<compile_context>
chip_gen: v7x
topology: tpu7x:2x2x1
jax: 0.10.0
libtpu: 0.0.40
codegen_flags: <defaults>
</compile_context>

<pallas_src>
import math
import numpy as np

import jax
import jax.numpy as jnp
from jax.experimental import pallas as pl
from jax.experimental.pallas import tpu as pltpu

# ---------------- model constants (from the torch module) ----------------
_DEFAULT_E_DIM = (32, 1)
_DEFAULT_V_DIM = (100, 16)
_NUM_RESIDUE_TYPES = 22
_EMBED_DIM = 32
NUM_RBF = 16

MAX_ROW_TILE = 256   # cap on rows (nodes / edges) per grid step
_EPS_NORM = 1e-8     # _norm_no_nan clamp
_EPS_LN = 1e-5       # nn.LayerNorm default eps

_PARALLEL = pltpu.CompilerParams(dimension_semantics=("parallel",))
_ARBITRARY = pltpu.CompilerParams(dimension_semantics=("arbitrary",))


def _round_up(x, m):
    return ((x + m - 1) // m) * m


def _pick_tile(n):
    """Row tile: multiple of 8 sublanes, at most MAX_ROW_TILE."""
    return min(MAX_ROW_TILE, _round_up(max(int(n), 1), 8))


# ---------------- in-kernel math helpers ----------------
def _mm(a, b):
    """MXU matmul: bf16 operands, f32 accumulation.  K == 1 contractions become a broadcasted
    outer product on the VPU (kept in f32) to avoid degenerate MXU shapes."""
    if b.shape[0] == 1:
        return a * b
    return jnp.dot(a.astype(jnp.bfloat16), b.astype(jnp.bfloat16),
                   preferred_element_type=jnp.float32)


def _sigmoid(x):
    # exp + approx reciprocal both land in the EUP slot.
    return pl.reciprocal(1.0 + jnp.exp(-x), approx=True)


def _ln_scalar(x, g, b):
    mu = jnp.mean(x, axis=-1, keepdims=True)
    var = jnp.mean((x - mu) ** 2, axis=-1, keepdims=True)
    return (x - mu) * jax.lax.rsqrt(var + _EPS_LN) * g + b


def _ln_sv(s, v3, g, b, T):
    """gvp.LayerNorm for (s, V).  v3: (3*T, nv), spatial components stacked on rows."""
    s_out = _ln_scalar(s, g, b)
    vx, vy, vz = v3[:T], v3[T:2 * T], v3[2 * T:]
    sq = jnp.maximum(vx * vx + vy * vy + vz * vz, _EPS_NORM)        # per-channel |v|^2 (clamped)
    inv = jax.lax.rsqrt(jnp.mean(sq, axis=-1, keepdims=True))       # 1 / rms over channels
    v_out = jnp.concatenate([vx * inv, vy * inv, vz * inv], axis=0)
    return s_out, v_out


def _gvp_core(s, v3, wh, ws, wvn, bs, relu, T, gate_params=None):
    """GVP with vector gating.  NOTE: vector_act is None in this model config, so the gate is
    computed from the pre-activation scalars s_pre (matches gvp-pytorch exactly for this config;
    with a vector_act it would use the activated scalars)."""
    vh = _mm(v3, wh)                                                 # (3T, h)
    hx, hy, hz = vh[:T], vh[T:2 * T], vh[2 * T:]
    vn = jnp.sqrt(jnp.maximum(hx * hx + hy * hy + hz * hz, _EPS_NORM))   # (T, h)
    s_pre = _mm(s, ws) + _mm(vn, wvn) + bs                           # (T, so)
    s_out = jnp.maximum(s_pre, 0.0) if relu else s_pre
    if gate_params is None:
        return s_out, None
    wv, wsv, bsv = gate_params
    gate = _sigmoid(_mm(s_pre, wsv) + bsv)                           # (T, vo)
    v_all = _mm(vh, wv)                                              # (3T, vo)
    v_out = jnp.concatenate([v_all[:T] * gate, v_all[T:2 * T] * gate,
                             v_all[2 * T:] * gate], axis=0)
    return s_out, v_out


def _load_v3(v_ref):
    """(3, T, nv) ref -> (3T, nv) value (components stacked on rows)."""
    return jnp.concatenate([v_ref[0], v_ref[1], v_ref[2]], axis=0)


def _store_v3(v_ref, v3, T):
    v_ref[0] = v3[:T]
    v_ref[1] = v3[T:2 * T]
    v_ref[2] = v3[2 * T:]


def _gvp_from_refs(s, v3, refs, relu, T, has_vec):
    wh, ws, wvn, bs = (r[...] for r in refs[:4])
    gate = tuple(r[...] for r in refs[4:7]) if has_vec else None
    return _gvp_core(s, v3, wh, ws, wvn, bs, relu=relu, T=T, gate_params=gate)


# ---------------- pallas_call plumbing helpers ----------------
def _full_spec(a):
    nd = a.ndim
    return pl.BlockSpec(a.shape, lambda i, _nd=nd: (0,) * _nd)


def _gvp_weight_arrays(p):
    out = [p['wh'], p['w_s'], p['w_vn'], p['b_s'].reshape(1, -1)]
    if 'w_v' in p:
        out += [p['w_v'], p['w_gate'], p['b_gate'].reshape(1, -1)]
    return out


# ---------------- kernels + wrappers ----------------
# 1) W_v: LayerNorm(32-scalar) + GVP((32,0)->(100,16)) == Linear(32->100); vectors start at zero.
def _wv_node_kernel(s_ref, g_ref, b_ref, w_ref, wb_ref, o_ref):
    x = _ln_scalar(s_ref[...], g_ref[...], b_ref[...])
    o_ref[...] = _mm(x, w_ref[...]) + wb_ref[...]


def wv_node(h_s, ln, lin, tile):
    Np, d = h_s.shape
    ns = lin['w'].shape[1]
    consts = [ln['g'].reshape(1, -1), ln['b'].reshape(1, -1), lin['w'], lin['b'].reshape(1, -1)]
    return pl.pallas_call(
        _wv_node_kernel,
        out_shape=jax.ShapeDtypeStruct((Np, ns), jnp.float32),
        grid=(Np // tile,),
        in_specs=[pl.BlockSpec((tile, d), lambda i: (i, 0))] + [_full_spec(c) for c in consts],
        out_specs=pl.BlockSpec((tile, ns), lambda i: (i, 0)),
        compiler_params=_PARALLEL,
    )(h_s, *consts)


# 2) W_e: LayerNorm((16,1)) + GVP((16,1)->(32,1), acts=(None,None), vector_gate) on edges.
def _we_edge_kernel(s_ref, v_ref, g_ref, b_ref, wh_ref, ws_ref, wvn_ref, bs_ref,
                    wv_ref, wsv_ref, bsv_ref, so_ref, vo_ref):
    T = s_ref.shape[0]
    s, v3 = _ln_sv(s_ref[...], _load_v3(v_ref), g_ref[...], b_ref[...], T)
    s_out, v_out = _gvp_core(s, v3, wh_ref[...], ws_ref[...], wvn_ref[...], bs_ref[...],
                             relu=False, T=T,
                             gate_params=(wv_ref[...], wsv_ref[...], bsv_ref[...]))
    so_ref[...] = s_out
    _store_v3(vo_ref, v_out, T)


def we_edge(e_s, e_v, ln, gvp_p, tile):
    Ep, ds = e_s.shape
    vi = e_v.shape[2]
    so = gvp_p['w_s'].shape[1]
    vo = gvp_p['w_v'].shape[1]
    consts = [ln['g'].reshape(1, -1), ln['b'].reshape(1, -1)] + _gvp_weight_arrays(gvp_p)
    return pl.pallas_call(
        _we_edge_kernel,
        out_shape=(jax.ShapeDtypeStruct((Ep, so), jnp.float32),
                   jax.ShapeDtypeStruct((3, Ep, vo), jnp.float32)),
        grid=(Ep // tile,),
        in_specs=[pl.BlockSpec((tile, ds), lambda i: (i, 0)),
                  pl.BlockSpec((3, tile, vi), lambda i: (0, i, 0))]
                 + [_full_spec(c) for c in consts],
        out_specs=(pl.BlockSpec((tile, so), lambda i: (i, 0)),
                   pl.BlockSpec((3, tile, vo), lambda i: (0, i, 0))),
        compiler_params=_PARALLEL,
    )(e_s, e_v, *consts)


# 3) GVPConv message function: 3 chained GVPs fused in one edge-tile kernel.
def _msg_kernel(ms_ref, mv_ref, *rest):
    refs = rest[:21]
    so_ref, vo_ref = rest[21], rest[22]
    T = ms_ref.shape[0]
    s = ms_ref[...]
    v3 = _load_v3(mv_ref)
    for k, relu in ((0, True), (1, True), (2, False)):
        s, v3 = _gvp_from_refs(s, v3, refs[7 * k:7 * (k + 1)], relu=relu, T=T, has_vec=True)
    so_ref[...] = s
    _store_v3(vo_ref, v3, T)


def conv_messages(m_s, m_v, lp, tile):
    Ep, si = m_s.shape
    vi = m_v.shape[2]
    ns, nv = _DEFAULT_V_DIM
    consts = (_gvp_weight_arrays(lp['msg0']) + _gvp_weight_arrays(lp['msg1'])
              + _gvp_weight_arrays(lp['msg2']))
    return pl.pallas_call(
        _msg_kernel,
        out_shape=(jax.ShapeDtypeStruct((Ep, ns), jnp.float32),
                   jax.ShapeDtypeStruct((3, Ep, nv), jnp.float32)),
        grid=(Ep // tile,),
        in_specs=[pl.BlockSpec((tile, si), lambda i: (i, 0)),
                  pl.BlockSpec((3, tile, vi), lambda i: (0, i, 0))]
                 + [_full_spec(c) for c in consts],
        out_specs=(pl.BlockSpec((tile, ns), lambda i: (i, 0)),
                   pl.BlockSpec((3, tile, nv), lambda i: (0, i, 0))),
        compiler_params=_PARALLEL,
    )(m_s, m_v, *consts)


# 4) Node update: mean-aggregation + residual + LN + feed-forward (2 GVPs) + residual + LN, fused.
def _node_update_kernel(agg_ref, ms_ref, mv_ref, hs_ref, hv_ref, *rest):
    refs = rest[:18]
    hs_out, hv_out = rest[18], rest[19]
    T = hs_ref.shape[0]
    agg = agg_ref[...]
    dh_s = _mm(agg, ms_ref[...])                                     # (T, ns)
    dh_v = jnp.concatenate([_mm(agg, mv_ref[0]), _mm(agg, mv_ref[1]), _mm(agg, mv_ref[2])],
                           axis=0)                                   # (3T, nv)
    x_s = hs_ref[...] + dh_s
    x_v = _load_v3(hv_ref) + dh_v
    x_s, x_v = _ln_sv(x_s, x_v, refs[0][...], refs[1][...], T)       # norm[0]
    f_s, f_v = _gvp_from_refs(x_s, x_v, refs[2:9], relu=True, T=T, has_vec=True)    # ff0
    f_s, f_v = _gvp_from_refs(f_s, f_v, refs[9:16], relu=False, T=T, has_vec=True)  # ff1
    y_s, y_v = _ln_sv(x_s + f_s, x_v + f_v, refs[16][...], refs[17][...], T)        # norm[1]
    hs_out[...] = y_s
    _store_v3(hv_out, y_v, T)


def node_update(agg, m_s, m_v, h_s, h_v, lp, tile):
    Np, ns = h_s.shape
    nv = h_v.shape[2]
    Ep = m_s.shape[0]
    consts = ([lp['ln0']['g'].reshape(1, -1), lp['ln0']['b'].reshape(1, -1)]
              + _gvp_weight_arrays(lp['ff0']) + _gvp_weight_arrays(lp['ff1'])
              + [lp['ln1']['g'].reshape(1, -1), lp['ln1']['b'].reshape(1, -1)])
    return pl.pallas_call(
        _node_update_kernel,
        out_shape=(jax.ShapeDtypeStruct((Np, ns), jnp.float32),
                   jax.ShapeDtypeStruct((3, Np, nv), jnp.float32)),
        grid=(Np // tile,),
        in_specs=[pl.BlockSpec((tile, Ep), lambda i: (i, 0)),
                  pl.BlockSpec((Ep, ns), lambda i: (0, 0)),
                  pl.BlockSpec((3, Ep, nv), lambda i: (0, 0, 0)),
                  pl.BlockSpec((tile, ns), lambda i: (i, 0)),
                  pl.BlockSpec((3, tile, nv), lambda i: (0, i, 0))]
                 + [_full_spec(c) for c in consts],
        out_specs=(pl.BlockSpec((tile, ns), lambda i: (i, 0)),
                   pl.BlockSpec((3, tile, nv), lambda i: (0, i, 0))),
        compiler_params=_PARALLEL,
    )(agg, m_s, m_v, h_s, h_v, *consts)


# 5) W_out (LayerNorm + GVP->(100,0)) + graph scatter_mean (pooling matmul, accumulated across
#    node tiles) + dense head (applied on the last grid step).  Node embeddings never hit HBM.
def _wout_pool_head_kernel(pool_ref, hs_ref, hv_ref, g_ref, b_ref,
                           wh_ref, ws_ref, wvn_ref, bs_ref,
                           w0_ref, b0_ref, w1_ref, b1_ref,
                           o_ref, acc_ref):
    T = hs_ref.shape[0]

    @pl.when(pl.program_id(0) == 0)
    def _():
        acc_ref[...] = jnp.zeros_like(acc_ref)

    s, v3 = _ln_sv(hs_ref[...], _load_v3(hv_ref), g_ref[...], b_ref[...], T)
    s_out, _ = _gvp_core(s, v3, wh_ref[...], ws_ref[...], wvn_ref[...], bs_ref[...],
                         relu=True, T=T, gate_params=None)           # W_out GVP (scalar only)
    acc_ref[...] += _mm(pool_ref[...], s_out)                        # partial graph means (G, ns)

    @pl.when(pl.program_id(0) == pl.num_programs(0) - 1)
    def _():
        y = jnp.maximum(_mm(acc_ref[...], w0_ref[...]) + b0_ref[...], 0.0)   # Linear + ReLU
        o_ref[...] = _mm(y, w1_ref[...]) + b1_ref[...]                       # Linear(200,1)


def wout_pool_head(pool, h_s, h_v, ln, gvp_p, d0, d1, tile):
    Gp, Np = pool.shape
    ns = h_s.shape[1]
    nv = h_v.shape[2]
    consts = ([ln['g'].reshape(1, -1), ln['b'].reshape(1, -1)]
              + _gvp_weight_arrays(gvp_p)
              + [d0['w'], d0['b'].reshape(1, -1), d1['w'], d1['b'].reshape(1, -1)])
    return pl.pallas_call(
        _wout_pool_head_kernel,
        out_shape=jax.ShapeDtypeStruct((Gp, 1), jnp.float32),
        grid=(Np // tile,),
        in_specs=[pl.BlockSpec((Gp, tile), lambda i: (0, i)),
                  pl.BlockSpec((tile, ns), lambda i: (i, 0)),
                  pl.BlockSpec((3, tile, nv), lambda i: (0, i, 0))]
                 + [_full_spec(c) for c in consts],
        out_specs=pl.BlockSpec((Gp, 1), lambda i: (0, 0)),
        scratch_shapes=[pltpu.VMEM((Gp, ns), jnp.float32)],
        compiler_params=_ARBITRARY,                                  # accumulator across grid axis
    )(pool, h_s, h_v, *consts)


# ---------------- parameter init (deterministic, synthetic) ----------------
def _uniform(key, shape, fan_in):
    bound = 1.0 / math.sqrt(float(fan_in))
    return jax.random.uniform(key, shape, jnp.float32, -bound, bound)


def init_gvp_params(key, si, vi, so, vo):
    h = max(vi, vo)                       # gvp.GVP: h_dim = max(vi, vo)
    ks = jax.random.split(key, 7)
    p = {'wh': _uniform(ks[0], (vi, h), vi),
         'w_s': _uniform(ks[1], (si, so), si + h),
         'w_vn': _uniform(ks[2], (h, so), si + h),
         'b_s': _uniform(ks[3], (so,), si + h)}
    if vo:
        p['w_v'] = _uniform(ks[4], (h, vo), h)
        p['w_gate'] = _uniform(ks[5], (so, vo), so)
        p['b_gate'] = _uniform(ks[6], (vo,), so)
    return p


def init_linear_params(key, din, dout):
    k1, k2 = jax.random.split(key)
    return {'w': _uniform(k1, (din, dout), din), 'b': _uniform(k2, (dout,), din)}


def init_model_params(key):
    ns, nv = _DEFAULT_V_DIM
    es, ev = _DEFAULT_E_DIM
    keys = jax.random.split(key, 8)
    params = {
        'embed': 0.1 * jax.random.normal(keys[0], (_NUM_RESIDUE_TYPES, _EMBED_DIM), jnp.float32),
        # W_v = LayerNorm(32-scalar) + GVP((32,0)->(100,16), acts=(None,None), gate)
        'Wv_ln': {'g': jnp.ones((_EMBED_DIM,), jnp.float32), 'b': jnp.zeros((_EMBED_DIM,), jnp.float32)},
        'Wv_lin': init_linear_params(keys[1], _EMBED_DIM, ns),
        # W_e = LayerNorm((16,1)) + GVP((16,1)->(32,1), acts=(None,None), gate)
        'We_ln': {'g': jnp.ones((NUM_RBF,), jnp.float32), 'b': jnp.zeros((NUM_RBF,), jnp.float32)},
        'We_gvp': init_gvp_params(keys[2], NUM_RBF, 1, es, ev),
        # W_out = LayerNorm((100,16)) + GVP((100,16)->(100,0), acts=(relu,None), gate)
        'Wout_ln': {'g': jnp.ones((ns,), jnp.float32), 'b': jnp.zeros((ns,), jnp.float32)},
        'Wout_gvp': init_gvp_params(keys[3], ns, nv, ns, 0),
        # dense head: Linear(100,200) + ReLU + Dropout(0.1) + Linear(200,1)
        'dense0': init_linear_params(keys[4], ns, 2 * ns),
        'dense1': init_linear_params(keys[5], 2 * ns, 1),
    }
    layers = []
    for lk in jax.random.split(keys[6], 5):
        k = jax.random.split(lk, 5)
        mi_s, mi_v = 2 * ns + es, 2 * nv + ev    # (232, 33)
        layers.append({
            'msg0': init_gvp_params(k[0], mi_s, mi_v, ns, nv),     # relu, gate
            'msg1': init_gvp_params(k[1], ns, nv, ns, nv),         # relu, gate
            'msg2': init_gvp_params(k[2], ns, nv, ns, nv),         # (None,None), gate
            'ln0': {'g': jnp.ones((ns,), jnp.float32), 'b': jnp.zeros((ns,), jnp.float32)},
            'ff0': init_gvp_params(k[3], ns, nv, 4 * ns, 2 * nv),  # relu, gate
            'ff1': init_gvp_params(k[4], 4 * ns, 2 * nv, ns, nv),  # (None,None), gate
            'ln1': {'g': jnp.ones((ns,), jnp.float32), 'b': jnp.zeros((ns,), jnp.float32)},
        })
    params['layers'] = layers
    return params


# ---------------- LBAModel forward (inference / eval mode) ----------------
def lba_model_forward(params, atoms, edge_s, edge_v, edge_index, batch_id, num_graphs):
    """LBAModel(plm=False).forward(batch) -> (num_graphs,) scalars.  Dropout layers = identity."""
    ns, nv = _DEFAULT_V_DIM
    N = atoms.shape[0]
    E = edge_s.shape[0]
    tile_n = _pick_tile(N)
    tile_e = _pick_tile(E)
    Np = _round_up(N, tile_n)
    Ep = _round_up(E, tile_e)
    Gp = _round_up(num_graphs, 8)

    # node embedding (gather = glue) + W_v
    h_s0 = jnp.take(params['embed'], atoms, axis=0)                          # (N, 32)
    h_s0 = jnp.pad(h_s0, ((0, Np - N), (0, 0)))
    h_s = wv_node(h_s0, params['Wv_ln'], params['Wv_lin'], tile_n)           # (Np, 100)
    h_v = jnp.zeros((3, Np, nv), jnp.float32)      # GVP with no vector input -> zero vectors

    # W_e on edges; edge_v torch layout (E,1,3) -> component-major (3, E, 1)
    e_s0 = jnp.pad(edge_s, ((0, Ep - E), (0, 0)))
    e_v0 = jnp.pad(jnp.transpose(edge_v, (2, 0, 1)), ((0, 0), (0, Ep - E), (0, 0)))
    e_s, e_v = we_edge(e_s0, e_v0, params['We_ln'], params['We_gvp'], tile_e)  # (Ep,32),(3,Ep,1)

    src = jnp.pad(edge_index[0], (0, Ep - E))      # padded edges gather node 0; never aggregated
    dst = jnp.pad(edge_index[1], (0, Ep - E))

    # scatter_mean over destination nodes expressed as a dense (N, E) mean matrix.
    # TODO(synk): replace with a PrefetchScalarGridSpec-indexed segment-sum for large graphs.
    onehot = (edge_index[1][None, :] == jnp.arange(N)[:, None]).astype(jnp.float32)
    agg = onehot / jnp.maximum(jnp.sum(onehot, axis=1, keepdims=True), 1.0)
    agg = jnp.pad(agg, ((0, Np - N), (0, Ep - E)))                            # (Np, Ep)

    for lp in params['layers']:
        # message inputs: tuple_cat((s_j, v_j), edge_attr, (s_i, v_i)); j = src, i = dst
        m_s = jnp.concatenate([jnp.take(h_s, src, axis=0), e_s,
                               jnp.take(h_s, dst, axis=0)], axis=-1)          # (Ep, 232)
        m_v = jnp.concatenate([jnp.take(h_v, src, axis=1), e_v,
                               jnp.take(h_v, dst, axis=1)], axis=-1)          # (3, Ep, 33)
        m_s, m_v = conv_messages(m_s, m_v, lp, tile_e)                        # fused 3-GVP message
        h_s, h_v = node_update(agg, m_s, m_v, h_s, h_v, lp, tile_n)           # fused agg+LN+FF+LN

    # W_out + graph-level scatter_mean(batch_id) + dense head, fused in one accumulating kernel
    pool_oh = (batch_id[None, :] == jnp.arange(num_graphs)[:, None]).astype(jnp.float32)  # (G, N)
    pool = pool_oh / jnp.maximum(jnp.sum(pool_oh, axis=1, keepdims=True), 1.0)
    pool = jnp.pad(pool, ((0, Gp - num_graphs), (0, Np - N)))                 # (Gp, Np)
    out = wout_pool_head(pool, h_s, h_v, params['Wout_ln'], params['Wout_gvp'],
                         params['dense0'], params['dense1'], tile_n)          # (Gp, 1)
    return out[:num_graphs, 0]                                                # squeeze(-1)


if __name__ == "__main__":
    key = jax.random.PRNGKey(0)
    kp, ka, ke, kv = jax.random.split(key, 4)

    N = 16                  # residues (nodes), 2 graphs of 8
    K_NEIGH = 4
    E = N * K_NEIGH         # 64 edges
    NUM_GRAPHS = 2

    params = init_model_params(kp)
    atoms = jax.random.randint(ka, (N,), 0, _NUM_RESIDUE_TYPES)               # residue types
    edge_s = jax.random.normal(ke, (E, NUM_RBF), jnp.float32)                 # RBF edge scalars
    edge_v = jax.random.normal(kv, (E, 1, 3), jnp.float32)                    # edge unit vectors

    # simple ring k-NN graph: each node receives edges from offsets {-2,-1,+1,+2}
    dst_np = np.repeat(np.arange(N), K_NEIGH)
    offs = np.tile(np.array([-2, -1, 1, 2]), N)
    src_np = (dst_np + offs) % N
    edge_index = jnp.asarray(np.stack([src_np, dst_np]), dtype=jnp.int32)     # (2, E)
    batch_id = jnp.asarray(np.repeat(np.arange(NUM_GRAPHS), N // NUM_GRAPHS), dtype=jnp.int32)

    fwd = jax.jit(lba_model_forward, static_argnames=("num_graphs",))
    out = fwd(params, atoms, edge_s, edge_v, edge_index, batch_id, num_graphs=NUM_GRAPHS)
    out = jax.block_until_ready(out)

    assert out.shape == (NUM_GRAPHS,), out.shape
    assert bool(jnp.all(jnp.isfinite(out)))
    print("KERNEL_OK")
</pallas_src>

<mosaic_0001>
module attributes {stable_mosaic.version = 11 : i64} {
  func.func @_wv_node_kernel(%arg0: i32, %arg1: memref<16x32xf32, #tpu.memory_space<vmem>>, %arg2: memref<1x32xf32, #tpu.memory_space<vmem>>, %arg3: memref<1x32xf32, #tpu.memory_space<vmem>>, %arg4: memref<32x100xf32, #tpu.memory_space<vmem>>, %arg5: memref<1x100xf32, #tpu.memory_space<vmem>>, %arg6: memref<16x100xf32, #tpu.memory_space<vmem>>) attributes {dimension_semantics = [#tpu.dimension_semantics<parallel>], iteration_bounds = array<i64: 1>, scalar_prefetch = 0 : i64, scratch_operands = 0 : i64, tpu.core_type = #tpu.core_type<tc>, window_params = [{transform_indices = @transform_0, window_bounds = array<i64: 16, 32>}, {pipeline_mode = #tpu.pipeline_mode<synchronous>, transform_indices = @transform_1, window_bounds = array<i64: 1, 32>}, {pipeline_mode = #tpu.pipeline_mode<synchronous>, transform_indices = @transform_2, window_bounds = array<i64: 1, 32>}, {pipeline_mode = #tpu.pipeline_mode<synchronous>, transform_indices = @transform_3, window_bounds = array<i64: 32, 100>}, {pipeline_mode = #tpu.pipeline_mode<synchronous>, transform_indices = @transform_4, window_bounds = array<i64: 1, 100>}, {transform_indices = @transform_5, window_bounds = array<i64: 16, 100>}]} {
    %c0 = arith.constant 0 : index
    %c0_0 = arith.constant 0 : index
    %0 = vector.load %arg1[%c0, %c0_0] : memref<16x32xf32, #tpu.memory_space<vmem>>, vector<16x32xf32>
    %c0_1 = arith.constant 0 : index
    %c0_2 = arith.constant 0 : index
    %1 = vector.load %arg2[%c0_1, %c0_2] : memref<1x32xf32, #tpu.memory_space<vmem>>, vector<1x32xf32>
    %c0_3 = arith.constant 0 : index
    %c0_4 = arith.constant 0 : index
    %2 = vector.load %arg3[%c0_3, %c0_4] : memref<1x32xf32, #tpu.memory_space<vmem>>, vector<1x32xf32>
    %cst = arith.constant dense<0.000000e+00> : vector<16xf32>
    %3 = vector.multi_reduction <add>, %0, %cst [1] : vector<16x32xf32> to vector<16xf32>
    %4 = vector.shape_cast %3 : vector<16xf32> to vector<16x1xf32>
    %cst_5 = arith.constant 3.200000e+01 : f32
    %5 = vector.broadcast %cst_5 : f32 to vector<16x1xf32>
    %6 = arith.divf %4, %5 : vector<16x1xf32>
    %7 = vector.broadcast %6 : vector<16x1xf32> to vector<16x32xf32>
    %8 = arith.subf %0, %7 : vector<16x32xf32>
    %9 = arith.mulf %8, %8 : vector<16x32xf32>
    %cst_6 = arith.constant dense<0.000000e+00> : vector<16xf32>
    %10 = vector.multi_reduction <add>, %9, %cst_6 [1] : vector<16x32xf32> to vector<16xf32>
    %11 = vector.shape_cast %10 : vector<16xf32> to vector<16x1xf32>
    %cst_7 = arith.constant 3.200000e+01 : f32
    %12 = vector.broadcast %cst_7 : f32 to vector<16x1xf32>
    %13 = arith.divf %11, %12 : vector<16x1xf32>
    %14 = vector.broadcast %6 : vector<16x1xf32> to vector<16x32xf32>
    %15 = arith.subf %0, %14 : vector<16x32xf32>
    %cst_8 = arith.constant 9.99999974E-6 : f32
    %16 = vector.broadcast %cst_8 : f32 to vector<16x1xf32>
    %17 = arith.addf %13, %16 : vector<16x1xf32>
    %18 = math.rsqrt %17 : vector<16x1xf32>
    %19 = vector.broadcast %18 : vector<16x1xf32> to vector<16x32xf32>
    %20 = arith.mulf %15, %19 : vector<16x32xf32>
    %21 = vector.broadcast %1 : vector<1x32xf32> to vector<16x32xf32>
    %22 = arith.mulf %20, %21 : vector<16x32xf32>
    %23 = vector.broadcast %2 : vector<1x32xf32> to vector<16x32xf32>
    %24 = arith.addf %22, %23 : vector<16x32xf32>
    %c0_9 = arith.constant 0 : index
    %c0_10 = arith.constant 0 : index
    %25 = vector.load %arg4[%c0_9, %c0_10] : memref<32x100xf32, #tpu.memory_space<vmem>>, vector<32x100xf32>
    %26 = arith.truncf %24 : vector<16x32xf32> to vector<16x32xbf16>
    %27 = arith.truncf %25 : vector<32x100xf32> to vector<32x100xbf16>
    %cst_11 = arith.constant dense<0.000000e+00> : vector<16x100xf32>
    %28 = tpu.matmul %26, %27, %cst_11 {dimension_numbers = #tpu.dot_dimension_numbers<[1], [0], [0], [1], [0, 0, 1, 1], [], []>} : vector<16x32xbf16>, vector<32x100xbf16>, vector<16x100xf32> -> vector<16x100xf32>
    %c0_12 = arith.constant 0 : index
    %c0_13 = arith.constant 0 : index
    %29 = vector.load %arg5[%c0_12, %c0_13] : memref<1x100xf32, #tpu.memory_space<vmem>>, vector<1x100xf32>
    %30 = vector.broadcast %29 : vector<1x100xf32> to vector<16x100xf32>
    %31 = arith.addf %28, %30 : vector<16x100xf32>
    %c0_14 = arith.constant 0 : index
    %c0_15 = arith.constant 0 : index
    %32 = vector.load %arg6[%c0_14, %c0_15] : memref<16x100xf32, #tpu.memory_space<vmem>>, vector<16x100xf32>
    tpu.vector_store %arg6[%c0_14, %c0_15], %31 {strides = array<i32>} : memref<16x100xf32, #tpu.memory_space<vmem>>, vector<16x100xf32>,
    return
  }
  func.func @transform_0(%arg0: i32) -> (i32, i32) {
    %c0_i32 = arith.constant 0 : i32
    %c0_i32_0 = arith.constant 0 : i32
    return %arg0, %c0_i32 : i32, i32
  }
  func.func @transform_1(%arg0: i32) -> (i32, i32) {
    %c0_i32 = arith.constant 0 : i32
    %c0_i32_0 = arith.constant 0 : i32
    %c0_i32_1 = arith.constant 0 : i32
    return %c0_i32, %c0_i32_0 : i32, i32
  }
  func.func @transform_2(%arg0: i32) -> (i32, i32) {
    %c0_i32 = arith.constant 0 : i32
    %c0_i32_0 = arith.constant 0 : i32
    %c0_i32_1 = arith.constant 0 : i32
    return %c0_i32, %c0_i32_0 : i32, i32
  }
  func.func @transform_3(%arg0: i32) -> (i32, i32) {
    %c0_i32 = arith.constant 0 : i32
    %c0_i32_0 = arith.constant 0 : i32
    %c0_i32_1 = arith.constant 0 : i32
    return %c0_i32, %c0_i32_0 : i32, i32
  }
  func.func @transform_4(%arg0: i32) -> (i32, i32) {
    %c0_i32 = arith.constant 0 : i32
    %c0_i32_0 = arith.constant 0 : i32
    %c0_i32_1 = arith.constant 0 : i32
    return %c0_i32, %c0_i32_0 : i32, i32
  }
  func.func @transform_5(%arg0: i32) -> (i32, i32) {
    %c0_i32 = arith.constant 0 : i32
    %c0_i32_0 = arith.constant 0 : i32
    return %arg0, %c0_i32 : i32, i32
  }
}

module attributes {stable_mosaic.version = 11 : i64} {
  func.func @_we_edge_kernel(%arg0: i32, %arg1: memref<64x16xf32, #tpu.memory_space<vmem>>, %arg2: memref<3x64x1xf32, #tpu.memory_space<vmem>>, %arg3: memref<1x16xf32, #tpu.memory_space<vmem>>, %arg4: memref<1x16xf32, #tpu.memory_space<vmem>>, %arg5: memref<1x1xf32, #tpu.memory_space<vmem>>, %arg6: memref<16x32xf32, #tpu.memory_space<vmem>>, %arg7: memref<1x32xf32, #tpu.memory_space<vmem>>, %arg8: memref<1x32xf32, #tpu.memory_space<vmem>>, %arg9: memref<1x1xf32, #tpu.memory_space<vmem>>, %arg10: memref<32x1xf32, #tpu.memory_space<vmem>>, %arg11: memref<1x1xf32, #tpu.memory_space<vmem>>, %arg12: memref<64x32xf32, #tpu.memory_space<vmem>>, %arg13: memref<3x64x1xf32, #tpu.memory_space<vmem>>) attributes {dimension_semantics = [#tpu.dimension_semantics<parallel>], iteration_bounds = array<i64: 1>, scalar_prefetch = 0 : i64, scratch_operands = 0 : i64, tpu.core_type = #tpu.core_type<tc>, window_params = [{transform_indices = @transform_0, window_bounds = array<i64: 64, 16>}, {transform_indices = @transform_1, window_bounds = array<i64: 3, 64, 1>}, {pipeline_mode = #tpu.pipeline_mode<synchronous>, transform_indices = @transform_2, window_bounds = array<i64: 1, 16>}, {pipeline_mode = #tpu.pipeline_mode<synchronous>, transform_indices = @transform_3, window_bounds = array<i64: 1, 16>}, {pipeline_mode = #tpu.pipeline_mode<synchronous>, transform_indices = @transform_4, window_bounds = array<i64: 1, 1>}, {pipeline_mode = #tpu.pipeline_mode<synchronous>, transform_indices = @transform_5, window_bounds = array<i64: 16, 32>}, {pipeline_mode = #tpu.pipeline_mode<synchronous>, transform_indices = @transform_6, window_bounds = array<i64: 1, 32>}, {pipeline_mode = #tpu.pipeline_mode<synchronous>, transform_indices = @transform_7, window_bounds = array<i64: 1, 32>}, {pipeline_mode = #tpu.pipeline_mode<synchronous>, transform_indices = @transform_8, window_bounds = array<i64: 1, 1>}, {pipeline_mode = #tpu.pipeline_mode<synchronous>, transform_indices = @transform_9, window_bounds = array<i64: 32, 1>}, {pipeline_mode = #tpu.pipeline_mode<synchronous>, transform_indices = @transform_10, window_bounds = array<i64: 1, 1>}, {transform_indices = @transform_11, window_bounds = array<i64: 64, 32>}, {transform_indices = @transform_12, window_bounds = array<i64: 3, 64, 1>}]} {
    %c0 = arith.constant 0 : index
    %c0_0 = arith.constant 0 : index
    %0 = vector.load %arg1[%c0, %c0_0] : memref<64x16xf32, #tpu.memory_space<vmem>>, vector<64x16xf32>
    %c0_1 = arith.constant 0 : index
    %c0_2 = arith.constant 0 : index
    %c0_3 = arith.constant 0 : index
    %1 = vector.load %arg2[%c0_1, %c0_2, %c0_3] : memref<3x64x1xf32, #tpu.memory_space<vmem>>, vector<1x64x1xf32>
    %2 = vector.shape_cast %1 : vector<1x64x1xf32> to vector<64x1xf32>
    %c1 = arith.constant 1 : index
    %c0_4 = arith.constant 0 : index
    %c0_5 = arith.constant 0 : index
    %3 = vector.load %arg2[%c1, %c0_4, %c0_5] : memref<3x64x1xf32, #tpu.memory_space<vmem>>, vector<1x64x1xf32>
    %4 = vector.shape_cast %3 : vector<1x64x1xf32> to vector<64x1xf32>
    %c2 = arith.constant 2 : index
    %c0_6 = arith.constant 0 : index
    %c0_7 = arith.constant 0 : index
    %5 = vector.load %arg2[%c2, %c0_6, %c0_7] : memref<3x64x1xf32, #tpu.memory_space<vmem>>, vector<1x64x1xf32>
    %6 = vector.shape_cast %5 : vector<1x64x1xf32> to vector<64x1xf32>
    %7 = tpu.concatenate %2, %4, %6 in 0 : vector<64x1xf32>, vector<64x1xf32>, vector<64x1xf32> -> vector<192x1xf32>
    %c0_8 = arith.constant 0 : index
    %c0_9 = arith.constant 0 : index
    %8 = vector.load %arg3[%c0_8, %c0_9] : memref<1x16xf32, #tpu.memory_space<vmem>>, vector<1x16xf32>
    %c0_10 = arith.constant 0 : index
    %c0_11 = arith.constant 0 : index
    %9 = vector.load %arg4[%c0_10, %c0_11] : memref<1x16xf32, #tpu.memory_space<vmem>>, vector<1x16xf32>
    %cst = arith.constant dense<0.000000e+00> : vector<64xf32>
    %10 = vector.multi_reduction <add>, %0, %cst [1] : vector<64x16xf32> to vector<64xf32>
    %11 = vector.shape_cast %10 : vector<64xf32> to vector<64x1xf32>
    %cst_12 = arith.constant 1.600000e+01 : f32
    %12 = vector.broadcast %cst_12 : f32 to vector<64x1xf32>
    %13 = arith.divf %11, %12 : vector<64x1xf32>
    %14 = vector.broadcast %13 : vector<64x1xf32> to vector<64x16xf32>
    %15 = arith.subf %0, %14 : vector<64x16xf32>
    %16 = arith.mulf %15, %15 : vector<64x16xf32>
    %cst_13 = arith.constant dense<0.000000e+00> : vector<64xf32>
    %17 = vector.multi_reduction <add>, %16, %cst_13 [1] : vector<64x16xf32> to vector<64xf32>
    %18 = vector.shape_cast %17 : vector<64xf32> to vector<64x1xf32>
    %cst_14 = arith.constant 1.600000e+01 : f32
    %19 = vector.broadcast %cst_14 : f32 to vector<64x1xf32>
    %20 = arith.divf %18, %19 : vector<64x1xf32>
    %21 = vector.broadcast %13 : vector<64x1xf32> to vector<64x16xf32>
    %22 = arith.subf %0, %21 : vector<64x16xf32>
    %cst_15 = arith.constant 9.99999974E-6 : f32
    %23 = vector.broadcast %cst_15 : f32 to vector<64x1xf32>
    %24 = arith.addf %20, %23 : vector<64x1xf32>
    %25 = math.rsqrt %24 : vector<64x1xf32>
    %26 = vector.broadcast %25 : vector<64x1xf32> to vector<64x16xf32>
    %27 = arith.mulf %22, %26 : vector<64x16xf32>
    %28 = vector.broadcast %8 : vector<1x16xf32> to vector<64x16xf32>
    %29 = arith.mulf %27, %28 : vector<64x16xf32>
    %30 = vector.broadcast %9 : vector<1x16xf32> to vector<64x16xf32>
    %31 = arith.addf %29, %30 : vector<64x16xf32>
    %32 = vector.extract_strided_slice %7 {offsets = [0, 0], sizes = [64, 1], strides = [1, 1]} : vector<192x1xf32> to vector<64x1xf32>
    %33 = vector.extract_strided_slice %7 {offsets = [64, 0], sizes = [64, 1], strides = [1, 1]} : vector<192x1xf32> to vector<64x1xf32>
    %34 = vector.extract_strided_slice %7 {offsets = [128, 0], sizes = [64, 1], strides = [1, 1]} : vector<192x1xf32> to vector<64x1xf32>
    %35 = arith.mulf %32, %32 : vector<64x1xf32>
    %36 = arith.mulf %33, %33 : vector<64x1xf32>
    %37 = arith.addf %35, %36 : vector<64x1xf32>
    %38 = arith.mulf %34, %34 : vector<64x1xf32>
    %39 = arith.addf %37, %38 : vector<64x1xf32>
    %cst_16 = arith.constant 9.99999993E-9 : f32
    %40 = vector.broadcast %cst_16 : f32 to vector<64x1xf32>
    %41 = arith.maximumf %39, %40 : vector<64x1xf32>
    %cst_17 = arith.constant dense<0.000000e+00> : vector<64xf32>
    %42 = vector.multi_reduction <add>, %41, %cst_17 [1] : vector<64x1xf32> to vector<64xf32>
    %43 = vector.shape_cast %42 : vector<64xf32> to vector<64x1xf32>
    %cst_18 = arith.constant 1.000000e+00 : f32
    %44 = vector.broadcast %cst_18 : f32 to vector<64x1xf32>
    %45 = arith.divf %43, %44 : vector<64x1xf32>
    %46 = math.rsqrt %45 : vector<64x1xf32>
    %47 = arith.mulf %32, %46 : vector<64x1xf32>
    %48 = arith.mulf %33, %46 : vector<64x1xf32>
    %49 = arith.mulf %34, %46 : vector<64x1xf32>
    %50 = tpu.concatenate %47, %48, %49 in 0 : vector<64x1xf32>, vector<64x1xf32>, vector<64x1xf32> -> vector<192x1xf32>
    %c0_19 = arith.constant 0 : index
    %c0_20 = arith.constant 0 : index
    %51 = vector.load %arg5[%c0_19, %c0_20] : memref<1x1xf32, #tpu.memory_space<vmem>>, vector<1x1xf32>
    %c0_21 = arith.constant 0 : index
    %c0_22 = arith.constant 0 : index
    %52 = vector.load %arg6[%c0_21, %c0_22] : memref<16x32xf32, #tpu.memory_space<vmem>>, vector<16x32xf32>
    %c0_23 = arith.constant 0 : index
    %c0_24 = arith.constant 0 : index
    %53 = vector.load %arg7[%c0_23, %c0_24] : memref<1x32xf32, #tpu.memory_space<vmem>>, vector<1x32xf32>
    %c0_25 = arith.constant 0 : index
    %c0_26 = arith.constant 0 : index
    %54 = vector.load %arg8[%c0_25, %c0_26] : memref<1x32xf32, #tpu.memory_space<vmem>>, vector<1x32xf32>
    %c0_27 = arith.constant 0 : index
    %c0_28 = arith.constant 0 : index
    %55 = vector.load %arg9[%c0_27, %c0_28] : memref<1x1xf32, #tpu.memory_space<vmem>>, vector<1x1xf32>
    %c0_29 = arith.constant 0 : index
    %c0_30 = arith.constant 0 : index
    %56 = vector.load %arg10[%c0_29, %c0_30] : memref<32x1xf32, #tpu.memory_space<vmem>>, vector<32x1xf32>
    %c0_31 = arith.constant 0 : index
    %c0_32 = arith.constant 0 : index
    %57 = vector.load %arg11[%c0_31, %c0_32] : memref<1x1xf32, #tpu.memory_space<vmem>>, vector<1x1xf32>
    %58 = vector.broadcast %51 : vector<1x1xf32> to vector<192x1xf32>
    %59 = arith.mulf %50, %58 : vector<192x1xf32>
    %60 = vector.extract_strided_slice %59 {offsets = [0, 0], sizes = [64, 1], strides = [1, 1]} : vector<192x1xf32> to vector<64x1xf32>
    %61 = vector.extract_strided_slice %59 {offsets = [64, 0], sizes = [64, 1], strides = [1, 1]} : vector<192x1xf32> to vector<64x1xf32>
    %62 = vector.extract_strided_slice %59 {offsets = [128, 0], sizes = [64, 1], strides = [1, 1]} : vector<192x1xf32> to vector<64x1xf32>
    %63 = arith.mulf %60, %60 : vector<64x1xf32>
    %64 = arith.mulf %61, %61 : vector<64x1xf32>
    %65 = arith.addf %63, %64 : vector<64x1xf32>
    %66 = arith.mulf %62, %62 : vector<64x1xf32>
    %67 = arith.addf %65, %66 : vector<64x1xf32>
    %cst_33 = arith.constant 9.99999993E-9 : f32
    %68 = vector.broadcast %cst_33 : f32 to vector<64x1xf32>
    %69 = arith.maximumf %67, %68 : vector<64x1xf32>
    %70 = math.sqrt %69 : vector<64x1xf32>
    %71 = arith.truncf %31 : vector<64x16xf32> to vector<64x16xbf16>
    %72 = arith.truncf %52 : vector<16x32xf32> to vector<16x32xbf16>
    %cst_34 = arith.constant dense<0.000000e+00> : vector<64x32xf32>
    %73 = tpu.matmul %71, %72, %cst_34 {dimension_numbers = #tpu.dot_dimension_numbers<[1], [0], [0], [1], [0, 0, 1, 1], [], []>} : vector<64x16xbf16>, vector<16x32xbf16>, vector<64x32xf32> -> vector<64x32xf32>
    %74 = vector.broadcast %70 : vector<64x1xf32> to vector<64x32xf32>
    %75 = vector.broadcast %53 : vector<1x32xf32> to vector<64x32xf32>
    %76 = arith.mulf %74, %75 : vector<64x32xf32>
    %77 = arith.addf %73, %76 : vector<64x32xf32>
    %78 = vector.broadcast %54 : vector<1x32xf32> to vector<64x32xf32>
    %79 = arith.addf %77, %78 : vector<64x32xf32>
    %80 = arith.truncf %79 : vector<64x32xf32> to vector<64x32xbf16>
    %81 = arith.truncf %56 : vector<32x1xf32> to vector<32x1xbf16>
    %cst_35 = arith.constant dense<0.000000e+00> : vector<64x1xf32>
    %82 = tpu.matmul %80, %81, %cst_35 {dimension_numbers = #tpu.dot_dimension_numbers<[1], [0], [0], [1], [0, 0, 1, 1], [], []>} : vector<64x32xbf16>, vector<32x1xbf16>, vector<64x1xf32> -> vector<64x1xf32>
    %83 = vector.broadcast %57 : vector<1x1xf32> to vector<64x1xf32>
    %84 = arith.addf %82, %83 : vector<64x1xf32>
    %cst_36 = arith.constant 0.000000e+00 : f32
    %85 = vector.broadcast %cst_36 : f32 to vector<64x1xf32>
    %86 = arith.subf %85, %84 : vector<64x1xf32>
    %87 = math.exp %86 : vector<64x1xf32>
    %cst_37 = arith.constant 1.000000e+00 : f32
    %88 = vector.broadcast %cst_37 : f32 to vector<64x1xf32>
    %89 = arith.addf %88, %87 : vector<64x1xf32>
    %90 = tpu.reciprocal %89 {approx = true} : vector<64x1xf32> -> vector<64x1xf32>
    %91 = vector.broadcast %55 : vector<1x1xf32> to vector<192x1xf32>
    %92 = arith.mulf %59, %91 : vector<192x1xf32>
    %93 = vector.extract_strided_slice %92 {offsets = [0, 0], sizes = [64, 1], strides = [1, 1]} : vector<192x1xf32> to vector<64x1xf32>
    %94 = arith.mulf %93, %90 : vector<64x1xf32>
    %95 = vector.extract_strided_slice %92 {offsets = [64, 0], sizes = [64, 1], strides = [1, 1]} : vector<192x1xf32> to vector<64x1xf32>
    %96 = arith.mulf %95, %90 : vector<64x1xf32>
    %97 = vector.extract_strided_slice %92 {offsets = [128, 0], sizes = [64, 1], strides = [1, 1]} : vector<192x1xf32> to vector<64x1xf32>
    %98 = arith.mulf %97, %90 : vector<64x1xf32>
    %99 = tpu.concatenate %94, %96, %98 in 0 : vector<64x1xf32>, vector<64x1xf32>, vector<64x1xf32> -> vector<192x1xf32>
    %c0_38 = arith.constant 0 : index
    %c0_39 = arith.constant 0 : index
    %100 = vector.load %arg12[%c0_38, %c0_39] : memref<64x32xf32, #tpu.memory_space<vmem>>, vector<64x32xf32>
    tpu.vector_store %arg12[%c0_38, %c0_39], %79 {strides = array<i32>} : memref<64x32xf32, #tpu.memory_space<vmem>>, vector<64x32xf32>,
    %101 = vector.extract_strided_slice %99 {offsets = [0, 0], sizes = [64, 1], strides = [1, 1]} : vector<192x1xf32> to vector<64x1xf32>
    %c0_40 = arith.constant 0 : index
    %c0_41 = arith.constant 0 : index
    %c0_42 = arith.constant 0 : index
    %102 = vector.load %arg13[%c0_40, %c0_41, %c0_42] : memref<3x64x1xf32, #tpu.memory_space<vmem>>, vector<1x64x1xf32>
    %103 = vector.shape_cast %102 : vector<1x64x1xf32> to vector<64x1xf32>
    %104 = vector.shape_cast %101 : vector<64x1xf32> to vector<1x64x1xf32>
    tpu.vector_store %arg13[%c0_40, %c0_41, %c0_42], %104 {strides = array<i32>} : memref<3x64x1xf32, #tpu.memory_space<vmem>>, vector<1x64x1xf32>,
    %105 = vector.extract_strided_slice %99 {offsets = [64, 0], sizes = [64, 1], strides = [1, 1]} : vector<192x1xf32> to vector<64x1xf32>
    %c1_43 = arith.constant 1 : index
    %c0_44 = arith.constant 0 : index
    %c0_45 = arith.constant 0 : index
    %106 = vector.load %arg13[%c1_43, %c0_44, %c0_45] : memref<3x64x1xf32, #tpu.memory_space<vmem>>, vector<1x64x1xf32>
    %107 = vector.shape_cast %106 : vector<1x64x1xf32> to vector<64x1xf32>
    %108 = vector.shape_cast %105 : vector<64x1xf32> to vector<1x64x1xf32>
    tpu.vector_store %arg13[%c1_43, %c0_44, %c0_45], %108 {strides = array<i32>} : memref<3x64x1xf32, #tpu.memory_space<vmem>>, vector<1x64x1xf32>,
    %109 = vector.extract_strided_slice %99 {offsets = [128, 0], sizes = [64, 1], strides = [1, 1]} : vector<192x1xf32> to vector<64x1xf32>
    %c2_46 = arith.constant 2 : index
    %c0_47 = arith.constant 0 : index
    %c0_48 = arith.constant 0 : index
    %110 = vector.load %arg13[%c2_46, %c0_47, %c0_48] : memref<3x64x1xf32, #tpu.memory_space<vmem>>, vector<1x64x1xf32>
    %111 = vector.shape_cast %110 : vector<1x64x1xf32> to vector<64x1xf32>
    %112 = vector.shape_cast %109 : vector<64x1xf32> to vector<1x64x1xf32>
    tpu.vector_store %arg13[%c2_46, %c0_47, %c0_48], %112 {strides = array<i32>} : memref<3x64x1xf32, #tpu.memory_space<vmem>>, vector<1x64x1xf32>,
    return
  }
  func.func @transform_0(%arg0: i32) -> (i32, i32) {
    %c0_i32 = arith.constant 0 : i32
    %c0_i32_0 = arith.constant 0 : i32
    return %arg0, %c0_i32 : i32, i32
  }
  func.func @transform_1(%arg0: i32) -> (i32, i32, i32) {
    %c0_i32 = arith.constant 0 : i32
    %c0_i32_0 = arith.constant 0 : i32
    %c0_i32_1 = arith.constant 0 : i32
    return %c0_i32, %arg0, %c0_i32_0 : i32, i32, i32
  }
  func.func @transform_2(%arg0: i32) -> (i32, i32) {
    %c0_i32 = arith.constant 0 : i32
    %c0_i32_0 = arith.constant 0 : i32
    %c0_i32_1 = arith.constant 0 : i32
    return %c0_i32, %c0_i32_0 : i32, i32
  }
  func.func @transform_3(%arg0: i32) -> (i32, i32) {
    %c0_i32 = arith.constant 0 : i32
    %c0_i32_0 = arith.constant 0 : i32
    %c0_i32_1 = arith.constant 0 : i32
    return %c0_i32, %c0_i32_0 : i32, i32
  }
  func.func @transform_4(%arg0: i32) -> (i32, i32) {
    %c0_i32 = arith.constant 0 : i32
    %c0_i32_0 = arith.constant 0 : i32
    %c0_i32_1 = arith.constant 0 : i32
    return %c0_i32, %c0_i32_0 : i32, i32
  }
  func.func @transform_5(%arg0: i32) -> (i32, i32) {
    %c0_i32 = arith.constant 0 : i32
    %c0_i32_0 = arith.constant 0 : i32
    %c0_i32_1 = arith.constant 0 : i32
    return %c0_i32, %c0_i32_0 : i32, i32
  }
  func.func @transform_6(%arg0: i32) -> (i32, i32) {
    %c0_i32 = arith.constant 0 : i32
    %c0_i32_0 = arith.constant 0 : i32
    %c0_i32_1 = arith.constant 0 : i32
    return %c0_i32, %c0_i32_0 : i32, i32
  }
  func.func @transform_7(%arg0: i32) -> (i32, i32) {
    %c0_i32 = arith.constant 0 : i32
    %c0_i32_0 = arith.constant 0 : i32
    %c0_i32_1 = arith.constant 0 : i32
    return %c0_i32, %c0_i32_0 : i32, i32
  }
  func.func @transform_8(%arg0: i32) -> (i32, i32) {
    %c0_i32 = arith.constant 0 : i32
    %c0_i32_0 = arith.constant 0 : i32
    %c0_i32_1 = arith.constant 0 : i32
    return %c0_i32, %c0_i32_0 : i32, i32
  }
  func.func @transform_9(%arg0: i32) -> (i32, i32) {
    %c0_i32 = arith.constant 0 : i32
    %c0_i32_0 = arith.constant 0 : i32
    %c0_i32_1 = arith.constant 0 : i32
    return %c0_i32, %c0_i32_0 : i32, i32
  }
  func.func @transform_10(%arg0: i32) -> (i32, i32) {
    %c0_i32 = arith.constant 0 : i32
    %c0_i32_0 = arith.constant 0 : i32
    %c0_i32_1 = arith.constant 0 : i32
    return %c0_i32, %c0_i32_0 : i32, i32
  }
  func.func @transform_11(%arg0: i32) -> (i32, i32) {
    %c0_i32 = arith.constant 0 : i32
    %c0_i32_0 = arith.constant 0 : i32
    return %arg0, %c0_i32 : i32, i32
  }
  func.func @transform_12(%arg0: i32) -> (i32, i32, i32) {
    %c0_i32 = arith.constant 0 : i32
    %c0_i32_0 = arith.constant 0 : i32
    %c0_i32_1 = arith.constant 0 : i32
    return %c0_i32, %arg0, %c0_i32_0 : i32, i32, i32
  }
}

module attributes {stable_mosaic.version = 11 : i64} {
  func.func @_msg_kernel(%arg0: i32, %arg1: memref<64x232xf32, #tpu.memory_space<vmem>>, %arg2: memref<3x64x33xf32, #tpu.memory_space<vmem>>, %arg3: memref<33x33xf32, #tpu.memory_space<vmem>>, %arg4: memref<232x100xf32, #tpu.memory_space<vmem>>, %arg5: memref<33x100xf32, #tpu.memory_space<vmem>>, %arg6: memref<1x100xf32, #tpu.memory_space<vmem>>, %arg7: memref<33x16xf32, #tpu.memory_space<vmem>>, %arg8: memref<100x16xf32, #tpu.memory_space<vmem>>, %arg9: memref<1x16xf32, #tpu.memory_space<vmem>>, %arg10: memref<16x16xf32, #tpu.memory_space<vmem>>, %arg11: memref<100x100xf32, #tpu.memory_space<vmem>>, %arg12: memref<16x100xf32, #tpu.memory_space<vmem>>, %arg13: memref<1x100xf32, #tpu.memory_space<vmem>>, %arg14: memref<16x16xf32, #tpu.memory_space<vmem>>, %arg15: memref<100x16xf32, #tpu.memory_space<vmem>>, %arg16: memref<1x16xf32, #tpu.memory_space<vmem>>, %arg17: memref<16x16xf32, #tpu.memory_space<vmem>>, %arg18: memref<100x100xf32, #tpu.memory_space<vmem>>, %arg19: memref<16x100xf32, #tpu.memory_space<vmem>>, %arg20: memref<1x100xf32, #tpu.memory_space<vmem>>, %arg21: memref<16x16xf32, #tpu.memory_space<vmem>>, %arg22: memref<100x16xf32, #tpu.memory_space<vmem>>, %arg23: memref<1x16xf32, #tpu.memory_space<vmem>>, %arg24: memref<64x100xf32, #tpu.memory_space<vmem>>, %arg25: memref<3x64x16xf32, #tpu.memory_space<vmem>>) attributes {dimension_semantics = [#tpu.dimension_semantics<parallel>], iteration_bounds = array<i64: 1>, scalar_prefetch = 0 : i64, scratch_operands = 0 : i64, tpu.core_type = #tpu.core_type<tc>, window_params = [{transform_indices = @transform_0, window_bounds = array<i64: 64, 232>}, {transform_indices = @transform_1, window_bounds = array<i64: 3, 64, 33>}, {pipeline_mode = #tpu.pipeline_mode<synchronous>, transform_indices = @transform_2, window_bounds = array<i64: 33, 33>}, {pipeline_mode = #tpu.pipeline_mode<synchronous>, transform_indices = @transform_3, window_bounds = array<i64: 232, 100>}, {pipeline_mode = #tpu.pipeline_mode<synchronous>, transform_indices = @transform_4, window_bounds = array<i64: 33, 100>}, {pipeline_mode = #tpu.pipeline_mode<synchronous>, transform_indices = @transform_5, window_bounds = array<i64: 1, 100>}, {pipeline_mode = #tpu.pipeline_mode<synchronous>, transform_indices = @transform_6, window_bounds = array<i64: 33, 16>}, {pipeline_mode = #tpu.pipeline_mode<synchronous>, transform_indices = @transform_7, window_bounds = array<i64: 100, 16>}, {pipeline_mode = #tpu.pipeline_mode<synchronous>, transform_indices = @transform_8, window_bounds = array<i64: 1, 16>}, {pipeline_mode = #tpu.pipeline_mode<synchronous>, transform_indices = @transform_9, window_bounds = array<i64: 16, 16>}, {pipeline_mode = #tpu.pipeline_mode<synchronous>, transform_indices = @transform_10, window_bounds = array<i64: 100, 100>}, {pipeline_mode = #tpu.pipeline_mode<synchronous>, transform_indices = @transform_11, window_bounds = array<i64: 16, 100>}, {pipeline_mode = #tpu.pipeline_mode<synchronous>, transform_indices = @transform_12, window_bounds = array<i64: 1, 100>}, {pipeline_mode = #tpu.pipeline_mode<synchronous>, transform_indices = @transform_13, window_bounds = array<i64: 16, 16>}, {pipeline_mode = #tpu.pipeline_mode<synchronous>, transform_indices = @transform_14, window_bounds = array<i64: 100, 16>}, {pipeline_mode = #tpu.pipeline_mode<synchronous>, transform_indices = @transform_15, window_bounds = array<i64: 1, 16>}, {pipeline_mode = #tpu.pipeline_mode<synchronous>, transform_indices = @transform_16, window_bounds = array<i64: 16, 16>}, {pipeline_mode = #tpu.pipeline_mode<synchronous>, transform_indices = @transform_17, window_bounds = array<i64: 100, 100>}, {pipeline_mode = #tpu.pipeline_mode<synchronous>, transform_indices = @transform_18, window_bounds = array<i64: 16, 100>}, {pipeline_mode = #tpu.pipeline_mode<synchronous>, transform_indices = @transform_19, window_bounds = array<i64: 1, 100>}, {pipeline_mode = #tpu.pipeline_mode<synchronous>, transform_indices = @transform_20, window_bounds = array<i64: 16, 16>}, {pipeline_mode = #tpu.pipeline_mode<synchronous>, transform_indices = @transform_21, window_bounds = array<i64: 100, 16>}, {pipeline_mode = #tpu.pipeline_mode<synchronous>, transform_indices = @transform_22, window_bounds = array<i64: 1, 16>}, {transform_indices = @transform_23, window_bounds = array<i64: 64, 100>}, {transform_indices = @transform_24, window_bounds = array<i64: 3, 64, 16>}]} {
    %c0 = arith.constant 0 : index
    %c0_0 = arith.constant 0 : index
    %0 = vector.load %arg1[%c0, %c0_0] : memref<64x232xf32, #tpu.memory_space<vmem>>, vector<64x232xf32>
    %c0_1 = arith.constant 0 : index
    %c0_2 = arith.constant 0 : index
    %c0_3 = arith.constant 0 : index
    %1 = vector.load %arg2[%c0_1, %c0_2, %c0_3] : memref<3x64x33xf32, #tpu.memory_space<vmem>>, vector<1x64x33xf32>
    %2 = vector.shape_cast %1 : vector<1x64x33xf32> to vector<64x33xf32>
    %c1 = arith.constant 1 : index
    %c0_4 = arith.constant 0 : index
    %c0_5 = arith.constant 0 : index
    %3 = vector.load %arg2[%c1, %c0_4, %c0_5] : memref<3x64x33xf32, #tpu.memory_space<vmem>>, vector<1x64x33xf32>
    %4 = vector.shape_cast %3 : vector<1x64x33xf32> to vector<64x33xf32>
    %c2 = arith.constant 2 : index
    %c0_6 = arith.constant 0 : index
    %c0_7 = arith.constant 0 : index
    %5 = vector.load %arg2[%c2, %c0_6, %c0_7] : memref<3x64x33xf32, #tpu.memory_space<vmem>>, vector<1x64x33xf32>
    %6 = vector.shape_cast %5 : vector<1x64x33xf32> to vector<64x33xf32>
    %7 = tpu.concatenate %2, %4, %6 in 0 : vector<64x33xf32>, vector<64x33xf32>, vector<64x33xf32> -> vector<192x33xf32>
    %c0_8 = arith.constant 0 : index
    %c0_9 = arith.constant 0 : index
    %8 = vector.load %arg3[%c0_8, %c0_9] : memref<33x33xf32, #tpu.memory_space<vmem>>, vector<33x33xf32>
    %c0_10 = arith.constant 0 : index
    %c0_11 = arith.constant 0 : index
    %9 = vector.load %arg4[%c0_10, %c0_11] : memref<232x100xf32, #tpu.memory_space<vmem>>, vector<232x100xf32>
    %c0_12 = arith.constant 0 : index
    %c0_13 = arith.constant 0 : index
    %10 = vector.load %arg5[%c0_12, %c0_13] : memref<33x100xf32, #tpu.memory_space<vmem>>, vector<33x100xf32>
    %c0_14 = arith.constant 0 : index
    %c0_15 = arith.constant 0 : index
    %11 = vector.load %arg6[%c0_14, %c0_15] : memref<1x100xf32, #tpu.memory_space<vmem>>, vector<1x100xf32>
    %c0_16 = arith.constant 0 : index
    %c0_17 = arith.constant 0 : index
    %12 = vector.load %arg7[%c0_16, %c0_17] : memref<33x16xf32, #tpu.memory_space<vmem>>, vector<33x16xf32>
    %c0_18 = arith.constant 0 : index
    %c0_19 = arith.constant 0 : index
    %13 = vector.load %arg8[%c0_18, %c0_19] : memref<100x16xf32, #tpu.memory_space<vmem>>, vector<100x16xf32>
    %c0_20 = arith.constant 0 : index
    %c0_21 = arith.constant 0 : index
    %14 = vector.load %arg9[%c0_20, %c0_21] : memref<1x16xf32, #tpu.memory_space<vmem>>, vector<1x16xf32>
    %15 = arith.truncf %7 : vector<192x33xf32> to vector<192x33xbf16>
    %16 = arith.truncf %8 : vector<33x33xf32> to vector<33x33xbf16>
    %cst = arith.constant dense<0.000000e+00> : vector<192x33xf32>
    %17 = tpu.matmul %15, %16, %cst {dimension_numbers = #tpu.dot_dimension_numbers<[1], [0], [0], [1], [0, 0, 1, 1], [], []>} : vector<192x33xbf16>, vector<33x33xbf16>, vector<192x33xf32> -> vector<192x33xf32>
    %18 = vector.extract_strided_slice %17 {offsets = [0, 0], sizes = [64, 33], strides = [1, 1]} : vector<192x33xf32> to vector<64x33xf32>
    %19 = vector.extract_strided_slice %17 {offsets = [64, 0], sizes = [64, 33], strides = [1, 1]} : vector<192x33xf32> to vector<64x33xf32>
    %20 = vector.extract_strided_slice %17 {offsets = [128, 0], sizes = [64, 33], strides = [1, 1]} : vector<192x33xf32> to vector<64x33xf32>
    %21 = arith.mulf %18, %18 : vector<64x33xf32>
    %22 = arith.mulf %19, %19 : vector<64x33xf32>
    %23 = arith.addf %21, %22 : vector<64x33xf32>
    %24 = arith.mulf %20, %20 : vector<64x33xf32>
    %25 = arith.addf %23, %24 : vector<64x33xf32>
    %cst_22 = arith.constant 9.99999993E-9 : f32
    %26 = vector.broadcast %cst_22 : f32 to vector<64x33xf32>
    %27 = arith.maximumf %25, %26 : vector<64x33xf32>
    %28 = math.sqrt %27 : vector<64x33xf32>
    %29 = arith.truncf %0 : vector<64x232xf32> to vector<64x232xbf16>
    %30 = arith.truncf %9 : vector<232x100xf32> to vector<232x100xbf16>
    %cst_23 = arith.constant dense<0.000000e+00> : vector<64x100xf32>
    %31 = tpu.matmul %29, %30, %cst_23 {dimension_numbers = #tpu.dot_dimension_numbers<[1], [0], [0], [1], [0, 0, 1, 1], [], []>} : vector<64x232xbf16>, vector<232x100xbf16>, vector<64x100xf32> -> vector<64x100xf32>
    %32 = arith.truncf %28 : vector<64x33xf32> to vector<64x33xbf16>
    %33 = arith.truncf %10 : vector<33x100xf32> to vector<33x100xbf16>
    %cst_24 = arith.constant dense<0.000000e+00> : vector<64x100xf32>
    %34 = tpu.matmul %32, %33, %cst_24 {dimension_numbers = #tpu.dot_dimension_numbers<[1], [0], [0], [1], [0, 0, 1, 1], [], []>} : vector<64x33xbf16>, vector<33x100xbf16>, vector<64x100xf32> -> vector<64x100xf32>
    %35 = arith.addf %31, %34 : vector<64x100xf32>
    %36 = vector.broadcast %11 : vector<1x100xf32> to vector<64x100xf32>
    %37 = arith.addf %35, %36 : vector<64x100xf32>
    %cst_25 = arith.constant 0.000000e+00 : f32
    %38 = vector.broadcast %cst_25 : f32 to vector<64x100xf32>
    %39 = arith.maximumf %37, %38 : vector<64x100xf32>
    %40 = arith.truncf %37 : vector<64x100xf32> to vector<64x100xbf16>
    %41 = arith.truncf %13 : vector<100x16xf32> to vector<100x16xbf16>
    %cst_26 = arith.constant dense<0.000000e+00> : vector<64x16xf32>
    %42 = tpu.matmul %40, %41, %cst_26 {dimension_numbers = #tpu.dot_dimension_numbers<[1], [0], [0], [1], [0, 0, 1, 1], [], []>} : vector<64x100xbf16>, vector<100x16xbf16>, vector<64x16xf32> -> vector<64x16xf32>
    %43 = vector.broadcast %14 : vector<1x16xf32> to vector<64x16xf32>
    %44 = arith.addf %42, %43 : vector<64x16xf32>
    %cst_27 = arith.constant 0.000000e+00 : f32
    %45 = vector.broadcast %cst_27 : f32 to vector<64x16xf32>
    %46 = arith.subf %45, %44 : vector<64x16xf32>
    %47 = math.exp %46 : vector<64x16xf32>
    %cst_28 = arith.constant 1.000000e+00 : f32
    %48 = vector.broadcast %cst_28 : f32 to vector<64x16xf32>
    %49 = arith.addf %48, %47 : vector<64x16xf32>
    %50 = tpu.reciprocal %49 {approx = true} : vector<64x16xf32> -> vector<64x16xf32>
    %51 = arith.truncf %17 : vector<192x33xf32> to vector<192x33xbf16>
    %52 = arith.truncf %12 : vector<33x16xf32> to vector<33x16xbf16>
    %cst_29 = arith.constant dense<0.000000e+00> : vector<192x16xf32>
    %53 = tpu.matmul %51, %52, %cst_29 {dimension_numbers = #tpu.dot_dimension_numbers<[1], [0], [0], [1], [0, 0, 1, 1], [], []>} : vector<192x33xbf16>, vector<33x16xbf16>, vector<192x16xf32> -> vector<192x16xf32>
    %54 = vector.extract_strided_slice %53 {offsets = [0, 0], sizes = [64, 16], strides = [1, 1]} : vector<192x16xf32> to vector<64x16xf32>
    %55 = arith.mulf %54, %50 : vector<64x16xf32>
    %56 = vector.extract_strided_slice %53 {offsets = [64, 0], sizes = [64, 16], strides = [1, 1]} : vector<192x16xf32> to vector<64x16xf32>
    %57 = arith.mulf %56, %50 : vector<64x16xf32>
    %58 = vector.extract_strided_slice %53 {offsets = [128, 0], sizes = [64, 16], strides = [1, 1]} : vector<192x16xf32> to vector<64x16xf32>
    %59 = arith.mulf %58, %50 : vector<64x16xf32>
    %60 = tpu.concatenate %55, %57, %59 in 0 : vector<64x16xf32>, vector<64x16xf32>, vector<64x16xf32> -> vector<192x16xf32>
    %c0_30 = arith.constant 0 : index
    %c0_31 = arith.constant 0 : index
    %61 = vector.load %arg10[%c0_30, %c0_31] : memref<16x16xf32, #tpu.memory_space<vmem>>, vector<16x16xf32>
    %c0_32 = arith.constant 0 : index
    %c0_33 = arith.constant 0 : index
    %62 = vector.load %arg11[%c0_32, %c0_33] : memref<100x100xf32, #tpu.memory_space<vmem>>, vector<100x100xf32>
    %c0_34 = arith.constant 0 : index
    %c0_35 = arith.constant 0 : index
    %63 = vector.load %arg12[%c0_34, %c0_35] : memref<16x100xf32, #tpu.memory_space<vmem>>, vector<16x100xf32>
    %c0_36 = arith.constant 0 : index
    %c0_37 = arith.constant 0 : index
    %64 = vector.load %arg13[%c0_36, %c0_37] : memref<1x100xf32, #tpu.memory_space<vmem>>, vector<1x100xf32>
    %c0_38 = arith.constant 0 : index
    %c0_39 = arith.constant 0 : index
    %65 = vector.load %arg14[%c0_38, %c0_39] : memref<16x16xf32, #tpu.memory_space<vmem>>, vector<16x16xf32>
    %c0_40 = arith.constant 0 : index
    %c0_41 = arith.constant 0 : index
    %66 = vector.load %arg15[%c0_40, %c0_41] : memref<100x16xf32, #tpu.memory_space<vmem>>, vector<100x16xf32>
    %c0_42 = arith.constant 0 : index
    %c0_43 = arith.constant 0 : index
    %67 = vector.load %arg16[%c0_42, %c0_43] : memref<1x16xf32, #tpu.memory_space<vmem>>, vector<1x16xf32>
    %68 = arith.truncf %60 : vector<192x16xf32> to vector<192x16xbf16>
    %69 = arith.truncf %61 : vector<16x16xf32> to vector<16x16xbf16>
    %cst_44 = arith.constant dense<0.000000e+00> : vector<192x16xf32>
    %70 = tpu.matmul %68, %69, %cst_44 {dimension_numbers = #tpu.dot_dimension_numbers<[1], [0], [0], [1], [0, 0, 1, 1], [], []>} : vector<192x16xbf16>, vector<16x16xbf16>, vector<192x16xf32> -> vector<192x16xf32>
    %71 = vector.extract_strided_slice %70 {offsets = [0, 0], sizes = [64, 16], strides = [1, 1]} : vector<192x16xf32> to vector<64x16xf32>
    %72 = vector.extract_strided_slice %70 {offsets = [64, 0], sizes = [64, 16], strides = [1, 1]} : vector<192x16xf32> to vector<64x16xf32>
    %73 = vector.extract_strided_slice %70 {offsets = [128, 0], sizes = [64, 16], strides = [1, 1]} : vector<192x16xf32> to vector<64x16xf32>
    %74 = arith.mulf %71, %71 : vector<64x16xf32>
    %75 = arith.mulf %72, %72 : vector<64x16xf32>
    %76 = arith.addf %74, %75 : vector<64x16xf32>
    %77 = arith.mulf %73, %73 : vector<64x16xf32>
    %78 = arith.addf %76, %77 : vector<64x16xf32>
    %cst_45 = arith.constant 9.99999993E-9 : f32
    %79 = vector.broadcast %cst_45 : f32 to vector<64x16xf32>
    %80 = arith.maximumf %78, %79 : vector<64x16xf32>
    %81 = math.sqrt %80 : vector<64x16xf32>
    %82 = arith.truncf %39 : vector<64x100xf32> to vector<64x100xbf16>
    %83 = arith.truncf %62 : vector<100x100xf32> to vector<100x100xbf16>
    %cst_46 = arith.constant dense<0.000000e+00> : vector<64x100xf32>
    %84 = tpu.matmul %82, %83, %cst_46 {dimension_numbers = #tpu.dot_dimension_numbers<[1], [0], [0], [1], [0, 0, 1, 1], [], []>} : vector<64x100xbf16>, vector<100x100xbf16>, vector<64x100xf32> -> vector<64x100xf32>
    %85 = arith.truncf %81 : vector<64x16xf32> to vector<64x16xbf16>
    %86 = arith.truncf %63 : vector<16x100xf32> to vector<16x100xbf16>
    %cst_47 = arith.constant dense<0.000000e+00> : vector<64x100xf32>
    %87 = tpu.matmul %85, %86, %cst_47 {dimension_numbers = #tpu.dot_dimension_numbers<[1], [0], [0], [1], [0, 0, 1, 1], [], []>} : vector<64x16xbf16>, vector<16x100xbf16>, vector<64x100xf32> -> vector<64x100xf32>
    %88 = arith.addf %84, %87 : vector<64x100xf32>
    %89 = vector.broadcast %64 : vector<1x100xf32> to vector<64x100xf32>
    %90 = arith.addf %88, %89 : vector<64x100xf32>
    %cst_48 = arith.constant 0.000000e+00 : f32
    %91 = vector.broadcast %cst_48 : f32 to vector<64x100xf32>
    %92 = arith.maximumf %90, %91 : vector<64x100xf32>
    %93 = arith.truncf %90 : vector<64x100xf32> to vector<64x100xbf16>
    %94 = arith.truncf %66 : vector<100x16xf32> to vector<100x16xbf16>
    %cst_49 = arith.constant dense<0.000000e+00> : vector<64x16xf32>
    %95 = tpu.matmul %93, %94, %cst_49 {dimension_numbers = #tpu.dot_dimension_numbers<[1], [0], [0], [1], [0, 0, 1, 1], [], []>} : vector<64x100xbf16>, vector<100x16xbf16>, vector<64x16xf32> -> vector<64x16xf32>
    %96 = vector.broadcast %67 : vector<1x16xf32> to vector<64x16xf32>
    %97 = arith.addf %95, %96 : vector<64x16xf32>
    %cst_50 = arith.constant 0.000000e+00 : f32
    %98 = vector.broadcast %cst_50 : f32 to vector<64x16xf32>
    %99 = arith.subf %98, %97 : vector<64x16xf32>
    %100 = math.exp %99 : vector<64x16xf32>
    %cst_51 = arith.constant 1.000000e+00 : f32
    %101 = vector.broadcast %cst_51 : f32 to vector<64x16xf32>
    %102 = arith.addf %101, %100 : vector<64x16xf32>
    %103 = tpu.reciprocal %102 {approx = true} : vector<64x16xf32> -> vector<64x16xf32>
    %104 = arith.truncf %70 : vector<192x16xf32> to vector<192x16xbf16>
    %105 = arith.truncf %65 : vector<16x16xf32> to vector<16x16xbf16>
    %cst_52 = arith.constant dense<0.000000e+00> : vector<192x16xf32>
    %106 = tpu.matmul %104, %105, %cst_52 {dimension_numbers = #tpu.dot_dimension_numbers<[1], [0], [0], [1], [0, 0, 1, 1], [], []>} : vector<192x16xbf16>, vector<16x16xbf16>, vector<192x16xf32> -> vector<192x16xf32>
    %107 = vector.extract_strided_slice %106 {offsets = [0, 0], sizes = [64, 16], strides = [1, 1]} : vector<192x16xf32> to vector<64x16xf32>
    %108 = arith.mulf %107, %103 : vector<64x16xf32>
    %109 = vector.extract_strided_slice %106 {offsets = [64, 0], sizes = [64, 16], strides = [1, 1]} : vector<192x16xf32> to vector<64x16xf32>
    %110 = arith.mulf %109, %103 : vector<64x16xf32>
    %111 = vector.extract_strided_slice %106 {offsets = [128, 0], sizes = [64, 16], strides = [1, 1]} : vector<192x16xf32> to vector<64x16xf32>
    %112 = arith.mulf %111, %103 : vector<64x16xf32>
    %113 = tpu.concatenate %108, %110, %112 in 0 : vector<64x16xf32>, vector<64x16xf32>, vector<64x16xf32> -> vector<192x16xf32>
    %c0_53 = arith.constant 0 : index
    %c0_54 = arith.constant 0 : index
    %114 = vector.load %arg17[%c0_53, %c0_54] : memref<16x16xf32, #tpu.memory_space<vmem>>, vector<16x16xf32>
    %c0_55 = arith.constant 0 : index
    %c0_56 = arith.constant 0 : index
    %115 = vector.load %arg18[%c0_55, %c0_56] : memref<100x100xf32, #tpu.memory_space<vmem>>, vector<100x100xf32>
    %c0_57 = arith.constant 0 : index
    %c0_58 = arith.constant 0 : index
    %116 = vector.load %arg19[%c0_57, %c0_58] : memref<16x100xf32, #tpu.memory_space<vmem>>, vector<16x100xf32>
    %c0_59 = arith.constant 0 : index
    %c0_60 = arith.constant 0 : index
    %117 = vector.load %arg20[%c0_59, %c0_60] : memref<1x100xf32, #tpu.memory_space<vmem>>, vector<1x100xf32>
    %c0_61 = arith.constant 0 : index
    %c0_62 = arith.constant 0 : index
    %118 = vector.load %arg21[%c0_61, %c0_62] : memref<16x16xf32, #tpu.memory_space<vmem>>, vector<16x16xf32>
    %c0_63 = arith.constant 0 : index
    %c0_64 = arith.constant 0 : index
    %119 = vector.load %arg22[%c0_63, %c0_64] : memref<100x16xf32, #tpu.memory_space<vmem>>, vector<100x16xf32>
    %c0_65 = arith.constant 0 : index
    %c0_66 = arith.constant 0 : index
    %120 = vector.load %arg23[%c0_65, %c0_66] : memref<1x16xf32, #tpu.memory_space<vmem>>, vector<1x16xf32>
    %121 = arith.truncf %113 : vector<192x16xf32> to vector<192x16xbf16>
    %122 = arith.truncf %114 : vector<16x16xf32> to vector<16x16xbf16>
    %cst_67 = arith.constant dense<0.000000e+00> : vector<192x16xf32>
    %123 = tpu.matmul %121, %122, %cst_67 {dimension_numbers = #tpu.dot_dimension_numbers<[1], [0], [0], [1], [0, 0, 1, 1], [], []>} : vector<192x16xbf16>, vector<16x16xbf16>, vector<192x16xf32> -> vector<192x16xf32>
    %124 = vector.extract_strided_slice %123 {offsets = [0, 0], sizes = [64, 16], strides = [1, 1]} : vector<192x16xf32> to vector<64x16xf32>
    %125 = vector.extract_strided_slice %123 {offsets = [64, 0], sizes = [64, 16], strides = [1, 1]} : vector<192x16xf32> to vector<64x16xf32>
    %126 = vector.extract_strided_slice %123 {offsets = [128, 0], sizes = [64, 16], strides = [1, 1]} : vector<192x16xf32> to vector<64x16xf32>
    %127 = arith.mulf %124, %124 : vector<64x16xf32>
    %128 = arith.mulf %125, %125 : vector<64x16xf32>
    %129 = arith.addf %127, %128 : vector<64x16xf32>
    %130 = arith.mulf %126, %126 : vector<64x16xf32>
    %131 = arith.addf %129, %130 : vector<64x16xf32>
    %cst_68 = arith.constant 9.99999993E-9 : f32
    %132 = vector.broadcast %cst_68 : f32 to vector<64x16xf32>
    %133 = arith.maximumf %131, %132 : vector<64x16xf32>
    %134 = math.sqrt %133 : vector<64x16xf32>
    %135 = arith.truncf %92 : vector<64x100xf32> to vector<64x100xbf16>
    %136 = arith.truncf %115 : vector<100x100xf32> to vector<100x100xbf16>
    %cst_69 = arith.constant dense<0.000000e+00> : vector<64x100xf32>
    %137 = tpu.matmul %135, %136, %cst_69 {dimension_numbers = #tpu.dot_dimension_numbers<[1], [0], [0], [1], [0, 0, 1, 1], [], []>} : vector<64x100xbf16>, vector<100x100xbf16>, vector<64x100xf32> -> vector<64x100xf32>
    %138 = arith.truncf %134 : vector<64x16xf32> to vector<64x16xbf16>
    %139 = arith.truncf %116 : vector<16x100xf32> to vector<16x100xbf16>
    %cst_70 = arith.constant dense<0.000000e+00> : vector<64x100xf32>
    %140 = tpu.matmul %138, %139, %cst_70 {dimension_numbers = #tpu.dot_dimension_numbers<[1], [0], [0], [1], [0, 0, 1, 1], [], []>} : vector<64x16xbf16>, vector<16x100xbf16>, vector<64x100xf32> -> vector<64x100xf32>
    %141 = arith.addf %137, %140 : vector<64x100xf32>
    %142 = vector.broadcast %117 : vector<1x100xf32> to vector<64x100xf32>
    %143 = arith.addf %141, %142 : vector<64x100xf32>
    %144 = arith.truncf %143 : vector<64x100xf32> to vector<64x100xbf16>
    %145 = arith.truncf %119 : vector<100x16xf32> to vector<100x16xbf16>
    %cst_71 = arith.constant dense<0.000000e+00> : vector<64x16xf32>
    %146 = tpu.matmul %144, %145, %cst_71 {dimension_numbers = #tpu.dot_dimension_numbers<[1], [0], [0], [1], [0, 0, 1, 1], [], []>} : vector<64x100xbf16>, vector<100x16xbf16>, vector<64x16xf32> -> vector<64x16xf32>
    %147 = vector.broadcast %120 : vector<1x16xf32> to vector<64x16xf32>
    %148 = arith.addf %146, %147 : vector<64x16xf32>
    %cst_72 = arith.constant 0.000000e+00 : f32
    %149 = vector.broadcast %cst_72 : f32 to vector<64x16xf32>
    %150 = arith.subf %149, %148 : vector<64x16xf32>
    %151 = math.exp %150 : vector<64x16xf32>
    %cst_73 = arith.constant 1.000000e+00 : f32
    %152 = vector.broadcast %cst_73 : f32 to vector<64x16xf32>
    %153 = arith.addf %152, %151 : vector<64x16xf32>
    %154 = tpu.reciprocal %153 {approx = true} : vector<64x16xf32> -> vector<64x16xf32>
    %155 = arith.truncf %123 : vector<192x16xf32> to vector<192x16xbf16>
    %156 = arith.truncf %118 : vector<16x16xf32> to vector<16x16xbf16>
    %cst_74 = arith.constant dense<0.000000e+00> : vector<192x16xf32>
    %157 = tpu.matmul %155, %156, %cst_74 {dimension_numbers = #tpu.dot_dimension_numbers<[1], [0], [0], [1], [0, 0, 1, 1], [], []>} : vector<192x16xbf16>, vector<16x16xbf16>, vector<192x16xf32> -> vector<192x16xf32>
    %158 = vector.extract_strided_slice %157 {offsets = [0, 0], sizes = [64, 16], strides = [1, 1]} : vector<192x16xf32> to vector<64x16xf32>
    %159 = arith.mulf %158, %154 : vector<64x16xf32>
    %160 = vector.extract_strided_slice %157 {offsets = [64, 0], sizes = [64, 16], strides = [1, 1]} : vector<192x16xf32> to vector<64x16xf32>
    %161 = arith.mulf %160, %154 : vector<64x16xf32>
    %162 = vector.extract_strided_slice %157 {offsets = [128, 0], sizes = [64, 16], strides = [1, 1]} : vector<192x16xf32> to vector<64x16xf32>
    %163 = arith.mulf %162, %154 : vector<64x16xf32>
    %164 = tpu.concatenate %159, %161, %163 in 0 : vector<64x16xf32>, vector<64x16xf32>, vector<64x16xf32> -> vector<192x16xf32>
    %c0_75 = arith.constant 0 : index
    %c0_76 = arith.constant 0 : index
    %165 = vector.load %arg24[%c0_75, %c0_76] : memref<64x100xf32, #tpu.memory_space<vmem>>, vector<64x100xf32>
    tpu.vector_store %arg24[%c0_75, %c0_76], %143 {strides = array<i32>} : memref<64x100xf32, #tpu.memory_space<vmem>>, vector<64x100xf32>,
    %166 = vector.extract_strided_slice %164 {offsets = [0, 0], sizes = [64, 16], strides = [1, 1]} : vector<192x16xf32> to vector<64x16xf32>
    %c0_77 = arith.constant 0 : index
    %c0_78 = arith.constant 0 : index
    %c0_79 = arith.constant 0 : index
    %167 = vector.load %arg25[%c0_77, %c0_78, %c0_79] : memref<3x64x16xf32, #tpu.memory_space<vmem>>, vector<1x64x16xf32>
    %168 = vector.shape_cast %167 : vector<1x64x16xf32> to vector<64x16xf32>
    %169 = vector.shape_cast %166 : vector<64x16xf32> to vector<1x64x16xf32>
    tpu.vector_store %arg25[%c0_77, %c0_78, %c0_79], %169 {strides = array<i32>} : memref<3x64x16xf32, #tpu.memory_space<vmem>>, vector<1x64x16xf32>,
    %170 = vector.extract_strided_slice %164 {offsets = [64, 0], sizes = [64, 16], strides = [1, 1]} : vector<192x16xf32> to vector<64x16xf32>
    %c1_80 = arith.constant 1 : index
    %c0_81 = arith.constant 0 : index
    %c0_82 = arith.constant 0 : index
    %171 = vector.load %arg25[%c1_80, %c0_81, %c0_82] : memref<3x64x16xf32, #tpu.memory_space<vmem>>, vector<1x64x16xf32>
    %172 = vector.shape_cast %171 : vector<1x64x16xf32> to vector<64x16xf32>
    %173 = vector.shape_cast %170 : vector<64x16xf32> to vector<1x64x16xf32>
    tpu.vector_store %arg25[%c1_80, %c0_81, %c0_82], %173 {strides = array<i32>} : memref<3x64x16xf32, #tpu.memory_space<vmem>>, vector<1x64x16xf32>,
    %174 = vector.extract_strided_slice %164 {offsets = [128, 0], sizes = [64, 16], strides = [1, 1]} : vector<192x16xf32> to vector<64x16xf32>
    %c2_83 = arith.constant 2 : index
    %c0_84 = arith.constant 0 : index
    %c0_85 = arith.constant 0 : index
    %175 = vector.load %arg25[%c2_83, %c0_84, %c0_85] : memref<3x64x16xf32, #tpu.memory_space<vmem>>, vector<1x64x16xf32>
    %176 = vector.shape_cast %175 : vector<1x64x16xf32> to vector<64x16xf32>
    %177 = vector.shape_cast %174 : vector<64x16xf32> to vector<1x64x16xf32>
    tpu.vector_store %arg25[%c2_83, %c0_84, %c0_85], %177 {strides = array<i32>} : memref<3x64x16xf32, #tpu.memory_space<vmem>>, vector<1x64x16xf32>,
    return
  }
  func.func @transform_0(%arg0: i32) -> (i32, i32) {
    %c0_i32 = arith.constant 0 : i32
    %c0_i32_0 = arith.constant 0 : i32
    return %arg0, %c0_i32 : i32, i32
  }
  func.func @transform_1(%arg0: i32) -> (i32, i32, i32) {
    %c0_i32 = arith.constant 0 : i32
    %c0_i32_0 = arith.constant 0 : i32
    %c0_i32_1 = arith.constant 0 : i32
    return %c0_i32, %arg0, %c0_i32_0 : i32, i32, i32
  }
  func.func @transform_2(%arg0: i32) -> (i32, i32) {
    %c0_i32 = arith.constant 0 : i32
    %c0_i32_0 = arith.constant 0 : i32
    %c0_i32_1 = arith.constant 0 : i32
    return %c0_i32, %c0_i32_0 : i32, i32
  }
  func.func @transform_3(%arg0: i32) -> (i32, i32) {
    %c0_i32 = arith.constant 0 : i32
    %c0_i32_0 = arith.constant 0 : i32
    %c0_i32_1 = arith.constant 0 : i32
    return %c0_i32, %c0_i32_0 : i32, i32
  }
  func.func @transform_4(%arg0: i32) -> (i32, i32) {
    %c0_i32 = arith.constant 0 : i32
    %c0_i32_0 = arith.constant 0 : i32
    %c0_i32_1 = arith.constant 0 : i32
    return %c0_i32, %c0_i32_0 : i32, i32
  }
  func.func @transform_5(%arg0: i32) -> (i32, i32) {
    %c0_i32 = arith.constant 0 : i32
    %c0_i32_0 = arith.constant 0 : i32
    %c0_i32_1 = arith.constant 0 : i32
    return %c0_i32, %c0_i32_0 : i32, i32
  }
  func.func @transform_6(%arg0: i32) -> (i32, i32) {
    %c0_i32 = arith.constant 0 : i32
    %c0_i32_0 = arith.constant 0 : i32
    %c0_i32_1 = arith.constant 0 : i32
    return %c0_i32, %c0_i32_0 : i32, i32
  }
  func.func @transform_7(%arg0: i32) -> (i32, i32) {
    %c0_i32 = arith.constant 0 : i32
    %c0_i32_0 = arith.constant 0 : i32
    %c0_i32_1 = arith.constant 0 : i32
    return %c0_i32, %c0_i32_0 : i32, i32
  }
  func.func @transform_8(%arg0: i32) -> (i32, i32) {
    %c0_i32 = arith.constant 0 : i32
    %c0_i32_0 = arith.constant 0 : i32
    %c0_i32_1 = arith.constant 0 : i32
    return %c0_i32, %c0_i32_0 : i32, i32
  }
  func.func @transform_9(%arg0: i32) -> (i32, i32) {
    %c0_i32 = arith.constant 0 : i32
    %c0_i32_0 = arith.constant 0 : i32
    %c0_i32_1 = arith.constant 0 : i32
    return %c0_i32, %c0_i32_0 : i32, i32
  }
  func.func @transform_10(%arg0: i32) -> (i32, i32) {
    %c0_i32 = arith.constant 0 : i32
    %c0_i32_0 = arith.constant 0 : i32
    %c0_i32_1 = arith.constant 0 : i32
    return %c0_i32, %c0_i32_0 : i32, i32
  }
  func.func @transform_11(%arg0: i32) -> (i32, i32) {
    %c0_i32 = arith.constant 0 : i32
    %c0_i32_0 = arith.constant 0 : i32
    %c0_i32_1 = arith.constant 0 : i32
    return %c0_i32, %c0_i32_0 : i32, i32
  }
  func.func @transform_12(%arg0: i32) -> (i32, i32) {
    %c0_i32 = arith.constant 0 : i32
    %c0_i32_0 = arith.constant 0 : i32
    %c0_i32_1 = arith.constant 0 : i32
    return %c0_i32, %c0_i32_0 : i32, i32
  }
  func.func @transform_13(%arg0: i32) -> (i32, i32) {
    %c0_i32 = arith.constant 0 : i32
    %c0_i32_0 = arith.constant 0 : i32
    %c0_i32_1 = arith.constant 0 : i32
    return %c0_i32, %c0_i32_0 : i32, i32
  }
  func.func @transform_14(%arg0: i32) -> (i32, i32) {
    %c0_i32 = arith.constant 0 : i32
    %c0_i32_0 = arith.constant 0 : i32
    %c0_i32_1 = arith.constant 0 : i32
    return %c0_i32, %c0_i32_0 : i32, i32
  }
  func.func @transform_15(%arg0: i32) -> (i32, i32) {
    %c0_i32 = arith.constant 0 : i32
    %c0_i32_0 = arith.constant 0 : i32
    %c0_i32_1 = arith.constant 0 : i32
    return %c0_i32, %c0_i32_0 : i32, i32
  }
  func.func @transform_16(%arg0: i32) -> (i32, i32) {
    %c0_i32 = arith.constant 0 : i32
    %c0_i32_0 = arith.constant 0 : i32
    %c0_i32_1 = arith.constant 0 : i32
    return %c0_i32, %c0_i32_0 : i32, i32
  }
  func.func @transform_17(%arg0: i32) -> (i32, i32) {
    %c0_i32 = arith.constant 0 : i32
    %c0_i32_0 = arith.constant 0 : i32
    %c0_i32_1 = arith.constant 0 : i32
    return %c0_i32, %c0_i32_0 : i32, i32
  }
  func.func @transform_18(%arg0: i32) -> (i32, i32) {
    %c0_i32 = arith.constant 0 : i32
    %c0_i32_0 = arith.constant 0 : i32
    %c0_i32_1 = arith.constant 0 : i32
    return %c0_i32, %c0_i32_0 : i32, i32
  }
  func.func @transform_19(%arg0: i32) -> (i32, i32) {
    %c0_i32 = arith.constant 0 : i32
    %c0_i32_0 = arith.constant 0 : i32
    %c0_i32_1 = arith.constant 0 : i32
    return %c0_i32, %c0_i32_0 : i32, i32
  }
  func.func @transform_20(%arg0: i32) -> (i32, i32) {
    %c0_i32 = arith.constant 0 : i32
    %c0_i32_0 = arith.constant 0 : i32
    %c0_i32_1 = arith.constant 0 : i32
    return %c0_i32, %c0_i32_0 : i32, i32
  }
  func.func @transform_21(%arg0: i32) -> (i32, i32) {
    %c0_i32 = arith.constant 0 : i32
    %c0_i32_0 = arith.constant 0 : i32
    %c0_i32_1 = arith.constant 0 : i32
    return %c0_i32, %c0_i32_0 : i32, i32
  }
  func.func @transform_22(%arg0: i32) -> (i32, i32) {
    %c0_i32 = arith.constant 0 : i32
    %c0_i32_0 = arith.constant 0 : i32
    %c0_i32_1 = arith.constant 0 : i32
    return %c0_i32, %c0_i32_0 : i32, i32
  }
  func.func @transform_23(%arg0: i32) -> (i32, i32) {
    %c0_i32 = arith.constant 0 : i32
    %c0_i32_0 = arith.constant 0 : i32
    return %arg0, %c0_i32 : i32, i32
  }
  func.func @transform_24(%arg0: i32) -> (i32, i32, i32) {
    %c0_i32 = arith.constant 0 : i32
    %c0_i32_0 = arith.constant 0 : i32
    %c0_i32_1 = arith.constant 0 : i32
    return %c0_i32, %arg0, %c0_i32_0 : i32, i32, i32
  }
}

module attributes {stable_mosaic.version = 11 : i64} {
  func.func @_node_update_kernel(%arg0: i32, %arg1: memref<16x64xf32, #tpu.memory_space<vmem>>, %arg2: memref<64x100xf32, #tpu.memory_space<vmem>>, %arg3: memref<3x64x16xf32, #tpu.memory_space<vmem>>, %arg4: memref<16x100xf32, #tpu.memory_space<vmem>>, %arg5: memref<3x16x16xf32, #tpu.memory_space<vmem>>, %arg6: memref<1x100xf32, #tpu.memory_space<vmem>>, %arg7: memref<1x100xf32, #tpu.memory_space<vmem>>, %arg8: memref<16x32xf32, #tpu.memory_space<vmem>>, %arg9: memref<100x400xf32, #tpu.memory_space<vmem>>, %arg10: memref<32x400xf32, #tpu.memory_space<vmem>>, %arg11: memref<1x400xf32, #tpu.memory_space<vmem>>, %arg12: memref<32x32xf32, #tpu.memory_space<vmem>>, %arg13: memref<400x32xf32, #tpu.memory_space<vmem>>, %arg14: memref<1x32xf32, #tpu.memory_space<vmem>>, %arg15: memref<32x32xf32, #tpu.memory_space<vmem>>, %arg16: memref<400x100xf32, #tpu.memory_space<vmem>>, %arg17: memref<32x100xf32, #tpu.memory_space<vmem>>, %arg18: memref<1x100xf32, #tpu.memory_space<vmem>>, %arg19: memref<32x16xf32, #tpu.memory_space<vmem>>, %arg20: memref<100x16xf32, #tpu.memory_space<vmem>>, %arg21: memref<1x16xf32, #tpu.memory_space<vmem>>, %arg22: memref<1x100xf32, #tpu.memory_space<vmem>>, %arg23: memref<1x100xf32, #tpu.memory_space<vmem>>, %arg24: memref<16x100xf32, #tpu.memory_space<vmem>>, %arg25: memref<3x16x16xf32, #tpu.memory_space<vmem>>) attributes {dimension_semantics = [#tpu.dimension_semantics<parallel>], iteration_bounds = array<i64: 1>, scalar_prefetch = 0 : i64, scratch_operands = 0 : i64, tpu.core_type = #tpu.core_type<tc>, window_params = [{transform_indices = @transform_0, window_bounds = array<i64: 16, 64>}, {pipeline_mode = #tpu.pipeline_mode<synchronous>, transform_indices = @transform_1, window_bounds = array<i64: 64, 100>}, {pipeline_mode = #tpu.pipeline_mode<synchronous>, transform_indices = @transform_2, window_bounds = array<i64: 3, 64, 16>}, {transform_indices = @transform_3, window_bounds = array<i64: 16, 100>}, {transform_indices = @transform_4, window_bounds = array<i64: 3, 16, 16>}, {pipeline_mode = #tpu.pipeline_mode<synchronous>, transform_indices = @transform_5, window_bounds = array<i64: 1, 100>}, {pipeline_mode = #tpu.pipeline_mode<synchronous>, transform_indices = @transform_6, window_bounds = array<i64: 1, 100>}, {pipeline_mode = #tpu.pipeline_mode<synchronous>, transform_indices = @transform_7, window_bounds = array<i64: 16, 32>}, {pipeline_mode = #tpu.pipeline_mode<synchronous>, transform_indices = @transform_8, window_bounds = array<i64: 100, 400>}, {pipeline_mode = #tpu.pipeline_mode<synchronous>, transform_indices = @transform_9, window_bounds = array<i64: 32, 400>}, {pipeline_mode = #tpu.pipeline_mode<synchronous>, transform_indices = @transform_10, window_bounds = array<i64: 1, 400>}, {pipeline_mode = #tpu.pipeline_mode<synchronous>, transform_indices = @transform_11, window_bounds = array<i64: 32, 32>}, {pipeline_mode = #tpu.pipeline_mode<synchronous>, transform_indices = @transform_12, window_bounds = array<i64: 400, 32>}, {pipeline_mode = #tpu.pipeline_mode<synchronous>, transform_indices = @transform_13, window_bounds = array<i64: 1, 32>}, {pipeline_mode = #tpu.pipeline_mode<synchronous>, transform_indices = @transform_14, window_bounds = array<i64: 32, 32>}, {pipeline_mode = #tpu.pipeline_mode<synchronous>, transform_indices = @transform_15, window_bounds = array<i64: 400, 100>}, {pipeline_mode = #tpu.pipeline_mode<synchronous>, transform_indices = @transform_16, window_bounds = array<i64: 32, 100>}, {pipeline_mode = #tpu.pipeline_mode<synchronous>, transform_indices = @transform_17, window_bounds = array<i64: 1, 100>}, {pipeline_mode = #tpu.pipeline_mode<synchronous>, transform_indices = @transform_18, window_bounds = array<i64: 32, 16>}, {pipeline_mode = #tpu.pipeline_mode<synchronous>, transform_indices = @transform_19, window_bounds = array<i64: 100, 16>}, {pipeline_mode = #tpu.pipeline_mode<synchronous>, transform_indices = @transform_20, window_bounds = array<i64: 1, 16>}, {pipeline_mode = #tpu.pipeline_mode<synchronous>, transform_indices = @transform_21, window_bounds = array<i64: 1, 100>}, {pipeline_mode = #tpu.pipeline_mode<synchronous>, transform_indices = @transform_22, window_bounds = array<i64: 1, 100>}, {transform_indices = @transform_23, window_bounds = array<i64: 16, 100>}, {transform_indices = @transform_24, window_bounds = array<i64: 3, 16, 16>}]} {
    %c0 = arith.constant 0 : index
    %c0_0 = arith.constant 0 : index
    %0 = vector.load %arg1[%c0, %c0_0] : memref<16x64xf32, #tpu.memory_space<vmem>>, vector<16x64xf32>
    %c0_1 = arith.constant 0 : index
    %c0_2 = arith.constant 0 : index
    %1 = vector.load %arg2[%c0_1, %c0_2] : memref<64x100xf32, #tpu.memory_space<vmem>>, vector<64x100xf32>
    %2 = arith.truncf %0 : vector<16x64xf32> to vector<16x64xbf16>
    %3 = arith.truncf %1 : vector<64x100xf32> to vector<64x100xbf16>
    %cst = arith.constant dense<0.000000e+00> : vector<16x100xf32>
    %4 = tpu.matmul %2, %3, %cst {dimension_numbers = #tpu.dot_dimension_numbers<[1], [0], [0], [1], [0, 0, 1, 1], [], []>} : vector<16x64xbf16>, vector<64x100xbf16>, vector<16x100xf32> -> vector<16x100xf32>
    %c0_3 = arith.constant 0 : index
    %c0_4 = arith.constant 0 : index
    %c0_5 = arith.constant 0 : index
    %5 = vector.load %arg3[%c0_3, %c0_4, %c0_5] : memref<3x64x16xf32, #tpu.memory_space<vmem>>, vector<1x64x16xf32>
    %6 = vector.shape_cast %5 : vector<1x64x16xf32> to vector<64x16xf32>
    %7 = arith.truncf %0 : vector<16x64xf32> to vector<16x64xbf16>
    %8 = arith.truncf %6 : vector<64x16xf32> to vector<64x16xbf16>
    %cst_6 = arith.constant dense<0.000000e+00> : vector<16x16xf32>
    %9 = tpu.matmul %7, %8, %cst_6 {dimension_numbers = #tpu.dot_dimension_numbers<[1], [0], [0], [1], [0, 0, 1, 1], [], []>} : vector<16x64xbf16>, vector<64x16xbf16>, vector<16x16xf32> -> vector<16x16xf32>
    %c1 = arith.constant 1 : index
    %c0_7 = arith.constant 0 : index
    %c0_8 = arith.constant 0 : index
    %10 = vector.load %arg3[%c1, %c0_7, %c0_8] : memref<3x64x16xf32, #tpu.memory_space<vmem>>, vector<1x64x16xf32>
    %11 = vector.shape_cast %10 : vector<1x64x16xf32> to vector<64x16xf32>
    %12 = arith.truncf %0 : vector<16x64xf32> to vector<16x64xbf16>
    %13 = arith.truncf %11 : vector<64x16xf32> to vector<64x16xbf16>
    %cst_9 = arith.constant dense<0.000000e+00> : vector<16x16xf32>
    %14 = tpu.matmul %12, %13, %cst_9 {dimension_numbers = #tpu.dot_dimension_numbers<[1], [0], [0], [1], [0, 0, 1, 1], [], []>} : vector<16x64xbf16>, vector<64x16xbf16>, vector<16x16xf32> -> vector<16x16xf32>
    %c2 = arith.constant 2 : index
    %c0_10 = arith.constant 0 : index
    %c0_11 = arith.constant 0 : index
    %15 = vector.load %arg3[%c2, %c0_10, %c0_11] : memref<3x64x16xf32, #tpu.memory_space<vmem>>, vector<1x64x16xf32>
    %16 = vector.shape_cast %15 : vector<1x64x16xf32> to vector<64x16xf32>
    %17 = arith.truncf %0 : vector<16x64xf32> to vector<16x64xbf16>
    %18 = arith.truncf %16 : vector<64x16xf32> to vector<64x16xbf16>
    %cst_12 = arith.constant dense<0.000000e+00> : vector<16x16xf32>
    %19 = tpu.matmul %17, %18, %cst_12 {dimension_numbers = #tpu.dot_dimension_numbers<[1], [0], [0], [1], [0, 0, 1, 1], [], []>} : vector<16x64xbf16>, vector<64x16xbf16>, vector<16x16xf32> -> vector<16x16xf32>
    %20 = tpu.concatenate %9, %14, %19 in 0 : vector<16x16xf32>, vector<16x16xf32>, vector<16x16xf32> -> vector<48x16xf32>
    %c0_13 = arith.constant 0 : index
    %c0_14 = arith.constant 0 : index
    %21 = vector.load %arg4[%c0_13, %c0_14] : memref<16x100xf32, #tpu.memory_space<vmem>>, vector<16x100xf32>
    %22 = arith.addf %21, %4 : vector<16x100xf32>
    %c0_15 = arith.constant 0 : index
    %c0_16 = arith.constant 0 : index
    %c0_17 = arith.constant 0 : index
    %23 = vector.load %arg5[%c0_15, %c0_16, %c0_17] : memref<3x16x16xf32, #tpu.memory_space<vmem>>, vector<1x16x16xf32>
    %24 = vector.shape_cast %23 : vector<1x16x16xf32> to vector<16x16xf32>
    %c1_18 = arith.constant 1 : index
    %c0_19 = arith.constant 0 : index
    %c0_20 = arith.constant 0 : index
    %25 = vector.load %arg5[%c1_18, %c0_19, %c0_20] : memref<3x16x16xf32, #tpu.memory_space<vmem>>, vector<1x16x16xf32>
    %26 = vector.shape_cast %25 : vector<1x16x16xf32> to vector<16x16xf32>
    %c2_21 = arith.constant 2 : index
    %c0_22 = arith.constant 0 : index
    %c0_23 = arith.constant 0 : index
    %27 = vector.load %arg5[%c2_21, %c0_22, %c0_23] : memref<3x16x16xf32, #tpu.memory_space<vmem>>, vector<1x16x16xf32>
    %28 = vector.shape_cast %27 : vector<1x16x16xf32> to vector<16x16xf32>
    %29 = tpu.concatenate %24, %26, %28 in 0 : vector<16x16xf32>, vector<16x16xf32>, vector<16x16xf32> -> vector<48x16xf32>
    %30 = arith.addf %29, %20 : vector<48x16xf32>
    %c0_24 = arith.constant 0 : index
    %c0_25 = arith.constant 0 : index
    %31 = vector.load %arg6[%c0_24, %c0_25] : memref<1x100xf32, #tpu.memory_space<vmem>>, vector<1x100xf32>
    %c0_26 = arith.constant 0 : index
    %c0_27 = arith.constant 0 : index
    %32 = vector.load %arg7[%c0_26, %c0_27] : memref<1x100xf32, #tpu.memory_space<vmem>>, vector<1x100xf32>
    %cst_28 = arith.constant dense<0.000000e+00> : vector<16xf32>
    %33 = vector.multi_reduction <add>, %22, %cst_28 [1] : vector<16x100xf32> to vector<16xf32>
    %34 = vector.shape_cast %33 : vector<16xf32> to vector<16x1xf32>
    %cst_29 = arith.constant 1.000000e+02 : f32
    %35 = vector.broadcast %cst_29 : f32 to vector<16x1xf32>
    %36 = arith.divf %34, %35 : vector<16x1xf32>
    %37 = vector.broadcast %36 : vector<16x1xf32> to vector<16x100xf32>
    %38 = arith.subf %22, %37 : vector<16x100xf32>
    %39 = arith.mulf %38, %38 : vector<16x100xf32>
    %cst_30 = arith.constant dense<0.000000e+00> : vector<16xf32>
    %40 = vector.multi_reduction <add>, %39, %cst_30 [1] : vector<16x100xf32> to vector<16xf32>
    %41 = vector.shape_cast %40 : vector<16xf32> to vector<16x1xf32>
    %cst_31 = arith.constant 1.000000e+02 : f32
    %42 = vector.broadcast %cst_31 : f32 to vector<16x1xf32>
    %43 = arith.divf %41, %42 : vector<16x1xf32>
    %44 = vector.broadcast %36 : vector<16x1xf32> to vector<16x100xf32>
    %45 = arith.subf %22, %44 : vector<16x100xf32>
    %cst_32 = arith.constant 9.99999974E-6 : f32
    %46 = vector.broadcast %cst_32 : f32 to vector<16x1xf32>
    %47 = arith.addf %43, %46 : vector<16x1xf32>
    %48 = math.rsqrt %47 : vector<16x1xf32>
    %49 = vector.broadcast %48 : vector<16x1xf32> to vector<16x100xf32>
    %50 = arith.mulf %45, %49 : vector<16x100xf32>
    %51 = vector.broadcast %31 : vector<1x100xf32> to vector<16x100xf32>
    %52 = arith.mulf %50, %51 : vector<16x100xf32>
    %53 = vector.broadcast %32 : vector<1x100xf32> to vector<16x100xf32>
    %54 = arith.addf %52, %53 : vector<16x100xf32>
    %55 = vector.extract_strided_slice %30 {offsets = [0, 0], sizes = [16, 16], strides = [1, 1]} : vector<48x16xf32> to vector<16x16xf32>
    %56 = vector.extract_strided_slice %30 {offsets = [16, 0], sizes = [16, 16], strides = [1, 1]} : vector<48x16xf32> to vector<16x16xf32>
    %57 = vector.extract_strided_slice %30 {offsets = [32, 0], sizes = [16, 16], strides = [1, 1]} : vector<48x16xf32> to vector<16x16xf32>
    %58 = arith.mulf %55, %55 : vector<16x16xf32>
    %59 = arith.mulf %56, %56 : vector<16x16xf32>
    %60 = arith.addf %58, %59 : vector<16x16xf32>
    %61 = arith.mulf %57, %57 : vector<16x16xf32>
    %62 = arith.addf %60, %61 : vector<16x16xf32>
    %cst_33 = arith.constant 9.99999993E-9 : f32
    %63 = vector.broadcast %cst_33 : f32 to vector<16x16xf32>
    %64 = arith.maximumf %62, %63 : vector<16x16xf32>
    %cst_34 = arith.constant dense<0.000000e+00> : vector<16xf32>
    %65 = vector.multi_reduction <add>, %64, %cst_34 [1] : vector<16x16xf32> to vector<16xf32>
    %66 = vector.shape_cast %65 : vector<16xf32> to vector<16x1xf32>
    %cst_35 = arith.constant 1.600000e+01 : f32
    %67 = vector.broadcast %cst_35 : f32 to vector<16x1xf32>
    %68 = arith.divf %66, %67 : vector<16x1xf32>
    %69 = math.rsqrt %68 : vector<16x1xf32>
    %70 = vector.broadcast %69 : vector<16x1xf32> to vector<16x16xf32>
    %71 = arith.mulf %55, %70 : vector<16x16xf32>
    %72 = vector.broadcast %69 : vector<16x1xf32> to vector<16x16xf32>
    %73 = arith.mulf %56, %72 : vector<16x16xf32>
    %74 = vector.broadcast %69 : vector<16x1xf32> to vector<16x16xf32>
    %75 = arith.mulf %57, %74 : vector<16x16xf32>
    %76 = tpu.concatenate %71, %73, %75 in 0 : vector<16x16xf32>, vector<16x16xf32>, vector<16x16xf32> -> vector<48x16xf32>
    %c0_36 = arith.constant 0 : index
    %c0_37 = arith.constant 0 : index
    %77 = vector.load %arg8[%c0_36, %c0_37] : memref<16x32xf32, #tpu.memory_space<vmem>>, vector<16x32xf32>
    %c0_38 = arith.constant 0 : index
    %c0_39 = arith.constant 0 : index
    %78 = vector.load %arg9[%c0_38, %c0_39] : memref<100x400xf32, #tpu.memory_space<vmem>>, vector<100x400xf32>
    %c0_40 = arith.constant 0 : index
    %c0_41 = arith.constant 0 : index
    %79 = vector.load %arg10[%c0_40, %c0_41] : memref<32x400xf32, #tpu.memory_space<vmem>>, vector<32x400xf32>
    %c0_42 = arith.constant 0 : index
    %c0_43 = arith.constant 0 : index
    %80 = vector.load %arg11[%c0_42, %c0_43] : memref<1x400xf32, #tpu.memory_space<vmem>>, vector<1x400xf32>
    %c0_44 = arith.constant 0 : index
    %c0_45 = arith.constant 0 : index
    %81 = vector.load %arg12[%c0_44, %c0_45] : memref<32x32xf32, #tpu.memory_space<vmem>>, vector<32x32xf32>
    %c0_46 = arith.constant 0 : index
    %c0_47 = arith.constant 0 : index
    %82 = vector.load %arg13[%c0_46, %c0_47] : memref<400x32xf32, #tpu.memory_space<vmem>>, vector<400x32xf32>
    %c0_48 = arith.constant 0 : index
    %c0_49 = arith.constant 0 : index
    %83 = vector.load %arg14[%c0_48, %c0_49] : memref<1x32xf32, #tpu.memory_space<vmem>>, vector<1x32xf32>
    %84 = arith.truncf %76 : vector<48x16xf32> to vector<48x16xbf16>
    %85 = arith.truncf %77 : vector<16x32xf32> to vector<16x32xbf16>
    %cst_50 = arith.constant dense<0.000000e+00> : vector<48x32xf32>
    %86 = tpu.matmul %84, %85, %cst_50 {dimension_numbers = #tpu.dot_dimension_numbers<[1], [0], [0], [1], [0, 0, 1, 1], [], []>} : vector<48x16xbf16>, vector<16x32xbf16>, vector<48x32xf32> -> vector<48x32xf32>
    %87 = vector.extract_strided_slice %86 {offsets = [0, 0], sizes = [16, 32], strides = [1, 1]} : vector<48x32xf32> to vector<16x32xf32>
    %88 = vector.extract_strided_slice %86 {offsets = [16, 0], sizes = [16, 32], strides = [1, 1]} : vector<48x32xf32> to vector<16x32xf32>
    %89 = vector.extract_strided_slice %86 {offsets = [32, 0], sizes = [16, 32], strides = [1, 1]} : vector<48x32xf32> to vector<16x32xf32>
    %90 = arith.mulf %87, %87 : vector<16x32xf32>
    %91 = arith.mulf %88, %88 : vector<16x32xf32>
    %92 = arith.addf %90, %91 : vector<16x32xf32>
    %93 = arith.mulf %89, %89 : vector<16x32xf32>
    %94 = arith.addf %92, %93 : vector<16x32xf32>
    %cst_51 = arith.constant 9.99999993E-9 : f32
    %95 = vector.broadcast %cst_51 : f32 to vector<16x32xf32>
    %96 = arith.maximumf %94, %95 : vector<16x32xf32>
    %97 = math.sqrt %96 : vector<16x32xf32>
    %98 = arith.truncf %54 : vector<16x100xf32> to vector<16x100xbf16>
    %99 = arith.truncf %78 : vector<100x400xf32> to vector<100x400xbf16>
    %cst_52 = arith.constant dense<0.000000e+00> : vector<16x400xf32>
    %100 = tpu.matmul %98, %99, %cst_52 {dimension_numbers = #tpu.dot_dimension_numbers<[1], [0], [0], [1], [0, 0, 1, 1], [], []>} : vector<16x100xbf16>, vector<100x400xbf16>, vector<16x400xf32> -> vector<16x400xf32>
    %101 = arith.truncf %97 : vector<16x32xf32> to vector<16x32xbf16>
    %102 = arith.truncf %79 : vector<32x400xf32> to vector<32x400xbf16>
    %cst_53 = arith.constant dense<0.000000e+00> : vector<16x400xf32>
    %103 = tpu.matmul %101, %102, %cst_53 {dimension_numbers = #tpu.dot_dimension_numbers<[1], [0], [0], [1], [0, 0, 1, 1], [], []>} : vector<16x32xbf16>, vector<32x400xbf16>, vector<16x400xf32> -> vector<16x400xf32>
    %104 = arith.addf %100, %103 : vector<16x400xf32>
    %105 = vector.broadcast %80 : vector<1x400xf32> to vector<16x400xf32>
    %106 = arith.addf %104, %105 : vector<16x400xf32>
    %cst_54 = arith.constant 0.000000e+00 : f32
    %107 = vector.broadcast %cst_54 : f32 to vector<16x400xf32>
    %108 = arith.maximumf %106, %107 : vector<16x400xf32>
    %109 = arith.truncf %106 : vector<16x400xf32> to vector<16x400xbf16>
    %110 = arith.truncf %82 : vector<400x32xf32> to vector<400x32xbf16>
    %cst_55 = arith.constant dense<0.000000e+00> : vector<16x32xf32>
    %111 = tpu.matmul %109, %110, %cst_55 {dimension_numbers = #tpu.dot_dimension_numbers<[1], [0], [0], [1], [0, 0, 1, 1], [], []>} : vector<16x400xbf16>, vector<400x32xbf16>, vector<16x32xf32> -> vector<16x32xf32>
    %112 = vector.broadcast %83 : vector<1x32xf32> to vector<16x32xf32>
    %113 = arith.addf %111, %112 : vector<16x32xf32>
    %cst_56 = arith.constant 0.000000e+00 : f32
    %114 = vector.broadcast %cst_56 : f32 to vector<16x32xf32>
    %115 = arith.subf %114, %113 : vector<16x32xf32>
    %116 = math.exp %115 : vector<16x32xf32>
    %cst_57 = arith.constant 1.000000e+00 : f32
    %117 = vector.broadcast %cst_57 : f32 to vector<16x32xf32>
    %118 = arith.addf %117, %116 : vector<16x32xf32>
    %119 = tpu.reciprocal %118 {approx = true} : vector<16x32xf32> -> vector<16x32xf32>
    %120 = arith.truncf %86 : vector<48x32xf32> to vector<48x32xbf16>
    %121 = arith.truncf %81 : vector<32x32xf32> to vector<32x32xbf16>
    %cst_58 = arith.constant dense<0.000000e+00> : vector<48x32xf32>
    %122 = tpu.matmul %120, %121, %cst_58 {dimension_numbers = #tpu.dot_dimension_numbers<[1], [0], [0], [1], [0, 0, 1, 1], [], []>} : vector<48x32xbf16>, vector<32x32xbf16>, vector<48x32xf32> -> vector<48x32xf32>
    %123 = vector.extract_strided_slice %122 {offsets = [0, 0], sizes = [16, 32], strides = [1, 1]} : vector<48x32xf32> to vector<16x32xf32>
    %124 = arith.mulf %123, %119 : vector<16x32xf32>
    %125 = vector.extract_strided_slice %122 {offsets = [16, 0], sizes = [16, 32], strides = [1, 1]} : vector<48x32xf32> to vector<16x32xf32>
    %126 = arith.mulf %125, %119 : vector<16x32xf32>
    %127 = vector.extract_strided_slice %122 {offsets = [32, 0], sizes = [16, 32], strides = [1, 1]} : vector<48x32xf32> to vector<16x32xf32>
    %128 = arith.mulf %127, %119 : vector<16x32xf32>
    %129 = tpu.concatenate %124, %126, %128 in 0 : vector<16x32xf32>, vector<16x32xf32>, vector<16x32xf32> -> vector<48x32xf32>
    %c0_59 = arith.constant 0 : index
    %c0_60 = arith.constant 0 : index
    %130 = vector.load %arg15[%c0_59, %c0_60] : memref<32x32xf32, #tpu.memory_space<vmem>>, vector<32x32xf32>
    %c0_61 = arith.constant 0 : index
    %c0_62 = arith.constant 0 : index
    %131 = vector.load %arg16[%c0_61, %c0_62] : memref<400x100xf32, #tpu.memory_space<vmem>>, vector<400x100xf32>
    %c0_63 = arith.constant 0 : index
    %c0_64 = arith.constant 0 : index
    %132 = vector.load %arg17[%c0_63, %c0_64] : memref<32x100xf32, #tpu.memory_space<vmem>>, vector<32x100xf32>
    %c0_65 = arith.constant 0 : index
    %c0_66 = arith.constant 0 : index
    %133 = vector.load %arg18[%c0_65, %c0_66] : memref<1x100xf32, #tpu.memory_space<vmem>>, vector<1x100xf32>
    %c0_67 = arith.constant 0 : index
    %c0_68 = arith.constant 0 : index
    %134 = vector.load %arg19[%c0_67, %c0_68] : memref<32x16xf32, #tpu.memory_space<vmem>>, vector<32x16xf32>
    %c0_69 = arith.constant 0 : index
    %c0_70 = arith.constant 0 : index
    %135 = vector.load %arg20[%c0_69, %c0_70] : memref<100x16xf32, #tpu.memory_space<vmem>>, vector<100x16xf32>
    %c0_71 = arith.constant 0 : index
    %c0_72 = arith.constant 0 : index
    %136 = vector.load %arg21[%c0_71, %c0_72] : memref<1x16xf32, #tpu.memory_space<vmem>>, vector<1x16xf32>
    %137 = arith.truncf %129 : vector<48x32xf32> to vector<48x32xbf16>
    %138 = arith.truncf %130 : vector<32x32xf32> to vector<32x32xbf16>
    %cst_73 = arith.constant dense<0.000000e+00> : vector<48x32xf32>
    %139 = tpu.matmul %137, %138, %cst_73 {dimension_numbers = #tpu.dot_dimension_numbers<[1], [0], [0], [1], [0, 0, 1, 1], [], []>} : vector<48x32xbf16>, vector<32x32xbf16>, vector<48x32xf32> -> vector<48x32xf32>
    %140 = vector.extract_strided_slice %139 {offsets = [0, 0], sizes = [16, 32], strides = [1, 1]} : vector<48x32xf32> to vector<16x32xf32>
    %141 = vector.extract_strided_slice %139 {offsets = [16, 0], sizes = [16, 32], strides = [1, 1]} : vector<48x32xf32> to vector<16x32xf32>
    %142 = vector.extract_strided_slice %139 {offsets = [32, 0], sizes = [16, 32], strides = [1, 1]} : vector<48x32xf32> to vector<16x32xf32>
    %143 = arith.mulf %140, %140 : vector<16x32xf32>
    %144 = arith.mulf %141, %141 : vector<16x32xf32>
    %145 = arith.addf %143, %144 : vector<16x32xf32>
    %146 = arith.mulf %142, %142 : vector<16x32xf32>
    %147 = arith.addf %145, %146 : vector<16x32xf32>
    %cst_74 = arith.constant 9.99999993E-9 : f32
    %148 = vector.broadcast %cst_74 : f32 to vector<16x32xf32>
    %149 = arith.maximumf %147, %148 : vector<16x32xf32>
    %150 = math.sqrt %149 : vector<16x32xf32>
    %151 = arith.truncf %108 : vector<16x400xf32> to vector<16x400xbf16>
    %152 = arith.truncf %131 : vector<400x100xf32> to vector<400x100xbf16>
    %cst_75 = arith.constant dense<0.000000e+00> : vector<16x100xf32>
    %153 = tpu.matmul %151, %152, %cst_75 {dimension_numbers = #tpu.dot_dimension_numbers<[1], [0], [0], [1], [0, 0, 1, 1], [], []>} : vector<16x400xbf16>, vector<400x100xbf16>, vector<16x100xf32> -> vector<16x100xf32>
    %154 = arith.truncf %150 : vector<16x32xf32> to vector<16x32xbf16>
    %155 = arith.truncf %132 : vector<32x100xf32> to vector<32x100xbf16>
    %cst_76 = arith.constant dense<0.000000e+00> : vector<16x100xf32>
    %156 = tpu.matmul %154, %155, %cst_76 {dimension_numbers = #tpu.dot_dimension_numbers<[1], [0], [0], [1], [0, 0, 1, 1], [], []>} : vector<16x32xbf16>, vector<32x100xbf16>, vector<16x100xf32> -> vector<16x100xf32>
    %157 = arith.addf %153, %156 : vector<16x100xf32>
    %158 = vector.broadcast %133 : vector<1x100xf32> to vector<16x100xf32>
    %159 = arith.addf %157, %158 : vector<16x100xf32>
    %160 = arith.truncf %159 : vector<16x100xf32> to vector<16x100xbf16>
    %161 = arith.truncf %135 : vector<100x16xf32> to vector<100x16xbf16>
    %cst_77 = arith.constant dense<0.000000e+00> : vector<16x16xf32>
    %162 = tpu.matmul %160, %161, %cst_77 {dimension_numbers = #tpu.dot_dimension_numbers<[1], [0], [0], [1], [0, 0, 1, 1], [], []>} : vector<16x100xbf16>, vector<100x16xbf16>, vector<16x16xf32> -> vector<16x16xf32>
    %163 = vector.broadcast %136 : vector<1x16xf32> to vector<16x16xf32>
    %164 = arith.addf %162, %163 : vector<16x16xf32>
    %cst_78 = arith.constant 0.000000e+00 : f32
    %165 = vector.broadcast %cst_78 : f32 to vector<16x16xf32>
    %166 = arith.subf %165, %164 : vector<16x16xf32>
    %167 = math.exp %166 : vector<16x16xf32>
    %cst_79 = arith.constant 1.000000e+00 : f32
    %168 = vector.broadcast %cst_79 : f32 to vector<16x16xf32>
    %169 = arith.addf %168, %167 : vector<16x16xf32>
    %170 = tpu.reciprocal %169 {approx = true} : vector<16x16xf32> -> vector<16x16xf32>
    %171 = arith.truncf %139 : vector<48x32xf32> to vector<48x32xbf16>
    %172 = arith.truncf %134 : vector<32x16xf32> to vector<32x16xbf16>
    %cst_80 = arith.constant dense<0.000000e+00> : vector<48x16xf32>
    %173 = tpu.matmul %171, %172, %cst_80 {dimension_numbers = #tpu.dot_dimension_numbers<[1], [0], [0], [1], [0, 0, 1, 1], [], []>} : vector<48x32xbf16>, vector<32x16xbf16>, vector<48x16xf32> -> vector<48x16xf32>
    %174 = vector.extract_strided_slice %173 {offsets = [0, 0], sizes = [16, 16], strides = [1, 1]} : vector<48x16xf32> to vector<16x16xf32>
    %175 = arith.mulf %174, %170 : vector<16x16xf32>
    %176 = vector.extract_strided_slice %173 {offsets = [16, 0], sizes = [16, 16], strides = [1, 1]} : vector<48x16xf32> to vector<16x16xf32>
    %177 = arith.mulf %176, %170 : vector<16x16xf32>
    %178 = vector.extract_strided_slice %173 {offsets = [32, 0], sizes = [16, 16], strides = [1, 1]} : vector<48x16xf32> to vector<16x16xf32>
    %179 = arith.mulf %178, %170 : vector<16x16xf32>
    %180 = tpu.concatenate %175, %177, %179 in 0 : vector<16x16xf32>, vector<16x16xf32>, vector<16x16xf32> -> vector<48x16xf32>
    %181 = arith.addf %54, %159 : vector<16x100xf32>
    %182 = arith.addf %76, %180 : vector<48x16xf32>
    %c0_81 = arith.constant 0 : index
    %c0_82 = arith.constant 0 : index
    %183 = vector.load %arg22[%c0_81, %c0_82] : memref<1x100xf32, #tpu.memory_space<vmem>>, vector<1x100xf32>
    %c0_83 = arith.constant 0 : index
    %c0_84 = arith.constant 0 : index
    %184 = vector.load %arg23[%c0_83, %c0_84] : memref<1x100xf32, #tpu.memory_space<vmem>>, vector<1x100xf32>
    %cst_85 = arith.constant dense<0.000000e+00> : vector<16xf32>
    %185 = vector.multi_reduction <add>, %181, %cst_85 [1] : vector<16x100xf32> to vector<16xf32>
    %186 = vector.shape_cast %185 : vector<16xf32> to vector<16x1xf32>
    %cst_86 = arith.constant 1.000000e+02 : f32
    %187 = vector.broadcast %cst_86 : f32 to vector<16x1xf32>
    %188 = arith.divf %186, %187 : vector<16x1xf32>
    %189 = vector.broadcast %188 : vector<16x1xf32> to vector<16x100xf32>
    %190 = arith.subf %181, %189 : vector<16x100xf32>
    %191 = arith.mulf %190, %190 : vector<16x100xf32>
    %cst_87 = arith.constant dense<0.000000e+00> : vector<16xf32>
    %192 = vector.multi_reduction <add>, %191, %cst_87 [1] : vector<16x100xf32> to vector<16xf32>
    %193 = vector.shape_cast %192 : vector<16xf32> to vector<16x1xf32>
    %cst_88 = arith.constant 1.000000e+02 : f32
    %194 = vector.broadcast %cst_88 : f32 to vector<16x1xf32>
    %195 = arith.divf %193, %194 : vector<16x1xf32>
    %196 = vector.broadcast %188 : vector<16x1xf32> to vector<16x100xf32>
    %197 = arith.subf %181, %196 : vector<16x100xf32>
    %cst_89 = arith.constant 9.99999974E-6 : f32
    %198 = vector.broadcast %cst_89 : f32 to vector<16x1xf32>
    %199 = arith.addf %195, %198 : vector<16x1xf32>
    %200 = math.rsqrt %199 : vector<16x1xf32>
    %201 = vector.broadcast %200 : vector<16x1xf32> to vector<16x100xf32>
    %202 = arith.mulf %197, %201 : vector<16x100xf32>
    %203 = vector.broadcast %183 : vector<1x100xf32> to vector<16x100xf32>
    %204 = arith.mulf %202, %203 : vector<16x100xf32>
    %205 = vector.broadcast %184 : vector<1x100xf32> to vector<16x100xf32>
    %206 = arith.addf %204, %205 : vector<16x100xf32>
    %207 = vector.extract_strided_slice %182 {offsets = [0, 0], sizes = [16, 16], strides = [1, 1]} : vector<48x16xf32> to vector<16x16xf32>
    %208 = vector.extract_strided_slice %182 {offsets = [16, 0], sizes = [16, 16], strides = [1, 1]} : vector<48x16xf32> to vector<16x16xf32>
    %209 = vector.extract_strided_slice %182 {offsets = [32, 0], sizes = [16, 16], strides = [1, 1]} : vector<48x16xf32> to vector<16x16xf32>
    %210 = arith.mulf %207, %207 : vector<16x16xf32>
    %211 = arith.mulf %208, %208 : vector<16x16xf32>
    %212 = arith.addf %210, %211 : vector<16x16xf32>
    %213 = arith.mulf %209, %209 : vector<16x16xf32>
    %214 = arith.addf %212, %213 : vector<16x16xf32>
    %cst_90 = arith.constant 9.99999993E-9 : f32
    %215 = vector.broadcast %cst_90 : f32 to vector<16x16xf32>
    %216 = arith.maximumf %214, %215 : vector<16x16xf32>
    %cst_91 = arith.constant dense<0.000000e+00> : vector<16xf32>
    %217 = vector.multi_reduction <add>, %216, %cst_91 [1] : vector<16x16xf32> to vector<16xf32>
    %218 = vector.shape_cast %217 : vector<16xf32> to vector<16x1xf32>
    %cst_92 = arith.constant 1.600000e+01 : f32
    %219 = vector.broadcast %cst_92 : f32 to vector<16x1xf32>
    %220 = arith.divf %218, %219 : vector<16x1xf32>
    %221 = math.rsqrt %220 : vector<16x1xf32>
    %222 = vector.broadcast %221 : vector<16x1xf32> to vector<16x16xf32>
    %223 = arith.mulf %207, %222 : vector<16x16xf32>
    %224 = vector.broadcast %221 : vector<16x1xf32> to vector<16x16xf32>
    %225 = arith.mulf %208, %224 : vector<16x16xf32>
    %226 = vector.broadcast %221 : vector<16x1xf32> to vector<16x16xf32>
    %227 = arith.mulf %209, %226 : vector<16x16xf32>
    %228 = tpu.concatenate %223, %225, %227 in 0 : vector<16x16xf32>, vector<16x16xf32>, vector<16x16xf32> -> vector<48x16xf32>
    %c0_93 = arith.constant 0 : index
    %c0_94 = arith.constant 0 : index
    %229 = vector.load %arg24[%c0_93, %c0_94] : memref<16x100xf32, #tpu.memory_space<vmem>>, vector<16x100xf32>
    tpu.vector_store %arg24[%c0_93, %c0_94], %206 {strides = array<i32>} : memref<16x100xf32, #tpu.memory_space<vmem>>, vector<16x100xf32>,
    %230 = vector.extract_strided_slice %228 {offsets = [0, 0], sizes = [16, 16], strides = [1, 1]} : vector<48x16xf32> to vector<16x16xf32>
    %c0_95 = arith.constant 0 : index
    %c0_96 = arith.constant 0 : index
    %c0_97 = arith.constant 0 : index
    %231 = vector.load %arg25[%c0_95, %c0_96, %c0_97] : memref<3x16x16xf32, #tpu.memory_space<vmem>>, vector<1x16x16xf32>
    %232 = vector.shape_cast %231 : vector<1x16x16xf32> to vector<16x16xf32>
    %233 = vector.shape_cast %230 : vector<16x16xf32> to vector<1x16x16xf32>
    tpu.vector_store %arg25[%c0_95, %c0_96, %c0_97], %233 {strides = array<i32>} : memref<3x16x16xf32, #tpu.memory_space<vmem>>, vector<1x16x16xf32>,
    %234 = vector.extract_strided_slice %228 {offsets = [16, 0], sizes = [16, 16], strides = [1, 1]} : vector<48x16xf32> to vector<16x16xf32>
    %c1_98 = arith.constant 1 : index
    %c0_99 = arith.constant 0 : index
    %c0_100 = arith.constant 0 : index
    %235 = vector.load %arg25[%c1_98, %c0_99, %c0_100] : memref<3x16x16xf32, #tpu.memory_space<vmem>>, vector<1x16x16xf32>
    %236 = vector.shape_cast %235 : vector<1x16x16xf32> to vector<16x16xf32>
    %237 = vector.shape_cast %234 : vector<16x16xf32> to vector<1x16x16xf32>
    tpu.vector_store %arg25[%c1_98, %c0_99, %c0_100], %237 {strides = array<i32>} : memref<3x16x16xf32, #tpu.memory_space<vmem>>, vector<1x16x16xf32>,
    %238 = vector.extract_strided_slice %228 {offsets = [32, 0], sizes = [16, 16], strides = [1, 1]} : vector<48x16xf32> to vector<16x16xf32>
    %c2_101 = arith.constant 2 : index
    %c0_102 = arith.constant 0 : index
    %c0_103 = arith.constant 0 : index
    %239 = vector.load %arg25[%c2_101, %c0_102, %c0_103] : memref<3x16x16xf32, #tpu.memory_space<vmem>>, vector<1x16x16xf32>
    %240 = vector.shape_cast %239 : vector<1x16x16xf32> to vector<16x16xf32>
    %241 = vector.shape_cast %238 : vector<16x16xf32> to vector<1x16x16xf32>
    tpu.vector_store %arg25[%c2_101, %c0_102, %c0_103], %241 {strides = array<i32>} : memref<3x16x16xf32, #tpu.memory_space<vmem>>, vector<1x16x16xf32>,
    return
  }
  func.func @transform_0(%arg0: i32) -> (i32, i32) {
    %c0_i32 = arith.constant 0 : i32
    %c0_i32_0 = arith.constant 0 : i32
    return %arg0, %c0_i32 : i32, i32
  }
  func.func @transform_1(%arg0: i32) -> (i32, i32) {
    %c0_i32 = arith.constant 0 : i32
    %c0_i32_0 = arith.constant 0 : i32
    %c0_i32_1 = arith.constant 0 : i32
    return %c0_i32, %c0_i32_0 : i32, i32
  }
  func.func @transform_2(%arg0: i32) -> (i32, i32, i32) {
    %c0_i32 = arith.constant 0 : i32
    %c0_i32_0 = arith.constant 0 : i32
    %c0_i32_1 = arith.constant 0 : i32
    %c0_i32_2 = arith.constant 0 : i32
    return %c0_i32, %c0_i32_0, %c0_i32_1 : i32, i32, i32
  }
  func.func @transform_3(%arg0: i32) -> (i32, i32) {
    %c0_i32 = arith.constant 0 : i32
    %c0_i32_0 = arith.constant 0 : i32
    return %arg0, %c0_i32 : i32, i32
  }
  func.func @transform_4(%arg0: i32) -> (i32, i32, i32) {
    %c0_i32 = arith.constant 0 : i32
    %c0_i32_0 = arith.constant 0 : i32
    %c0_i32_1 = arith.constant 0 : i32
    return %c0_i32, %arg0, %c0_i32_0 : i32, i32, i32
  }
  func.func @transform_5(%arg0: i32) -> (i32, i32) {
    %c0_i32 = arith.constant 0 : i32
    %c0_i32_0 = arith.constant 0 : i32
    %c0_i32_1 = arith.constant 0 : i32
    return %c0_i32, %c0_i32_0 : i32, i32
  }
  func.func @transform_6(%arg0: i32) -> (i32, i32) {
    %c0_i32 = arith.constant 0 : i32
    %c0_i32_0 = arith.constant 0 : i32
    %c0_i32_1 = arith.constant 0 : i32
    return %c0_i32, %c0_i32_0 : i32, i32
  }
  func.func @transform_7(%arg0: i32) -> (i32, i32) {
    %c0_i32 = arith.constant 0 : i32
    %c0_i32_0 = arith.constant 0 : i32
    %c0_i32_1 = arith.constant 0 : i32
    return %c0_i32, %c0_i32_0 : i32, i32
  }
  func.func @transform_8(%arg0: i32) -> (i32, i32) {
    %c0_i32 = arith.constant 0 : i32
    %c0_i32_0 = arith.constant 0 : i32
    %c0_i32_1 = arith.constant 0 : i32
    return %c0_i32, %c0_i32_0 : i32, i32
  }
  func.func @transform_9(%arg0: i32) -> (i32, i32) {
    %c0_i32 = arith.constant 0 : i32
    %c0_i32_0 = arith.constant 0 : i32
    %c0_i32_1 = arith.constant 0 : i32
    return %c0_i32, %c0_i32_0 : i32, i32
  }
  func.func @transform_10(%arg0: i32) -> (i32, i32) {
    %c0_i32 = arith.constant 0 : i32
    %c0_i32_0 = arith.constant 0 : i32
    %c0_i32_1 = arith.constant 0 : i32
    return %c0_i32, %c0_i32_0 : i32, i32
  }
  func.func @transform_11(%arg0: i32) -> (i32, i32) {
    %c0_i32 = arith.constant 0 : i32
    %c0_i32_0 = arith.constant 0 : i32
    %c0_i32_1 = arith.constant 0 : i32
    return %c0_i32, %c0_i32_0 : i32, i32
  }
  func.func @transform_12(%arg0: i32) -> (i32, i32) {
    %c0_i32 = arith.constant 0 : i32
    %c0_i32_0 = arith.constant 0 : i32
    %c0_i32_1 = arith.constant 0 : i32
    return %c0_i32, %c0_i32_0 : i32, i32
  }
  func.func @transform_13(%arg0: i32) -> (i32, i32) {
    %c0_i32 = arith.constant 0 : i32
    %c0_i32_0 = arith.constant 0 : i32
    %c0_i32_1 = arith.constant 0 : i32
    return %c0_i32, %c0_i32_0 : i32, i32
  }
  func.func @transform_14(%arg0: i32) -> (i32, i32) {
    %c0_i32 = arith.constant 0 : i32
    %c0_i32_0 = arith.constant 0 : i32
    %c0_i32_1 = arith.constant 0 : i32
    return %c0_i32, %c0_i32_0 : i32, i32
  }
  func.func @transform_15(%arg0: i32) -> (i32, i32) {
    %c0_i32 = arith.constant 0 : i32
    %c0_i32_0 = arith.constant 0 : i32
    %c0_i32_1 = arith.constant 0 : i32
    return %c0_i32, %c0_i32_0 : i32, i32
  }
  func.func @transform_16(%arg0: i32) -> (i32, i32) {
    %c0_i32 = arith.constant 0 : i32
    %c0_i32_0 = arith.constant 0 : i32
    %c0_i32_1 = arith.constant 0 : i32
    return %c0_i32, %c0_i32_0 : i32, i32
  }
  func.func @transform_17(%arg0: i32) -> (i32, i32) {
    %c0_i32 = arith.constant 0 : i32
    %c0_i32_0 = arith.constant 0 : i32
    %c0_i32_1 = arith.constant 0 : i32
    return %c0_i32, %c0_i32_0 : i32, i32
  }
  func.func @transform_18(%arg0: i32) -> (i32, i32) {
    %c0_i32 = arith.constant 0 : i32
    %c0_i32_0 = arith.constant 0 : i32
    %c0_i32_1 = arith.constant 0 : i32
    return %c0_i32, %c0_i32_0 : i32, i32
  }
  func.func @transform_19(%arg0: i32) -> (i32, i32) {
    %c0_i32 = arith.constant 0 : i32
    %c0_i32_0 = arith.constant 0 : i32
    %c0_i32_1 = arith.constant 0 : i32
    return %c0_i32, %c0_i32_0 : i32, i32
  }
  func.func @transform_20(%arg0: i32) -> (i32, i32) {
    %c0_i32 = arith.constant 0 : i32
    %c0_i32_0 = arith.constant 0 : i32
    %c0_i32_1 = arith.constant 0 : i32
    return %c0_i32, %c0_i32_0 : i32, i32
  }
  func.func @transform_21(%arg0: i32) -> (i32, i32) {
    %c0_i32 = arith.constant 0 : i32
    %c0_i32_0 = arith.constant 0 : i32
    %c0_i32_1 = arith.constant 0 : i32
    return %c0_i32, %c0_i32_0 : i32, i32
  }
  func.func @transform_22(%arg0: i32) -> (i32, i32) {
    %c0_i32 = arith.constant 0 : i32
    %c0_i32_0 = arith.constant 0 : i32
    %c0_i32_1 = arith.constant 0 : i32
    return %c0_i32, %c0_i32_0 : i32, i32
  }
  func.func @transform_23(%arg0: i32) -> (i32, i32) {
    %c0_i32 = arith.constant 0 : i32
    %c0_i32_0 = arith.constant 0 : i32
    return %arg0, %c0_i32 : i32, i32
  }
  func.func @transform_24(%arg0: i32) -> (i32, i32, i32) {
    %c0_i32 = arith.constant 0 : i32
    %c0_i32_0 = arith.constant 0 : i32
    %c0_i32_1 = arith.constant 0 : i32
    return %c0_i32, %arg0, %c0_i32_0 : i32, i32, i32
  }
}

module attributes {stable_mosaic.version = 11 : i64} {
  func.func @_wout_pool_head_kernel(%arg0: i32, %arg1: memref<8x16xf32, #tpu.memory_space<vmem>>, %arg2: memref<16x100xf32, #tpu.memory_space<vmem>>, %arg3: memref<3x16x16xf32, #tpu.memory_space<vmem>>, %arg4: memref<1x100xf32, #tpu.memory_space<vmem>>, %arg5: memref<1x100xf32, #tpu.memory_space<vmem>>, %arg6: memref<16x16xf32, #tpu.memory_space<vmem>>, %arg7: memref<100x100xf32, #tpu.memory_space<vmem>>, %arg8: memref<16x100xf32, #tpu.memory_space<vmem>>, %arg9: memref<1x100xf32, #tpu.memory_space<vmem>>, %arg10: memref<100x200xf32, #tpu.memory_space<vmem>>, %arg11: memref<1x200xf32, #tpu.memory_space<vmem>>, %arg12: memref<200x1xf32, #tpu.memory_space<vmem>>, %arg13: memref<1x1xf32, #tpu.memory_space<vmem>>, %arg14: memref<8x1xf32, #tpu.memory_space<vmem>>, %arg15: memref<8x100xf32, #tpu.memory_space<vmem>>) attributes {dimension_semantics = [#tpu.dimension_semantics<arbitrary>], iteration_bounds = array<i64: 1>, scalar_prefetch = 0 : i64, scratch_operands = 1 : i64, tpu.core_type = #tpu.core_type<tc>, window_params = [{transform_indices = @transform_0, window_bounds = array<i64: 8, 16>}, {transform_indices = @transform_1, window_bounds = array<i64: 16, 100>}, {transform_indices = @transform_2, window_bounds = array<i64: 3, 16, 16>}, {pipeline_mode = #tpu.pipeline_mode<synchronous>, transform_indices = @transform_3, window_bounds = array<i64: 1, 100>}, {pipeline_mode = #tpu.pipeline_mode<synchronous>, transform_indices = @transform_4, window_bounds = array<i64: 1, 100>}, {pipeline_mode = #tpu.pipeline_mode<synchronous>, transform_indices = @transform_5, window_bounds = array<i64: 16, 16>}, {pipeline_mode = #tpu.pipeline_mode<synchronous>, transform_indices = @transform_6, window_bounds = array<i64: 100, 100>}, {pipeline_mode = #tpu.pipeline_mode<synchronous>, transform_indices = @transform_7, window_bounds = array<i64: 16, 100>}, {pipeline_mode = #tpu.pipeline_mode<synchronous>, transform_indices = @transform_8, window_bounds = array<i64: 1, 100>}, {pipeline_mode = #tpu.pipeline_mode<synchronous>, transform_indices = @transform_9, window_bounds = array<i64: 100, 200>}, {pipeline_mode = #tpu.pipeline_mode<synchronous>, transform_indices = @transform_10, window_bounds = array<i64: 1, 200>}, {pipeline_mode = #tpu.pipeline_mode<synchronous>, transform_indices = @transform_11, window_bounds = array<i64: 200, 1>}, {pipeline_mode = #tpu.pipeline_mode<synchronous>, transform_indices = @transform_12, window_bounds = array<i64: 1, 1>}, {pipeline_mode = #tpu.pipeline_mode<synchronous>, transform_indices = @transform_13, window_bounds = array<i64: 8, 1>}]} {
    %c0_i32 = arith.constant 0 : i32
    %0 = arith.cmpi eq, %arg0, %c0_i32 : i32
    %1 = arith.extui %0 : i1 to i32
    %c0_i32_0 = arith.constant 0 : i32
    %2 = arith.cmpi ne, %1, %c0_i32_0 : i32
    scf.if %2 {
      %cst_42 = arith.constant 0.000000e+00 : f32
      %96 = vector.broadcast %cst_42 : f32 to vector<8x100xf32>
      %c0_43 = arith.constant 0 : index
      %c0_44 = arith.constant 0 : index
      %97 = vector.load %arg15[%c0_43, %c0_44] : memref<8x100xf32, #tpu.memory_space<vmem>>, vector<8x100xf32>
      tpu.vector_store %arg15[%c0_43, %c0_44], %96 {strides = array<i32>} : memref<8x100xf32, #tpu.memory_space<vmem>>, vector<8x100xf32>,
    } else {
    }
    %c0 = arith.constant 0 : index
    %c0_1 = arith.constant 0 : index
    %3 = vector.load %arg2[%c0, %c0_1] : memref<16x100xf32, #tpu.memory_space<vmem>>, vector<16x100xf32>
    %c0_2 = arith.constant 0 : index
    %c0_3 = arith.constant 0 : index
    %c0_4 = arith.constant 0 : index
    %4 = vector.load %arg3[%c0_2, %c0_3, %c0_4] : memref<3x16x16xf32, #tpu.memory_space<vmem>>, vector<1x16x16xf32>
    %5 = vector.shape_cast %4 : vector<1x16x16xf32> to vector<16x16xf32>
    %c1 = arith.constant 1 : index
    %c0_5 = arith.constant 0 : index
    %c0_6 = arith.constant 0 : index
    %6 = vector.load %arg3[%c1, %c0_5, %c0_6] : memref<3x16x16xf32, #tpu.memory_space<vmem>>, vector<1x16x16xf32>
    %7 = vector.shape_cast %6 : vector<1x16x16xf32> to vector<16x16xf32>
    %c2 = arith.constant 2 : index
    %c0_7 = arith.constant 0 : index
    %c0_8 = arith.constant 0 : index
    %8 = vector.load %arg3[%c2, %c0_7, %c0_8] : memref<3x16x16xf32, #tpu.memory_space<vmem>>, vector<1x16x16xf32>
    %9 = vector.shape_cast %8 : vector<1x16x16xf32> to vector<16x16xf32>
    %10 = tpu.concatenate %5, %7, %9 in 0 : vector<16x16xf32>, vector<16x16xf32>, vector<16x16xf32> -> vector<48x16xf32>
    %c0_9 = arith.constant 0 : index
    %c0_10 = arith.constant 0 : index
    %11 = vector.load %arg4[%c0_9, %c0_10] : memref<1x100xf32, #tpu.memory_space<vmem>>, vector<1x100xf32>
    %c0_11 = arith.constant 0 : index
    %c0_12 = arith.constant 0 : index
    %12 = vector.load %arg5[%c0_11, %c0_12] : memref<1x100xf32, #tpu.memory_space<vmem>>, vector<1x100xf32>
    %cst = arith.constant dense<0.000000e+00> : vector<16xf32>
    %13 = vector.multi_reduction <add>, %3, %cst [1] : vector<16x100xf32> to vector<16xf32>
    %14 = vector.shape_cast %13 : vector<16xf32> to vector<16x1xf32>
    %cst_13 = arith.constant 1.000000e+02 : f32
    %15 = vector.broadcast %cst_13 : f32 to vector<16x1xf32>
    %16 = arith.divf %14, %15 : vector<16x1xf32>
    %17 = vector.broadcast %16 : vector<16x1xf32> to vector<16x100xf32>
    %18 = arith.subf %3, %17 : vector<16x100xf32>
    %19 = arith.mulf %18, %18 : vector<16x100xf32>
    %cst_14 = arith.constant dense<0.000000e+00> : vector<16xf32>
    %20 = vector.multi_reduction <add>, %19, %cst_14 [1] : vector<16x100xf32> to vector<16xf32>
    %21 = vector.shape_cast %20 : vector<16xf32> to vector<16x1xf32>
    %cst_15 = arith.constant 1.000000e+02 : f32
    %22 = vector.broadcast %cst_15 : f32 to vector<16x1xf32>
    %23 = arith.divf %21, %22 : vector<16x1xf32>
    %24 = vector.broadcast %16 : vector<16x1xf32> to vector<16x100xf32>
    %25 = arith.subf %3, %24 : vector<16x100xf32>
    %cst_16 = arith.constant 9.99999974E-6 : f32
    %26 = vector.broadcast %cst_16 : f32 to vector<16x1xf32>
    %27 = arith.addf %23, %26 : vector<16x1xf32>
    %28 = math.rsqrt %27 : vector<16x1xf32>
    %29 = vector.broadcast %28 : vector<16x1xf32> to vector<16x100xf32>
    %30 = arith.mulf %25, %29 : vector<16x100xf32>
    %31 = vector.broadcast %11 : vector<1x100xf32> to vector<16x100xf32>
    %32 = arith.mulf %30, %31 : vector<16x100xf32>
    %33 = vector.broadcast %12 : vector<1x100xf32> to vector<16x100xf32>
    %34 = arith.addf %32, %33 : vector<16x100xf32>
    %35 = vector.extract_strided_slice %10 {offsets = [0, 0], sizes = [16, 16], strides = [1, 1]} : vector<48x16xf32> to vector<16x16xf32>
    %36 = vector.extract_strided_slice %10 {offsets = [16, 0], sizes = [16, 16], strides = [1, 1]} : vector<48x16xf32> to vector<16x16xf32>
    %37 = vector.extract_strided_slice %10 {offsets = [32, 0], sizes = [16, 16], strides = [1, 1]} : vector<48x16xf32> to vector<16x16xf32>
    %38 = arith.mulf %35, %35 : vector<16x16xf32>
    %39 = arith.mulf %36, %36 : vector<16x16xf32>
    %40 = arith.addf %38, %39 : vector<16x16xf32>
    %41 = arith.mulf %37, %37 : vector<16x16xf32>
    %42 = arith.addf %40, %41 : vector<16x16xf32>
    %cst_17 = arith.constant 9.99999993E-9 : f32
    %43 = vector.broadcast %cst_17 : f32 to vector<16x16xf32>
    %44 = arith.maximumf %42, %43 : vector<16x16xf32>
    %cst_18 = arith.constant dense<0.000000e+00> : vector<16xf32>
    %45 = vector.multi_reduction <add>, %44, %cst_18 [1] : vector<16x16xf32> to vector<16xf32>
    %46 = vector.shape_cast %45 : vector<16xf32> to vector<16x1xf32>
    %cst_19 = arith.constant 1.600000e+01 : f32
    %47 = vector.broadcast %cst_19 : f32 to vector<16x1xf32>
    %48 = arith.divf %46, %47 : vector<16x1xf32>
    %49 = math.rsqrt %48 : vector<16x1xf32>
    %50 = vector.broadcast %49 : vector<16x1xf32> to vector<16x16xf32>
    %51 = arith.mulf %35, %50 : vector<16x16xf32>
    %52 = vector.broadcast %49 : vector<16x1xf32> to vector<16x16xf32>
    %53 = arith.mulf %36, %52 : vector<16x16xf32>
    %54 = vector.broadcast %49 : vector<16x1xf32> to vector<16x16xf32>
    %55 = arith.mulf %37, %54 : vector<16x16xf32>
    %56 = tpu.concatenate %51, %53, %55 in 0 : vector<16x16xf32>, vector<16x16xf32>, vector<16x16xf32> -> vector<48x16xf32>
    %c0_20 = arith.constant 0 : index
    %c0_21 = arith.constant 0 : index
    %57 = vector.load %arg6[%c0_20, %c0_21] : memref<16x16xf32, #tpu.memory_space<vmem>>, vector<16x16xf32>
    %c0_22 = arith.constant 0 : index
    %c0_23 = arith.constant 0 : index
    %58 = vector.load %arg7[%c0_22, %c0_23] : memref<100x100xf32, #tpu.memory_space<vmem>>, vector<100x100xf32>
    %c0_24 = arith.constant 0 : index
    %c0_25 = arith.constant 0 : index
    %59 = vector.load %arg8[%c0_24, %c0_25] : memref<16x100xf32, #tpu.memory_space<vmem>>, vector<16x100xf32>
    %c0_26 = arith.constant 0 : index
    %c0_27 = arith.constant 0 : index
    %60 = vector.load %arg9[%c0_26, %c0_27] : memref<1x100xf32, #tpu.memory_space<vmem>>, vector<1x100xf32>
    %61 = arith.truncf %56 : vector<48x16xf32> to vector<48x16xbf16>
    %62 = arith.truncf %57 : vector<16x16xf32> to vector<16x16xbf16>
    %cst_28 = arith.constant dense<0.000000e+00> : vector<48x16xf32>
    %63 = tpu.matmul %61, %62, %cst_28 {dimension_numbers = #tpu.dot_dimension_numbers<[1], [0], [0], [1], [0, 0, 1, 1], [], []>} : vector<48x16xbf16>, vector<16x16xbf16>, vector<48x16xf32> -> vector<48x16xf32>
    %64 = vector.extract_strided_slice %63 {offsets = [0, 0], sizes = [16, 16], strides = [1, 1]} : vector<48x16xf32> to vector<16x16xf32>
    %65 = vector.extract_strided_slice %63 {offsets = [16, 0], sizes = [16, 16], strides = [1, 1]} : vector<48x16xf32> to vector<16x16xf32>
    %66 = vector.extract_strided_slice %63 {offsets = [32, 0], sizes = [16, 16], strides = [1, 1]} : vector<48x16xf32> to vector<16x16xf32>
    %67 = arith.mulf %64, %64 : vector<16x16xf32>
    %68 = arith.mulf %65, %65 : vector<16x16xf32>
    %69 = arith.addf %67, %68 : vector<16x16xf32>
    %70 = arith.mulf %66, %66 : vector<16x16xf32>
    %71 = arith.addf %69, %70 : vector<16x16xf32>
    %cst_29 = arith.constant 9.99999993E-9 : f32
    %72 = vector.broadcast %cst_29 : f32 to vector<16x16xf32>
    %73 = arith.maximumf %71, %72 : vector<16x16xf32>
    %74 = math.sqrt %73 : vector<16x16xf32>
    %75 = arith.truncf %34 : vector<16x100xf32> to vector<16x100xbf16>
    %76 = arith.truncf %58 : vector<100x100xf32> to vector<100x100xbf16>
    %cst_30 = arith.constant dense<0.000000e+00> : vector<16x100xf32>
    %77 = tpu.matmul %75, %76, %cst_30 {dimension_numbers = #tpu.dot_dimension_numbers<[1], [0], [0], [1], [0, 0, 1, 1], [], []>} : vector<16x100xbf16>, vector<100x100xbf16>, vector<16x100xf32> -> vector<16x100xf32>
    %78 = arith.truncf %74 : vector<16x16xf32> to vector<16x16xbf16>
    %79 = arith.truncf %59 : vector<16x100xf32> to vector<16x100xbf16>
    %cst_31 = arith.constant dense<0.000000e+00> : vector<16x100xf32>
    %80 = tpu.matmul %78, %79, %cst_31 {dimension_numbers = #tpu.dot_dimension_numbers<[1], [0], [0], [1], [0, 0, 1, 1], [], []>} : vector<16x16xbf16>, vector<16x100xbf16>, vector<16x100xf32> -> vector<16x100xf32>
    %81 = arith.addf %77, %80 : vector<16x100xf32>
    %82 = vector.broadcast %60 : vector<1x100xf32> to vector<16x100xf32>
    %83 = arith.addf %81, %82 : vector<16x100xf32>
    %cst_32 = arith.constant 0.000000e+00 : f32
    %84 = vector.broadcast %cst_32 : f32 to vector<16x100xf32>
    %85 = arith.maximumf %83, %84 : vector<16x100xf32>
    %c0_33 = arith.constant 0 : index
    %c0_34 = arith.constant 0 : index
    %86 = vector.load %arg15[%c0_33, %c0_34] : memref<8x100xf32, #tpu.memory_space<vmem>>, vector<8x100xf32>
    %c0_35 = arith.constant 0 : index
    %c0_36 = arith.constant 0 : index
    %87 = vector.load %arg1[%c0_35, %c0_36] : memref<8x16xf32, #tpu.memory_space<vmem>>, vector<8x16xf32>
    %88 = arith.truncf %87 : vector<8x16xf32> to vector<8x16xbf16>
    %89 = arith.truncf %85 : vector<16x100xf32> to vector<16x100xbf16>
    %cst_37 = arith.constant dense<0.000000e+00> : vector<8x100xf32>
    %90 = tpu.matmul %88, %89, %cst_37 {dimension_numbers = #tpu.dot_dimension_numbers<[1], [0], [0], [1], [0, 0, 1, 1], [], []>} : vector<8x16xbf16>, vector<16x100xbf16>, vector<8x100xf32> -> vector<8x100xf32>
    %91 = arith.addf %86, %90 : vector<8x100xf32>
    %c0_38 = arith.constant 0 : index
    %c0_39 = arith.constant 0 : index
    %92 = vector.load %arg15[%c0_38, %c0_39] : memref<8x100xf32, #tpu.memory_space<vmem>>, vector<8x100xf32>
    tpu.vector_store %arg15[%c0_38, %c0_39], %91 {strides = array<i32>} : memref<8x100xf32, #tpu.memory_space<vmem>>, vector<8x100xf32>,
    %c0_i32_40 = arith.constant 0 : i32
    %93 = arith.cmpi eq, %arg0, %c0_i32_40 : i32
    %94 = arith.extui %93 : i1 to i32
    %c0_i32_41 = arith.constant 0 : i32
    %95 = arith.cmpi ne, %94, %c0_i32_41 : i32
    scf.if %95 {
      %c0_42 = arith.constant 0 : index
      %c0_43 = arith.constant 0 : index
      %96 = vector.load %arg15[%c0_42, %c0_43] : memref<8x100xf32, #tpu.memory_space<vmem>>, vector<8x100xf32>
      %c0_44 = arith.constant 0 : index
      %c0_45 = arith.constant 0 : index
      %97 = vector.load %arg10[%c0_44, %c0_45] : memref<100x200xf32, #tpu.memory_space<vmem>>, vector<100x200xf32>
      %98 = arith.truncf %96 : vector<8x100xf32> to vector<8x100xbf16>
      %99 = arith.truncf %97 : vector<100x200xf32> to vector<100x200xbf16>
      %cst_46 = arith.constant dense<0.000000e+00> : vector<8x200xf32>
      %100 = tpu.matmul %98, %99, %cst_46 {dimension_numbers = #tpu.dot_dimension_numbers<[1], [0], [0], [1], [0, 0, 1, 1], [], []>} : vector<8x100xbf16>, vector<100x200xbf16>, vector<8x200xf32> -> vector<8x200xf32>
      %c0_47 = arith.constant 0 : index
      %c0_48 = arith.constant 0 : index
      %101 = vector.load %arg11[%c0_47, %c0_48] : memref<1x200xf32, #tpu.memory_space<vmem>>, vector<1x200xf32>
      %102 = vector.broadcast %101 : vector<1x200xf32> to vector<8x200xf32>
      %103 = arith.addf %100, %102 : vector<8x200xf32>
      %cst_49 = arith.constant 0.000000e+00 : f32
      %104 = vector.broadcast %cst_49 : f32 to vector<8x200xf32>
      %105 = arith.maximumf %103, %104 : vector<8x200xf32>
      %c0_50 = arith.constant 0 : index
      %c0_51 = arith.constant 0 : index
      %106 = vector.load %arg12[%c0_50, %c0_51] : memref<200x1xf32, #tpu.memory_space<vmem>>, vector<200x1xf32>
      %107 = arith.truncf %105 : vector<8x200xf32> to vector<8x200xbf16>
      %108 = arith.truncf %106 : vector<200x1xf32> to vector<200x1xbf16>
      %cst_52 = arith.constant dense<0.000000e+00> : vector<8x1xf32>
      %109 = tpu.matmul %107, %108, %cst_52 {dimension_numbers = #tpu.dot_dimension_numbers<[1], [0], [0], [1], [0, 0, 1, 1], [], []>} : vector<8x200xbf16>, vector<200x1xbf16>, vector<8x1xf32> -> vector<8x1xf32>
      %c0_53 = arith.constant 0 : index
      %c0_54 = arith.constant 0 : index
      %110 = vector.load %arg13[%c0_53, %c0_54] : memref<1x1xf32, #tpu.memory_space<vmem>>, vector<1x1xf32>
      %111 = vector.broadcast %110 : vector<1x1xf32> to vector<8x1xf32>
      %112 = arith.addf %109, %111 : vector<8x1xf32>
      %c0_55 = arith.constant 0 : index
      %c0_56 = arith.constant 0 : index
      %113 = vector.load %arg14[%c0_55, %c0_56] : memref<8x1xf32, #tpu.memory_space<vmem>>, vector<8x1xf32>
      tpu.vector_store %arg14[%c0_55, %c0_56], %112 {strides = array<i32>} : memref<8x1xf32, #tpu.memory_space<vmem>>, vector<8x1xf32>,
    } else {
    }
    return
  }
  func.func @transform_0(%arg0: i32) -> (i32, i32) {
    %c0_i32 = arith.constant 0 : i32
    %c0_i32_0 = arith.constant 0 : i32
    return %c0_i32, %arg0 : i32, i32
  }
  func.func @transform_1(%arg0: i32) -> (i32, i32) {
    %c0_i32 = arith.constant 0 : i32
    %c0_i32_0 = arith.constant 0 : i32
    return %arg0, %c0_i32 : i32, i32
  }
  func.func @transform_2(%arg0: i32) -> (i32, i32, i32) {
    %c0_i32 = arith.constant 0 : i32
    %c0_i32_0 = arith.constant 0 : i32
    %c0_i32_1 = arith.constant 0 : i32
    return %c0_i32, %arg0, %c0_i32_0 : i32, i32, i32
  }
  func.func @transform_3(%arg0: i32) -> (i32, i32) {
    %c0_i32 = arith.constant 0 : i32
    %c0_i32_0 = arith.constant 0 : i32
    %c0_i32_1 = arith.constant 0 : i32
    return %c0_i32, %c0_i32_0 : i32, i32
  }
  func.func @transform_4(%arg0: i32) -> (i32, i32) {
    %c0_i32 = arith.constant 0 : i32
    %c0_i32_0 = arith.constant 0 : i32
    %c0_i32_1 = arith.constant 0 : i32
    return %c0_i32, %c0_i32_0 : i32, i32
  }
  func.func @transform_5(%arg0: i32) -> (i32, i32) {
    %c0_i32 = arith.constant 0 : i32
    %c0_i32_0 = arith.constant 0 : i32
    %c0_i32_1 = arith.constant 0 : i32
    return %c0_i32, %c0_i32_0 : i32, i32
  }
  func.func @transform_6(%arg0: i32) -> (i32, i32) {
    %c0_i32 = arith.constant 0 : i32
    %c0_i32_0 = arith.constant 0 : i32
    %c0_i32_1 = arith.constant 0 : i32
    return %c0_i32, %c0_i32_0 : i32, i32
  }
  func.func @transform_7(%arg0: i32) -> (i32, i32) {
    %c0_i32 = arith.constant 0 : i32
    %c0_i32_0 = arith.constant 0 : i32
    %c0_i32_1 = arith.constant 0 : i32
    return %c0_i32, %c0_i32_0 : i32, i32
  }
  func.func @transform_8(%arg0: i32) -> (i32, i32) {
    %c0_i32 = arith.constant 0 : i32
    %c0_i32_0 = arith.constant 0 : i32
    %c0_i32_1 = arith.constant 0 : i32
    return %c0_i32, %c0_i32_0 : i32, i32
  }
  func.func @transform_9(%arg0: i32) -> (i32, i32) {
    %c0_i32 = arith.constant 0 : i32
    %c0_i32_0 = arith.constant 0 : i32
    %c0_i32_1 = arith.constant 0 : i32
    return %c0_i32, %c0_i32_0 : i32, i32
  }
  func.func @transform_10(%arg0: i32) -> (i32, i32) {
    %c0_i32 = arith.constant 0 : i32
    %c0_i32_0 = arith.constant 0 : i32
    %c0_i32_1 = arith.constant 0 : i32
    return %c0_i32, %c0_i32_0 : i32, i32
  }
  func.func @transform_11(%arg0: i32) -> (i32, i32) {
    %c0_i32 = arith.constant 0 : i32
    %c0_i32_0 = arith.constant 0 : i32
    %c0_i32_1 = arith.constant 0 : i32
    return %c0_i32, %c0_i32_0 : i32, i32
  }
  func.func @transform_12(%arg0: i32) -> (i32, i32) {
    %c0_i32 = arith.constant 0 : i32
    %c0_i32_0 = arith.constant 0 : i32
    %c0_i32_1 = arith.constant 0 : i32
    return %c0_i32, %c0_i32_0 : i32, i32
  }
  func.func @transform_13(%arg0: i32) -> (i32, i32) {
    %c0_i32 = arith.constant 0 : i32
    %c0_i32_0 = arith.constant 0 : i32
    %c0_i32_1 = arith.constant 0 : i32
    return %c0_i32, %c0_i32_0 : i32, i32
  }
}

</mosaic_0001>

<bundles_post_ra>
// kernel: lba_model_forward.13
= control target key start
LH: loop header
LB: loop body
LE: loop exit
PB: predicated region body
PF: predicated region fallthrough
CT: control target
= control target key end

     0   :  { %vm25_vm0 = vcmask 261120   ;;  %v155_v17 = vmov 0.0   ;;  %vm156_vm1 = vmmov 0   ;;  %vm127_vm2 = vcmask 818176   ;;  %s225_s0 = inlined_call_operand.vmem [shape: f32[16,32], index: 0, kind: input, shape index: {}]   ;;  %s226_s3 = inlined_call_operand.vmem [shape: f32[32,100], index: 3, kind: input, shape index: {}]   ;;  %s227_s1 = inlined_call_operand.vmem [shape: f32[1,32], index: 1, kind: input, shape index: {}]   ;;  %s228_s2 = inlined_call_operand.vmem [shape: f32[1,32], index: 2, kind: input, shape index: {}]   ;;  %s229_s4 = inlined_call_operand.vmem [shape: f32[1,100], index: 4, kind: input, shape index: {}]   ;;  %s230_s5 = inlined_call_operand.vmem [shape: f32[16,100], index: 5, kind: output, shape index: {}]  }
   0x1   :  { %v21_v0 = vld [vmem:[%s225_s0] sm:$0xff]  ;;  %v22_v1 = vld [vmem:[%s225_s0 + $0x8] sm:$0xff]  ;;  %141 = vmatprep.subr.bf16.mxu0 %v155_v17  ;;  %v71_v18 = vld [vmem:[%s226_s3 + $0x10] sm:$0xff]  ;;  %145 = vmatprep.mubr.msk.bf16.mxu0 %vm156_vm1, %v155_v17 }
   0x2   :  { %v26_v2 = vsel %vm25_vm0, %v21_v0, 0.0  ;;  %v29_v3 = vsel %vm25_vm0, %v22_v1, 0.0  ;;  %v69_v14 = vld [vmem:[%s226_s3] sm:$0xff]  ;;  %v70_v15 = vld [vmem:[%s226_s3 + $0x8] sm:$0xff]  ;;  %v72_v19 = vld [vmem:[%s226_s3 + $0x18] sm:$0xff] }
   0x3   :  { %27 = vadd.xlane.f32.xlu0 %v26_v2  ;;  %v74_v16 = vpack.c.bf16 %v70_v15, %v69_v14  ;;  %v75_v20 = vpack.c.bf16 %v72_v19, %v71_v18  ;;  %v134_v29 = vld [vmem:[%s227_s1] ss:$0 sm:$0xff] }
   0x4   :  { %v135_v33 = vld [vmem:[%s228_s2] ss:$0 sm:$0xff] }
   0x5   :  { %142 = vmatpush3.bf16.msra.mxu0 %v74_v16  ;;  %v136_v38 = vld [vmem:[%s229_s4] ss:$0 sm:$0xff] }
   0x6   :  { %143 = vmatprep.subr.bf16.mxu0 %v155_v17 }
   0x7   :  { %30 = vadd.xlane.f32.xlu0 %v29_v3 }
   0x9   :  { %144 = vmatpush3.bf16.msra.mxu0 %v75_v20 }
  0x90   :  { %v28_v4 = vpop.xlane.xlu0 %27 }
  0x91   :  { %v33_v5 = vmul.f32 0.03125, %v28_v4 }
  0x93   :  { %v35_v6 = vsub.f32 %v21_v0, %v33_v5 }
  0x94   :  { %v31_v7 = vpop.xlane.xlu0 %30 }
  0x95   :  { %v34_v8 = vmul.f32 0.03125, %v31_v7  ;;  %v37_v9 = vmul.f32 %v35_v6, %v35_v6 }
  0x97   :  { %v36_v10 = vsub.f32 %v22_v1, %v34_v8  ;;  %v39_v11 = vsel %vm25_vm0, %v37_v9, 0.0 }
  0x98   :  { %40 = vadd.xlane.f32.xlu1 %v39_v11 }
  0x99   :  { %v38_v12 = vmul.f32 %v36_v10, %v36_v10 }
  0x9b   :  { %v42_v13 = vsel %vm25_vm0, %v38_v12, 0.0 }
  0x9c   :  { %43 = vadd.xlane.f32.xlu1 %v42_v13 }
 0x125   :  { %v41_v21 = vpop.xlane.xlu1 %40 }
 0x126   :  { %v45_v22 = vmul.f32 0.03125, %v41_v21 }
 0x128   :  { %v47_v23 = vadd.f32 1e-05, %v45_v22 }
 0x129   :  { %v44_v24 = vpop.xlane.xlu1 %43 }
 0x12a   :  { %151 = vrsqrt.f32 %v47_v23  ;;  %v46_v25 = vmul.f32 0.03125, %v44_v24 }
 0x12c   :  { %v48_v26 = vadd.f32 1e-05, %v46_v25 }
 0x12e   :  { %153 = vrsqrt.f32 %v48_v26 }
 0x134   :  { %v152_v27 = vpop.eup %151 }
 0x135   :  { %v51_v28 = vmul.f32 %v152_v27, %v35_v6 }
 0x137   :  { %v59_v32 = vmul.f32 %v134_v29, %v51_v28 }
 0x138   :  { %v154_v30 = vpop.eup %153 }
 0x139   :  { %v52_v31 = vmul.f32 %v154_v30, %v36_v10  ;;  %v67_v35 = vadd.f32 %v135_v33, %v59_v32 }
 0x13b   :  { %v60_v34 = vmul.f32 %v134_v29, %v52_v31 }
 0x13d   :  { %v68_v36 = vadd.f32 %v135_v33, %v60_v34 }
 0x13f   :  { %v73_v37 = vpack.c.bf16 %v68_v36, %v67_v35 }
 0x141   :  { %146 = vmatmul.mubr.msk.bf16.vlgmr.msra.gmra.mrb[0].mxu0 %vm25_vm0, %v73_v37 }
 0x214   :  { %v120_v39 = vpop.f32.mrb[0].mxu0 }
 0x215   :  { %v121_v40 = vadd.f32 %v136_v38, %v120_v39  ;;  %v147_v41 = vpop.f32.mrb[1].mxu0 }
 0x216   :  { %v123_v42 = vpop.f32.mrb[2].mxu0 }
 0x217   :  { %128 = vst.msk [vmem:[%s230_s5] sm:$0xff] %vm127_vm2, %v121_v40  ;;  %v124_v43 = vadd.f32 %v136_v38, %v123_v42  ;;  %v148_v44 = vpop.f32.mrb[3].mxu0 }
 0x219   :  { %129 = vst.msk [vmem:[%s230_s5 + $0x8] sm:$0xff] %vm127_vm2, %v124_v43 }

// kernel: lba_model_forward.14
= control target key start
LH: loop header
LB: loop body
LE: loop exit
PB: predicated region body
PF: predicated region fallthrough
CT: control target
= control target key end

     0   :  { %vm83_vm0 = vcmask 130048   ;;  %s1698_s0 = inlined_call_operand.vmem [shape: f32[64,16], index: 0, kind: input, shape index: {}]   ;;  %s1699_s5 = inlined_call_operand.vmem [shape: f32[16,32], index: 5, kind: input, shape index: {}]   ;;  %s1700_s1 = inlined_call_operand.vmem [shape: f32[3,64,1], index: 1, kind: input, shape index: {}]   ;;  %s1701_s4 = inlined_call_operand.<no memory space> [shape: f32[1,1], index: 4, kind: input, shape index: {}]   ;;  %s1702_s8 = inlined_call_operand.<no memory space> [shape: f32[1,1], index: 8, kind: input, shape index: {}]   ;;  %s1703_s2 = inlined_call_operand.vmem [shape: f32[1,16], index: 2, kind: input, shape index: {}]   ;;  %s1704_s3 = inlined_call_operand.vmem [shape: f32[1,16], index: 3, kind: input, shape index: {}]   ;;  %s1705_s9 = inlined_call_operand.vmem [shape: f32[32,1], index: 9, kind: input, shape index: {}]   ;;  %s1706_s10 = inlined_call_operand.<no memory space> [shape: f32[1,1], index: 10, kind: input, shape index: {}]   ;;  %s1707_s6 = inlined_call_operand.vmem [shape: f32[1,32], index: 6, kind: input, shape index: {}]   ;;  %s1708_s7 = inlined_call_operand.vmem [shape: f32[1,32], index: 7, kind: input, shape index: {}]   ;;  %s1709_s11 = inlined_call_operand.vmem [shape: f32[64,32], index: 11, kind: output, shape index: {0}]   ;;  %s1710_s12 = inlined_call_operand.vmem [shape: f32[3,64,1], index: 12, kind: output, shape index: {1}]  }
   0x1   :  { %v47_v0 = vld [vmem:[%s1698_s0] sm:$0xff]  ;;  %v49_v1 = vld [vmem:[%s1698_s0 + $0x10] sm:$0xff]  ;;  %v48_v2 = vld [vmem:[%s1698_s0 + $0x8] sm:$0xff] }
   0x2   :  { %v84_v3 = vsel %vm83_vm0, %v47_v0, 0.0  ;;  %v90_v4 = vsel %vm83_vm0, %v49_v1, 0.0  ;;  %v50_v5 = vld [vmem:[%s1698_s0 + $0x18] sm:$0xff]  ;;  %v87_v6 = vsel %vm83_vm0, %v48_v2, 0.0  ;;  %v51_v8 = vld [vmem:[%s1698_s0 + $0x20] sm:$0xff]  ;;  %v52_v9 = vld [vmem:[%s1698_s0 + $0x28] sm:$0xff] }
   0x3   :  { %85 = vadd.xlane.f32.xlu0 %v84_v3  ;;  %91 = vadd.xlane.f32.xlu1 %v90_v4  ;;  %v93_v7 = vsel %vm83_vm0, %v50_v5, 0.0  ;;  %v96_v10 = vsel %vm83_vm0, %v51_v8, 0.0  ;;  %v99_v11 = vsel %vm83_vm0, %v52_v9, 0.0  ;;  %v53_v12 = vld [vmem:[%s1698_s0 + $0x30] sm:$0xff]  ;;  %v54_v13 = vld [vmem:[%s1698_s0 + $0x38] sm:$0xff]  ;;  %v306_v56 = vld [vmem:[%s1699_s5] sm:$0xff] }
   0x4   :  { %v102_v14 = vsel %vm83_vm0, %v53_v12, 0.0  ;;  %v105_v15 = vsel %vm83_vm0, %v54_v13, 0.0  ;;  %v307_v57 = vld [vmem:[%s1699_s5 + $0x8] sm:$0xff]  ;;  %v1163_v3 = vld [vmem:[%s1700_s1 + $0x50] sm:$0xff] }
   0x5   :  { %v454_v58 = vpack.c.bf16 %v307_v57, %v306_v56  ;;  %v1137_v59 = vld [vmem:[%s1700_s1 + $0x8] sm:$0xff] }
   0x6   :  { %v1142_v60 = vld [vmem:[%s1700_s1 + $0x48] sm:$0xff]  ;;  %v218_v61 = vmul.f32 %v1137_v59, %v1137_v59 }
   0x7   :  { %88 = vadd.xlane.f32.xlu0 %v87_v6  ;;  %94 = vadd.xlane.f32.xlu1 %v93_v7  ;;  %v226_v62 = vmul.f32 %v1142_v60, %v1142_v60  ;;  %v1151_v63 = vld [vmem:[%s1700_s1 + $0x88] sm:$0xff]  ;;  %v227_v6 = vmul.f32 %v1163_v3, %v1163_v3  ;;  %v1172_v7 = vld [vmem:[%s1700_s1 + $0x90] sm:$0xff] }
   0x8   :  { %885 = vmatprep.subr.bf16.mxu0 %v454_v58 }
   0x9   :  { %886 = vmatpush3.bf16.msra.mxu0 %v454_v58 }
   0xb   :  { %97 = vadd.xlane.f32.xlu0 %v96_v10  ;;  %100 = vadd.xlane.f32.xlu1 %v99_v11  ;;  %v243_v10 = vmul.f32 %v1172_v7, %v1172_v7  ;;  %v1179_v11 = vld [vmem:[%s1700_s1 + $0x18] sm:$0xff] }
   0xf   :  { %103 = vadd.xlane.f32.xlu0 %v102_v14  ;;  %106 = vadd.xlane.f32.xlu1 %v105_v15  ;;  %v990_v14 = vmov 0   ;;  %v18_v15 = vstv %s1701_s4 }
  0x10   :  { %909 = vset.pattern.permute.xlu1 %v990_v14  ;;  %908 = vset.pattern.permute.xlu0 %v990_v14  ;;  %19 = vst [vmem:[#allocation2] sm:$0x1] %v18_v15  ;;  %v1298_v14 = vld [vmem:[%s1700_s1 + $0x40] sm:$0xff] }
  0x90   :  { %v86_v16 = vpop.xlane.xlu0 %85  ;;  %v92_v17 = vpop.xlane.xlu1 %91 }
  0x91   :  { %v109_v18 = vmul.f32 0.0625, %v86_v16  ;;  %v111_v19 = vmul.f32 0.0625, %v92_v17  ;;  %v20_v16 = vstv %s1702_s8 }
  0x92   :  { %21 = vst [vmem:[#allocation3] sm:$0x1] %v20_v16 }
  0x93   :  { %v1088_v20 = vsub.f32 %v47_v0, %v109_v18  ;;  %v1090_v21 = vsub.f32 %v49_v1, %v111_v19  ;;  %v234_v0 = vadd.f32 %v226_v62, %v218_v61  ;;  %v242_v1 = vmul.f32 %v1151_v63, %v1151_v63  ;;  %v1200_v18 = vld [vmem:[%s1700_s1 + $0x20] sm:$0xff] }
  0x94   :  { %v89_v22 = vpop.xlane.xlu0 %88  ;;  %v95_v23 = vpop.xlane.xlu1 %94  ;;  %v1205_v19 = vld [vmem:[%s1700_s1 + $0x60] sm:$0xff] }
  0x95   :  { %v110_v24 = vmul.f32 0.0625, %v89_v22  ;;  %v112_v25 = vmul.f32 0.0625, %v95_v23  ;;  %v125_v26 = vmul.f32 %v1088_v20, %v1088_v20  ;;  %v127_v27 = vmul.f32 %v1090_v21, %v1090_v21  ;;  %v1276_v62 = vld [vmem:[#allocation2] ss:$0 sm:$0xff] }
  0x96   :  { %v250_v4 = vadd.f32 %v242_v1, %v234_v0  ;;  %v220_v22 = vmul.f32 %v1179_v11, %v1179_v11 }
  0x97   :  { %v1096_v28 = vsub.f32 %v48_v2, %v110_v24  ;;  %v1098_v29 = vsub.f32 %v50_v5, %v112_v25  ;;  %v133_v30 = vsel %vm83_vm0, %v125_v26, 0.0  ;;  %v139_v33 = vsel %vm83_vm0, %v127_v27, 0.0  ;;  %v1158_v2 = vld [vmem:[%s1700_s1 + $0x10] sm:$0xff]  ;;  %v1216_v25 = vld [vmem:[%s1700_s1 + $0xa0] sm:$0xff]  ;;  %v1223_v27 = vld [vmem:[%s1700_s1 + $0x28] sm:$0xff] }
  0x98   :  { %134 = vadd.xlane.f32.xlu0 %v133_v30  ;;  %v98_v31 = vpop.xlane.xlu0 %97  ;;  %v101_v32 = vpop.xlane.xlu1 %100  ;;  %v219_v5 = vmul.f32 %v1158_v2, %v1158_v2  ;;  %v221_v26 = vmul.f32 %v1200_v18, %v1200_v18  ;;  %v1228_v30 = vld [vmem:[%s1700_s1 + $0x68] sm:$0xff] }
  0x99   :  { %v113_v34 = vmul.f32 0.0625, %v98_v31  ;;  %v114_v35 = vmul.f32 0.0625, %v101_v32  ;;  %v126_v36 = vmul.f32 %v1096_v28, %v1096_v28  ;;  %v128_v37 = vmul.f32 %v1098_v29, %v1098_v29 }
  0x9a   :  { %v229_v32 = vmul.f32 %v1205_v19, %v1205_v19 }
  0x9b   :  { %v1106_v38 = vsub.f32 %v51_v8, %v113_v34  ;;  %v1108_v39 = vsub.f32 %v52_v9, %v114_v35  ;;  %v136_v40 = vsel %vm83_vm0, %v126_v36, 0.0  ;;  %v142_v43 = vsel %vm83_vm0, %v128_v37, 0.0  ;;  %v1237_v34 = vld [vmem:[%s1700_s1 + $0xa8] sm:$0xff]  ;;  %v1244_v36 = vld [vmem:[%s1700_s1 + $0x30] sm:$0xff] }
  0x9c   :  { %140 = vadd.xlane.f32.xlu0 %v139_v33  ;;  %137 = vadd.xlane.f32.xlu1 %v136_v40  ;;  %v104_v41 = vpop.xlane.xlu0 %103  ;;  %v107_v42 = vpop.xlane.xlu1 %106  ;;  %v258_v8 = vmax.f32 %v250_v4, 1e-08  ;;  %v235_v9 = vadd.f32 %v227_v6, %v219_v5  ;;  %v245_v33 = vmul.f32 %v1216_v25, %v1216_v25  ;;  %v222_v35 = vmul.f32 %v1223_v27, %v1223_v27  ;;  %v1249_v37 = vld [vmem:[%s1700_s1 + $0x70] sm:$0xff] }
  0x9d   :  { %v115_v44 = vmul.f32 0.0625, %v104_v41  ;;  %v116_v45 = vmul.f32 0.0625, %v107_v42  ;;  %v129_v46 = vmul.f32 %v1106_v38, %v1106_v38  ;;  %v130_v47 = vmul.f32 %v1108_v39, %v1108_v39 }
  0x9e   :  { %910 = vrsqrt.f32 %v258_v8  ;;  %v251_v17 = vadd.f32 %v243_v10, %v235_v9  ;;  %v230_v41 = vmul.f32 %v1228_v30, %v1228_v30  ;;  %v246_v42 = vmul.f32 %v1237_v34, %v1237_v34  ;;  %v1288_v9 = vld [vmem:[%s1700_s1 + $0xb8] sm:$0xff]  ;;  %v1293_v10 = vld [vmem:[%s1700_s1] sm:$0xff] }
  0x9f   :  { %v1116_v48 = vsub.f32 %v53_v12, %v115_v44  ;;  %v1118_v49 = vsub.f32 %v54_v13, %v116_v45  ;;  %v145_v50 = vsel %vm83_vm0, %v129_v46, 0.0  ;;  %v148_v51 = vsel %vm83_vm0, %v130_v47, 0.0  ;;  %v1184_v12 = vld [vmem:[%s1700_s1 + $0x58] sm:$0xff] }
  0xa0   :  { %143 = vadd.xlane.f32.xlu1 %v142_v43  ;;  %146 = vadd.xlane.f32.xlu0 %v145_v50  ;;  %v1189_v13 = vld [vmem:[%s1700_s1 + $0x98] sm:$0xff]  ;;  %v228_v23 = vmul.f32 %v1184_v12, %v1184_v12  ;;  %v259_v31 = vmax.f32 %v251_v17, 1e-08  ;;  %v237_v43 = vadd.f32 %v229_v32, %v221_v26  ;;  %v223_v44 = vmul.f32 %v1244_v36, %v1244_v36  ;;  %v1262_v50 = vld [vmem:[%s1700_s1 + $0xb0] sm:$0xff] }
  0xa1   :  { %v131_v52 = vmul.f32 %v1116_v48, %v1116_v48  ;;  %v132_v53 = vmul.f32 %v1118_v49, %v1118_v49  ;;  %v244_v24 = vmul.f32 %v1189_v13, %v1189_v13  ;;  %v231_v45 = vmul.f32 %v1249_v37, %v1249_v37 }
  0xa2   :  { %v236_v40 = vadd.f32 %v228_v23, %v220_v22  ;;  %912 = vrsqrt.f32 %v259_v31  ;;  %v238_v47 = vadd.f32 %v230_v41, %v222_v35  ;;  %v247_v58 = vmul.f32 %v1262_v50, %v1262_v50 }
  0xa3   :  { %v151_v54 = vsel %vm83_vm0, %v131_v52, 0.0  ;;  %v154_v55 = vsel %vm83_vm0, %v132_v53, 0.0  ;;  %v239_v57 = vadd.f32 %v231_v45, %v223_v44  ;;  %v248_v22 = vmul.f32 %v1288_v9, %v1288_v9 }
  0xa4   :  { %149 = vadd.xlane.f32.xlu1 %v148_v51  ;;  %152 = vadd.xlane.f32.xlu0 %v151_v54  ;;  %v252_v46 = vadd.f32 %v244_v24, %v236_v40  ;;  %v253_v51 = vadd.f32 %v245_v33, %v237_v43  ;;  %v254_v53 = vadd.f32 %v246_v42, %v238_v47  ;;  %v1267_v54 = vld [vmem:[%s1700_s1 + $0x38] sm:$0xff]  ;;  %v1324_v33 = vld [vmem:[%s1700_s1 + $0x80] sm:$0xff] }
  0xa5   :  { %v224_v0 = vmul.f32 %v1267_v54, %v1267_v54  ;;  %v217_v23 = vmul.f32 %v1293_v10, %v1293_v10  ;;  %v225_v24 = vmul.f32 %v1298_v14, %v1298_v14 }
  0xa6   :  { %v260_v52 = vmax.f32 %v252_v46, 1e-08  ;;  %v261_v56 = vmax.f32 %v253_v51, 1e-08  ;;  %v262_v8 = vmax.f32 %v254_v53, 1e-08  ;;  %v241_v46 = vmul.f32 %v1324_v33, %v1324_v33 }
  0xa8   :  { %155 = vadd.xlane.f32.xlu1 %v154_v55  ;;  %v1272_v55 = vld [vmem:[%s1700_s1 + $0x78] sm:$0xff]  ;;  %914 = vrsqrt.f32 %v260_v52  ;;  %v911_v61 = vpop.eup %910 }
  0xa9   :  { %916 = vrsqrt.f32 %v261_v56  ;;  %v232_v1 = vmul.f32 %v1272_v55, %v1272_v55  ;;  %v282_v4 = vmul.f32 %v911_v61, %v1137_v59  ;;  %v290_v5 = vmul.f32 %v911_v61, %v1142_v60 }
  0xaa   :  { %v298_v6 = vmul.f32 %v911_v61, %v1151_v63  ;;  %v255_v59 = vadd.f32 %v247_v58, %v239_v57  ;;  %918 = vrsqrt.f32 %v262_v8 }
  0xab   :  { %v1301_v60 = vmul.f32 %v1276_v62, %v282_v4  ;;  %v1304_v63 = vmul.f32 %v1276_v62, %v290_v5  ;;  %v240_v17 = vadd.f32 %v232_v1, %v224_v0 }
  0xac   :  { %v1307_v15 = vmul.f32 %v1276_v62, %v298_v6  ;;  %v913_v16 = vpop.eup %912  ;;  %v263_v41 = vmax.f32 %v255_v59, 1e-08 }
  0xad   :  { %v347_v26 = vmul.f32 %v1301_v60, %v1301_v60  ;;  %v355_v31 = vmul.f32 %v1304_v63, %v1304_v63  ;;  %v283_v35 = vmul.f32 %v913_v16, %v1158_v2  ;;  %v291_v40 = vmul.f32 %v913_v16, %v1163_v3 }
  0xae   :  { %v371_v32 = vmul.f32 %v1307_v15, %v1307_v15  ;;  %v299_v43 = vmul.f32 %v913_v16, %v1172_v7  ;;  %v256_v2 = vadd.f32 %v248_v22, %v240_v17  ;;  %v233_v3 = vadd.f32 %v225_v24, %v217_v23 }
  0xaf   :  { %v363_v42 = vadd.f32 %v355_v31, %v347_v26  ;;  %v1330_v44 = vmul.f32 %v1276_v62, %v283_v35  ;;  %v1333_v45 = vmul.f32 %v1276_v62, %v291_v40  ;;  %920 = vrsqrt.f32 %v263_v41 }
  0xb0   :  { %v1338_v52 = vmul.f32 %v1276_v62, %v299_v43  ;;  %v264_v6 = vmax.f32 %v256_v2, 1e-08  ;;  %v249_v8 = vadd.f32 %v241_v46, %v233_v3 }
  0xb1   :  { %v379_v51 = vadd.f32 %v371_v32, %v363_v42  ;;  %v348_v7 = vmul.f32 %v1330_v44, %v1330_v44  ;;  %v356_v56 = vmul.f32 %v1333_v45, %v1333_v45 }
  0xb2   :  { %v915_v47 = vpop.eup %914  ;;  %v372_v58 = vmul.f32 %v1338_v52, %v1338_v52 }
  0xb3   :  { %v917_v53 = vpop.eup %916  ;;  %v387_v57 = vmax.f32 %v379_v51, 1e-08  ;;  %v284_v61 = vmul.f32 %v915_v47, %v1179_v11  ;;  %v364_v0 = vadd.f32 %v356_v56, %v348_v7  ;;  %v292_v1 = vmul.f32 %v915_v47, %v1184_v12 }
  0xb4   :  { %v300_v4 = vmul.f32 %v915_v47, %v1189_v13  ;;  %v285_v5 = vmul.f32 %v917_v53, %v1200_v18  ;;  %v919_v11 = vpop.eup %918  ;;  %v293_v12 = vmul.f32 %v917_v53, %v1205_v19  ;;  %v301_v13 = vmul.f32 %v917_v53, %v1216_v25 }
  0xb5   :  { %922 = vrsqrt.f32 %v387_v57  ;;  %v380_v59 = vadd.f32 %v372_v58, %v364_v0  ;;  %v1351_v16 = vmul.f32 %v1276_v62, %v284_v61  ;;  %v1354_v17 = vmul.f32 %v1276_v62, %v292_v1 }
  0xb6   :  { %v1357_v22 = vmul.f32 %v1276_v62, %v300_v4  ;;  %v1362_v18 = vmul.f32 %v1276_v62, %v285_v5  ;;  %v1371_v32 = vmul.f32 %v1276_v62, %v293_v12  ;;  %924 = vrsqrt.f32 %v264_v6 }
  0xb7   :  { %v388_v23 = vmax.f32 %v380_v59, 1e-08  ;;  %v349_v24 = vmul.f32 %v1351_v16, %v1351_v16  ;;  %v357_v26 = vmul.f32 %v1354_v17, %v1354_v17  ;;  %v257_v19 = vmax.f32 %v249_v8, 1e-08 }
  0xb8   :  { %v373_v31 = vmul.f32 %v1357_v22, %v1357_v22  ;;  %v286_v25 = vmul.f32 %v919_v11, %v1223_v27  ;;  %v1375_v40 = vmul.f32 %v1276_v62, %v301_v13  ;;  %v350_v41 = vmul.f32 %v1362_v18, %v1362_v18 }
  0xb9   :  { %926 = vrsqrt.f32 %v388_v23  ;;  %v365_v35 = vadd.f32 %v357_v26, %v349_v24  ;;  %v358_v42 = vmul.f32 %v1371_v32, %v1371_v32  ;;  %v921_v43 = vpop.eup %920  ;;  %v294_v46 = vmul.f32 %v919_v11, %v1228_v30 }
  0xba   :  { %v302_v47 = vmul.f32 %v919_v11, %v1237_v34  ;;  %v374_v27 = vmul.f32 %v1375_v40, %v1375_v40  ;;  %928 = vrsqrt.f32 %v257_v19  ;;  %vm403_vm1 = vcmp.eq.f32.partialorder %v387_v57, inf }
  0xbb   :  { %v381_v51 = vadd.f32 %v373_v31, %v365_v35  ;;  %v366_v2 = vadd.f32 %v358_v42, %v350_v41  ;;  %v1386_v3 = vmul.f32 %v1276_v62, %v286_v25  ;;  %v1389_v53 = vmul.f32 %v1276_v62, %v294_v46 }
  0xbc   :  { %v1392_v7 = vmul.f32 %v1276_v62, %v302_v47  ;;  %v406_v30 = vand.u32 2147483648, %v387_v57  ;;  %v287_v61 = vmul.f32 %v921_v43, %v1244_v36  ;;  %vm405_vm2 = vcmp.eq.f32.partialorder %v387_v57, 0.0 }
  0xbd   :  { %v1394_v58 = vmax.f32 %v381_v51, 1e-08  ;;  %v382_v34 = vadd.f32 %v374_v27, %v366_v2  ;;  %v351_v1 = vmul.f32 %v1386_v3, %v1386_v3  ;;  %v359_v4 = vmul.f32 %v1389_v53, %v1389_v53 }
  0xbe   :  { %v375_v5 = vmul.f32 %v1392_v7, %v1392_v7  ;;  %v295_v6 = vmul.f32 %v921_v43, %v1249_v37  ;;  %v303_v8 = vmul.f32 %v921_v43, %v1262_v50  ;;  %v1410_v24 = vmul.f32 %v1276_v62, %v287_v61 }
  0xbf   :  { %v923_v56 = vpop.eup %922  ;;  %930 = vrsqrt.f32 %v1394_v58  ;;  %v1407_v36 = vmax.f32 %v382_v34, 1e-08  ;;  %v367_v11 = vadd.f32 %v359_v4, %v351_v1  ;;  %vm410_vm3 = vcmp.eq.f32.partialorder %v388_v23, inf }
  0xc0   :  { %v402_v0 = vmul.f32 %v923_v56, %v387_v57  ;;  %v925_v12 = vpop.eup %924  ;;  %vm412_vm4 = vcmp.eq.f32.partialorder %v388_v23, 0.0  ;;  %v413_v31 = vand.u32 2147483648, %v388_v23  ;;  %v1414_v50 = vmul.f32 %v1276_v62, %v295_v6 }
  0xc1   :  { %932 = vrsqrt.f32 %v1407_v36  ;;  %v383_v19 = vadd.f32 %v375_v5, %v367_v11  ;;  %v352_v25 = vmul.f32 %v1410_v24, %v1410_v24  ;;  %v288_v35 = vmul.f32 %v925_v12, %v1267_v54 }
  0xc2   :  { %v404_v59 = vsel %vm403_vm1, %v387_v57, %v402_v0  ;;  %v1417_v57 = vmul.f32 %v1276_v62, %v303_v8  ;;  %v296_v41 = vmul.f32 %v925_v12, %v1272_v55  ;;  %v360_v47 = vmul.f32 %v1414_v50, %v1414_v50 }
  0xc3   :  { %v407_v13 = vsel %vm405_vm2, %v406_v30, %v404_v59  ;;  %v927_v26 = vpop.eup %926  ;;  %v391_v46 = vmax.f32 %v383_v19, 1e-08  ;;  %v304_v27 = vmul.f32 %v925_v12, %v1288_v9  ;;  %vm417_vm5 = vcmp.eq.f32.partialorder %v1394_v58, inf }
  0xc4   :  { %462 = vperm.xlu1 %909, %v407_v13   ;;  %v409_v37 = vmul.f32 %v927_v26, %v388_v23  ;;  %v929_v42 = vpop.eup %928  ;;  %v376_v2 = vmul.f32 %v1417_v57, %v1417_v57  ;;  %vm419_vm6 = vcmp.eq.f32.partialorder %v1394_v58, 0.0  ;;  %v368_v54 = vadd.f32 %v360_v47, %v352_v25 }
  0xc5   :  { %934 = vrsqrt.f32 %v391_v46  ;;  %v1431_v55 = vmul.f32 %v1276_v62, %v288_v35  ;;  %v1437_v56 = vmul.f32 %v1276_v62, %v304_v27  ;;  %v420_v34 = vand.u32 2147483648, %v1394_v58 }
  0xc6   :  { %v411_v43 = vsel %vm410_vm3, %v388_v23, %v409_v37  ;;  %v1434_v23 = vmul.f32 %v1276_v62, %v296_v41  ;;  %v281_v9 = vmul.f32 %v929_v42, %v1293_v10  ;;  %v289_v61 = vmul.f32 %v929_v42, %v1298_v14 }
  0xc7   :  { %v414_v51 = vsel %vm412_vm4, %v413_v31, %v411_v43  ;;  %v297_v0 = vmul.f32 %v929_v42, %v1324_v33  ;;  %v384_v4 = vadd.f32 %v376_v2, %v368_v54  ;;  %v353_v5 = vmul.f32 %v1431_v55, %v1431_v55 }
  0xc8   :  { %467 = vperm.xlu1 %909, %v414_v51   ;;  %v361_v6 = vmul.f32 %v1434_v23, %v1434_v23  ;;  %vm424_vm7 = vcmp.eq.f32.partialorder %v1407_v36, inf  ;;  %vm426_vm8 = vcmp.eq.f32.partialorder %v1407_v36, 0.0  ;;  %v427_v8 = vand.u32 2147483648, %v1407_v36 }
  0xc9   :  { %v931_v30 = vpop.eup %930  ;;  %v377_v10 = vmul.f32 %v1437_v56, %v1437_v56  ;;  %v392_v59 = vmax.f32 %v384_v4, 1e-08  ;;  %v1457_v12 = vmul.f32 %v1276_v62, %v281_v9  ;;  %v1463_v31 = vmul.f32 %v1276_v62, %v289_v61 }
  0xca   :  { %v416_v1 = vmul.f32 %v931_v30, %v1394_v58  ;;  %v369_v11 = vadd.f32 %v361_v6, %v353_v5  ;;  %v1466_v37 = vmul.f32 %v1276_v62, %v297_v0  ;;  %vm431_vm9 = vcmp.eq.f32.partialorder %v391_v46, inf }
  0xcb   :  { %v933_v14 = vpop.eup %932  ;;  %936 = vrsqrt.f32 %v392_v59  ;;  %v346_v35 = vmul.f32 %v1457_v12, %v1457_v12  ;;  %v434_v62 = vand.u32 2147483648, %v391_v46  ;;  %vm433_vm10 = vcmp.eq.f32.partialorder %v391_v46, 0.0 }
  0xcc   :  { %v418_v33 = vsel %vm417_vm5, %v1394_v58, %v416_v1  ;;  %v423_v26 = vmul.f32 %v933_v14, %v1407_v36  ;;  %v385_v25 = vadd.f32 %v377_v10, %v369_v11  ;;  %v354_v58 = vmul.f32 %v1463_v31, %v1463_v31 }
  0xcd   :  { %v421_v13 = vsel %vm419_vm6, %v420_v34, %v418_v33  ;;  %v370_v42 = vmul.f32 %v1466_v37, %v1466_v37  ;;  %vm438_vm11 = vcmp.eq.f32.partialorder %v392_v59, inf  ;;  %vm440_vm12 = vcmp.eq.f32.partialorder %v392_v59, 0.0 }
  0xce   :  { %472 = vperm.xlu1 %909, %v421_v13   ;;  %v425_v19 = vsel %vm424_vm7, %v1407_v36, %v423_v26  ;;  %v393_v47 = vmax.f32 %v385_v25, 1e-08  ;;  %v362_v51 = vadd.f32 %v354_v58, %v346_v35  ;;  %v441_v36 = vand.u32 2147483648, %v392_v59 }
  0xcf   :  { %v428_v41 = vsel %vm426_vm8, %v427_v8, %v425_v19  ;;  %v935_v43 = vpop.eup %934  ;;  %vm792_vm2 = vcmask 7168  }
  0xd0   :  { %v430_v2 = vmul.f32 %v935_v43, %v391_v46  ;;  %938 = vrsqrt.f32 %v393_v47  ;;  %v378_v54 = vadd.f32 %v370_v42, %v362_v51  ;;  %vm445_vm13 = vcmp.eq.f32.partialorder %v393_v47, inf }
  0xd1   :  { %v448_v5 = vand.u32 2147483648, %v393_v47  ;;  %vm447_vm14 = vcmp.eq.f32.partialorder %v393_v47, 0.0 }
  0xd2   :  { %477 = vperm.xlu1 %909, %v428_v41   ;;  %v432_v27 = vsel %vm431_vm9, %v391_v46, %v430_v2  ;;  %v386_v34 = vmax.f32 %v378_v54, 1e-08 }
  0xd3   :  { %v435_v30 = vsel %vm433_vm10, %v434_v62, %v432_v27 }
  0xd4   :  { %940 = vrsqrt.f32 %v386_v34  ;;  %vm396_vm15 = vcmp.eq.f32.partialorder %v386_v34, inf  ;;  %v399_v14 = vand.u32 2147483648, %v386_v34  ;;  %vm398_vm1 = vcmp.eq.f32.partialorder %v386_v34, 0.0 }
  0xd5   :  { %v937_v9 = vpop.eup %936 }
  0xd6   :  { %482 = vperm.xlu1 %909, %v435_v30   ;;  %v437_v61 = vmul.f32 %v937_v9, %v392_v59 }
  0xd8   :  { %v439_v0 = vsel %vm438_vm11, %v392_v59, %v437_v61 }
  0xd9   :  { %v442_v1 = vsel %vm440_vm12, %v441_v36, %v439_v0 }
  0xda   :  { %v939_v4 = vpop.eup %938  ;;  %487 = vperm.xlu1 %909, %v442_v1  }
  0xdb   :  { %v444_v6 = vmul.f32 %v939_v4, %v393_v47 }
  0xdd   :  { %v446_v8 = vsel %vm445_vm13, %v393_v47, %v444_v6 }
  0xde   :  { %v449_v46 = vsel %vm447_vm14, %v448_v5, %v446_v8  ;;  %v941_v10 = vpop.eup %940  ;;  %v843_v8 = vld [vmem:[%s1703_s2] ss:$0 sm:$0xff] }
  0xdf   :  { %492 = vperm.xlu1 %909, %v449_v46   ;;  %v395_v33 = vmul.f32 %v941_v10, %v386_v34 }
  0xe1   :  { %v397_v11 = vsel %vm396_vm15, %v386_v34, %v395_v33 }
  0xe2   :  { %v400_v13 = vsel %vm398_vm1, %v399_v14, %v397_v11 }
  0xe3   :  { %457 = vperm.xlu0 %908, %v400_v13  }
 0x125   :  { %v135_v26 = vpop.xlane.xlu0 %134 }
 0x126   :  { %v157_v59 = vmul.f32 0.0625, %v135_v26 }
 0x128   :  { %v165_v19 = vadd.f32 1e-05, %v157_v59 }
 0x129   :  { %v138_v25 = vpop.xlane.xlu1 %137  ;;  %v141_v35 = vpop.xlane.xlu0 %140 }
 0x12a   :  { %942 = vrsqrt.f32 %v165_v19  ;;  %v158_v58 = vmul.f32 0.0625, %v138_v25  ;;  %v159_v41 = vmul.f32 0.0625, %v141_v35 }
 0x12c   :  { %v166_v42 = vadd.f32 1e-05, %v158_v58  ;;  %v167_v43 = vadd.f32 1e-05, %v159_v41 }
 0x12d   :  { %v144_v62 = vpop.xlane.xlu1 %143  ;;  %v147_v47 = vpop.xlane.xlu0 %146 }
 0x12e   :  { %944 = vrsqrt.f32 %v166_v42  ;;  %v160_v51 = vmul.f32 0.0625, %v144_v62  ;;  %v161_v2 = vmul.f32 0.0625, %v147_v47 }
 0x12f   :  { %946 = vrsqrt.f32 %v167_v43 }
 0x130   :  { %v168_v27 = vadd.f32 1e-05, %v160_v51  ;;  %v169_v54 = vadd.f32 1e-05, %v161_v2 }
 0x131   :  { %v150_v30 = vpop.xlane.xlu1 %149  ;;  %v153_v34 = vpop.xlane.xlu0 %152 }
 0x132   :  { %948 = vrsqrt.f32 %v168_v27  ;;  %v162_v9 = vmul.f32 0.0625, %v150_v30  ;;  %v163_v36 = vmul.f32 0.0625, %v153_v34 }
 0x133   :  { %950 = vrsqrt.f32 %v169_v54 }
 0x134   :  { %v943_v61 = vpop.eup %942  ;;  %v170_v0 = vadd.f32 1e-05, %v162_v9  ;;  %v171_v1 = vadd.f32 1e-05, %v163_v36 }
 0x135   :  { %v156_v4 = vpop.xlane.xlu1 %155  ;;  %v181_v5 = vmul.f32 %v943_v61, %v1088_v20  ;;  %v844_v20 = vld [vmem:[%s1704_s3] ss:$0 sm:$0xff] }
 0x136   :  { %952 = vrsqrt.f32 %v170_v0  ;;  %v164_v6 = vmul.f32 0.0625, %v156_v4 }
 0x137   :  { %954 = vrsqrt.f32 %v171_v1  ;;  %v195_v11 = vmul.f32 %v843_v8, %v181_v5 }
 0x138   :  { %v945_v46 = vpop.eup %944  ;;  %v172_v10 = vadd.f32 1e-05, %v164_v6 }
 0x139   :  { %v947_v14 = vpop.eup %946  ;;  %v182_v33 = vmul.f32 %v945_v46, %v1096_v28  ;;  %v209_v35 = vadd.f32 %v844_v20, %v195_v11  ;;  %v314_v46 = vld [vmem:[%s1705_s9 + $0x18] sm:$0xff] }
 0x13a   :  { %v183_v13 = vmul.f32 %v947_v14, %v1090_v21  ;;  %956 = vrsqrt.f32 %v172_v10  ;;  %v22_v14 = vstv %s1706_s10 }
 0x13b   :  { %v196_v26 = vmul.f32 %v843_v8, %v182_v33  ;;  %23 = vst [vmem:[#allocation4] sm:$0x1] %v22_v14 }
 0x13c   :  { %v949_v59 = vpop.eup %948  ;;  %v197_v41 = vmul.f32 %v843_v8, %v183_v13 }
 0x13d   :  { %v951_v19 = vpop.eup %950  ;;  %v184_v25 = vmul.f32 %v949_v59, %v1098_v29  ;;  %v210_v58 = vadd.f32 %v844_v20, %v196_v26 }
 0x13e   :  { %v185_v42 = vmul.f32 %v951_v19, %v1106_v38  ;;  %v211_v51 = vadd.f32 %v844_v20, %v197_v41  ;;  %v846_v19 = vld [vmem:[%s1707_s6] ss:$0 sm:$0xff] }
 0x13f   :  { %v450_v43 = vpack.c.bf16 %v210_v58, %v209_v35  ;;  %v198_v28 = vmul.f32 %v843_v8, %v184_v25  ;;  %v851_v41 = vld [vmem:[%s1708_s7] ss:$0 sm:$0xff] }
 0x140   :  { %v953_v62 = vpop.eup %952  ;;  %v199_v27 = vmul.f32 %v843_v8, %v185_v42 }
 0x141   :  { %v955_v47 = vpop.eup %954  ;;  %v186_v21 = vmul.f32 %v953_v62, %v1108_v39  ;;  %887 = vmatprep.mubr.msk.bf16.mxu0 %vm83_vm0, %v450_v43  ;;  %v212_v2 = vadd.f32 %v844_v20, %v198_v28 }
 0x142   :  { %v187_v54 = vmul.f32 %v955_v47, %v1116_v48  ;;  %v213_v38 = vadd.f32 %v844_v20, %v199_v27  ;;  %v311_v48 = vld [vmem:[%s1705_s9] sm:$0xff] }
 0x143   :  { %v451_v30 = vpack.c.bf16 %v212_v2, %v211_v51  ;;  %v200_v29 = vmul.f32 %v843_v8, %v186_v21  ;;  %v463_v33 = vpop.permute.xlu1 %462 }
 0x144   :  { %v957_v34 = vpop.eup %956  ;;  %v201_v61 = vmul.f32 %v843_v8, %v187_v54  ;;  %v502_v47 = vmul.f32 %v846_v19, %v463_v33 }
 0x145   :  { %v188_v9 = vmul.f32 %v957_v34, %v1118_v49  ;;  %888 = vmatmul.mubr.msk.bf16.vlgmr.msra.gmra.mrb[0].mxu0 %vm83_vm0, %v451_v30  ;;  %v214_v36 = vadd.f32 %v844_v20, %v200_v29  ;;  %v312_v49 = vld [vmem:[%s1705_s9 + $0x8] sm:$0xff] }
 0x146   :  { %v215_v39 = vadd.f32 %v844_v20, %v201_v61  ;;  %v604_v6 = vpack.c.bf16 %v312_v49, %v311_v48 }
 0x147   :  { %v452_v0 = vpack.c.bf16 %v214_v36, %v213_v38  ;;  %v202_v1 = vmul.f32 %v843_v8, %v188_v9  ;;  %v313_v8 = vld [vmem:[%s1705_s9 + $0x10] sm:$0xff]  ;;  %v468_v11 = vpop.permute.xlu1 %467 }
 0x148   :  { %895 = vmatprep.subr.bf16.mxu1 %v604_v6  ;;  %v605_v10 = vpack.c.bf16 %v314_v46, %v313_v8  ;;  %v503_v35 = vmul.f32 %v846_v19, %v468_v11 }
 0x149   :  { %891 = vmatprep.mubr.msk.bf16.mxu0 %vm83_vm0, %v452_v0  ;;  %v216_v4 = vadd.f32 %v844_v20, %v202_v1  ;;  %896 = vmatpush3.bf16.msra.mxu1 %v604_v6 }
 0x14a   :  { %897 = vmatprep.subr.bf16.mxu1 %v605_v10 }
 0x14b   :  { %v453_v5 = vpack.c.bf16 %v216_v4, %v215_v39 }
 0x14d   :  { %892 = vmatmul.mubr.msk.bf16.gmra.mrb[4].mxu0 %vm83_vm0, %v453_v5  ;;  %898 = vmatpush3.bf16.msra.mxu1 %v605_v10  ;;  %v473_v13 = vpop.permute.xlu1 %472  ;;  %vm612_vm0 = vcmask 261120  }
 0x14e   :  { %v504_v43 = vmul.f32 %v846_v19, %v473_v13 }
 0x151   :  { %v478_v20 = vpop.permute.xlu1 %477 }
 0x152   :  { %v505_v0 = vmul.f32 %v846_v19, %v478_v20 }
 0x155   :  { %v483_v26 = vpop.permute.xlu1 %482 }
 0x156   :  { %v506_v49 = vmul.f32 %v846_v19, %v483_v26 }
 0x159   :  { %v488_v58 = vpop.permute.xlu1 %487 }
 0x15a   :  { %v507_v36 = vmul.f32 %v846_v19, %v488_v58 }
 0x15e   :  { %v493_v9 = vpop.permute.xlu1 %492 }
 0x15f   :  { %v508_v4 = vmul.f32 %v846_v19, %v493_v9 }
 0x162   :  { %v458_v59 = vpop.permute.xlu0 %457 }
 0x163   :  { %v501_v25 = vmul.f32 %v846_v19, %v458_v59  ;;  %v852_v19 = vld [vmem:[#allocation4] ss:$0 sm:$0xff] }
 0x218   :  { %v889_v42 = vpop.f32.mrb[0].mxu0 }
 0x219   :  { %v564_v28 = vadd.f32 %v889_v42, %v503_v35  ;;  %v555_v62 = vpop.f32.mrb[1].mxu0 }
 0x21a   :  { %v556_v21 = vadd.f32 %v555_v62, %v501_v25  ;;  %v890_v51 = vpop.f32.mrb[2].mxu0 }
 0x21b   :  { %v594_v2 = vadd.f32 %v851_v41, %v564_v28  ;;  %v567_v27 = vadd.f32 %v890_v51, %v504_v43  ;;  %v558_v54 = vpop.f32.mrb[3].mxu0 }
 0x21c   :  { %v592_v30 = vadd.f32 %v851_v41, %v556_v21  ;;  %v559_v29 = vadd.f32 %v558_v54, %v502_v47 }
 0x21d   :  { %786 = vst.msk [vmem:[%s1709_s11 + $0x10] sm:$0xff] %vm612_vm0, %v594_v2  ;;  %v595_v34 = vadd.f32 %v851_v41, %v567_v27 }
 0x21e   :  { %784 = vst.msk [vmem:[%s1709_s11] sm:$0xff] %vm612_vm0, %v592_v30  ;;  %v593_v38 = vadd.f32 %v851_v41, %v559_v29 }
 0x21f   :  { %v601_v61 = vpack.c.bf16 %v595_v34, %v594_v2  ;;  %787 = vst.msk [vmem:[%s1709_s11 + $0x18] sm:$0xff] %vm612_vm0, %v595_v34 }
 0x220   :  { %785 = vst.msk [vmem:[%s1709_s11 + $0x8] sm:$0xff] %vm612_vm0, %v593_v38  ;;  %v893_v1 = vpop.f32.mrb[4].mxu0  ;;  %v600_v39 = vpack.c.bf16 %v593_v38, %v592_v30 }
 0x221   :  { %v580_v5 = vadd.f32 %v893_v1, %v507_v36  ;;  %v571_v48 = vpop.f32.mrb[5].mxu0 }
 0x222   :  { %v572_v6 = vadd.f32 %v571_v48, %v505_v0  ;;  %v894_v8 = vpop.f32.mrb[6].mxu0  ;;  %899 = vmatprep.mubr.msk.bf16.mxu1 %vm612_vm0, %v600_v39 }
 0x223   :  { %v598_v46 = vadd.f32 %v851_v41, %v580_v5  ;;  %v583_v10 = vadd.f32 %v894_v8, %v508_v4  ;;  %v574_v14 = vpop.f32.mrb[7].mxu0  ;;  %900 = vmatmul.mubr.msk.bf16.vlgmr.msra.gmra.mrb[0].mxu1 %vm612_vm0, %v601_v61 }
 0x224   :  { %v596_v33 = vadd.f32 %v851_v41, %v572_v6  ;;  %v575_v11 = vadd.f32 %v574_v14, %v506_v49 }
 0x225   :  { %790 = vst.msk [vmem:[%s1709_s11 + $0x30] sm:$0xff] %vm612_vm0, %v598_v46  ;;  %v599_v13 = vadd.f32 %v851_v41, %v583_v10 }
 0x226   :  { %788 = vst.msk [vmem:[%s1709_s11 + $0x20] sm:$0xff] %vm612_vm0, %v596_v33  ;;  %v597_v20 = vadd.f32 %v851_v41, %v575_v11 }
 0x227   :  { %v603_v26 = vpack.c.bf16 %v599_v13, %v598_v46  ;;  %791 = vst.msk [vmem:[%s1709_s11 + $0x38] sm:$0xff] %vm612_vm0, %v599_v13 }
 0x228   :  { %v602_v59 = vpack.c.bf16 %v597_v20, %v596_v33  ;;  %789 = vst.msk [vmem:[%s1709_s11 + $0x28] sm:$0xff] %vm612_vm0, %v597_v20 }
 0x22a   :  { %903 = vmatprep.mubr.msk.bf16.mxu1 %vm612_vm0, %v602_v59 }
 0x22b   :  { %904 = vmatmul.mubr.msk.bf16.gmra.mrb[4].mxu1 %vm612_vm0, %v603_v26 }
 0x2f6   :  { %v901_v25 = vpop.f32.mrb[0].mxu1 }
 0x2f7   :  { %v668_v35 = vadd.f32 %v901_v25, %v852_v19  ;;  %v659_v58 = vpop.f32.mrb[1].mxu1  ;;  %v1552_v25 = vld [vmem:[#allocation3] ss:$0 sm:$0xff] }
 0x2f8   :  { %v660_v41 = vadd.f32 %v852_v19, %v659_v58  ;;  %v902_v42 = vpop.f32.mrb[2].mxu1 }
 0x2f9   :  { %v692_v43 = vsub.f32 0.0, %v668_v35  ;;  %v671_v28 = vadd.f32 %v902_v42, %v852_v19  ;;  %v662_v62 = vpop.f32.mrb[3].mxu1  ;;  %v738_v42 = vmul.f32 %v1552_v25, %v1330_v44  ;;  %v752_v44 = vmul.f32 %v1552_v25, %v1466_v37 }
 0x2fa   :  { %v690_v47 = vsub.f32 0.0, %v660_v41  ;;  %v663_v21 = vadd.f32 %v852_v19, %v662_v62  ;;  %v737_v41 = vmul.f32 %v1552_v25, %v1301_v60  ;;  %v744_v60 = vmul.f32 %v1552_v25, %v1463_v31 }
 0x2fb   :  { %v702_v51 = vmul.f32 1.442695, %v692_v43  ;;  %v693_v2 = vsub.f32 0.0, %v671_v28  ;;  %v746_v43 = vmul.f32 %v1552_v25, %v1333_v45  ;;  %v753_v31 = vmul.f32 %v1552_v25, %v1307_v15 }
 0x2fc   :  { %v698_v27 = vmul.f32 1.442695, %v690_v47  ;;  %v691_v54 = vsub.f32 0.0, %v663_v21  ;;  %v754_v47 = vmul.f32 %v1552_v25, %v1338_v52  ;;  %v739_v21 = vmul.f32 %v1552_v25, %v1351_v16 }
 0x2fd   :  { %958 = vpow2.f32 %v702_v51  ;;  %v704_v30 = vmul.f32 1.442695, %v693_v2  ;;  %v736_v51 = vmul.f32 %v1552_v25, %v1457_v12  ;;  %v755_v52 = vmul.f32 %v1552_v25, %v1357_v22 }
 0x2fe   :  { %960 = vpow2.f32 %v698_v27  ;;  %v700_v29 = vmul.f32 1.442695, %v691_v54  ;;  %v905_v34 = vpop.f32.mrb[4].mxu1  ;;  %v747_v54 = vmul.f32 %v1552_v25, %v1354_v17  ;;  %v745_v12 = vmul.f32 %v1552_v25, %v1304_v63 }
 0x2ff   :  { %962 = vpow2.f32 %v704_v30  ;;  %v684_v9 = vadd.f32 %v905_v34, %v852_v19  ;;  %v675_v38 = vpop.f32.mrb[5].mxu1 }
 0x300   :  { %964 = vpow2.f32 %v700_v29  ;;  %v676_v36 = vadd.f32 %v852_v19, %v675_v38  ;;  %v906_v61 = vpop.f32.mrb[6].mxu1 }
 0x301   :  { %v696_v0 = vsub.f32 0.0, %v684_v9  ;;  %v687_v1 = vadd.f32 %v906_v61, %v852_v19  ;;  %v678_v39 = vpop.f32.mrb[7].mxu1 }
 0x302   :  { %v694_v4 = vsub.f32 0.0, %v676_v36  ;;  %v679_v5 = vadd.f32 %v852_v19, %v678_v39 }
 0x303   :  { %v710_v48 = vmul.f32 1.442695, %v696_v0  ;;  %v697_v49 = vsub.f32 0.0, %v687_v1 }
 0x304   :  { %v706_v6 = vmul.f32 1.442695, %v694_v4  ;;  %v695_v8 = vsub.f32 0.0, %v679_v5  ;;  %v742_v5 = vmul.f32 %v1552_v25, %v1410_v24  ;;  %v740_v24 = vmul.f32 %v1552_v25, %v1362_v18 }
 0x305   :  { %966 = vpow2.f32 %v710_v48  ;;  %v712_v46 = vmul.f32 1.442695, %v697_v49  ;;  %v750_v48 = vmul.f32 %v1552_v25, %v1414_v50  ;;  %v758_v49 = vmul.f32 %v1552_v25, %v1417_v57 }
 0x306   :  { %968 = vpow2.f32 %v706_v6  ;;  %v708_v10 = vmul.f32 1.442695, %v695_v8  ;;  %v748_v50 = vmul.f32 %v1552_v25, %v1371_v32  ;;  %v756_v57 = vmul.f32 %v1552_v25, %v1375_v40 }
 0x307   :  { %v959_v14 = vpop.eup %958  ;;  %970 = vpow2.f32 %v712_v46  ;;  %v743_v18 = vmul.f32 %v1552_v25, %v1431_v55  ;;  %v751_v32 = vmul.f32 %v1552_v25, %v1434_v23  ;;  %v759_v40 = vmul.f32 %v1552_v25, %v1437_v56 }
 0x308   :  { %v961_v33 = vpop.eup %960  ;;  %v716_v11 = vadd.f32 1.0, %v959_v14  ;;  %972 = vpow2.f32 %v708_v10  ;;  %v741_v8 = vmul.f32 %v1552_v25, %v1386_v3  ;;  %v749_v46 = vmul.f32 %v1552_v25, %v1389_v53 }
 0x309   :  { %v963_v13 = vpop.eup %962  ;;  %v714_v20 = vadd.f32 1.0, %v961_v33  ;;  %v757_v10 = vmul.f32 %v1552_v25, %v1392_v7 }
 0x30a   :  { %v965_v26 = vpop.eup %964  ;;  %974 = vrcp.f32 %v716_v11  ;;  %v717_v59 = vadd.f32 1.0, %v963_v13 }
 0x30b   :  { %976 = vrcp.f32 %v714_v20  ;;  %v715_v19 = vadd.f32 1.0, %v965_v26 }
 0x30c   :  { %978 = vrcp.f32 %v717_v59 }
 0x30d   :  { %980 = vrcp.f32 %v715_v19 }
 0x30f   :  { %v967_v35 = vpop.eup %966 }
 0x310   :  { %v969_v58 = vpop.eup %968  ;;  %v720_v28 = vadd.f32 1.0, %v967_v35 }
 0x311   :  { %v971_v62 = vpop.eup %970  ;;  %v718_v2 = vadd.f32 1.0, %v969_v58 }
 0x312   :  { %v973_v27 = vpop.eup %972  ;;  %982 = vrcp.f32 %v720_v28  ;;  %v721_v45 = vadd.f32 1.0, %v971_v62 }
 0x313   :  { %984 = vrcp.f32 %v718_v2  ;;  %v719_v16 = vadd.f32 1.0, %v973_v27 }
 0x314   :  { %v975_v30 = vpop.eup %974  ;;  %986 = vrcp.f32 %v721_v45 }
 0x315   :  { %v977_v37 = vpop.eup %976  ;;  %v762_v29 = vmul.f32 %v975_v30, %v738_v42  ;;  %v770_v34 = vmul.f32 %v975_v30, %v746_v43  ;;  %v778_v9 = vmul.f32 %v975_v30, %v754_v47  ;;  %988 = vrcp.f32 %v719_v16 }
 0x316   :  { %v979_v17 = vpop.eup %978  ;;  %v760_v38 = vmul.f32 %v977_v37, %v736_v51  ;;  %v768_v36 = vmul.f32 %v977_v37, %v744_v60  ;;  %v776_v22 = vmul.f32 %v977_v37, %v752_v44 }
 0x317   :  { %v981_v61 = vpop.eup %980  ;;  %795 = vst.msk [vmem:[%s1710_s12 + $0x10] sm:$0xff] %vm792_vm2, %v762_v29  ;;  %860 = vst.msk [vmem:[%s1710_s12 + $0x50] sm:$0xff] %vm792_vm2, %v770_v34  ;;  %v763_v63 = vmul.f32 %v979_v17, %v739_v21  ;;  %v771_v15 = vmul.f32 %v979_v17, %v747_v54  ;;  %v779_v0 = vmul.f32 %v979_v17, %v755_v52 }
 0x318   :  { %868 = vst.msk [vmem:[%s1710_s12 + $0x90] sm:$0xff] %vm792_vm2, %v778_v9  ;;  %793 = vst.msk [vmem:[%s1710_s12] sm:$0xff] %vm792_vm2, %v760_v38  ;;  %v761_v1 = vmul.f32 %v981_v61, %v737_v41  ;;  %v769_v39 = vmul.f32 %v981_v61, %v745_v12  ;;  %v777_v4 = vmul.f32 %v981_v61, %v753_v31 }
 0x319   :  { %858 = vst.msk [vmem:[%s1710_s12 + $0x40] sm:$0xff] %vm792_vm2, %v768_v36  ;;  %866 = vst.msk [vmem:[%s1710_s12 + $0x80] sm:$0xff] %vm792_vm2, %v776_v22 }
 0x31a   :  { %796 = vst.msk [vmem:[%s1710_s12 + $0x18] sm:$0xff] %vm792_vm2, %v763_v63  ;;  %861 = vst.msk [vmem:[%s1710_s12 + $0x58] sm:$0xff] %vm792_vm2, %v771_v15 }
 0x31b   :  { %869 = vst.msk [vmem:[%s1710_s12 + $0x98] sm:$0xff] %vm792_vm2, %v779_v0  ;;  %794 = vst.msk [vmem:[%s1710_s12 + $0x8] sm:$0xff] %vm792_vm2, %v761_v1 }
 0x31c   :  { %859 = vst.msk [vmem:[%s1710_s12 + $0x48] sm:$0xff] %vm792_vm2, %v769_v39  ;;  %867 = vst.msk [vmem:[%s1710_s12 + $0x88] sm:$0xff] %vm792_vm2, %v777_v4  ;;  %v983_v6 = vpop.eup %982 }
 0x31d   :  { %v985_v14 = vpop.eup %984  ;;  %v766_v33 = vmul.f32 %v983_v6, %v742_v5  ;;  %v774_v11 = vmul.f32 %v983_v6, %v750_v48  ;;  %v782_v55 = vmul.f32 %v983_v6, %v758_v49 }
 0x31e   :  { %v987_v13 = vpop.eup %986  ;;  %v764_v20 = vmul.f32 %v985_v14, %v740_v24  ;;  %v772_v23 = vmul.f32 %v985_v14, %v748_v50  ;;  %v780_v26 = vmul.f32 %v985_v14, %v756_v57 }
 0x31f   :  { %v989_v59 = vpop.eup %988  ;;  %799 = vst.msk [vmem:[%s1710_s12 + $0x30] sm:$0xff] %vm792_vm2, %v766_v33  ;;  %864 = vst.msk [vmem:[%s1710_s12 + $0x70] sm:$0xff] %vm792_vm2, %v774_v11  ;;  %v767_v3 = vmul.f32 %v987_v13, %v743_v18  ;;  %v775_v53 = vmul.f32 %v987_v13, %v751_v32  ;;  %v783_v7 = vmul.f32 %v987_v13, %v759_v40 }
 0x320   :  { %872 = vst.msk [vmem:[%s1710_s12 + $0xb0] sm:$0xff] %vm792_vm2, %v782_v55  ;;  %797 = vst.msk [vmem:[%s1710_s12 + $0x20] sm:$0xff] %vm792_vm2, %v764_v20  ;;  %v765_v56 = vmul.f32 %v989_v59, %v741_v8  ;;  %v773_v19 = vmul.f32 %v989_v59, %v749_v46  ;;  %v781_v25 = vmul.f32 %v989_v59, %v757_v10 }
 0x321   :  { %862 = vst.msk [vmem:[%s1710_s12 + $0x60] sm:$0xff] %vm792_vm2, %v772_v23  ;;  %870 = vst.msk [vmem:[%s1710_s12 + $0xa0] sm:$0xff] %vm792_vm2, %v780_v26 }
 0x322   :  { %800 = vst.msk [vmem:[%s1710_s12 + $0x38] sm:$0xff] %vm792_vm2, %v767_v3  ;;  %865 = vst.msk [vmem:[%s1710_s12 + $0x78] sm:$0xff] %vm792_vm2, %v775_v53 }
 0x323   :  { %873 = vst.msk [vmem:[%s1710_s12 + $0xb8] sm:$0xff] %vm792_vm2, %v783_v7  ;;  %798 = vst.msk [vmem:[%s1710_s12 + $0x28] sm:$0xff] %vm792_vm2, %v765_v56 }
 0x324   :  { %863 = vst.msk [vmem:[%s1710_s12 + $0x68] sm:$0xff] %vm792_vm2, %v773_v19  ;;  %871 = vst.msk [vmem:[%s1710_s12 + $0xa8] sm:$0xff] %vm792_vm2, %v781_v25 }

// kernel: lba_model_forward.25
= control target key start
LH: loop header
LB: loop body
LE: loop exit
PB: predicated region body
PF: predicated region fallthrough
CT: control target
= control target key end

     0   :  { %vm51_vm0 = vcmask 818176   ;;  %vm121_vm1 = vcmask 130048   ;;  %v716_v24 = vmov 0.0   ;;  %vm717_vm2 = vmmov 0   ;;  %s1113_s1 = inlined_call_operand.vmem [shape: f32[16,100], index: 1, kind: input, shape index: {}]   ;;  %s1114_s2 = inlined_call_operand.vmem [shape: f32[3,16,16], index: 2, kind: input, shape index: {}]   ;;  %s1115_s5 = inlined_call_operand.vmem [shape: f32[16,16], index: 5, kind: input, shape index: {}]   ;;  %s1116_s7 = inlined_call_operand.vmem [shape: f32[16,100], index: 7, kind: input, shape index: {}]   ;;  %s1117_s6 = inlined_call_operand.vmem [shape: f32[100,100], index: 6, kind: input, shape index: {}]   ;;  %s1118_s3 = inlined_call_operand.vmem [shape: f32[1,100], index: 3, kind: input, shape index: {}]   ;;  %s1119_s4 = inlined_call_operand.vmem [shape: f32[1,100], index: 4, kind: input, shape index: {}]   ;;  %s1120_s8 = inlined_call_operand.vmem [shape: f32[1,100], index: 8, kind: input, shape index: {}]   ;;  %s1121_s9 = inlined_call_operand.vmem [shape: f32[100,200], index: 9, kind: input, shape index: {}]   ;;  %s1122_s0 = inlined_call_operand.vmem [shape: f32[8,16], index: 0, kind: input, shape index: {}]   ;;  %s1123_s11 = inlined_call_operand.vmem [shape: f32[200,1], index: 11, kind: input, shape index: {}]   ;;  %s1124_s12 = inlined_call_operand.<no memory space> [shape: f32[1,1], index: 12, kind: input, shape index: {}]   ;;  %s1125_s10 = inlined_call_operand.vmem [shape: f32[1,200], index: 10, kind: input, shape index: {}]   ;;  %s1126_s13 = inlined_call_operand.vmem [shape: f32[8,1], index: 13, kind: output, shape index: {}]  }
   0x1   :  { %v53_v0 = vld [vmem:[%s1113_s1] sm:$0xff]  ;;  %v54_v1 = vld [vmem:[%s1113_s1 + $0x8] sm:$0xff]  ;;  %v802_v4 = vld [vmem:[%s1114_s2 + $0x10] sm:$0xff]  ;;  %657 = vmatprep.subr.bf16.mxu0 %v716_v24  ;;  %52 = vst.msk [vmem:[#allocation2] sm:$0xff] %vm51_vm0, %v716_v24  ;;  %659 = vmatprep.mubr.msk.bf16.mxu0 %vm717_vm2, %v716_v24  ;;  %vm310_vm7 = vcmask 1041408   ;;  %vm574_vm8 = vcmask 1043456  }
   0x2   :  { %v55_v2 = vld [vmem:[%s1114_s2] sm:$0xff]  ;;  %v66_v3 = vsel %vm51_vm0, %v53_v0, 0.0  ;;  %v56_v7 = vld [vmem:[%s1114_s2 + $0x8] sm:$0xff]  ;;  %v111_v8 = vmul.f32 %v802_v4, %v802_v4  ;;  %v625_v10 = vld [vmem:[%s1114_s2 + $0x18] sm:$0xff]  ;;  %v69_v13 = vsel %vm51_vm0, %v54_v1, 0.0  ;;  %671 = vmatprep.subr.bf16.mxu1 %v716_v24  ;;  %673 = vmatprep.mubr.msk.bf16.mxu1 %vm717_vm2, %v716_v24  ;;  %vm570_vm9 = vcmask 588800  }
   0x3   :  { %v807_v5 = vld [vmem:[%s1114_s2 + $0x20] sm:$0xff]  ;;  %v109_v6 = vmul.f32 %v55_v2, %v55_v2  ;;  %67 = vadd.xlane.f32.xlu1 %v66_v3  ;;  %v627_v11 = vld [vmem:[%s1114_s2 + $0x28] sm:$0xff]  ;;  %v110_v12 = vmul.f32 %v56_v7, %v56_v7  ;;  %v112_v14 = vmul.f32 %v625_v10, %v625_v10  ;;  %vm618_vm10 = vcmask 7168  }
   0x4   :  { %v115_v9 = vmul.f32 %v807_v5, %v807_v5  ;;  %v116_v15 = vmul.f32 %v627_v11, %v627_v11  ;;  %v139_v25 = vld [vmem:[%s1115_s5] sm:$0xff]  ;;  %v140_v26 = vld [vmem:[%s1115_s5 + $0x8] sm:$0xff] }
   0x5   :  { %v113_v16 = vadd.f32 %v111_v8, %v109_v6  ;;  %v114_v17 = vadd.f32 %v112_v14, %v110_v12  ;;  %v160_v27 = vpack.c.bf16 %v140_v26, %v139_v25  ;;  %v154_v53 = vld [vmem:[%s1116_s7] sm:$0xff]  ;;  %v155_v54 = vld [vmem:[%s1116_s7 + $0x8] sm:$0xff] }
   0x6   :  { %v262_v55 = vpack.c.bf16 %v155_v54, %v154_v53  ;;  %v141_v25 = vld [vmem:[%s1117_s6] sm:$0xff]  ;;  %v142_v26 = vld [vmem:[%s1117_s6 + $0x8] sm:$0xff]  ;;  %v151_v54 = vld [vmem:[%s1117_s6 + $0x50] sm:$0xff] }
   0x7   :  { %70 = vadd.xlane.f32.xlu1 %v69_v13  ;;  %v117_v18 = vadd.f32 %v115_v9, %v113_v16  ;;  %v118_v19 = vadd.f32 %v116_v15, %v114_v17  ;;  %658 = vmatpush3.bf16.msra.mxu0 %v160_v27 }
   0x8   :  { %672 = vmatpush3.bf16.msra.mxu1 %v262_v55  ;;  %v152_v55 = vld [vmem:[%s1117_s6 + $0x58] sm:$0xff] }
   0x9   :  { %v119_v20 = vmax.f32 %v117_v18, 1e-08  ;;  %v120_v21 = vmax.f32 %v118_v19, 1e-08  ;;  %677 = vmatprep.subr.bf16.mxu1 %v716_v24 }
   0xb   :  { %v122_v22 = vsel %vm121_vm1, %v119_v20, 0.0  ;;  %v125_v23 = vsel %vm121_vm1, %v120_v21, 0.0 }
   0xc   :  { %123 = vadd.xlane.f32.xlu0 %v122_v22 }
  0x10   :  { %126 = vadd.xlane.f32.xlu0 %v125_v23 }
  0x90   :  { %v68_v28 = vpop.xlane.xlu1 %67 }
  0x91   :  { %v73_v29 = vmul.f32 0.01, %v68_v28 }
  0x93   :  { %v839_v30 = vsub.f32 %v53_v0, %v73_v29 }
  0x94   :  { %v71_v31 = vpop.xlane.xlu1 %70 }
  0x95   :  { %v74_v32 = vmul.f32 0.01, %v71_v31  ;;  %v77_v33 = vmul.f32 %v839_v30, %v839_v30 }
  0x97   :  { %v843_v34 = vsub.f32 %v54_v1, %v74_v32  ;;  %v79_v35 = vsel %vm51_vm0, %v77_v33, 0.0 }
  0x98   :  { %80 = vadd.xlane.f32.xlu0 %v79_v35 }
  0x99   :  { %v124_v36 = vpop.xlane.xlu0 %123  ;;  %v78_v37 = vmul.f32 %v843_v34, %v843_v34 }
  0x9a   :  { %v129_v38 = vmul.f32 0.0625, %v124_v36  ;;  %v254_v36 = vpack.c.bf16 %v142_v26, %v141_v25  ;;  %v425_v25 = vld [vmem:[%s1121_s9 + $0x38] sm:$0xff] }
  0x9b   :  { %v82_v39 = vsel %vm51_vm0, %v78_v37, 0.0 }
  0x9c   :  { %83 = vadd.xlane.f32.xlu1 %v82_v39  ;;  %704 = vrsqrt.f32 %v129_v38  ;;  %v143_v38 = vld [vmem:[%s1117_s6 + $0x10] sm:$0xff]  ;;  %v144_v39 = vld [vmem:[%s1117_s6 + $0x18] sm:$0xff] }
  0x9d   :  { %v127_v40 = vpop.xlane.xlu0 %126 }
  0x9e   :  { %v130_v41 = vmul.f32 0.0625, %v127_v40 }
  0xa0   :  { %706 = vrsqrt.f32 %v130_v41  ;;  %v255_v41 = vpack.c.bf16 %v144_v39, %v143_v38  ;;  %v428_v38 = vld [vmem:[%s1121_s9 + $0x50] sm:$0xff]  ;;  %v431_v39 = vld [vmem:[%s1121_s9 + $0x68] sm:$0xff] }
  0xa6   :  { %v705_v42 = vpop.eup %704 }
  0xa7   :  { %v133_v44 = vmul.f32 %v705_v42, %v55_v2  ;;  %v135_v48 = vmul.f32 %v705_v42, %v802_v4  ;;  %v137_v51 = vmul.f32 %v705_v42, %v807_v5  ;;  %v145_v42 = vld [vmem:[%s1117_s6 + $0x20] sm:$0xff] }
  0xaa   :  { %v707_v43 = vpop.eup %706 }
  0xab   :  { %v134_v45 = vmul.f32 %v707_v43, %v56_v7  ;;  %v136_v47 = vmul.f32 %v707_v43, %v625_v10  ;;  %v138_v50 = vmul.f32 %v707_v43, %v627_v11  ;;  %v146_v43 = vld [vmem:[%s1117_s6 + $0x28] sm:$0xff] }
  0xad   :  { %v157_v46 = vpack.c.bf16 %v134_v45, %v133_v44  ;;  %v158_v49 = vpack.c.bf16 %v136_v47, %v135_v48  ;;  %v159_v52 = vpack.c.bf16 %v138_v50, %v137_v51  ;;  %v256_v44 = vpack.c.bf16 %v146_v43, %v145_v42  ;;  %v147_v45 = vld [vmem:[%s1117_s6 + $0x30] sm:$0xff]  ;;  %v149_v48 = vld [vmem:[%s1117_s6 + $0x40] sm:$0xff] }
  0xae   :  { %v430_v43 = vld [vmem:[%s1121_s9 + $0x60] sm:$0xff] }
  0xaf   :  { %660 = vmatmul.mubr.msk.bf16.vlgmr.msra.gmra.mrb[0].mxu0 %vm121_vm1, %v157_v46  ;;  %v148_v46 = vld [vmem:[%s1117_s6 + $0x38] sm:$0xff] }
  0xb0   :  { %663 = vmatprep.mubr.msk.bf16.mxu0 %vm717_vm2, %v716_v24  ;;  %v257_v47 = vpack.c.bf16 %v148_v46, %v147_v45  ;;  %v435_v46 = vld [vmem:[%s1121_s9 + $0x88] sm:$0xff] }
  0xb7   :  { %664 = vmatmul.mubr.msk.bf16.gmra.mrb[4].mxu0 %vm121_vm1, %v158_v49  ;;  %v150_v49 = vld [vmem:[%s1117_s6 + $0x48] sm:$0xff] }
  0xb8   :  { %667 = vmatprep.mubr.msk.bf16.mxu0 %vm717_vm2, %v716_v24 }
  0xbf   :  { %668 = vmatmul.mubr.msk.bf16.gmra.mrb[8].mxu0 %vm121_vm1, %v159_v52  ;;  %v258_v52 = vpack.c.bf16 %v150_v49, %v149_v48  ;;  %v434_v49 = vld [vmem:[%s1121_s9 + $0x80] sm:$0xff] }
 0x125   :  { %v81_v18 = vpop.xlane.xlu0 %80 }
 0x126   :  { %v85_v27 = vmul.f32 0.01, %v81_v18  ;;  %v366_v18 = vld [vmem:[%s1122_s0] sm:$0xff] }
 0x127   :  { %v367_v26 = vpack.c.bf16 %v366_v18, %v366_v18  ;;  %v537_v18 = vld [vmem:[%s1123_s11 + $0x70] sm:$0xff] }
 0x128   :  { %v87_v40 = vadd.f32 1e-05, %v85_v27 }
 0x129   :  { %v84_v16 = vpop.xlane.xlu1 %83 }
 0x12a   :  { %v86_v21 = vmul.f32 0.01, %v84_v16 }
 0x12c   :  { %v88_v32 = vadd.f32 1e-05, %v86_v21  ;;  %v420_v21 = vld [vmem:[%s1121_s9 + $0x10] sm:$0xff] }
 0x182   :  { %v204_v56 = vpop.f32.mrb[0].mxu0 }
 0x183   :  { %v661_v57 = vpop.f32.mrb[1].mxu0  ;;  %v227_v61 = vmul.f32 %v204_v56, %v204_v56  ;;  %v153_v56 = vld [vmem:[%s1117_s6 + $0x60] sm:$0xf] }
 0x184   :  { %v207_v58 = vpop.f32.mrb[2].mxu0 }
 0x185   :  { %v662_v59 = vpop.f32.mrb[3].mxu0  ;;  %v228_v1 = vmul.f32 %v207_v58, %v207_v58  ;;  %v259_v58 = vpack.c.bf16 %v152_v55, %v151_v54  ;;  %v438_v55 = vld [vmem:[%s1121_s9 + $0xa0] sm:$0xff] }
 0x18a   :  { %v212_v60 = vpop.f32.mrb[4].mxu0 }
 0x18b   :  { %v229_v62 = vmul.f32 %v212_v60, %v212_v60  ;;  %v665_v63 = vpop.f32.mrb[5].mxu0  ;;  %v260_v60 = vpack.c.bf16 %v153_v56, %v153_v56  ;;  %v440_v56 = vld [vmem:[%s1121_s9 + $0xb0] sm:$0xff] }
 0x18c   :  { %v215_v0 = vpop.f32.mrb[6].mxu0 }
 0x18d   :  { %v231_v2 = vadd.f32 %v229_v62, %v227_v61  ;;  %v230_v3 = vmul.f32 %v215_v0, %v215_v0  ;;  %v666_v4 = vpop.f32.mrb[7].mxu0  ;;  %v629_v62 = vld [vmem:[%s1119_s4] ss:$0 sm:$0xff] }
 0x18f   :  { %v232_v5 = vadd.f32 %v230_v3, %v228_v1 }
 0x192   :  { %v220_v6 = vpop.f32.mrb[8].mxu0 }
 0x193   :  { %v233_v7 = vmul.f32 %v220_v6, %v220_v6  ;;  %v669_v8 = vpop.f32.mrb[9].mxu0  ;;  %v635_v6 = vld [vmem:[%s1120_s8] ss:$0 sm:$0xff] }
 0x194   :  { %v223_v9 = vpop.f32.mrb[10].mxu0 }
 0x195   :  { %v235_v10 = vadd.f32 %v233_v7, %v231_v2  ;;  %v234_v11 = vmul.f32 %v223_v9, %v223_v9  ;;  %v670_v12 = vpop.f32.mrb[11].mxu0 }
 0x197   :  { %v237_v13 = vmax.f32 %v235_v10, 1e-08  ;;  %v236_v14 = vadd.f32 %v234_v11, %v232_v5 }
 0x199   :  { %708 = vrsqrt.f32 %v237_v13  ;;  %v238_v15 = vmax.f32 %v236_v14, 1e-08  ;;  %vm241_vm3 = vcmp.eq.f32.partialorder %v237_v13, inf  ;;  %v244_v28 = vand.u32 2147483648, %v237_v13 }
 0x19a   :  { %vm243_vm5 = vcmp.eq.f32.partialorder %v237_v13, 0.0 }
 0x19b   :  { %710 = vrsqrt.f32 %v238_v15  ;;  %vm248_vm4 = vcmp.eq.f32.partialorder %v238_v15, inf  ;;  %v251_v29 = vand.u32 2147483648, %v238_v15  ;;  %vm250_vm6 = vcmp.eq.f32.partialorder %v238_v15, 0.0 }
 0x19c   :  { %712 = vrsqrt.f32 %v88_v32  ;;  %v427_v32 = vld [vmem:[%s1121_s9 + $0x48] sm:$0xff] }
 0x19d   :  { %714 = vrsqrt.f32 %v87_v40  ;;  %v433_v40 = vld [vmem:[%s1121_s9 + $0x78] sm:$0xff] }
 0x19e   :  { %v452_v42 = vpack.c.bf16 %v433_v40, %v431_v39 }
 0x1a3   :  { %v709_v17 = vpop.eup %708 }
 0x1a4   :  { %v240_v19 = vmul.f32 %v709_v17, %v237_v13 }
 0x1a5   :  { %v711_v20 = vpop.eup %710 }
 0x1a6   :  { %v242_v22 = vsel %vm241_vm3, %v237_v13, %v240_v19  ;;  %v247_v23 = vmul.f32 %v711_v20, %v238_v15  ;;  %v713_v50 = vpop.eup %712  ;;  %v418_v20 = vld [vmem:[%s1121_s9] sm:$0xff] }
 0x1a7   :  { %v245_v33 = vsel %vm243_vm5, %v244_v28, %v242_v22  ;;  %v715_v51 = vpop.eup %714  ;;  %v92_v53 = vmul.f32 %v713_v50, %v843_v34  ;;  %v628_v34 = vld [vmem:[%s1118_s3] ss:$0 sm:$0xff]  ;;  %v445_v27 = vpack.c.bf16 %v420_v21, %v418_v20  ;;  %v436_v50 = vld [vmem:[%s1121_s9 + $0x90] sm:$0xff] }
 0x1a8   :  { %v249_v31 = vsel %vm248_vm4, %v238_v15, %v247_v23  ;;  %v91_v57 = vmul.f32 %v715_v51, %v839_v30  ;;  %v312_v30 = vsel %vm310_vm7, %v260_v60, 0  ;;  %v421_v15 = vld [vmem:[%s1121_s9 + $0x18] sm:$0xff]  ;;  %v423_v23 = vld [vmem:[%s1121_s9 + $0x28] sm:$0xff]  ;;  %v453_v51 = vpack.c.bf16 %v436_v50, %v434_v49  ;;  %v539_v21 = vld [vmem:[%s1123_s11 + $0x80] sm:$0xff] }
 0x1a9   :  { %v252_v35 = vsel %vm250_vm6, %v251_v29, %v249_v31  ;;  %v100_v59 = vmul.f32 %v628_v34, %v92_v53  ;;  %v448_v28 = vpack.c.bf16 %v425_v25, %v423_v23  ;;  %v422_v29 = vld [vmem:[%s1121_s9 + $0x20] sm:$0xff]  ;;  %v424_v31 = vld [vmem:[%s1121_s9 + $0x30] sm:$0xff]  ;;  %v441_v53 = vld [vmem:[%s1121_s9 + $0xb8] sm:$0xff]  ;;  %v718_v60 = vmov 0  }
 0x1aa   :  { %v261_v37 = vpack.c.bf16 %v252_v35, %v245_v33  ;;  %v99_v61 = vmul.f32 %v628_v34, %v91_v57  ;;  %v429_v33 = vld [vmem:[%s1121_s9 + $0x58] sm:$0xff]  ;;  %v447_v35 = vpack.c.bf16 %v424_v31, %v422_v29  ;;  %v443_v57 = vld [vmem:[%s1121_s9 + $0xc8] sm:$0xf]  ;;  %v455_v34 = vpack.c.bf16 %v440_v56, %v438_v55  ;;  %578 = vmatprep.subr.bf16.mxu0 %v718_v60  ;;  %v541_v25 = vld [vmem:[%s1123_s11 + $0x90] sm:$0xff] }
 0x1ab   :  { %v108_v63 = vadd.f32 %v629_v62, %v100_v59  ;;  %v442_v59 = vld [vmem:[%s1121_s9 + $0xc0] sm:$0xf]  ;;  %v544_v29 = vld [vmem:[%s1123_s11 + $0xa8] sm:$0xff] }
 0x1ac   :  { %674 = vmatmul.mubr.msk.bf16.vlgmr.msra.gmra.mrb[0].mxu1 %vm121_vm1, %v261_v37  ;;  %v107_v0 = vadd.f32 %v629_v62, %v99_v61  ;;  %v426_v37 = vld [vmem:[%s1121_s9 + $0x40] sm:$0xff]  ;;  %v457_v61 = vpack.c.bf16 %v442_v59, %v442_v59 }
 0x1ad   :  { %678 = vmatpush3.bf16.msra.mxu1 %v254_v36  ;;  %691 = vmatprep.mubr.msk.bf16.mxu1 %vm717_vm2, %v716_v24  ;;  %v450_v36 = vpack.c.bf16 %v429_v33, %v427_v32  ;;  %v365_v32 = vld [vmem:[#allocation2] sm:$0xff] }
 0x1ae   :  { %679 = vmatprep.subr.bf16.mxu1 %v716_v24  ;;  %v253_v1 = vpack.c.bf16 %v108_v63, %v107_v0  ;;  %v475_v62 = vsel %vm310_vm7, %v457_v61, 0  ;;  %v524_v63 = vld [vmem:[%s1123_s11 + $0x8] sm:$0xff]  ;;  %v525_v0 = vld [vmem:[%s1123_s11 + $0x10] sm:$0xff] }
 0x1b1   :  { %680 = vmatpush3.bf16.msra.mxu1 %v255_v41  ;;  %v449_v41 = vpack.c.bf16 %v428_v38, %v426_v37 }
 0x1b2   :  { %681 = vmatprep.subr.bf16.mxu1 %v716_v24 }
 0x1b5   :  { %682 = vmatpush3.bf16.msra.mxu1 %v256_v44  ;;  %v432_v44 = vld [vmem:[%s1121_s9 + $0x70] sm:$0xff] }
 0x1b6   :  { %683 = vmatprep.subr.bf16.mxu1 %v716_v24  ;;  %v451_v45 = vpack.c.bf16 %v432_v44, %v430_v43  ;;  %v547_v44 = vld [vmem:[%s1123_s11 + $0xc0] sm:$0xff] }
 0x1b9   :  { %684 = vmatpush3.bf16.msra.mxu1 %v257_v47  ;;  %v437_v47 = vld [vmem:[%s1121_s9 + $0x98] sm:$0xff] }
 0x1ba   :  { %685 = vmatprep.subr.bf16.mxu1 %v716_v24  ;;  %v454_v48 = vpack.c.bf16 %v437_v47, %v435_v46  ;;  %v18_v47 = vstv %s1124_s12 }
 0x1bb   :  { %19 = vst [vmem:[#allocation3] sm:$0x1] %v18_v47 }
 0x1bd   :  { %686 = vmatpush3.bf16.msra.mxu1 %v258_v52  ;;  %v439_v52 = vld [vmem:[%s1121_s9 + $0xa8] sm:$0xff] }
 0x1be   :  { %687 = vmatprep.subr.bf16.mxu1 %v716_v24  ;;  %v456_v54 = vpack.c.bf16 %v441_v53, %v439_v52 }
 0x1c1   :  { %688 = vmatpush3.bf16.msra.mxu1 %v259_v58  ;;  %v458_v58 = vpack.c.bf16 %v443_v57, %v443_v57 }
 0x1c2   :  { %689 = vmatprep.subr.bf16.mxu1 %v716_v24 }
 0x1c5   :  { %690 = vmatpush3.bf16.msra.mxu1 %v312_v30  ;;  %v523_v30 = vld [vmem:[%s1123_s11] sm:$0xff] }
 0x1c6   :  { %695 = vmatprep.subr.bf16.mxu1 %v716_v24 }
 0x1c8   :  { %692 = vmatmul.mubr.msk.bf16.vlgmr.msra.gmra.mrb[4].mxu1 %vm51_vm0, %v253_v1  ;;  %v550_v1 = vpack.c.bf16 %v524_v63, %v523_v30  ;;  %v639_v63 = vld [vmem:[#allocation3] ss:$0 sm:$0xff] }
 0x1c9   :  { %697 = vmatprep.mubr.msk.bf16.mxu1 %vm717_vm2, %v716_v24  ;;  %v419_v24 = vld [vmem:[%s1121_s9 + $0x8] sm:$0xff] }
 0x1ca   :  { %v446_v19 = vpack.c.bf16 %v421_v15, %v419_v24  ;;  %579 = vmatpush1.bf16.msra.mxu0 %v550_v1  ;;  %v535_v15 = vld [vmem:[%s1123_s11 + $0x60] sm:$0xff] }
 0x1cb   :  { %580 = vmatprep.subr.bf16.mxu0 %v718_v60 }
 0x27f   :  { %v300_v2 = vpop.f32.mrb[0].mxu1 }
 0x280   :  { %v675_v3 = vpop.f32.mrb[1].mxu1 }
 0x281   :  { %v303_v4 = vpop.f32.mrb[2].mxu1 }
 0x282   :  { %v676_v5 = vpop.f32.mrb[3].mxu1 }
 0x283   :  { %v528_v5 = vld [vmem:[%s1123_s11 + $0x28] sm:$0xff] }
 0x29b   :  { %v348_v7 = vpop.f32.mrb[4].mxu1 }
 0x29c   :  { %v349_v8 = vadd.f32 %v348_v7, %v300_v2  ;;  %v693_v9 = vpop.f32.mrb[5].mxu1  ;;  %v526_v2 = vld [vmem:[%s1123_s11 + $0x18] sm:$0xff]  ;;  %v529_v7 = vld [vmem:[%s1123_s11 + $0x30] sm:$0xff] }
 0x29d   :  { %v351_v10 = vpop.f32.mrb[6].mxu1  ;;  %v551_v3 = vpack.c.bf16 %v526_v2, %v525_v0 }
 0x29e   :  { %v361_v11 = vadd.f32 %v635_v6, %v349_v8  ;;  %v352_v12 = vadd.f32 %v351_v10, %v303_v4  ;;  %v694_v13 = vpop.f32.mrb[7].mxu1  ;;  %v527_v4 = vld [vmem:[%s1123_s11 + $0x20] sm:$0xff]  ;;  %v530_v8 = vld [vmem:[%s1123_s11 + $0x38] sm:$0xff] }
 0x29f   :  { %581 = vmatpush1.bf16.msra.mxu0 %v551_v3  ;;  %v553_v9 = vpack.c.bf16 %v530_v8, %v529_v7  ;;  %v531_v10 = vld [vmem:[%s1123_s11 + $0x40] sm:$0xff]  ;;  %v533_v13 = vld [vmem:[%s1123_s11 + $0x50] sm:$0xff] }
 0x2a0   :  { %v362_v14 = vadd.f32 %v635_v6, %v352_v12  ;;  %v363_v16 = vmax.f32 %v361_v11, 0.0  ;;  %v552_v6 = vpack.c.bf16 %v528_v5, %v527_v4  ;;  %582 = vmatprep.subr.bf16.mxu0 %v718_v60  ;;  %v532_v11 = vld [vmem:[%s1123_s11 + $0x48] sm:$0xff] }
 0x2a1   :  { %v554_v12 = vpack.c.bf16 %v532_v11, %v531_v10 }
 0x2a2   :  { %v364_v17 = vmax.f32 %v362_v14, 0.0  ;;  %v534_v14 = vld [vmem:[%s1123_s11 + $0x58] sm:$0xff] }
 0x2a3   :  { %583 = vmatpush1.bf16.msra.mxu0 %v552_v6  ;;  %v555_v24 = vpack.c.bf16 %v534_v14, %v533_v13 }
 0x2a4   :  { %v368_v22 = vpack.c.bf16 %v364_v17, %v363_v16  ;;  %584 = vmatprep.subr.bf16.mxu0 %v718_v60  ;;  %v536_v16 = vld [vmem:[%s1123_s11 + $0x68] sm:$0xff] }
 0x2a5   :  { %v556_v17 = vpack.c.bf16 %v536_v16, %v535_v15 }
 0x2a6   :  { %696 = vmatpush3.bf16.msra.mxu1 %v368_v22  ;;  %v540_v22 = vld [vmem:[%s1123_s11 + $0x88] sm:$0xff] }
 0x2a7   :  { %480 = vmatprep.subr.bf16.mxu1 %v446_v19  ;;  %585 = vmatpush1.bf16.msra.mxu0 %v553_v9  ;;  %v538_v19 = vld [vmem:[%s1123_s11 + $0x78] sm:$0xff]  ;;  %v558_v23 = vpack.c.bf16 %v540_v22, %v539_v21 }
 0x2a8   :  { %586 = vmatprep.subr.bf16.mxu0 %v718_v60  ;;  %v557_v20 = vpack.c.bf16 %v538_v19, %v537_v18 }
 0x2a9   :  { %698 = vmatmul.mubr.msk.bf16.vlgmr.msra.gmra.mrb[8].mxu1 %vm121_vm1, %v367_v26  ;;  %v542_v26 = vld [vmem:[%s1123_s11 + $0x98] sm:$0xff] }
 0x2aa   :  { %481 = vmatpush1.bf16.msra.mxu1 %v445_v27  ;;  %512 = vmatprep.mubr.bf16.mxu1 %v718_v60  ;;  %v559_v27 = vpack.c.bf16 %v542_v26, %v541_v25 }
 0x2ab   :  { %482 = vmatprep.subr.bf16.mxu1 %v448_v28  ;;  %587 = vmatpush1.bf16.msra.mxu0 %v554_v12  ;;  %v543_v28 = vld [vmem:[%s1123_s11 + $0xa0] sm:$0xff] }
 0x2ac   :  { %588 = vmatprep.subr.bf16.mxu0 %v718_v60  ;;  %v560_v31 = vpack.c.bf16 %v544_v29, %v543_v28 }
 0x2ae   :  { %483 = vmatpush1.bf16.msra.mxu1 %v447_v35 }
 0x2af   :  { %484 = vmatprep.subr.bf16.mxu1 %v450_v36  ;;  %589 = vmatpush1.bf16.msra.mxu0 %v555_v24 }
 0x2b0   :  { %590 = vmatprep.subr.bf16.mxu0 %v718_v60 }
 0x2b2   :  { %485 = vmatpush1.bf16.msra.mxu1 %v449_v41  ;;  %v545_v41 = vld [vmem:[%s1123_s11 + $0xb0] sm:$0xff] }
 0x2b3   :  { %486 = vmatprep.subr.bf16.mxu1 %v452_v42  ;;  %591 = vmatpush1.bf16.msra.mxu0 %v556_v17  ;;  %v546_v42 = vld [vmem:[%s1123_s11 + $0xb8] sm:$0xff] }
 0x2b4   :  { %592 = vmatprep.subr.bf16.mxu0 %v718_v60  ;;  %v561_v43 = vpack.c.bf16 %v546_v42, %v545_v41 }
 0x2b6   :  { %487 = vmatpush1.bf16.msra.mxu1 %v451_v45  ;;  %v562_v45 = vpack.c.bf16 %v547_v44, %v547_v44 }
 0x2b7   :  { %488 = vmatprep.subr.bf16.mxu1 %v454_v48  ;;  %593 = vmatpush1.bf16.msra.mxu0 %v557_v20  ;;  %v461_v48 = vlaneseq }
 0x2b8   :  { %594 = vmatprep.subr.bf16.mxu0 %v718_v60  ;;  %v576_v46 = vsel %vm574_vm8, %v562_v45, 0 }
 0x2b9   :  { %v462_v49 = vshrl.u32 %v461_v48, 7 }
 0x2ba   :  { %489 = vmatpush1.bf16.msra.mxu1 %v453_v51  ;;  %v459_v51 = vld [vmem:[%s1125_s10] sm:$0x3] }
 0x2bb   :  { %490 = vmatprep.subr.bf16.mxu1 %v456_v54  ;;  %595 = vmatpush1.bf16.msra.mxu0 %v558_v23  ;;  %v463_v50 = vsub.s32 0, %v462_v49  ;;  %v467_v52 = vsub.s32 1, %v462_v49 }
 0x2bc   :  { %596 = vmatprep.subr.bf16.mxu0 %v718_v60 }
 0x2bd   :  { %v464_v53 = vrot.slane %v459_v51, %v463_v50  ;;  %v468_v54 = vrot.slane %v459_v51, %v467_v52 }
 0x2be   :  { %491 = vmatpush1.bf16.msra.mxu1 %v455_v34 }
 0x2bf   :  { %637 = vmatprep.subr.msk.bf16.mxu1 %vm310_vm7, %v458_v58  ;;  %597 = vmatpush1.bf16.msra.mxu0 %v559_v27 }
 0x2c0   :  { %598 = vmatprep.subr.bf16.mxu0 %v718_v60 }
 0x2c2   :  { %493 = vmatpush1.bf16.msra.mxu1 %v475_v62 }
 0x2c3   :  { %599 = vmatpush1.bf16.msra.mxu0 %v560_v31 }
 0x2c4   :  { %600 = vmatprep.subr.bf16.mxu0 %v718_v60 }
 0x2c7   :  { %601 = vmatpush1.bf16.msra.mxu0 %v561_v43 }
 0x2c8   :  { %602 = vmatprep.subr.bf16.mxu0 %v718_v60 }
 0x2cb   :  { %603 = vmatpush1.bf16.msra.mxu0 %v576_v46 }
 0x37c   :  { %v406_v33 = vpop.f32.mrb[8].mxu1 }
 0x37d   :  { %v412_v35 = vadd.f32 %v406_v33, %v365_v32  ;;  %v699_v36 = vpop.f32.mrb[9].mxu1 }
 0x37e   :  { %v409_v37 = vpop.f32.mrb[10].mxu1 }
 0x37f   :  { %413 = vst.msk [vmem:[#allocation2] sm:$0xff] %vm51_vm0, %v412_v35  ;;  %v700_v38 = vpop.f32.mrb[11].mxu1 }
 0x386   :  { %v417_v39 = vld [vmem:[#allocation2] sm:$0xff] }
 0x387   :  { %v444_v40 = vpack.c.bf16 %v417_v39, %v417_v39 }
 0x389   :  { %638 = vmatmul.mubr.msk.bf16.vlgmr.msra.gmra.mrb[12].mxu1 %vm51_vm0, %v444_v40 }
 0x45c   :  { %v514_v55 = vpop.f32.mrb[12].mxu1 }
 0x45d   :  { %v515_v56 = vadd.f32 %v514_v55, %v464_v53  ;;  %v516_v57 = vpop.f32.mrb[13].mxu1 }
 0x45e   :  { %v517_v34 = vadd.f32 %v516_v57, %v468_v54  ;;  %v518_v58 = vpop.f32.mrb[14].mxu1 }
 0x45f   :  { %v521_v59 = vmax.f32 %v515_v56, 0.0  ;;  %v519_v60 = vpop.f32.mrb[15].mxu1 }
 0x460   :  { %v522_v61 = vmax.f32 %v517_v34, 0.0 }
 0x461   :  { %v548_v30 = vpack.c.bf16 %v521_v59, %v521_v59 }
 0x462   :  { %v549_v62 = vpack.c.bf16 %v522_v61, %v522_v61 }
 0x464   :  { %640 = vmatprep.mubr.msk.bf16.mxu0 %vm570_vm9, %v549_v62 }
 0x465   :  { %611 = vmatmul.mubr.bf16.vlgmr.msra.gmra.mrb[12].mxu0 %v548_v30 }
 0x538   :  { %v612_v0 = vpop.f32.mrb[12].mxu0 }
 0x539   :  { %v613_v1 = vadd.f32 %v639_v63, %v612_v0  ;;  %v614_v2 = vpop.f32.mrb[13].mxu0 }
 0x53a   :  { %v615_v3 = vpop.f32.mrb[14].mxu0 }
 0x53b   :  { %619 = vst.msk [vmem:[%s1126_s13] sm:$0xff] %vm618_vm10, %v613_v1  ;;  %v616_v4 = vpop.f32.mrb[15].mxu0 }

// kernel: lba_model_forward.15
= control target key start
LH: loop header
LB: loop body
LE: loop exit
PB: predicated region body
PF: predicated region fallthrough
CT: control target
= control target key end

     0   :  { %vm230_vm0 = vcmask 1040384   ;;  %v3540_v9 = vmov 0   ;;  %vm193_vm1 = vcmask 269312   ;;  %vm592_vm2 = vcmask 1043456   ;;  %s5157_s2 = inlined_call_operand.vmem [shape: f32[33,33], index: 2, kind: input, shape index: {}]   ;;  %s5158_s1 = inlined_call_operand.vmem [shape: f32[3,64,33], index: 1, kind: input, shape index: {}]   ;;  %s5159_s3 = inlined_call_operand.vmem [shape: f32[232,100], index: 3, kind: input, shape index: {}]   ;;  %s5160_s0 = inlined_call_operand.vmem [shape: f32[64,232], index: 0, kind: input, shape index: {}]   ;;  %s5161_s4 = inlined_call_operand.vmem [shape: f32[33,100], index: 4, kind: input, shape index: {}]   ;;  %s5162_s7 = inlined_call_operand.vmem [shape: f32[100,16], index: 7, kind: input, shape index: {}]   ;;  %s5163_s6 = inlined_call_operand.vmem [shape: f32[33,16], index: 6, kind: input, shape index: {}]   ;;  %s5164_s5 = inlined_call_operand.vmem [shape: f32[1,100], index: 5, kind: input, shape index: {}]   ;;  %s5165_s9 = inlined_call_operand.vmem [shape: f32[16,16], index: 9, kind: input, shape index: {}]   ;;  %s5166_s8 = inlined_call_operand.vmem [shape: f32[1,16], index: 8, kind: input, shape index: {}]   ;;  %s5167_s11 = inlined_call_operand.vmem [shape: f32[16,100], index: 11, kind: input, shape index: {}]   ;;  %s5168_s10 = inlined_call_operand.vmem [shape: f32[100,100], index: 10, kind: input, shape index: {}]   ;;  %s5169_s14 = inlined_call_operand.vmem [shape: f32[100,16], index: 14, kind: input, shape index: {}]   ;;  %s5170_s13 = inlined_call_operand.vmem [shape: f32[16,16], index: 13, kind: input, shape index: {}]   ;;  %s5171_s12 = inlined_call_operand.vmem [shape: f32[1,100], index: 12, kind: input, shape index: {}]   ;;  %s5172_s16 = inlined_call_operand.vmem [shape: f32[16,16], index: 16, kind: input, shape index: {}]   ;;  %s5173_s15 = inlined_call_operand.vmem [shape: f32[1,16], index: 15, kind: input, shape index: {}]   ;;  %s5174_s18 = inlined_call_operand.vmem [shape: f32[16,100], index: 18, kind: input, shape index: {}]   ;;  %s5175_s17 = inlined_call_operand.vmem [shape: f32[100,100], index: 17, kind: input, shape index: {}]   ;;  %s5176_s21 = inlined_call_operand.vmem [shape: f32[100,16], index: 21, kind: input, shape index: {}]   ;;  %s5177_s20 = inlined_call_operand.vmem [shape: f32[16,16], index: 20, kind: input, shape index: {}]   ;;  %s5178_s19 = inlined_call_operand.vmem [shape: f32[1,100], index: 19, kind: input, shape index: {}]   ;;  %s5179_s23 = inlined_call_operand.vmem [shape: f32[64,100], index: 23, kind: output, shape index: {0}]   ;;  %s5180_s22 = inlined_call_operand.vmem [shape: f32[1,16], index: 22, kind: input, shape index: {}]   ;;  %s5181_s24 = inlined_call_operand.vmem [shape: f32[3,64,16], index: 24, kind: output, shape index: {1}]  }
   0x1   :  { %5190 = sst [smem:[#allocation2_spill]] %s5157_s2  ;;  %v3685_v10 = vsel %vm230_vm0, 65535, %v3540_v9  ;;  %vm579_vm3 = vcmask 850944  }
   0x2   :  { %5191 = sst [smem:[#allocation3_spill]] %s5158_s1  ;;  %s5199_s27 = sld [smem:[#allocation2_spill]] }
   0x3   :  { %5192 = sst [smem:[#allocation4_spill]] %s5159_s3 }
   0x4   :  { %5193 = sst [smem:[#allocation5_spill]] %s5160_s0  ;;  %s5201_s25 = sld [smem:[#allocation4_spill]] }
   0x5   :  { %5194 = sst [smem:[#allocation6_spill]] %s5161_s4  ;;  %s5200_s4 = sld [smem:[#allocation3_spill]] }
   0x6   :  { %5195 = sst [smem:[#allocation7_spill]] %s5162_s7  ;;  %s5203_s3 = sld [smem:[#allocation6_spill]] }
   0x7   :  { %5196 = sst [smem:[#allocation8_spill]] %s5163_s6 }
   0x8   :  { %5197 = sst [smem:[#allocation9_spill]] %s5164_s5  ;;  %v119_v0 = vld [vmem:[%s5199_s27] sm:$0xff]  ;;  %v120_v1 = vld [vmem:[%s5199_s27 + $0x8] sm:$0xff]  ;;  %v121_v2 = vld [vmem:[%s5199_s27 + $0x10] sm:$0xff]  ;;  %s5205_s1 = sld [smem:[#allocation8_spill]] }
   0x9   :  { %5198 = sst [smem:[#allocation10_spill]] %s5165_s9  ;;  %v190_v3 = vpack.c.bf16 %v120_v1, %v119_v0  ;;  %v122_v4 = vld [vmem:[%s5199_s27 + $0x18] sm:$0xff]  ;;  %v123_v5 = vld [vmem:[%s5199_s27 + $0x20] sm:$0x1]  ;;  %s5202_s9 = sld [smem:[#allocation5_spill]] }
   0xa   :  { %v191_v7 = vpack.c.bf16 %v122_v4, %v121_v2  ;;  %v192_v8 = vpack.c.bf16 %v123_v5, %v123_v5  ;;  %v124_v18 = vld [vmem:[%s5201_s25] sm:$0xff]  ;;  %v125_v19 = vld [vmem:[%s5201_s25 + $0x8] sm:$0xff]  ;;  %v126_v23 = vld [vmem:[%s5201_s25 + $0x10] sm:$0xff]  ;;  %s5210_s2 = sld [smem:[#allocation10_spill]] }
   0xb   :  { %v93_v6 = vld [vmem:[%s5200_s4] sm:$0xff]  ;;  %v94_v11 = vld [vmem:[%s5200_s4 + $0x8] sm:$0xff]  ;;  %3064 = vmatprep.subr.bf16.mxu0 %v190_v3  ;;  %v95_v14 = vld [vmem:[%s5200_s4 + $0x10] sm:$0xff]  ;;  %v477_v22 = vpack.c.bf16 %v125_v19, %v124_v18 }
   0xc   :  { %v178_v12 = vpack.c.bf16 %v94_v11, %v93_v6  ;;  %3065 = vmatpush3.bf16.msra.mxu0 %v190_v3  ;;  %v234_v13 = vand.u32 %v3685_v10, %v192_v8  ;;  %v96_v15 = vld [vmem:[%s5200_s4 + $0x18] sm:$0xff]  ;;  %v97_v16 = vld [vmem:[%s5200_s4 + $0x20] sm:$0xff]  ;;  %v98_v17 = vld [vmem:[%s5200_s4 + $0x28] sm:$0xff] }
   0xd   :  { %3066 = vmatprep.subr.bf16.mxu0 %v191_v7  ;;  %v179_v20 = vpack.c.bf16 %v96_v15, %v95_v14  ;;  %v180_v21 = vpack.c.bf16 %v98_v17, %v97_v16  ;;  %v127_v24 = vld [vmem:[%s5201_s25 + $0x18] sm:$0xff]  ;;  %v99_v25 = vld [vmem:[%s5200_s4 + $0x30] sm:$0xff]  ;;  %v2764_v27 = vld [vmem:[%s5200_s4 + $0x40] sm:$0xff] }
   0xe   :  { %3070 = vmatprep.mubr.msk.bf16.mxu0 %vm193_vm1, %v178_v12  ;;  %v100_v26 = vld [vmem:[%s5200_s4 + $0x38] sm:$0xff]  ;;  %v478_v28 = vpack.c.bf16 %v127_v24, %v126_v23  ;;  %v2765_v29 = vld [vmem:[%s5200_s4 + $0x48] sm:$0xff]  ;;  %v128_v30 = vld [vmem:[%s5201_s25 + $0x20] sm:$0xff] }
   0xf   :  { %v129_v31 = vld [vmem:[%s5201_s25 + $0x28] sm:$0xff]  ;;  %v181_v32 = vpack.c.bf16 %v100_v26, %v99_v25  ;;  %v182_v33 = vpack.c.bf16 %v2765_v29, %v2764_v27  ;;  %v130_v35 = vld [vmem:[%s5201_s25 + $0x30] sm:$0xff]  ;;  %v131_v36 = vld [vmem:[%s5201_s25 + $0x38] sm:$0xff] }
  0x10   :  { %3067 = vmatpush3.bf16.msra.mxu0 %v191_v7  ;;  %v479_v34 = vpack.c.bf16 %v129_v31, %v128_v30  ;;  %v2766_v37 = vld [vmem:[%s5200_s4 + $0x50] sm:$0xff]  ;;  %v2767_v38 = vld [vmem:[%s5200_s4 + $0x58] sm:$0xff]  ;;  %v480_v39 = vpack.c.bf16 %v131_v36, %v130_v35  ;;  %v2768_v40 = vld [vmem:[%s5200_s4 + $0x60] sm:$0xff] }
  0x11   :  { %3068 = vmatprep.subr.bf16.mxu0 %v234_v13  ;;  %v2769_v41 = vld [vmem:[%s5200_s4 + $0x68] sm:$0xff]  ;;  %v183_v42 = vpack.c.bf16 %v2767_v38, %v2766_v37  ;;  %v2770_v44 = vld [vmem:[%s5200_s4 + $0x70] sm:$0xff]  ;;  %v2771_v45 = vld [vmem:[%s5200_s4 + $0x78] sm:$0xff] }
  0x12   :  { %v184_v43 = vpack.c.bf16 %v2769_v41, %v2768_v40  ;;  %v2772_v46 = vld [vmem:[%s5200_s4 + $0x80] sm:$0xff]  ;;  %v2773_v47 = vld [vmem:[%s5200_s4 + $0x88] sm:$0xff]  ;;  %v185_v48 = vpack.c.bf16 %v2771_v45, %v2770_v44  ;;  %v2774_v50 = vld [vmem:[%s5200_s4 + $0x90] sm:$0xff] }
  0x13   :  { %v186_v49 = vpack.c.bf16 %v2773_v47, %v2772_v46  ;;  %v2775_v51 = vld [vmem:[%s5200_s4 + $0x98] sm:$0xff]  ;;  %v2776_v52 = vld [vmem:[%s5200_s4 + $0xa0] sm:$0xff]  ;;  %v2777_v53 = vld [vmem:[%s5200_s4 + $0xa8] sm:$0xff] }
  0x14   :  { %3069 = vmatpush3.bf16.msra.mxu0 %v234_v13  ;;  %v187_v54 = vpack.c.bf16 %v2775_v51, %v2774_v50  ;;  %v188_v55 = vpack.c.bf16 %v2777_v53, %v2776_v52  ;;  %v2778_v56 = vld [vmem:[%s5200_s4 + $0xb0] sm:$0xff]  ;;  %v2779_v57 = vld [vmem:[%s5200_s4 + $0xb8] sm:$0xff]  ;;  %v132_v59 = vld [vmem:[%s5201_s25 + $0x40] sm:$0xff] }
  0x15   :  { %596 = vmatprep.subr.bf16.mxu0 %v3540_v9  ;;  %v189_v58 = vpack.c.bf16 %v2779_v57, %v2778_v56  ;;  %v133_v60 = vld [vmem:[%s5201_s25 + $0x48] sm:$0xff]  ;;  %v134_v62 = vld [vmem:[%s5201_s25 + $0x50] sm:$0xff]  ;;  %v135_v63 = vld [vmem:[%s5201_s25 + $0x58] sm:$0xff] }
  0x16   :  { %v481_v61 = vpack.c.bf16 %v133_v60, %v132_v59  ;;  %v482_v0 = vpack.c.bf16 %v135_v63, %v134_v62  ;;  %v136_v1 = vld [vmem:[%s5201_s25 + $0x60] sm:$0xff]  ;;  %v137_v2 = vld [vmem:[%s5201_s25 + $0x68] sm:$0xff]  ;;  %v138_v4 = vld [vmem:[%s5201_s25 + $0x70] sm:$0xff] }
  0x17   :  { %3071 = vmatmul.mubr.msk.bf16.vlgmr.msra.gmra.mrb[0].mxu0 %vm193_vm1, %v179_v20  ;;  %v483_v3 = vpack.c.bf16 %v137_v2, %v136_v1  ;;  %v139_v5 = vld [vmem:[%s5201_s25 + $0x78] sm:$0xff]  ;;  %v140_v7 = vld [vmem:[%s5201_s25 + $0x80] sm:$0xff]  ;;  %v141_v8 = vld [vmem:[%s5201_s25 + $0x88] sm:$0xff] }
  0x18   :  { %3074 = vmatprep.mubr.msk.bf16.mxu0 %vm193_vm1, %v180_v21  ;;  %597 = vmatpush1.bf16.msra.mxu0 %v477_v22  ;;  %v484_v6 = vpack.c.bf16 %v139_v5, %v138_v4  ;;  %v485_v11 = vpack.c.bf16 %v141_v8, %v140_v7  ;;  %v142_v12 = vld [vmem:[%s5201_s25 + $0x90] sm:$0xff]  ;;  %v143_v13 = vld [vmem:[%s5201_s25 + $0x98] sm:$0xff]  ;;  %v144_v15 = vld [vmem:[%s5201_s25 + $0xa0] sm:$0xff] }
  0x19   :  { %598 = vmatprep.subr.bf16.mxu0 %v3540_v9  ;;  %v486_v14 = vpack.c.bf16 %v143_v13, %v142_v12  ;;  %v145_v16 = vld [vmem:[%s5201_s25 + $0xa8] sm:$0xff]  ;;  %v146_v18 = vld [vmem:[%s5201_s25 + $0xb0] sm:$0xff]  ;;  %v147_v19 = vld [vmem:[%s5201_s25 + $0xb8] sm:$0xff] }
  0x1a   :  { %v487_v17 = vpack.c.bf16 %v145_v16, %v144_v15  ;;  %v488_v20 = vpack.c.bf16 %v147_v19, %v146_v18  ;;  %v148_v21 = vld [vmem:[%s5201_s25 + $0xc0] sm:$0xff]  ;;  %v149_v22 = vld [vmem:[%s5201_s25 + $0xc8] sm:$0xff]  ;;  %v150_v24 = vld [vmem:[%s5201_s25 + $0xd0] sm:$0xff] }
  0x1b   :  { %v489_v23 = vpack.c.bf16 %v149_v22, %v148_v21  ;;  %v151_v25 = vld [vmem:[%s5201_s25 + $0xd8] sm:$0xff]  ;;  %v152_v27 = vld [vmem:[%s5201_s25 + $0xe0] sm:$0xff]  ;;  %v78_v30 = vld [vmem:[%s5202_s9 + $0x8] sm:$0xff] }
  0x1c   :  { %599 = vmatpush1.bf16.msra.mxu0 %v478_v28  ;;  %v490_v26 = vpack.c.bf16 %v151_v25, %v150_v24  ;;  %v491_v28 = vpack.c.bf16 %v152_v27, %v152_v27  ;;  %v80_v31 = vld [vmem:[%s5202_s9 + $0x18] sm:$0xff]  ;;  %v153_v35 = vld [vmem:[%s5203_s3] sm:$0xff]  ;;  %v154_v36 = vld [vmem:[%s5203_s3 + $0x8] sm:$0xff] }
  0x1d   :  { %600 = vmatprep.subr.bf16.mxu0 %v3540_v9  ;;  %v496_v37 = vpack.c.bf16 %v154_v36, %v153_v35  ;;  %v82_v38 = vld [vmem:[%s5202_s9 + $0x28] sm:$0xff]  ;;  %v81_v41 = vld [vmem:[%s5202_s9 + $0x20] sm:$0xff]  ;;  %v155_v44 = vld [vmem:[%s5203_s3 + $0x10] sm:$0xff] }
  0x1e   :  { %v594_v29 = vsel %vm592_vm2, %v491_v28, 0  ;;  %v156_v45 = vld [vmem:[%s5203_s3 + $0x18] sm:$0xff]  ;;  %v157_v47 = vld [vmem:[%s5203_s3 + $0x20] sm:$0x1]  ;;  %v90_v56 = vld [vmem:[%s5202_s9 + $0x68] sm:$0xff]  ;;  %s5204_s3 = sld [smem:[#allocation7_spill]] }
  0x1f   :  { %3075 = vmatmul.mubr.msk.bf16.gmra.mrb[4].mxu0 %vm193_vm1, %v181_v32  ;;  %v470_v32 = vpack.c.bf16 %v80_v31, %v78_v30  ;;  %3094 = vmatprep.subr.bf16.mxu1 %v496_v37  ;;  %v497_v46 = vpack.c.bf16 %v156_v45, %v155_v44  ;;  %v498_v50 = vpack.c.bf16 %v157_v47, %v157_v47  ;;  %v85_v53 = vld [vmem:[%s5202_s9 + $0x40] sm:$0xff]  ;;  %v92_v57 = vld [vmem:[%s5202_s9 + $0x78] sm:$0xff]  ;;  %v91_v60 = vld [vmem:[%s5202_s9 + $0x70] sm:$0xff] }
  0x20   :  { %3078 = vmatprep.mubr.msk.bf16.mxu0 %vm193_vm1, %v182_v33  ;;  %601 = vmatpush1.bf16.msra.mxu0 %v479_v34  ;;  %v77_v33 = vld [vmem:[%s5202_s9] sm:$0xff] }
  0x21   :  { %602 = vmatprep.subr.bf16.mxu0 %v3540_v9  ;;  %3095 = vmatpush3.bf16.msra.mxu1 %v496_v37  ;;  %v512_v52 = vand.u32 %v498_v50, %v3685_v10  ;;  %v89_v59 = vld [vmem:[%s5202_s9 + $0x60] sm:$0xff] }
  0x22   :  { %3096 = vmatprep.subr.bf16.mxu1 %v497_v46 }
  0x24   :  { %603 = vmatpush1.bf16.msra.mxu0 %v480_v39  ;;  %v84_v39 = vld [vmem:[%s5202_s9 + $0x38] sm:$0xff]  ;;  %v164_v62 = vld [vmem:[%s5204_s3] sm:$0xff]  ;;  %v165_v63 = vld [vmem:[%s5204_s3 + $0x8] sm:$0xff] }
  0x25   :  { %604 = vmatprep.subr.bf16.mxu0 %v3540_v9  ;;  %v472_v40 = vpack.c.bf16 %v84_v39, %v82_v38  ;;  %3097 = vmatpush3.bf16.msra.mxu1 %v497_v46 }
  0x26   :  { %3098 = vmatprep.subr.bf16.mxu1 %v512_v52 }
  0x27   :  { %3079 = vmatmul.mubr.msk.bf16.gmra.mrb[8].mxu0 %vm193_vm1, %v183_v42  ;;  %v83_v42 = vld [vmem:[%s5202_s9 + $0x30] sm:$0xff] }
  0x28   :  { %3082 = vmatprep.mubr.msk.bf16.mxu0 %vm193_vm1, %v184_v43  ;;  %605 = vmatpush1.bf16.msra.mxu0 %v481_v61  ;;  %v471_v43 = vpack.c.bf16 %v83_v42, %v81_v41  ;;  %v475_v61 = vpack.c.bf16 %v91_v60, %v89_v59 }
  0x29   :  { %606 = vmatprep.subr.bf16.mxu0 %v3540_v9  ;;  %3099 = vmatpush3.bf16.msra.mxu1 %v512_v52 }
  0x2c   :  { %607 = vmatpush1.bf16.msra.mxu0 %v482_v0  ;;  %v3945_v0 = vpack.c.bf16 %v165_v63, %v164_v62 }
  0x2d   :  { %608 = vmatprep.subr.bf16.mxu0 %v3540_v9 }
  0x2e   :  { %3108 = vmatprep.subr.bf16.mxu1 %v3945_v0 }
  0x2f   :  { %3083 = vmatmul.mubr.msk.bf16.gmra.mrb[12].mxu0 %vm193_vm1, %v185_v48  ;;  %v86_v48 = vld [vmem:[%s5202_s9 + $0x48] sm:$0xff] }
  0x30   :  { %3086 = vmatprep.mubr.msk.bf16.mxu0 %vm193_vm1, %v186_v49  ;;  %609 = vmatpush1.bf16.msra.mxu0 %v483_v3  ;;  %v88_v49 = vld [vmem:[%s5202_s9 + $0x58] sm:$0xff] }
  0x31   :  { %610 = vmatprep.subr.bf16.mxu0 %v3540_v9  ;;  %v474_v51 = vpack.c.bf16 %v88_v49, %v86_v48 }
  0x34   :  { %611 = vmatpush1.bf16.msra.mxu0 %v484_v6 }
  0x35   :  { %612 = vmatprep.subr.bf16.mxu0 %v3540_v9 }
  0x37   :  { %3087 = vmatmul.mubr.msk.bf16.gmra.mrb[16].mxu0 %vm193_vm1, %v187_v54  ;;  %v87_v54 = vld [vmem:[%s5202_s9 + $0x50] sm:$0xff] }
  0x38   :  { %3090 = vmatprep.mubr.msk.bf16.mxu0 %vm193_vm1, %v188_v55  ;;  %613 = vmatpush1.bf16.msra.mxu0 %v485_v11  ;;  %v473_v55 = vpack.c.bf16 %v87_v54, %v85_v53 }
  0x39   :  { %614 = vmatprep.subr.bf16.mxu0 %v3540_v9 }
  0x3c   :  { %615 = vmatpush1.bf16.msra.mxu0 %v486_v14 }
  0x3d   :  { %616 = vmatprep.subr.bf16.mxu0 %v3540_v9 }
  0x3f   :  { %3091 = vmatmul.mubr.msk.bf16.gmra.mrb[20].mxu0 %vm193_vm1, %v189_v58  ;;  %v476_v58 = vpack.c.bf16 %v92_v57, %v90_v56 }
  0x40   :  { %617 = vmatpush1.bf16.msra.mxu0 %v487_v17  ;;  %2796 = vmatprep.mubr.msk.bf16.mxu0 %vm579_vm3, %v470_v32 }
  0x41   :  { %618 = vmatprep.subr.bf16.mxu0 %v3540_v9 }
  0x44   :  { %619 = vmatpush1.bf16.msra.mxu0 %v488_v20 }
  0x45   :  { %620 = vmatprep.subr.bf16.mxu0 %v3540_v9 }
  0x48   :  { %621 = vmatpush1.bf16.msra.mxu0 %v489_v23 }
  0x49   :  { %622 = vmatprep.subr.bf16.mxu0 %v3540_v9 }
  0x4c   :  { %623 = vmatpush1.bf16.msra.mxu0 %v490_v26 }
  0x4d   :  { %624 = vmatprep.subr.bf16.mxu0 %v3540_v9  ;;  %v79_v9 = vld [vmem:[%s5202_s9 + $0x10] sm:$0xff]  ;;  %s5206_s9 = sld [smem:[#allocation9_spill]] }
  0x4e   :  { %v469_v34 = vpack.c.bf16 %v79_v9, %v77_v33 }
  0x50   :  { %625 = vmatpush1.bf16.msra.mxu0 %v594_v29 }
  0x53   :  { %629 = vmatmul.mubr.bf16.vlgmr.msra.gmra.mrb[24].mxu0 %v469_v34 }
  0x54   :  { %2797 = vmatprep.mubr.msk.bf16.mxu0 %vm579_vm3, %v472_v40 }
  0x5b   :  { %637 = vmatmul.mubr.bf16.gmra.mrb[28].mxu0 %v471_v43 }
  0x5c   :  { %2798 = vmatprep.mubr.msk.bf16.mxu0 %vm579_vm3, %v474_v51 }
  0x63   :  { %645 = vmatmul.mubr.bf16.gmra.mrb[32].mxu0 %v473_v55 }
  0x64   :  { %2799 = vmatprep.mubr.msk.bf16.mxu0 %vm579_vm3, %v476_v58 }
  0x6b   :  { %653 = vmatmul.mubr.bf16.gmra.mrb[36].mxu0 %v475_v61 }
  0xea   :  { %v3948_v1 = vpop.f32.mrb[0].mxu0 }
  0xeb   :  { %v3950_v2 = vpop.f32.mrb[1].mxu0  ;;  %v367_v16 = vmul.f32 %v3948_v1, %v3948_v1 }
  0xec   :  { %v3952_v3 = vpop.f32.mrb[2].mxu0  ;;  %v365_v19 = vmul.f32 %v3950_v2, %v3950_v2 }
  0xed   :  { %v823_v4 = vpack.c.bf16 %v3952_v3, %v3948_v1  ;;  %v3956_v5 = vpop.f32.mrb[3].mxu0  ;;  %v368_v22 = vmul.f32 %v3952_v3, %v3952_v3  ;;  %v1029_v3 = vld [vmem:[%s5210_s2] sm:$0xff] }
  0xee   :  { %v822_v6 = vpack.c.bf16 %v3956_v5, %v3950_v2  ;;  %v366_v27 = vmul.f32 %v3956_v5, %v3956_v5 }
  0xf2   :  { %v3960_v7 = vpop.f32.mrb[4].mxu0 }
  0xf3   :  { %v3962_v8 = vpop.f32.mrb[5].mxu0  ;;  %v371_v9 = vmul.f32 %v3960_v7, %v3960_v7 }
  0xf4   :  { %v3964_v11 = vpop.f32.mrb[6].mxu0  ;;  %v369_v36 = vmul.f32 %v3962_v8, %v3962_v8 }
  0xf5   :  { %v825_v12 = vpack.c.bf16 %v3964_v11, %v3960_v7  ;;  %v3968_v13 = vpop.f32.mrb[7].mxu0  ;;  %v372_v39 = vmul.f32 %v3964_v11, %v3964_v11 }
  0xf6   :  { %v824_v14 = vpack.c.bf16 %v3968_v13, %v3962_v8  ;;  %v370_v44 = vmul.f32 %v3968_v13, %v3968_v13 }
  0xfa   :  { %v3972_v15 = vpop.f32.mrb[8].mxu0 }
  0xfb   :  { %v375_v17 = vmul.f32 %v3972_v15, %v3972_v15  ;;  %v3978_v18 = vpop.f32.mrb[9].mxu0 }
  0xfc   :  { %v373_v20 = vmul.f32 %v3978_v18, %v3978_v18  ;;  %v3984_v21 = vpop.f32.mrb[10].mxu0 }
  0xfd   :  { %v383_v23 = vadd.f32 %v375_v17, %v367_v16  ;;  %v376_v24 = vmul.f32 %v3984_v21, %v3984_v21  ;;  %v827_v25 = vpack.c.bf16 %v3984_v21, %v3972_v15  ;;  %v3992_v26 = vpop.f32.mrb[11].mxu0 }
  0xfe   :  { %v381_v28 = vadd.f32 %v373_v20, %v365_v19  ;;  %v374_v29 = vmul.f32 %v3992_v26, %v3992_v26  ;;  %v826_v30 = vpack.c.bf16 %v3992_v26, %v3978_v18 }
  0xff   :  { %v384_v31 = vadd.f32 %v376_v24, %v368_v22 }
 0x100   :  { %v382_v32 = vadd.f32 %v374_v29, %v366_v27 }
 0x102   :  { %v4000_v33 = vpop.f32.mrb[12].mxu0 }
 0x103   :  { %v379_v34 = vmul.f32 %v4000_v33, %v4000_v33  ;;  %v4006_v35 = vpop.f32.mrb[13].mxu0 }
 0x104   :  { %v377_v37 = vmul.f32 %v4006_v35, %v4006_v35  ;;  %v4012_v38 = vpop.f32.mrb[14].mxu0 }
 0x105   :  { %v387_v40 = vadd.f32 %v379_v34, %v371_v9  ;;  %v380_v41 = vmul.f32 %v4012_v38, %v4012_v38  ;;  %v829_v42 = vpack.c.bf16 %v4012_v38, %v4000_v33  ;;  %v4020_v43 = vpop.f32.mrb[15].mxu0 }
 0x106   :  { %v385_v45 = vadd.f32 %v377_v37, %v369_v36  ;;  %v378_v46 = vmul.f32 %v4020_v43, %v4020_v43  ;;  %v828_v47 = vpack.c.bf16 %v4020_v43, %v4006_v35 }
 0x107   :  { %v388_v48 = vadd.f32 %v380_v41, %v372_v39 }
 0x108   :  { %v386_v49 = vadd.f32 %v378_v46, %v370_v44 }
 0x10a   :  { %v4028_v50 = vpop.f32.mrb[16].mxu0 }
 0x10b   :  { %v391_v51 = vmul.f32 %v4028_v50, %v4028_v50  ;;  %v4032_v52 = vpop.f32.mrb[17].mxu0 }
 0x10c   :  { %v389_v53 = vmul.f32 %v4032_v52, %v4032_v52  ;;  %v4036_v54 = vpop.f32.mrb[18].mxu0 }
 0x10d   :  { %v399_v55 = vadd.f32 %v391_v51, %v383_v23  ;;  %v392_v56 = vmul.f32 %v4036_v54, %v4036_v54  ;;  %v4042_v58 = vpop.f32.mrb[19].mxu0 }
 0x10e   :  { %v397_v59 = vadd.f32 %v389_v53, %v381_v28  ;;  %v390_v60 = vmul.f32 %v4042_v58, %v4042_v58  ;;  %v830_v61 = vpack.c.bf16 %v4042_v58, %v4032_v52 }
 0x10f   :  { %v407_v62 = vmax.f32 %v399_v55, 1e-08  ;;  %v400_v63 = vadd.f32 %v392_v56, %v384_v31 }
 0x110   :  { %v405_v16 = vmax.f32 %v397_v59, 1e-08  ;;  %v398_v17 = vadd.f32 %v390_v60, %v382_v32 }
 0x111   :  { %3396 = vrsqrt.f32 %v407_v62  ;;  %v408_v19 = vmax.f32 %v400_v63, 1e-08  ;;  %vm429_vm4 = vcmp.eq.f32.partialorder %v407_v62, inf  ;;  %vm431_vm7 = vcmp.eq.f32.partialorder %v407_v62, 0.0 }
 0x112   :  { %v406_v20 = vmax.f32 %v398_v17, 1e-08  ;;  %v4048_v22 = vpop.f32.mrb[20].mxu0  ;;  %3398 = vrsqrt.f32 %v405_v16  ;;  %vm415_vm5 = vcmp.eq.f32.partialorder %v405_v16, inf  ;;  %vm417_vm6 = vcmp.eq.f32.partialorder %v405_v16, 0.0 }
 0x113   :  { %3400 = vrsqrt.f32 %v408_v19  ;;  %v395_v23 = vmul.f32 %v4048_v22, %v4048_v22  ;;  %v4052_v24 = vpop.f32.mrb[21].mxu0  ;;  %v418_v59 = vand.u32 2147483648, %v405_v16  ;;  %v432_v63 = vand.u32 2147483648, %v407_v62 }
 0x114   :  { %v393_v27 = vmul.f32 %v4052_v24, %v4052_v24  ;;  %v4056_v28 = vpop.f32.mrb[22].mxu0  ;;  %3402 = vrsqrt.f32 %v406_v20  ;;  %vm436_vm8 = vcmp.eq.f32.partialorder %v408_v19, inf  ;;  %vm422_vm9 = vcmp.eq.f32.partialorder %v406_v20, inf }
 0x115   :  { %v403_v29 = vadd.f32 %v395_v23, %v387_v40  ;;  %v396_v31 = vmul.f32 %v4056_v28, %v4056_v28  ;;  %v4062_v9 = vpop.f32.mrb[23].mxu0  ;;  %vm438_vm10 = vcmp.eq.f32.partialorder %v408_v19, 0.0  ;;  %vm424_vm11 = vcmp.eq.f32.partialorder %v406_v20, 0.0 }
 0x116   :  { %v401_v34 = vadd.f32 %v393_v27, %v385_v45  ;;  %v394_v36 = vmul.f32 %v4062_v9, %v4062_v9  ;;  %v5208_v1 = vpack.c.bf16 %v4062_v9, %v4052_v24  ;;  %v5209_v2 = vpack.c.bf16 %v4056_v28, %v4048_v22 }
 0x117   :  { %v4068_v39 = vmax.f32 %v403_v29, 1e-08  ;;  %v404_v41 = vadd.f32 %v396_v31, %v388_v48  ;;  %v439_v29 = vand.u32 2147483648, %v408_v19  ;;  %v425_v31 = vand.u32 2147483648, %v406_v20 }
 0x118   :  { %v4070_v44 = vmax.f32 %v401_v34, 1e-08  ;;  %v402_v40 = vadd.f32 %v394_v36, %v386_v49  ;;  %v166_v36 = vld [vmem:[%s5204_s3 + $0x10] sm:$0xff] }
 0x119   :  { %3404 = vrsqrt.f32 %v4068_v39  ;;  %v4073_v46 = vmax.f32 %v404_v41, 1e-08  ;;  %vm457_vm12 = vcmp.eq.f32.partialorder %v4068_v39, inf  ;;  %vm459_vm15 = vcmp.eq.f32.partialorder %v4068_v39, 0.0 }
 0x11a   :  { %3406 = vrsqrt.f32 %v4070_v44  ;;  %v4076_v51 = vmax.f32 %v402_v40, 1e-08  ;;  %vm443_vm13 = vcmp.eq.f32.partialorder %v4070_v44, inf  ;;  %vm445_vm14 = vcmp.eq.f32.partialorder %v4070_v44, 0.0 }
 0x11b   :  { %v3397_v45 = vpop.eup %3396  ;;  %3408 = vrsqrt.f32 %v4073_v46  ;;  %vm464_vm0 = vcmp.eq.f32.partialorder %v4073_v46, inf  ;;  %vm466_vm3 = vcmp.eq.f32.partialorder %v4073_v46, 0.0 }
 0x11c   :  { %v3399_v53 = vpop.eup %3398  ;;  %3410 = vrsqrt.f32 %v4076_v51  ;;  %v428_v55 = vmul.f32 %v3397_v45, %v407_v62  ;;  %vm450_vm2 = vcmp.eq.f32.partialorder %v4076_v51, inf }
 0x11d   :  { %v3401_v48 = vpop.eup %3400  ;;  %v414_v56 = vmul.f32 %v3399_v53, %v405_v16  ;;  %v167_v53 = vld [vmem:[%s5204_s3 + $0x18] sm:$0xff] }
 0x11e   :  { %v3403_v49 = vpop.eup %3402  ;;  %v430_v60 = vsel %vm429_vm4, %v407_v62, %v428_v55  ;;  %v435_v17 = vmul.f32 %v3401_v48, %v408_v19  ;;  %v168_v55 = vld [vmem:[%s5204_s3 + $0x20] sm:$0xff]  ;;  %vm452_vm4 = vcmp.eq.f32.partialorder %v4076_v51, 0.0 }
 0x11f   :  { %v416_v23 = vsel %vm415_vm5, %v405_v16, %v414_v56  ;;  %v421_v27 = vmul.f32 %v3403_v49, %v406_v20  ;;  %v433_v40 = vsel %vm431_vm7, %v432_v63, %v430_v60  ;;  %vm713_vm5 = vcmask 1041408  }
 0x120   :  { %v437_v34 = vsel %vm436_vm8, %v408_v19, %v435_v17  ;;  %v169_v19 = vld [vmem:[%s5204_s3 + $0x28] sm:$0xff]  ;;  %v419_v48 = vsel %vm417_vm6, %v418_v59, %v416_v23  ;;  %v688_v17 = vpack.c.bf16 %v167_v53, %v166_v36  ;;  %v446_v59 = vand.u32 2147483648, %v4070_v44 }
 0x121   :  { %v423_v41 = vsel %vm422_vm9, %v406_v20, %v421_v27  ;;  %v440_v45 = vsel %vm438_vm10, %v439_v29, %v437_v34  ;;  %v689_v27 = vpack.c.bf16 %v169_v19, %v168_v55  ;;  %v453_v53 = vand.u32 2147483648, %v4076_v51 }
 0x122   :  { %v426_v56 = vsel %vm424_vm11, %v425_v31, %v423_v41  ;;  %v493_v49 = vpack.c.bf16 %v440_v45, %v433_v40  ;;  %v460_v31 = vand.u32 2147483648, %v4068_v39  ;;  %v467_v45 = vand.u32 2147483648, %v4073_v46 }
 0x123   :  { %v3405_v20 = vpop.eup %3404  ;;  %v492_v62 = vpack.c.bf16 %v426_v56, %v419_v48  ;;  %vm700_vm6 = vcmask 818176  }
 0x124   :  { %v3407_v60 = vpop.eup %3406  ;;  %v456_v63 = vmul.f32 %v3405_v20, %v4068_v39 }
 0x125   :  { %v3409_v29 = vpop.eup %3408  ;;  %3100 = vmatprep.mubr.msk.bf16.mxu1 %vm193_vm1, %v492_v62  ;;  %v442_v34 = vmul.f32 %v3407_v60, %v4070_v44 }
 0x126   :  { %v3411_v16 = vpop.eup %3410  ;;  %3101 = vmatmul.mubr.msk.bf16.vlgmr.msra.gmra.mrb[0].mxu1 %vm193_vm1, %v493_v49  ;;  %v458_v23 = vsel %vm457_vm12, %v4068_v39, %v456_v63  ;;  %v463_v36 = vmul.f32 %v3409_v29, %v4073_v46  ;;  %v171_v49 = vld [vmem:[%s5204_s3 + $0x38] sm:$0xff]  ;;  %v172_v39 = vld [vmem:[%s5204_s3 + $0x40] sm:$0xff]  ;;  %v173_v63 = vld [vmem:[%s5204_s3 + $0x48] sm:$0xff] }
 0x127   :  { %v444_v41 = vsel %vm443_vm13, %v4070_v44, %v442_v34  ;;  %v449_v40 = vmul.f32 %v3411_v16, %v4076_v51  ;;  %3109 = vmatpush3.bf16.msra.mxu1 %v3945_v0  ;;  %v461_v48 = vsel %vm459_vm15, %v460_v31, %v458_v23  ;;  %v170_v0 = vld [vmem:[%s5204_s3 + $0x30] sm:$0xff]  ;;  %v691_v44 = vpack.c.bf16 %v173_v63, %v172_v39  ;;  %v2800_v63 = vld [vmem:[%s5206_s9] ss:$0 sm:$0xff] }
 0x128   :  { %v465_v55 = vsel %vm464_vm0, %v4073_v46, %v463_v36  ;;  %3110 = vmatprep.subr.bf16.mxu1 %v688_v17  ;;  %v447_v46 = vsel %vm445_vm14, %v446_v59, %v444_v41 }
 0x129   :  { %v451_v19 = vsel %vm450_vm2, %v4076_v51, %v449_v40  ;;  %v468_v56 = vsel %vm466_vm3, %v467_v45, %v465_v55  ;;  %v690_v51 = vpack.c.bf16 %v171_v49, %v170_v0  ;;  %v174_v45 = vld [vmem:[%s5204_s3 + $0x50] sm:$0xff] }
 0x12a   :  { %v454_v20 = vsel %vm452_vm4, %v453_v53, %v451_v19  ;;  %v495_v62 = vpack.c.bf16 %v468_v56, %v461_v48  ;;  %v176_v48 = vld [vmem:[%s5204_s3 + $0x60] sm:$0xf] }
 0x12b   :  { %v494_v60 = vpack.c.bf16 %v454_v20, %v447_v46  ;;  %3111 = vmatpush3.bf16.msra.mxu1 %v688_v17  ;;  %v630_v17 = vpop.f32.mrb[24].mxu0  ;;  %v693_v56 = vpack.c.bf16 %v176_v48, %v176_v48 }
 0x12c   :  { %3112 = vmatprep.subr.bf16.mxu1 %v689_v27  ;;  %v632_v29 = vpop.f32.mrb[25].mxu0 }
 0x12d   :  { %3104 = vmatprep.mubr.msk.bf16.mxu1 %vm193_vm1, %v494_v60  ;;  %v633_v34 = vpop.f32.mrb[26].mxu0  ;;  %v715_v49 = vsel %vm713_vm5, %v693_v56, 0  ;;  %v159_v60 = vld [vmem:[%s5205_s1] sm:$0xff] }
 0x12e   :  { %3105 = vmatmul.mubr.msk.bf16.gmra.mrb[4].mxu1 %vm193_vm1, %v495_v62  ;;  %v635_v16 = vpop.f32.mrb[27].mxu0 }
 0x12f   :  { %3113 = vmatpush3.bf16.msra.mxu1 %v689_v27  ;;  %v638_v59 = vpop.f32.mrb[28].mxu0  ;;  %v175_v27 = vld [vmem:[%s5204_s3 + $0x58] sm:$0xff] }
 0x130   :  { %3114 = vmatprep.subr.bf16.mxu1 %v690_v51  ;;  %v640_v23 = vpop.f32.mrb[29].mxu0  ;;  %v692_v55 = vpack.c.bf16 %v175_v27, %v174_v45 }
 0x131   :  { %v641_v31 = vpop.f32.mrb[30].mxu0 }
 0x132   :  { %v643_v36 = vpop.f32.mrb[31].mxu0 }
 0x133   :  { %3115 = vmatpush3.bf16.msra.mxu1 %v690_v51  ;;  %v160_v51 = vld [vmem:[%s5205_s1 + $0x8] sm:$0xff] }
 0x134   :  { %3116 = vmatprep.subr.bf16.mxu1 %v691_v44  ;;  %v834_v39 = vpack.c.bf16 %v160_v51, %v159_v60 }
 0x136   :  { %v646_v41 = vpop.f32.mrb[32].mxu0 }
 0x137   :  { %3117 = vmatpush3.bf16.msra.mxu1 %v691_v44  ;;  %v648_v40 = vpop.f32.mrb[33].mxu0 }
 0x138   :  { %v649_v53 = vpop.f32.mrb[34].mxu0  ;;  %3118 = vmatprep.subr.bf16.mxu1 %v692_v55 }
 0x139   :  { %v651_v19 = vpop.f32.mrb[35].mxu0 }
 0x13b   :  { %3119 = vmatpush3.bf16.msra.mxu1 %v692_v55 }
 0x13c   :  { %3390 = vmatprep.subr.msk.bf16.mxu1 %vm713_vm5, %v693_v56 }
 0x13e   :  { %v654_v0 = vpop.f32.mrb[36].mxu0 }
 0x13f   :  { %v656_v46 = vpop.f32.mrb[37].mxu0  ;;  %3121 = vmatpush3.bf16.msra.mxu1 %v715_v49  ;;  %v161_v49 = vld [vmem:[%s5205_s1 + $0x10] sm:$0xff] }
 0x140   :  { %v657_v20 = vpop.f32.mrb[38].mxu0  ;;  %3130 = vmatprep.subr.bf16.mxu1 %v834_v39  ;;  %v162_v46 = vld [vmem:[%s5205_s1 + $0x18] sm:$0xff] }
 0x141   :  { %v659_v62 = vpop.f32.mrb[39].mxu0 }
 0x1f9   :  { %v3102_v44 = vpop.f32.mrb[0].mxu1 }
 0x1fa   :  { %v639_v29 = vadd.f32 %v3102_v44, %v638_v59  ;;  %v548_v16 = vpop.f32.mrb[1].mxu1 }
 0x1fb   :  { %v631_v23 = vadd.f32 %v630_v17, %v548_v16  ;;  %v3103_v36 = vpop.f32.mrb[2].mxu1  ;;  %v163_v17 = vld [vmem:[%s5205_s1 + $0x20] sm:$0x1] }
 0x1fc   :  { %v669_v40 = vadd.f32 %v2800_v63, %v639_v29  ;;  %v642_v45 = vadd.f32 %v3103_v36, %v641_v31  ;;  %v551_v27 = vpop.f32.mrb[3].mxu1  ;;  %v835_v36 = vpack.c.bf16 %v162_v46, %v161_v49 }
 0x1fd   :  { %v667_v55 = vadd.f32 %v2800_v63, %v631_v23  ;;  %v634_v19 = vadd.f32 %v633_v34, %v551_v27 }
 0x1fe   :  { %v670_v48 = vadd.f32 %v2800_v63, %v642_v45  ;;  %v677_v59 = vmax.f32 %v669_v40, 0.0  ;;  %v836_v45 = vpack.c.bf16 %v163_v17, %v163_v17 }
 0x1ff   :  { %v668_v56 = vadd.f32 %v2800_v63, %v634_v19  ;;  %v675_v60 = vmax.f32 %v667_v55, 0.0 }
 0x200   :  { %v678_v62 = vmax.f32 %v670_v48, 0.0  ;;  %v684_v31 = vpack.c.bf16 %v670_v48, %v669_v40 }
 0x201   :  { %v676_v34 = vmax.f32 %v668_v56, 0.0  ;;  %v683_v51 = vpack.c.bf16 %v668_v56, %v667_v55  ;;  %v3106_v44 = vpop.f32.mrb[4].mxu1 }
 0x202   :  { %v4164_v29 = vpack.c.bf16 %v678_v62, %v677_v59  ;;  %v655_v16 = vadd.f32 %v3106_v44, %v654_v0  ;;  %v564_v23 = vpop.f32.mrb[5].mxu1  ;;  %v874_v0 = vand.u32 %v836_v45, %v3685_v10  ;;  %v5207_v10 = vpack.c.bf16 %v4036_v54, %v4028_v50 }
 0x203   :  { %v4166_v27 = vpack.c.bf16 %v676_v34, %v675_v60  ;;  %v647_v19 = vadd.f32 %v646_v41, %v564_v23  ;;  %v3107_v32 = vpop.f32.mrb[6].mxu1  ;;  %3122 = vmatprep.mubr.msk.bf16.mxu1 %vm700_vm6, %v683_v51 }
 0x204   :  { %v673_v37 = vadd.f32 %v2800_v63, %v655_v16  ;;  %v658_v57 = vadd.f32 %v3107_v32, %v657_v20  ;;  %v567_v40 = vpop.f32.mrb[7].mxu1  ;;  %3123 = vmatmul.mubr.msk.bf16.vlgmr.msra.gmra.mrb[8].mxu1 %vm700_vm6, %v684_v31 }
 0x205   :  { %v671_v48 = vadd.f32 %v2800_v63, %v647_v19  ;;  %v650_v55 = vadd.f32 %v649_v53, %v567_v40  ;;  %3131 = vmatpush3.bf16.msra.mxu1 %v834_v39 }
 0x206   :  { %v674_v56 = vadd.f32 %v2800_v63, %v658_v57  ;;  %3132 = vmatprep.subr.bf16.mxu1 %v835_v36  ;;  %v681_v46 = vmax.f32 %v673_v37, 0.0 }
 0x207   :  { %v672_v49 = vadd.f32 %v2800_v63, %v650_v55  ;;  %v679_v41 = vmax.f32 %v671_v48, 0.0 }
 0x208   :  { %v682_v17 = vmax.f32 %v674_v56, 0.0  ;;  %v686_v59 = vpack.c.bf16 %v674_v56, %v673_v37 }
 0x209   :  { %v680_v62 = vmax.f32 %v672_v49, 0.0  ;;  %v685_v60 = vpack.c.bf16 %v672_v49, %v671_v48  ;;  %3133 = vmatpush3.bf16.msra.mxu1 %v835_v36 }
 0x20a   :  { %v4171_v34 = vpack.c.bf16 %v682_v17, %v681_v46  ;;  %3134 = vmatprep.subr.bf16.mxu1 %v874_v0 }
 0x20b   :  { %v4173_v32 = vpack.c.bf16 %v680_v62, %v679_v41  ;;  %3126 = vmatprep.mubr.msk.bf16.mxu1 %vm700_vm6, %v685_v60 }
 0x20c   :  { %3127 = vmatmul.mubr.msk.bf16.gmra.mrb[12].mxu1 %vm700_vm6, %v686_v59 }
 0x20d   :  { %3136 = vmatprep.mubr.msk.bf16.mxu1 %vm193_vm1, %v822_v6  ;;  %3135 = vmatpush3.bf16.msra.mxu1 %v874_v0  ;;  %v2801_v6 = vld [vmem:[%s5166_s8] ss:$0 sm:$0xff] }
 0x214   :  { %3137 = vmatmul.mubr.msk.bf16.vlgmr.msra.gmra.mrb[16].mxu1 %vm193_vm1, %v823_v4  ;;  %v1030_v4 = vld [vmem:[%s5210_s2 + $0x8] sm:$0xff] }
 0x215   :  { %3140 = vmatprep.mubr.msk.bf16.mxu1 %vm193_vm1, %v824_v14  ;;  %v1075_v5 = vpack.c.bf16 %v1030_v4, %v1029_v3 }
 0x217   :  { %3160 = vmatprep.subr.bf16.mxu0 %v1075_v5  ;;  %3372 = vmatprep.subr.bf16.mxu1 %v1075_v5 }
 0x218   :  { %3161 = vmatpush3.bf16.msra.mxu0 %v1075_v5  ;;  %3373 = vmatpush3.bf16.msra.mxu1 %v1075_v5 }
 0x21c   :  { %3141 = vmatmul.mubr.msk.bf16.gmra.mrb[20].mxu1 %vm193_vm1, %v825_v12 }
 0x21d   :  { %3144 = vmatprep.mubr.msk.bf16.mxu1 %vm193_vm1, %v826_v30 }
 0x224   :  { %3145 = vmatmul.mubr.msk.bf16.gmra.mrb[24].mxu1 %vm193_vm1, %v827_v25 }
 0x225   :  { %3148 = vmatprep.mubr.msk.bf16.mxu1 %vm193_vm1, %v828_v47 }
 0x22c   :  { %3149 = vmatmul.mubr.msk.bf16.gmra.mrb[28].mxu1 %vm193_vm1, %v829_v42 }
 0x22d   :  { %3152 = vmatprep.mubr.msk.bf16.mxu1 %vm193_vm1, %v830_v61 }
 0x234   :  { %3153 = vmatmul.mubr.msk.bf16.gmra.mrb[32].mxu1 %vm193_vm1, %v5207_v10 }
 0x235   :  { %3156 = vmatprep.mubr.msk.bf16.mxu1 %vm193_vm1, %v5208_v1 }
 0x23c   :  { %3157 = vmatmul.mubr.msk.bf16.gmra.mrb[36].mxu1 %vm193_vm1, %v5209_v2  ;;  %vm1076_vm1 = vcmask 130048  }
 0x2d7   :  { %v3124_v7 = vpop.f32.mrb[8].mxu1 }
 0x2d8   :  { %v760_v8 = vadd.f32 %v3124_v7, %v2801_v6  ;;  %v751_v11 = vpop.f32.mrb[9].mxu1 }
 0x2d9   :  { %v752_v12 = vadd.f32 %v2801_v6, %v751_v11  ;;  %v3125_v13 = vpop.f32.mrb[10].mxu1 }
 0x2da   :  { %v784_v14 = vsub.f32 0.0, %v760_v8  ;;  %v763_v15 = vadd.f32 %v3125_v13, %v2801_v6  ;;  %v754_v18 = vpop.f32.mrb[11].mxu1 }
 0x2db   :  { %v782_v21 = vsub.f32 0.0, %v752_v12  ;;  %v755_v25 = vadd.f32 %v2801_v6, %v754_v18 }
 0x2dc   :  { %v794_v26 = vmul.f32 1.442695, %v784_v14  ;;  %v785_v30 = vsub.f32 0.0, %v763_v15 }
 0x2dd   :  { %v790_v33 = vmul.f32 1.442695, %v782_v21  ;;  %v783_v35 = vsub.f32 0.0, %v755_v25 }
 0x2de   :  { %3412 = vpow2.f32 %v794_v26  ;;  %v796_v38 = vmul.f32 1.442695, %v785_v30 }
 0x2df   :  { %3414 = vpow2.f32 %v790_v33  ;;  %v792_v42 = vmul.f32 1.442695, %v783_v35  ;;  %v3128_v43 = vpop.f32.mrb[12].mxu1 }
 0x2e0   :  { %3416 = vpow2.f32 %v796_v38  ;;  %v776_v47 = vadd.f32 %v3128_v43, %v2801_v6  ;;  %v767_v50 = vpop.f32.mrb[13].mxu1 }
 0x2e1   :  { %3418 = vpow2.f32 %v792_v42  ;;  %v768_v52 = vadd.f32 %v2801_v6, %v767_v50  ;;  %v3129_v54 = vpop.f32.mrb[14].mxu1 }
 0x2e2   :  { %v788_v57 = vsub.f32 0.0, %v776_v47  ;;  %v779_v58 = vadd.f32 %v3129_v54, %v2801_v6  ;;  %v770_v61 = vpop.f32.mrb[15].mxu1 }
 0x2e3   :  { %v786_v22 = vsub.f32 0.0, %v768_v52  ;;  %v771_v24 = vadd.f32 %v2801_v6, %v770_v61 }
 0x2e4   :  { %v802_v28 = vmul.f32 1.442695, %v788_v57  ;;  %v789_v9 = vsub.f32 0.0, %v779_v58 }
 0x2e5   :  { %v798_v37 = vmul.f32 1.442695, %v786_v22  ;;  %v787_v53 = vsub.f32 0.0, %v771_v24 }
 0x2e6   :  { %3420 = vpow2.f32 %v802_v28  ;;  %v804_v20 = vmul.f32 1.442695, %v789_v9 }
 0x2e7   :  { %3422 = vpow2.f32 %v798_v37  ;;  %v800_v39 = vmul.f32 1.442695, %v787_v53  ;;  %v3138_v63 = vpop.f32.mrb[16].mxu1 }
 0x2e8   :  { %v3413_v31 = vpop.eup %3412  ;;  %3424 = vpow2.f32 %v804_v20  ;;  %v910_v51 = vpop.f32.mrb[17].mxu1 }
 0x2e9   :  { %v3415_v44 = vpop.eup %3414  ;;  %v808_v16 = vadd.f32 1.0, %v3413_v31  ;;  %3426 = vpow2.f32 %v800_v39  ;;  %v3139_v23 = vpop.f32.mrb[18].mxu1 }
 0x2ea   :  { %v3417_v36 = vpop.eup %3416  ;;  %v806_v45 = vadd.f32 1.0, %v3415_v44  ;;  %v913_v19 = vpop.f32.mrb[19].mxu1 }
 0x2eb   :  { %v3419_v40 = vpop.eup %3418  ;;  %3428 = vrcp.f32 %v808_v16  ;;  %v809_v48 = vadd.f32 1.0, %v3417_v36 }
 0x2ec   :  { %3430 = vrcp.f32 %v806_v45  ;;  %v807_v55 = vadd.f32 1.0, %v3419_v40 }
 0x2ed   :  { %3432 = vrcp.f32 %v809_v48 }
 0x2ee   :  { %3434 = vrcp.f32 %v807_v55 }
 0x2ef   :  { %v3142_v56 = vpop.f32.mrb[20].mxu1 }
 0x2f0   :  { %v3421_v0 = vpop.eup %3420  ;;  %v926_v49 = vpop.f32.mrb[21].mxu1 }
 0x2f1   :  { %v3423_v46 = vpop.eup %3422  ;;  %v812_v17 = vadd.f32 1.0, %v3421_v0  ;;  %v3143_v59 = vpop.f32.mrb[22].mxu1 }
 0x2f2   :  { %v3425_v41 = vpop.eup %3424  ;;  %v810_v62 = vadd.f32 1.0, %v3423_v46  ;;  %v929_v60 = vpop.f32.mrb[23].mxu1 }
 0x2f3   :  { %v3427_v10 = vpop.eup %3426  ;;  %3436 = vrcp.f32 %v812_v17  ;;  %v813_v1 = vadd.f32 1.0, %v3425_v41 }
 0x2f4   :  { %3438 = vrcp.f32 %v810_v62  ;;  %v811_v2 = vadd.f32 1.0, %v3427_v10 }
 0x2f5   :  { %v3429_v3 = vpop.eup %3428  ;;  %3440 = vrcp.f32 %v813_v1 }
 0x2f6   :  { %v3431_v4 = vpop.eup %3430  ;;  %3442 = vrcp.f32 %v811_v2  ;;  %v1007_v5 = vmul.f32 %v3429_v3, %v3138_v63 }
 0x2f7   :  { %v3433_v6 = vpop.eup %3432  ;;  %v1005_v7 = vmul.f32 %v3431_v4, %v910_v51  ;;  %v3146_v8 = vpop.f32.mrb[24].mxu1 }
 0x2f8   :  { %v3435_v11 = vpop.eup %3434  ;;  %v1008_v12 = vmul.f32 %v3433_v6, %v3139_v23  ;;  %v1015_v13 = vmul.f32 %v3429_v3, %v3146_v8  ;;  %v942_v14 = vpop.f32.mrb[25].mxu1 }
 0x2f9   :  { %v1006_v15 = vmul.f32 %v3435_v11, %v913_v19  ;;  %v1013_v18 = vmul.f32 %v3431_v4, %v942_v14  ;;  %v3147_v21 = vpop.f32.mrb[26].mxu1 }
 0x2fa   :  { %v1064_v25 = vpack.c.bf16 %v1008_v12, %v1007_v5  ;;  %v1016_v26 = vmul.f32 %v3433_v6, %v3147_v21  ;;  %v945_v30 = vpop.f32.mrb[27].mxu1  ;;  %v1050_v21 = vld [vmem:[%s5169_s14 + $0x8] sm:$0xff] }
 0x2fb   :  { %v1063_v33 = vpack.c.bf16 %v1006_v15, %v1005_v7  ;;  %v1014_v35 = vmul.f32 %v3435_v11, %v945_v30  ;;  %v1032_v7 = vld [vmem:[%s5168_s10 + $0x8] sm:$0xff] }
 0x2fc   :  { %v1068_v38 = vpack.c.bf16 %v1016_v26, %v1015_v13 }
 0x2fd   :  { %v3437_v42 = vpop.eup %3436  ;;  %v1067_v43 = vpack.c.bf16 %v1014_v35, %v1013_v18  ;;  %3162 = vmatprep.mubr.msk.bf16.mxu0 %vm1076_vm1, %v1063_v33  ;;  %v1049_v18 = vld [vmem:[%s5169_s14] sm:$0xff]  ;;  %v1052_v33 = vld [vmem:[%s5169_s14 + $0x18] sm:$0xff] }
 0x2fe   :  { %v3439_v47 = vpop.eup %3438  ;;  %v1011_v50 = vmul.f32 %v3437_v42, %v3142_v56  ;;  %3163 = vmatmul.mubr.msk.bf16.vlgmr.msra.gmra.mrb[40].mxu0 %vm1076_vm1, %v1064_v25  ;;  %v1051_v25 = vld [vmem:[%s5169_s14 + $0x10] sm:$0xff]  ;;  %v1545_v30 = vpack.c.bf16 %v1050_v21, %v1049_v18 }
 0x2ff   :  { %v3441_v52 = vpop.eup %3440  ;;  %v1009_v54 = vmul.f32 %v3439_v47, %v926_v49  ;;  %v3150_v57 = vpop.f32.mrb[28].mxu1  ;;  %v1546_v35 = vpack.c.bf16 %v1052_v33, %v1051_v25 }
 0x300   :  { %v3443_v58 = vpop.eup %3442  ;;  %v1012_v61 = vmul.f32 %v3441_v52, %v3143_v59  ;;  %v1019_v22 = vmul.f32 %v3437_v42, %v3150_v57  ;;  %v958_v24 = vpop.f32.mrb[29].mxu1  ;;  %3218 = vmatprep.subr.bf16.mxu0 %v1545_v30 }
 0x301   :  { %v1010_v28 = vmul.f32 %v3443_v58, %v929_v60  ;;  %v1017_v9 = vmul.f32 %v3439_v47, %v958_v24  ;;  %v3151_v37 = vpop.f32.mrb[30].mxu1  ;;  %3219 = vmatpush3.bf16.msra.mxu0 %v1545_v30 }
 0x302   :  { %v1066_v53 = vpack.c.bf16 %v1012_v61, %v1011_v50  ;;  %v1020_v20 = vmul.f32 %v3441_v52, %v3151_v37  ;;  %v961_v39 = vpop.f32.mrb[31].mxu1  ;;  %3220 = vmatprep.subr.bf16.mxu0 %v1546_v35  ;;  %v1059_v37 = vld [vmem:[%s5169_s14 + $0x50] sm:$0xff] }
 0x303   :  { %v1065_v63 = vpack.c.bf16 %v1010_v28, %v1009_v54  ;;  %v1018_v31 = vmul.f32 %v3443_v58, %v961_v39  ;;  %v1056_v54 = vld [vmem:[%s5169_s14 + $0x38] sm:$0xff]  ;;  %v1057_v28 = vld [vmem:[%s5169_s14 + $0x40] sm:$0xff] }
 0x304   :  { %v1070_v51 = vpack.c.bf16 %v1020_v20, %v1019_v22 }
 0x305   :  { %v1069_v44 = vpack.c.bf16 %v1018_v31, %v1017_v9  ;;  %3166 = vmatprep.mubr.msk.bf16.mxu0 %vm1076_vm1, %v1065_v63  ;;  %3221 = vmatpush3.bf16.msra.mxu0 %v1546_v35  ;;  %v1058_v9 = vld [vmem:[%s5169_s14 + $0x48] sm:$0xff] }
 0x306   :  { %3167 = vmatmul.mubr.msk.bf16.gmra.mrb[44].mxu0 %vm1076_vm1, %v1066_v53  ;;  %v1060_v53 = vld [vmem:[%s5169_s14 + $0x58] sm:$0xff]  ;;  %v1549_v39 = vpack.c.bf16 %v1058_v9, %v1057_v28 }
 0x307   :  { %v3154_v16 = vpop.f32.mrb[32].mxu1  ;;  %3170 = vmatprep.mubr.msk.bf16.mxu0 %vm1076_vm1, %v1067_v43 }
 0x308   :  { %v1023_v23 = vmul.f32 %v3429_v3, %v3154_v16  ;;  %v974_v36 = vpop.f32.mrb[33].mxu1  ;;  %v1044_v3 = vld [vmem:[%s5167_s11] sm:$0xff] }
 0x309   :  { %v1021_v45 = vmul.f32 %v3431_v4, %v974_v36  ;;  %v3155_v19 = vpop.f32.mrb[34].mxu1  ;;  %v1045_v4 = vld [vmem:[%s5167_s11 + $0x8] sm:$0xff] }
 0x30a   :  { %v1024_v40 = vmul.f32 %v3433_v6, %v3155_v19  ;;  %v977_v48 = vpop.f32.mrb[35].mxu1  ;;  %v1361_v5 = vpack.c.bf16 %v1045_v4, %v1044_v3  ;;  %v1031_v6 = vld [vmem:[%s5168_s10] sm:$0xff] }
 0x30b   :  { %v1022_v55 = vmul.f32 %v3435_v11, %v977_v48  ;;  %v4258_v8 = vpack.c.bf16 %v1032_v7, %v1031_v6 }
 0x30c   :  { %v1072_v56 = vpack.c.bf16 %v1024_v40, %v1023_v23  ;;  %3186 = vmatprep.subr.bf16.mxu1 %v1361_v5  ;;  %v1550_v40 = vpack.c.bf16 %v1060_v53, %v1059_v37 }
 0x30d   :  { %v1071_v0 = vpack.c.bf16 %v1022_v55, %v1021_v45 }
 0x30e   :  { %3171 = vmatmul.mubr.msk.bf16.gmra.mrb[48].mxu0 %vm1076_vm1, %v1068_v38  ;;  %v1053_v38 = vld [vmem:[%s5169_s14 + $0x20] sm:$0xff] }
 0x30f   :  { %v3158_v49 = vpop.f32.mrb[36].mxu1  ;;  %3174 = vmatprep.mubr.msk.bf16.mxu0 %vm1076_vm1, %v1069_v44  ;;  %3178 = vmatprep.mubr.msk.bf16.mxu1 %vm1076_vm1, %v1071_v0 }
 0x310   :  { %v1027_v46 = vmul.f32 %v3437_v42, %v3158_v49  ;;  %v990_v17 = vpop.f32.mrb[37].mxu1  ;;  %3179 = vmatmul.mubr.msk.bf16.vlgmr.msra.gmra.mrb[40].mxu1 %vm1076_vm1, %v1072_v56  ;;  %v1054_v42 = vld [vmem:[%s5169_s14 + $0x28] sm:$0xff] }
 0x311   :  { %v1025_v59 = vmul.f32 %v3439_v47, %v990_v17  ;;  %v3159_v41 = vpop.f32.mrb[38].mxu1  ;;  %3187 = vmatpush3.bf16.msra.mxu1 %v1361_v5  ;;  %v1547_v47 = vpack.c.bf16 %v1054_v42, %v1053_v38 }
 0x312   :  { %v1028_v62 = vmul.f32 %v3441_v52, %v3159_v41  ;;  %v993_v60 = vpop.f32.mrb[39].mxu1  ;;  %3196 = vmatprep.subr.bf16.mxu1 %v4258_v8  ;;  %v1055_v52 = vld [vmem:[%s5169_s14 + $0x30] sm:$0xff] }
 0x313   :  { %v1026_v10 = vmul.f32 %v3443_v58, %v993_v60  ;;  %3222 = vmatprep.subr.bf16.mxu0 %v1547_v47  ;;  %v1548_v24 = vpack.c.bf16 %v1056_v54, %v1055_v52 }
 0x314   :  { %v1074_v1 = vpack.c.bf16 %v1028_v62, %v1027_v46  ;;  %3223 = vmatpush3.bf16.msra.mxu0 %v1547_v47 }
 0x315   :  { %v1073_v2 = vpack.c.bf16 %v1026_v10, %v1025_v59  ;;  %3224 = vmatprep.subr.bf16.mxu0 %v1548_v24 }
 0x316   :  { %3175 = vmatmul.mubr.msk.bf16.gmra.mrb[52].mxu0 %vm1076_vm1, %v1070_v51 }
 0x317   :  { %3182 = vmatprep.mubr.msk.bf16.mxu1 %vm1076_vm1, %v1073_v2 }
 0x318   :  { %3183 = vmatmul.mubr.msk.bf16.gmra.mrb[44].mxu1 %vm1076_vm1, %v1074_v1  ;;  %3225 = vmatpush3.bf16.msra.mxu0 %v1548_v24 }
 0x319   :  { %3226 = vmatprep.subr.bf16.mxu0 %v1549_v39 }
 0x31c   :  { %3227 = vmatpush3.bf16.msra.mxu0 %v1549_v39 }
 0x31d   :  { %3228 = vmatprep.subr.bf16.mxu0 %v1550_v40 }
 0x320   :  { %3229 = vmatpush3.bf16.msra.mxu0 %v1550_v40 }
 0x3d1   :  { %v4261_v11 = vpop.f32.mrb[40].mxu0 }
 0x3d2   :  { %v4263_v12 = vpop.f32.mrb[41].mxu0  ;;  %v1244_v63 = vmul.f32 %v4261_v11, %v4261_v11 }
 0x3d3   :  { %v4265_v13 = vpop.f32.mrb[42].mxu0  ;;  %v1242_v31 = vmul.f32 %v4263_v12, %v4263_v12 }
 0x3d4   :  { %v1679_v14 = vpack.c.bf16 %v4265_v13, %v4261_v11  ;;  %v4269_v15 = vpop.f32.mrb[43].mxu0  ;;  %v1245_v16 = vmul.f32 %v4265_v13, %v4265_v13 }
 0x3d5   :  { %v1678_v26 = vpack.c.bf16 %v4269_v15, %v4263_v12  ;;  %v1243_v23 = vmul.f32 %v4269_v15, %v4269_v15  ;;  %v2838_v12 = vld [vmem:[%s5171_s12] ss:$0 sm:$0xff] }
 0x3d9   :  { %v4291_v43 = vpop.f32.mrb[44].mxu0 }
 0x3da   :  { %v4293_v50 = vpop.f32.mrb[45].mxu0  ;;  %v1248_v38 = vmul.f32 %v4291_v43, %v4291_v43 }
 0x3db   :  { %v4301_v57 = vpop.f32.mrb[46].mxu0  ;;  %v1246_v42 = vmul.f32 %v4293_v50, %v4293_v50 }
 0x3dc   :  { %v1681_v58 = vpack.c.bf16 %v4301_v57, %v4291_v43  ;;  %v4305_v61 = vpop.f32.mrb[47].mxu0  ;;  %v1249_v53 = vmul.f32 %v4301_v57, %v4301_v57 }
 0x3dd   :  { %v1680_v22 = vpack.c.bf16 %v4305_v61, %v4293_v50  ;;  %v1247_v39 = vmul.f32 %v4305_v61, %v4305_v61 }
 0x3e1   :  { %v4321_v20 = vpop.f32.mrb[48].mxu0 }
 0x3e2   :  { %v1252_v51 = vmul.f32 %v4321_v20, %v4321_v20  ;;  %v4329_v44 = vpop.f32.mrb[49].mxu0 }
 0x3e3   :  { %v1250_v36 = vmul.f32 %v4329_v44, %v4329_v44  ;;  %v4337_v45 = vpop.f32.mrb[50].mxu0  ;;  %v4339_v19 = vpop.f32.mrb[40].mxu1 }
 0x3e4   :  { %v1260_v48 = vadd.f32 %v1252_v51, %v1244_v63  ;;  %v1253_v55 = vmul.f32 %v4337_v45, %v4337_v45  ;;  %v1683_v56 = vpack.c.bf16 %v4337_v45, %v4321_v20  ;;  %v1268_v0 = vmul.f32 %v4339_v19, %v4339_v19  ;;  %v4347_v49 = vpop.f32.mrb[51].mxu0  ;;  %v4349_v46 = vpop.f32.mrb[41].mxu1 }
 0x3e5   :  { %v1258_v17 = vadd.f32 %v1250_v36, %v1242_v31  ;;  %v1251_v59 = vmul.f32 %v4347_v49, %v4347_v49  ;;  %v1682_v41 = vpack.c.bf16 %v4347_v49, %v4329_v44  ;;  %v1266_v62 = vmul.f32 %v4349_v46, %v4349_v46  ;;  %v4357_v60 = vpop.f32.mrb[42].mxu1 }
 0x3e6   :  { %v1261_v10 = vadd.f32 %v1253_v55, %v1245_v16  ;;  %v1276_v1 = vadd.f32 %v1268_v0, %v1260_v48  ;;  %v1269_v2 = vmul.f32 %v4357_v60, %v4357_v60  ;;  %v1687_v3 = vpack.c.bf16 %v4357_v60, %v4339_v19  ;;  %v4363_v4 = vpop.f32.mrb[43].mxu1 }
 0x3e7   :  { %v1259_v5 = vadd.f32 %v1251_v59, %v1243_v23  ;;  %v1274_v6 = vadd.f32 %v1266_v62, %v1258_v17  ;;  %v1267_v7 = vmul.f32 %v4363_v4, %v4363_v4  ;;  %v1686_v18 = vpack.c.bf16 %v4363_v4, %v4349_v46 }
 0x3e8   :  { %v4369_v21 = vmax.f32 %v1276_v1, 1e-08  ;;  %v1277_v25 = vadd.f32 %v1269_v2, %v1261_v10 }
 0x3e9   :  { %v4371_v30 = vmax.f32 %v1274_v6, 1e-08  ;;  %v1275_v33 = vadd.f32 %v1267_v7, %v1259_v5  ;;  %v4373_v35 = vpop.f32.mrb[52].mxu0 }
 0x3ea   :  { %3444 = vrsqrt.f32 %v4369_v21  ;;  %v4380_v47 = vmax.f32 %v1277_v25, 1e-08  ;;  %v4382_v52 = vpop.f32.mrb[53].mxu0  ;;  %v1256_v24 = vmul.f32 %v4373_v35, %v4373_v35  ;;  %vm1306_vm7 = vcmp.eq.f32.partialorder %v4369_v21, inf }
 0x3eb   :  { %3446 = vrsqrt.f32 %v4371_v30  ;;  %v4385_v54 = vmax.f32 %v1275_v33, 1e-08  ;;  %v1254_v28 = vmul.f32 %v4382_v52, %v4382_v52  ;;  %v4391_v9 = vpop.f32.mrb[54].mxu0  ;;  %v4393_v37 = vpop.f32.mrb[44].mxu1  ;;  %vm1292_vm9 = vcmp.eq.f32.partialorder %v4371_v30, inf }
 0x3ec   :  { %3448 = vrsqrt.f32 %v4380_v47  ;;  %v1257_v63 = vmul.f32 %v4391_v9, %v4391_v9  ;;  %v4402_v31 = vpop.f32.mrb[55].mxu0  ;;  %v4404_v51 = vpop.f32.mrb[45].mxu1  ;;  %v1264_v16 = vadd.f32 %v1256_v24, %v1248_v38  ;;  %v1685_v36 = vpack.c.bf16 %v4391_v9, %v4373_v35 }
 0x3ed   :  { %3450 = vrsqrt.f32 %v4385_v54  ;;  %v1262_v23 = vadd.f32 %v1254_v28, %v1246_v42  ;;  %v4409_v48 = vpop.f32.mrb[46].mxu1  ;;  %v1272_v0 = vmul.f32 %v4393_v37, %v4393_v37  ;;  %v1255_v17 = vmul.f32 %v4402_v31, %v4402_v31 }
 0x3ee   :  { %v1265_v55 = vadd.f32 %v1257_v63, %v1249_v53  ;;  %v1684_v59 = vpack.c.bf16 %v4402_v31, %v4382_v52  ;;  %v4417_v40 = vpop.f32.mrb[47].mxu1  ;;  %v1270_v62 = vmul.f32 %v4404_v51, %v4404_v51  ;;  %v1273_v10 = vmul.f32 %v4409_v48, %v4409_v48 }
 0x3ef   :  { %v1271_v2 = vmul.f32 %v4417_v40, %v4417_v40  ;;  %v1280_v5 = vadd.f32 %v1272_v0, %v1264_v16  ;;  %v1263_v6 = vadd.f32 %v1255_v17, %v1247_v39  ;;  %v1688_v7 = vpack.c.bf16 %v4417_v40, %v4404_v51 }
 0x3f0   :  { %v1278_v25 = vadd.f32 %v1270_v62, %v1262_v23  ;;  %v1281_v33 = vadd.f32 %v1273_v10, %v1265_v55  ;;  %v1309_v23 = vand.u32 2147483648, %v4369_v21  ;;  %vm1313_vm8 = vcmp.eq.f32.partialorder %v4380_v47, inf }
 0x3f1   :  { %v4429_v38 = vmax.f32 %v1280_v5, 1e-08  ;;  %v1279_v42 = vadd.f32 %v1271_v2, %v1263_v6  ;;  %v1316_v0 = vand.u32 2147483648, %v4380_v47  ;;  %vm1294_vm10 = vcmp.eq.f32.partialorder %v4371_v30, 0.0 }
 0x3f2   :  { %v4431_v24 = vmax.f32 %v1278_v25, 1e-08  ;;  %v4433_v28 = vmax.f32 %v1281_v33, 1e-08  ;;  %v1295_v6 = vand.u32 2147483648, %v4371_v30  ;;  %vm1299_vm11 = vcmp.eq.f32.partialorder %v4385_v54, inf }
 0x3f3   :  { %3452 = vrsqrt.f32 %v4429_v38  ;;  %v4437_v63 = vmax.f32 %v1279_v42, 1e-08  ;;  %v1302_v33 = vand.u32 2147483648, %v4385_v54  ;;  %vm1308_vm12 = vcmp.eq.f32.partialorder %v4369_v21, 0.0 }
 0x3f4   :  { %v3445_v53 = vpop.eup %3444  ;;  %3454 = vrsqrt.f32 %v4431_v24  ;;  %vm1315_vm13 = vcmp.eq.f32.partialorder %v4380_v47, 0.0  ;;  %vm1301_vm14 = vcmp.eq.f32.partialorder %v4385_v54, 0.0  ;;  %vm1334_vm15 = vcmp.eq.f32.partialorder %v4429_v38, inf }
 0x3f5   :  { %v3447_v39 = vpop.eup %3446  ;;  %v1305_v16 = vmul.f32 %v3445_v53, %v4369_v21  ;;  %3456 = vrsqrt.f32 %v4433_v28  ;;  %vm1320_vm0 = vcmp.eq.f32.partialorder %v4431_v24, inf  ;;  %vm1322_vm2 = vcmp.eq.f32.partialorder %v4431_v24, 0.0 }
 0x3f6   :  { %v3449_v55 = vpop.eup %3448  ;;  %v1291_v17 = vmul.f32 %v3447_v39, %v4371_v30  ;;  %3458 = vrsqrt.f32 %v4437_v63  ;;  %vm1327_vm3 = vcmp.eq.f32.partialorder %v4437_v63, inf  ;;  %vm1341_vm4 = vcmp.eq.f32.partialorder %v4433_v28, inf }
 0x3f7   :  { %v3451_v62 = vpop.eup %3450  ;;  %v1312_v10 = vmul.f32 %v3449_v55, %v4380_v47  ;;  %v1307_v2 = vsel %vm1306_vm7, %v4369_v21, %v1305_v16  ;;  %v1033_v55 = vld [vmem:[%s5168_s10 + $0x10] sm:$0xff]  ;;  %v1034_v21 = vld [vmem:[%s5168_s10 + $0x18] sm:$0xff]  ;;  %vm1336_vm7 = vcmp.eq.f32.partialorder %v4429_v38, 0.0 }
 0x3f8   :  { %v1293_v5 = vsel %vm1292_vm9, %v4371_v30, %v1291_v17  ;;  %v1298_v25 = vmul.f32 %v3451_v62, %v4385_v54  ;;  %v1310_v39 = vsel %vm1308_vm12, %v1309_v23, %v1307_v2  ;;  %v1036_v23 = vld [vmem:[%s5168_s10 + $0x28] sm:$0xff]  ;;  %vm1329_vm9 = vcmp.eq.f32.partialorder %v4437_v63, 0.0 }
 0x3f9   :  { %v1314_v42 = vsel %vm1313_vm8, %v4380_v47, %v1312_v10  ;;  %v1296_v17 = vsel %vm1294_vm10, %v1295_v6, %v1293_v5  ;;  %vm1343_vm8 = vcmp.eq.f32.partialorder %v4433_v28, 0.0 }
 0x3fa   :  { %v1300_v53 = vsel %vm1299_vm11, %v4385_v54, %v1298_v25  ;;  %v1317_v16 = vsel %vm1315_vm13, %v1316_v0, %v1314_v42  ;;  %v1035_v54 = vld [vmem:[%s5168_s10 + $0x20] sm:$0xff]  ;;  %v1351_v0 = vpack.c.bf16 %v1034_v21, %v1033_v55  ;;  %v1323_v42 = vand.u32 2147483648, %v4431_v24 }
 0x3fb   :  { %v1303_v62 = vsel %vm1301_vm14, %v1302_v33, %v1300_v53  ;;  %v1358_v10 = vpack.c.bf16 %v1317_v16, %v1310_v39  ;;  %v1352_v30 = vpack.c.bf16 %v1036_v23, %v1035_v54  ;;  %v1337_v16 = vand.u32 2147483648, %v4429_v38 }
 0x3fc   :  { %v1357_v47 = vpack.c.bf16 %v1303_v62, %v1296_v17  ;;  %v1344_v17 = vand.u32 2147483648, %v4433_v28  ;;  %v1037_v62 = vld [vmem:[%s5168_s10 + $0x30] sm:$0xff] }
 0x3fd   :  { %v3453_v2 = vpop.eup %3452 }
 0x3fe   :  { %3188 = vmatprep.mubr.msk.bf16.mxu1 %vm1076_vm1, %v1357_v47  ;;  %v3455_v25 = vpop.eup %3454  ;;  %v1333_v5 = vmul.f32 %v3453_v2, %v4429_v38  ;;  %v1330_v47 = vand.u32 2147483648, %v4437_v63 }
 0x3ff   :  { %3189 = vmatmul.mubr.msk.bf16.vlgmr.msra.gmra.mrb[48].mxu1 %vm1076_vm1, %v1358_v10  ;;  %v3457_v6 = vpop.eup %3456  ;;  %v1319_v33 = vmul.f32 %v3455_v25, %v4431_v24  ;;  %v1038_v10 = vld [vmem:[%s5168_s10 + $0x38] sm:$0xff] }
 0x400   :  { %3197 = vmatpush3.bf16.msra.mxu1 %v4258_v8  ;;  %v3459_v53 = vpop.eup %3458  ;;  %v1335_v39 = vsel %vm1334_vm15, %v4429_v38, %v1333_v5  ;;  %v1340_v55 = vmul.f32 %v3457_v6, %v4433_v28  ;;  %v1039_v38 = vld [vmem:[%s5168_s10 + $0x40] sm:$0xff] }
 0x401   :  { %3198 = vmatprep.subr.bf16.mxu1 %v1351_v0  ;;  %v1321_v8 = vsel %vm1320_vm0, %v4431_v24, %v1319_v33  ;;  %v1326_v21 = vmul.f32 %v3459_v53, %v4437_v63  ;;  %v1338_v2 = vsel %vm1336_vm7, %v1337_v16, %v1335_v39  ;;  %v1353_v53 = vpack.c.bf16 %v1038_v10, %v1037_v62  ;;  %v1048_v39 = vld [vmem:[%s5170_s13 + $0x8] sm:$0xff] }
 0x402   :  { %v1342_v54 = vsel %vm1341_vm4, %v4433_v28, %v1340_v55  ;;  %v1324_v5 = vsel %vm1322_vm2, %v1323_v42, %v1321_v8  ;;  %v1040_v28 = vld [vmem:[%s5168_s10 + $0x48] sm:$0xff] }
 0x403   :  { %v1328_v23 = vsel %vm1327_vm3, %v4437_v63, %v1326_v21  ;;  %v1345_v25 = vsel %vm1343_vm8, %v1344_v17, %v1342_v54  ;;  %v1354_v24 = vpack.c.bf16 %v1040_v28, %v1039_v38  ;;  %v1041_v63 = vld [vmem:[%s5168_s10 + $0x50] sm:$0xff] }
 0x404   :  { %3199 = vmatpush3.bf16.msra.mxu1 %v1351_v0  ;;  %v1331_v6 = vsel %vm1329_vm9, %v1330_v47, %v1328_v23  ;;  %v1360_v33 = vpack.c.bf16 %v1345_v25, %v1338_v2  ;;  %v1042_v0 = vld [vmem:[%s5168_s10 + $0x58] sm:$0xff] }
 0x405   :  { %3200 = vmatprep.subr.bf16.mxu1 %v1352_v30  ;;  %v1359_v1 = vpack.c.bf16 %v1331_v6, %v1324_v5  ;;  %v1355_v42 = vpack.c.bf16 %v1042_v0, %v1041_v63 }
 0x407   :  { %3192 = vmatprep.mubr.msk.bf16.mxu1 %vm1076_vm1, %v1359_v1  ;;  %v1043_v1 = vld [vmem:[%s5168_s10 + $0x60] sm:$0xf] }
 0x408   :  { %3201 = vmatpush3.bf16.msra.mxu1 %v1352_v30  ;;  %v1356_v30 = vpack.c.bf16 %v1043_v1, %v1043_v1 }
 0x409   :  { %3193 = vmatmul.mubr.msk.bf16.gmra.mrb[52].mxu1 %vm1076_vm1, %v1360_v33  ;;  %3202 = vmatprep.subr.bf16.mxu1 %v1353_v53 }
 0x40a   :  { %3210 = vmatprep.mubr.msk.bf16.mxu1 %vm700_vm6, %v4166_v27  ;;  %v1047_v27 = vld [vmem:[%s5170_s13] sm:$0xff]  ;;  %v1452_v16 = vsel %vm713_vm5, %v1356_v30, 0 }
 0x40b   :  { %v1690_v55 = vpack.c.bf16 %v1048_v39, %v1047_v27  ;;  %v1880_v39 = vld [vmem:[%s5172_s16] sm:$0xff] }
 0x40c   :  { %3203 = vmatpush3.bf16.msra.mxu1 %v1353_v53 }
 0x40d   :  { %3204 = vmatprep.subr.bf16.mxu1 %v1354_v24 }
 0x410   :  { %3205 = vmatpush3.bf16.msra.mxu1 %v1354_v24 }
 0x411   :  { %3206 = vmatprep.subr.bf16.mxu1 %v1355_v42 }
 0x414   :  { %3207 = vmatpush3.bf16.msra.mxu1 %v1355_v42 }
 0x415   :  { %3391 = vmatprep.subr.msk.bf16.mxu1 %vm713_vm5, %v1356_v30 }
 0x418   :  { %3209 = vmatpush3.bf16.msra.mxu1 %v1452_v16  ;;  %v1881_v16 = vld [vmem:[%s5172_s16 + $0x8] sm:$0xff] }
 0x419   :  { %3240 = vmatprep.subr.bf16.mxu1 %v1690_v55 }
 0x41b   :  { %3211 = vmatmul.mubr.msk.bf16.vlgmr.msra.gmra.mrb[48].mxu1 %vm700_vm6, %v4164_v29  ;;  %v5211_v29 = vpack.c.bf16 %v4409_v48, %v4393_v37 }
 0x41c   :  { %3214 = vmatprep.mubr.msk.bf16.mxu1 %vm700_vm6, %v4173_v32  ;;  %3241 = vmatpush3.bf16.msra.mxu1 %v1690_v55  ;;  %v1926_v55 = vpack.c.bf16 %v1881_v16, %v1880_v39 }
 0x423   :  { %3215 = vmatmul.mubr.msk.bf16.gmra.mrb[52].mxu1 %vm700_vm6, %v4171_v34  ;;  %v1061_v34 = vld [vmem:[%s5169_s14 + $0x60] sm:$0xf] }
 0x424   :  { %3242 = vmatprep.mubr.msk.bf16.mxu1 %vm1076_vm1, %v1678_v26  ;;  %v1551_v32 = vpack.c.bf16 %v1061_v34, %v1061_v34 }
 0x426   :  { %3392 = vmatprep.subr.msk.bf16.mxu0 %vm713_vm5, %v1551_v32  ;;  %v1571_v11 = vsel %vm713_vm5, %v1551_v32, 0 }
 0x427   :  { %3231 = vmatpush3.bf16.msra.mxu0 %v1571_v11 }
 0x428   :  { %3266 = vmatprep.subr.bf16.mxu0 %v1926_v55 }
 0x42b   :  { %3243 = vmatmul.mubr.msk.bf16.vlgmr.msra.gmra.mrb[56].mxu1 %vm1076_vm1, %v1679_v14 }
 0x42c   :  { %3246 = vmatprep.mubr.msk.bf16.mxu1 %vm1076_vm1, %v1680_v22 }
 0x433   :  { %3247 = vmatmul.mubr.msk.bf16.gmra.mrb[60].mxu1 %vm1076_vm1, %v1681_v58 }
 0x434   :  { %3250 = vmatprep.mubr.msk.bf16.mxu1 %vm1076_vm1, %v1682_v41 }
 0x43b   :  { %3251 = vmatmul.mubr.msk.bf16.gmra.mrb[64].mxu1 %vm1076_vm1, %v1683_v56 }
 0x43c   :  { %3254 = vmatprep.mubr.msk.bf16.mxu1 %vm1076_vm1, %v1684_v59 }
 0x443   :  { %3255 = vmatmul.mubr.msk.bf16.gmra.mrb[68].mxu1 %vm1076_vm1, %v1685_v36 }
 0x444   :  { %3258 = vmatprep.mubr.msk.bf16.mxu1 %vm1076_vm1, %v1686_v18 }
 0x44b   :  { %3259 = vmatmul.mubr.msk.bf16.gmra.mrb[72].mxu1 %vm1076_vm1, %v1687_v3 }
 0x44c   :  { %3262 = vmatprep.mubr.msk.bf16.mxu1 %vm1076_vm1, %v1688_v7 }
 0x453   :  { %3263 = vmatmul.mubr.msk.bf16.gmra.mrb[76].mxu1 %vm1076_vm1, %v5211_v29  ;;  %v2839_v29 = vld [vmem:[%s5173_s15] ss:$0 sm:$0xff] }
 0x4ee   :  { %v3212_v13 = vpop.f32.mrb[48].mxu1 }
 0x4ef   :  { %v1527_v14 = vadd.f32 %v3212_v13, %v2838_v12  ;;  %v1488_v15 = vpop.f32.mrb[49].mxu1 }
 0x4f0   :  { %v1525_v26 = vadd.f32 %v2838_v12, %v1488_v15  ;;  %v3213_v43 = vpop.f32.mrb[50].mxu1 }
 0x4f1   :  { %v1528_v50 = vadd.f32 %v3213_v43, %v2838_v12  ;;  %v1491_v57 = vpop.f32.mrb[51].mxu1  ;;  %v1535_v61 = vmax.f32 %v1527_v14, 0.0 }
 0x4f2   :  { %v1526_v58 = vadd.f32 %v2838_v12, %v1491_v57  ;;  %v1533_v44 = vmax.f32 %v1525_v26, 0.0 }
 0x4f3   :  { %v1536_v22 = vmax.f32 %v1528_v50, 0.0  ;;  %v1542_v20 = vpack.c.bf16 %v1528_v50, %v1527_v14 }
 0x4f4   :  { %v1534_v45 = vmax.f32 %v1526_v58, 0.0  ;;  %v1541_v19 = vpack.c.bf16 %v1526_v58, %v1525_v26 }
 0x4f5   :  { %v4599_v56 = vpack.c.bf16 %v1536_v22, %v1535_v61 }
 0x4f6   :  { %v4601_v49 = vpack.c.bf16 %v1534_v45, %v1533_v44  ;;  %v3216_v46 = vpop.f32.mrb[52].mxu1  ;;  %3232 = vmatprep.mubr.msk.bf16.mxu0 %vm700_vm6, %v1541_v19 }
 0x4f7   :  { %v1531_v41 = vadd.f32 %v3216_v46, %v2838_v12  ;;  %v1504_v60 = vpop.f32.mrb[53].mxu1  ;;  %3233 = vmatmul.mubr.msk.bf16.vlgmr.msra.gmra.mrb[56].mxu0 %vm700_vm6, %v1542_v20 }
 0x4f8   :  { %v1529_v3 = vadd.f32 %v2838_v12, %v1504_v60  ;;  %v3217_v4 = vpop.f32.mrb[54].mxu1  ;;  %3267 = vmatpush3.bf16.msra.mxu0 %v1926_v55 }
 0x4f9   :  { %v1532_v18 = vadd.f32 %v3217_v4, %v2838_v12  ;;  %v1507_v35 = vpop.f32.mrb[55].mxu1  ;;  %v1539_v9 = vmax.f32 %v1531_v41, 0.0 }
 0x4fa   :  { %v1530_v52 = vadd.f32 %v2838_v12, %v1507_v35  ;;  %v1537_v51 = vmax.f32 %v1529_v3, 0.0 }
 0x4fb   :  { %v1540_v37 = vmax.f32 %v1532_v18, 0.0  ;;  %v1544_v31 = vpack.c.bf16 %v1532_v18, %v1531_v41 }
 0x4fc   :  { %v1538_v36 = vmax.f32 %v1530_v52, 0.0  ;;  %v1543_v48 = vpack.c.bf16 %v1530_v52, %v1529_v3 }
 0x4fd   :  { %v4605_v59 = vpack.c.bf16 %v1540_v37, %v1539_v9 }
 0x4fe   :  { %v4607_v40 = vpack.c.bf16 %v1538_v36, %v1537_v51  ;;  %3236 = vmatprep.mubr.msk.bf16.mxu0 %vm700_vm6, %v1543_v48  ;;  %v4610_v7 = vpop.f32.mrb[56].mxu1 }
 0x4ff   :  { %3237 = vmatmul.mubr.msk.bf16.gmra.mrb[60].mxu0 %vm700_vm6, %v1544_v31  ;;  %v4613_v8 = vpop.f32.mrb[57].mxu1 }
 0x500   :  { %v4615_v21 = vpop.f32.mrb[58].mxu1 }
 0x501   :  { %v4617_v17 = vpop.f32.mrb[59].mxu1 }
 0x506   :  { %v4619_v62 = vpop.f32.mrb[60].mxu1 }
 0x507   :  { %v4621_v10 = vpop.f32.mrb[61].mxu1 }
 0x508   :  { %v4623_v47 = vpop.f32.mrb[62].mxu1 }
 0x509   :  { %v4625_v54 = vpop.f32.mrb[63].mxu1 }
 0x50e   :  { %v4627_v23 = vpop.f32.mrb[64].mxu1 }
 0x50f   :  { %v4629_v2 = vpop.f32.mrb[65].mxu1 }
 0x510   :  { %v4631_v25 = vpop.f32.mrb[66].mxu1 }
 0x511   :  { %v4633_v5 = vpop.f32.mrb[67].mxu1 }
 0x516   :  { %v4635_v6 = vpop.f32.mrb[68].mxu1 }
 0x517   :  { %v4637_v33 = vpop.f32.mrb[69].mxu1 }
 0x518   :  { %v4639_v53 = vpop.f32.mrb[70].mxu1 }
 0x519   :  { %v4641_v38 = vpop.f32.mrb[71].mxu1 }
 0x51e   :  { %v4643_v28 = vpop.f32.mrb[72].mxu1 }
 0x51f   :  { %v4645_v24 = vpop.f32.mrb[73].mxu1 }
 0x520   :  { %v4647_v63 = vpop.f32.mrb[74].mxu1 }
 0x521   :  { %v4649_v0 = vpop.f32.mrb[75].mxu1 }
 0x526   :  { %v4651_v42 = vpop.f32.mrb[76].mxu1 }
 0x527   :  { %v4653_v1 = vpop.f32.mrb[77].mxu1 }
 0x528   :  { %v4655_v30 = vpop.f32.mrb[78].mxu1 }
 0x529   :  { %v4657_v27 = vpop.f32.mrb[79].mxu1 }
 0x5ca   :  { %v3234_v34 = vpop.f32.mrb[56].mxu0 }
 0x5cb   :  { %v1616_v32 = vadd.f32 %v3234_v34, %v2839_v29  ;;  %v1607_v11 = vpop.f32.mrb[57].mxu0 }
 0x5cc   :  { %v1608_v12 = vadd.f32 %v2839_v29, %v1607_v11  ;;  %v3235_v13 = vpop.f32.mrb[58].mxu0 }
 0x5cd   :  { %v1640_v14 = vsub.f32 0.0, %v1616_v32  ;;  %v1619_v15 = vadd.f32 %v3235_v13, %v2839_v29  ;;  %v1610_v26 = vpop.f32.mrb[59].mxu0 }
 0x5ce   :  { %v1638_v43 = vsub.f32 0.0, %v1608_v12  ;;  %v1611_v50 = vadd.f32 %v2839_v29, %v1610_v26 }
 0x5cf   :  { %v1650_v57 = vmul.f32 1.442695, %v1640_v14  ;;  %v1641_v58 = vsub.f32 0.0, %v1619_v15 }
 0x5d0   :  { %v1646_v61 = vmul.f32 1.442695, %v1638_v43  ;;  %v1639_v22 = vsub.f32 0.0, %v1611_v50 }
 0x5d1   :  { %3460 = vpow2.f32 %v1650_v57  ;;  %v1652_v20 = vmul.f32 1.442695, %v1641_v58 }
 0x5d2   :  { %3462 = vpow2.f32 %v1646_v61  ;;  %v1648_v44 = vmul.f32 1.442695, %v1639_v22  ;;  %v3238_v45 = vpop.f32.mrb[60].mxu0 }
 0x5d3   :  { %3464 = vpow2.f32 %v1652_v20  ;;  %v1632_v19 = vadd.f32 %v3238_v45, %v2839_v29  ;;  %v1623_v46 = vpop.f32.mrb[61].mxu0 }
 0x5d4   :  { %3466 = vpow2.f32 %v1648_v44  ;;  %v1624_v41 = vadd.f32 %v2839_v29, %v1623_v46  ;;  %v3239_v60 = vpop.f32.mrb[62].mxu0 }
 0x5d5   :  { %v1644_v3 = vsub.f32 0.0, %v1632_v19  ;;  %v1635_v4 = vadd.f32 %v3239_v60, %v2839_v29  ;;  %v1626_v18 = vpop.f32.mrb[63].mxu0 }
 0x5d6   :  { %v1642_v35 = vsub.f32 0.0, %v1624_v41  ;;  %v1627_v52 = vadd.f32 %v2839_v29, %v1626_v18 }
 0x5d7   :  { %v1658_v9 = vmul.f32 1.442695, %v1644_v3  ;;  %v1645_v37 = vsub.f32 0.0, %v1635_v4 }
 0x5d8   :  { %v1654_v31 = vmul.f32 1.442695, %v1642_v35  ;;  %v1643_v51 = vsub.f32 0.0, %v1627_v52 }
 0x5d9   :  { %3468 = vpow2.f32 %v1658_v9  ;;  %v1660_v36 = vmul.f32 1.442695, %v1645_v37 }
 0x5da   :  { %3470 = vpow2.f32 %v1654_v31  ;;  %v1656_v48 = vmul.f32 1.442695, %v1643_v51 }
 0x5db   :  { %v3461_v39 = vpop.eup %3460  ;;  %3472 = vpow2.f32 %v1660_v36 }
 0x5dc   :  { %v3463_v16 = vpop.eup %3462  ;;  %v1664_v55 = vadd.f32 1.0, %v3461_v39  ;;  %3474 = vpow2.f32 %v1656_v48 }
 0x5dd   :  { %v3465_v34 = vpop.eup %3464  ;;  %v1662_v32 = vadd.f32 1.0, %v3463_v16 }
 0x5de   :  { %v3467_v11 = vpop.eup %3466  ;;  %3476 = vrcp.f32 %v1664_v55  ;;  %v1665_v12 = vadd.f32 1.0, %v3465_v34 }
 0x5df   :  { %3478 = vrcp.f32 %v1662_v32  ;;  %v1663_v29 = vadd.f32 1.0, %v3467_v11 }
 0x5e0   :  { %3480 = vrcp.f32 %v1665_v12 }
 0x5e1   :  { %3482 = vrcp.f32 %v1663_v29  ;;  %v1901_v29 = vld [vmem:[%s5176_s21 + $0x8] sm:$0xff] }
 0x5e3   :  { %v3469_v13 = vpop.eup %3468 }
 0x5e4   :  { %v3471_v14 = vpop.eup %3470  ;;  %v1668_v15 = vadd.f32 1.0, %v3469_v13  ;;  %v1902_v13 = vld [vmem:[%s5176_s21 + $0x10] sm:$0xff] }
 0x5e5   :  { %v3473_v26 = vpop.eup %3472  ;;  %v1666_v43 = vadd.f32 1.0, %v3471_v14 }
 0x5e6   :  { %v3475_v50 = vpop.eup %3474  ;;  %3484 = vrcp.f32 %v1668_v15  ;;  %v1669_v57 = vadd.f32 1.0, %v3473_v26  ;;  %v1903_v15 = vld [vmem:[%s5176_s21 + $0x18] sm:$0xff] }
 0x5e7   :  { %3486 = vrcp.f32 %v1666_v43  ;;  %v1667_v58 = vadd.f32 1.0, %v3475_v50  ;;  %v2388_v26 = vpack.c.bf16 %v1903_v15, %v1902_v13  ;;  %v1904_v43 = vld [vmem:[%s5176_s21 + $0x20] sm:$0xff]  ;;  %v1905_v50 = vld [vmem:[%s5176_s21 + $0x28] sm:$0xff] }
 0x5e8   :  { %v3477_v61 = vpop.eup %3476  ;;  %3488 = vrcp.f32 %v1669_v57  ;;  %v2389_v57 = vpack.c.bf16 %v1905_v50, %v1904_v43 }
 0x5e9   :  { %v3479_v22 = vpop.eup %3478  ;;  %3490 = vrcp.f32 %v1667_v58  ;;  %v1858_v20 = vmul.f32 %v3477_v61, %v4610_v7  ;;  %v1866_v44 = vmul.f32 %v3477_v61, %v4627_v23  ;;  %v1874_v45 = vmul.f32 %v3477_v61, %v4643_v28  ;;  %v1906_v58 = vld [vmem:[%s5176_s21 + $0x30] sm:$0xff]  ;;  %v1907_v61 = vld [vmem:[%s5176_s21 + $0x38] sm:$0xff] }
 0x5ea   :  { %v3481_v19 = vpop.eup %3480  ;;  %v1856_v46 = vmul.f32 %v3479_v22, %v4613_v8  ;;  %v1864_v41 = vmul.f32 %v3479_v22, %v4629_v2  ;;  %v1872_v60 = vmul.f32 %v3479_v22, %v4645_v24  ;;  %v2390_v22 = vpack.c.bf16 %v1907_v61, %v1906_v58 }
 0x5eb   :  { %v3483_v3 = vpop.eup %3482  ;;  %v1859_v4 = vmul.f32 %v3481_v19, %v4615_v21  ;;  %v1867_v18 = vmul.f32 %v3481_v19, %v4631_v25  ;;  %v1875_v35 = vmul.f32 %v3481_v19, %v4647_v63  ;;  %v1910_v19 = vld [vmem:[%s5176_s21 + $0x50] sm:$0xff] }
 0x5ec   :  { %v1857_v7 = vmul.f32 %v3483_v3, %v4617_v17  ;;  %v1865_v23 = vmul.f32 %v3483_v3, %v4633_v5  ;;  %v1873_v28 = vmul.f32 %v3483_v3, %v4649_v0 }
 0x5ed   :  { %v1915_v52 = vpack.c.bf16 %v1859_v4, %v1858_v20  ;;  %v1919_v9 = vpack.c.bf16 %v1867_v18, %v1866_v44  ;;  %v1923_v8 = vpack.c.bf16 %v1875_v35, %v1874_v45  ;;  %v1908_v20 = vld [vmem:[%s5176_s21 + $0x40] sm:$0xff]  ;;  %v1909_v44 = vld [vmem:[%s5176_s21 + $0x48] sm:$0xff] }
 0x5ee   :  { %v1914_v37 = vpack.c.bf16 %v1857_v7, %v1856_v46  ;;  %v1918_v2 = vpack.c.bf16 %v1865_v23, %v1864_v41  ;;  %v1922_v31 = vpack.c.bf16 %v1873_v28, %v1872_v60  ;;  %v2391_v45 = vpack.c.bf16 %v1909_v44, %v1908_v20  ;;  %v1911_v46 = vld [vmem:[%s5176_s21 + $0x58] sm:$0xff] }
 0x5ef   :  { %v2392_v41 = vpack.c.bf16 %v1911_v46, %v1910_v19 }
 0x5f0   :  { %v3485_v24 = vpop.eup %3484  ;;  %3268 = vmatprep.mubr.msk.bf16.mxu0 %vm1076_vm1, %v1914_v37 }
 0x5f1   :  { %v3487_v21 = vpop.eup %3486  ;;  %3269 = vmatmul.mubr.msk.bf16.vlgmr.msra.gmra.mrb[64].mxu0 %vm1076_vm1, %v1915_v52  ;;  %v1862_v25 = vmul.f32 %v3485_v24, %v4619_v62  ;;  %v1870_v17 = vmul.f32 %v3485_v24, %v4635_v6  ;;  %v1878_v5 = vmul.f32 %v3485_v24, %v4651_v42 }
 0x5f2   :  { %v3489_v63 = vpop.eup %3488  ;;  %v1860_v0 = vmul.f32 %v3487_v21, %v4621_v10  ;;  %v1868_v51 = vmul.f32 %v3487_v21, %v4637_v33  ;;  %v1876_v36 = vmul.f32 %v3487_v21, %v4653_v1  ;;  %v1883_v1 = vld [vmem:[%s5175_s17 + $0x8] sm:$0xff] }
 0x5f3   :  { %v3491_v48 = vpop.eup %3490  ;;  %v1863_v39 = vmul.f32 %v3489_v63, %v4623_v47  ;;  %v1871_v16 = vmul.f32 %v3489_v63, %v4639_v53  ;;  %v1879_v55 = vmul.f32 %v3489_v63, %v4655_v30  ;;  %v1895_v47 = vld [vmem:[%s5174_s18] sm:$0xff] }
 0x5f4   :  { %v1861_v62 = vmul.f32 %v3491_v48, %v4625_v54  ;;  %v1869_v6 = vmul.f32 %v3491_v48, %v4641_v38  ;;  %v1877_v42 = vmul.f32 %v3491_v48, %v4657_v27  ;;  %v1896_v54 = vld [vmem:[%s5174_s18 + $0x8] sm:$0xff]  ;;  %v1882_v38 = vld [vmem:[%s5175_s17] sm:$0xff] }
 0x5f5   :  { %v1917_v34 = vpack.c.bf16 %v1863_v39, %v1862_v25  ;;  %v1921_v32 = vpack.c.bf16 %v1871_v16, %v1870_v17  ;;  %v1925_v10 = vpack.c.bf16 %v1879_v55, %v1878_v5  ;;  %v2211_v53 = vpack.c.bf16 %v1896_v54, %v1895_v47  ;;  %v1900_v27 = vld [vmem:[%s5176_s21] sm:$0xff] }
 0x5f6   :  { %v1916_v11 = vpack.c.bf16 %v1861_v62, %v1860_v0  ;;  %v1920_v33 = vpack.c.bf16 %v1869_v6, %v1868_v51  ;;  %v1924_v12 = vpack.c.bf16 %v1877_v42, %v1876_v36  ;;  %v4716_v30 = vpack.c.bf16 %v1883_v1, %v1882_v38 }
 0x5f7   :  { %3292 = vmatprep.subr.bf16.mxu1 %v2211_v53  ;;  %v2387_v14 = vpack.c.bf16 %v1901_v29, %v1900_v27 }
 0x5f8   :  { %3272 = vmatprep.mubr.msk.bf16.mxu0 %vm1076_vm1, %v1916_v11  ;;  %3293 = vmatpush3.bf16.msra.mxu1 %v2211_v53 }
 0x5f9   :  { %3273 = vmatmul.mubr.msk.bf16.gmra.mrb[68].mxu0 %vm1076_vm1, %v1917_v34  ;;  %3302 = vmatprep.subr.bf16.mxu1 %v4716_v30 }
 0x5fa   :  { %3276 = vmatprep.mubr.msk.bf16.mxu0 %vm1076_vm1, %v1918_v2  ;;  %3324 = vmatprep.subr.bf16.mxu0 %v2387_v14 }
 0x5fb   :  { %3325 = vmatpush3.bf16.msra.mxu0 %v2387_v14 }
 0x5fc   :  { %3326 = vmatprep.subr.bf16.mxu0 %v2388_v26 }
 0x5ff   :  { %3327 = vmatpush3.bf16.msra.mxu0 %v2388_v26 }
 0x600   :  { %3328 = vmatprep.subr.bf16.mxu0 %v2389_v57 }
 0x601   :  { %3277 = vmatmul.mubr.msk.bf16.gmra.mrb[72].mxu0 %vm1076_vm1, %v1919_v9 }
 0x602   :  { %3280 = vmatprep.mubr.msk.bf16.mxu0 %vm1076_vm1, %v1920_v33 }
 0x603   :  { %3329 = vmatpush3.bf16.msra.mxu0 %v2389_v57 }
 0x604   :  { %3330 = vmatprep.subr.bf16.mxu0 %v2390_v22 }
 0x607   :  { %3331 = vmatpush3.bf16.msra.mxu0 %v2390_v22 }
 0x608   :  { %3332 = vmatprep.subr.bf16.mxu0 %v2391_v45 }
 0x609   :  { %3281 = vmatmul.mubr.msk.bf16.gmra.mrb[76].mxu0 %vm1076_vm1, %v1921_v32 }
 0x60a   :  { %3284 = vmatprep.mubr.msk.bf16.mxu0 %vm1076_vm1, %v1922_v31 }
 0x60b   :  { %3333 = vmatpush3.bf16.msra.mxu0 %v2391_v45 }
 0x60c   :  { %3334 = vmatprep.subr.bf16.mxu0 %v2392_v41 }
 0x60f   :  { %3335 = vmatpush3.bf16.msra.mxu0 %v2392_v41 }
 0x611   :  { %3285 = vmatmul.mubr.msk.bf16.gmra.mrb[80].mxu0 %vm1076_vm1, %v1923_v8 }
 0x612   :  { %3288 = vmatprep.mubr.msk.bf16.mxu0 %vm1076_vm1, %v1924_v12 }
 0x619   :  { %3289 = vmatmul.mubr.msk.bf16.gmra.mrb[84].mxu0 %vm1076_vm1, %v1925_v10 }
 0x6c4   :  { %v4755_v60 = vpop.f32.mrb[64].mxu0 }
 0x6c5   :  { %v4757_v3 = vpop.f32.mrb[65].mxu0  ;;  %v2094_v31 = vmul.f32 %v4755_v60, %v4755_v60 }
 0x6c6   :  { %v4759_v4 = vpop.f32.mrb[66].mxu0  ;;  %v2092_v25 = vmul.f32 %v4757_v3, %v4757_v3 }
 0x6c7   :  { %v2521_v18 = vpack.c.bf16 %v4759_v4, %v4755_v60  ;;  %v4763_v35 = vpop.f32.mrb[67].mxu0  ;;  %v2095_v63 = vmul.f32 %v4759_v4, %v4759_v4 }
 0x6c8   :  { %v2520_v7 = vpack.c.bf16 %v4763_v35, %v4757_v3  ;;  %v2093_v39 = vmul.f32 %v4763_v35, %v4763_v35 }
 0x6cc   :  { %v4767_v23 = vpop.f32.mrb[68].mxu0 }
 0x6cd   :  { %v4769_v28 = vpop.f32.mrb[69].mxu0  ;;  %v2098_v32 = vmul.f32 %v4767_v23, %v4767_v23 }
 0x6ce   :  { %v4771_v52 = vpop.f32.mrb[70].mxu0  ;;  %v2096_v33 = vmul.f32 %v4769_v28, %v4769_v28 }
 0x6cf   :  { %v2523_v9 = vpack.c.bf16 %v4771_v52, %v4767_v23  ;;  %v4775_v8 = vpop.f32.mrb[71].mxu0  ;;  %v2099_v54 = vmul.f32 %v4771_v52, %v4771_v52 }
 0x6d0   :  { %v2522_v37 = vpack.c.bf16 %v4775_v8, %v4769_v28  ;;  %v2097_v29 = vmul.f32 %v4775_v8, %v4775_v8 }
 0x6d4   :  { %v4779_v2 = vpop.f32.mrb[72].mxu0 }
 0x6d5   :  { %v2102_v24 = vmul.f32 %v4779_v2, %v4779_v2  ;;  %v4785_v21 = vpop.f32.mrb[73].mxu0 }
 0x6d6   :  { %v2100_v17 = vmul.f32 %v4785_v21, %v4785_v21  ;;  %v4791_v5 = vpop.f32.mrb[74].mxu0 }
 0x6d7   :  { %v2110_v0 = vadd.f32 %v2102_v24, %v2094_v31  ;;  %v2103_v51 = vmul.f32 %v4791_v5, %v4791_v5  ;;  %v2525_v36 = vpack.c.bf16 %v4791_v5, %v4779_v2  ;;  %v4799_v48 = vpop.f32.mrb[75].mxu0 }
 0x6d8   :  { %v2108_v16 = vadd.f32 %v2100_v17, %v2092_v25  ;;  %v2101_v55 = vmul.f32 %v4799_v48, %v4799_v48  ;;  %v2524_v62 = vpack.c.bf16 %v4799_v48, %v4785_v21 }
 0x6d9   :  { %v2111_v6 = vadd.f32 %v2103_v51, %v2095_v63 }
 0x6da   :  { %v2109_v42 = vadd.f32 %v2101_v55, %v2093_v39 }
 0x6dc   :  { %v4807_v34 = vpop.f32.mrb[76].mxu0 }
 0x6dd   :  { %v2106_v10 = vmul.f32 %v4807_v34, %v4807_v34  ;;  %v4813_v11 = vpop.f32.mrb[77].mxu0 }
 0x6de   :  { %v2104_v12 = vmul.f32 %v4813_v11, %v4813_v11  ;;  %v4819_v47 = vpop.f32.mrb[78].mxu0 }
 0x6df   :  { %v2114_v53 = vadd.f32 %v2106_v10, %v2098_v32  ;;  %v2107_v38 = vmul.f32 %v4819_v47, %v4819_v47  ;;  %v2527_v1 = vpack.c.bf16 %v4819_v47, %v4807_v34  ;;  %v4827_v27 = vpop.f32.mrb[79].mxu0 }
 0x6e0   :  { %v2112_v13 = vadd.f32 %v2104_v12, %v2096_v33  ;;  %v2105_v14 = vmul.f32 %v4827_v27, %v4827_v27  ;;  %v2526_v15 = vpack.c.bf16 %v4827_v27, %v4813_v11 }
 0x6e1   :  { %v2115_v26 = vadd.f32 %v2107_v38, %v2099_v54 }
 0x6e2   :  { %v2113_v43 = vadd.f32 %v2105_v14, %v2097_v29 }
 0x6e4   :  { %v4835_v50 = vpop.f32.mrb[80].mxu0 }
 0x6e5   :  { %v2118_v57 = vmul.f32 %v4835_v50, %v4835_v50  ;;  %v4839_v58 = vpop.f32.mrb[81].mxu0 }
 0x6e6   :  { %v2116_v61 = vmul.f32 %v4839_v58, %v4839_v58  ;;  %v4843_v22 = vpop.f32.mrb[82].mxu0 }
 0x6e7   :  { %v2126_v20 = vadd.f32 %v2118_v57, %v2110_v0  ;;  %v2119_v44 = vmul.f32 %v4843_v22, %v4843_v22  ;;  %v4849_v19 = vpop.f32.mrb[83].mxu0  ;;  %v5212_v60 = vpack.c.bf16 %v4843_v22, %v4835_v50 }
 0x6e8   :  { %v2124_v46 = vadd.f32 %v2116_v61, %v2108_v16  ;;  %v2117_v41 = vmul.f32 %v4849_v19, %v4849_v19  ;;  %v2528_v31 = vpack.c.bf16 %v4849_v19, %v4839_v58 }
 0x6e9   :  { %v2134_v24 = vmax.f32 %v2126_v20, 1e-08  ;;  %v2127_v25 = vadd.f32 %v2119_v44, %v2111_v6 }
 0x6ea   :  { %v2132_v17 = vmax.f32 %v2124_v46, 1e-08  ;;  %v2125_v63 = vadd.f32 %v2117_v41, %v2109_v42 }
 0x6eb   :  { %3492 = vrsqrt.f32 %v2134_v24  ;;  %v2135_v0 = vmax.f32 %v2127_v25, 1e-08  ;;  %vm2156_vm10 = vcmp.eq.f32.partialorder %v2134_v24, inf  ;;  %v2159_v25 = vand.u32 2147483648, %v2134_v24 }
 0x6ec   :  { %3494 = vrsqrt.f32 %v2132_v17  ;;  %v2133_v51 = vmax.f32 %v2125_v63, 1e-08  ;;  %v4855_v39 = vpop.f32.mrb[84].mxu0  ;;  %vm2142_vm11 = vcmp.eq.f32.partialorder %v2132_v17, inf  ;;  %vm2144_vm12 = vcmp.eq.f32.partialorder %v2132_v17, 0.0 }
 0x6ed   :  { %3496 = vrsqrt.f32 %v2135_v0  ;;  %v2122_v16 = vmul.f32 %v4855_v39, %v4855_v39  ;;  %v4859_v55 = vpop.f32.mrb[85].mxu0  ;;  %vm2163_vm13 = vcmp.eq.f32.partialorder %v2135_v0, inf  ;;  %vm2158_vm15 = vcmp.eq.f32.partialorder %v2134_v24, 0.0 }
 0x6ee   :  { %3498 = vrsqrt.f32 %v2133_v51  ;;  %v2120_v32 = vmul.f32 %v4859_v55, %v4859_v55  ;;  %v4863_v10 = vpop.f32.mrb[86].mxu0  ;;  %vm2149_vm14 = vcmp.eq.f32.partialorder %v2133_v51, inf  ;;  %vm2165_vm0 = vcmp.eq.f32.partialorder %v2135_v0, 0.0 }
 0x6ef   :  { %v2130_v6 = vadd.f32 %v2122_v16, %v2114_v53  ;;  %v2123_v42 = vmul.f32 %v4863_v10, %v4863_v10  ;;  %v4869_v12 = vpop.f32.mrb[87].mxu0  ;;  %vm2151_vm2 = vcmp.eq.f32.partialorder %v2133_v51, 0.0  ;;  %v5214_v4 = vpack.c.bf16 %v4863_v10, %v4855_v39 }
 0x6f0   :  { %v2128_v54 = vadd.f32 %v2120_v32, %v2112_v13  ;;  %v2121_v38 = vmul.f32 %v4869_v12, %v4869_v12  ;;  %v2166_v32 = vand.u32 2147483648, %v2135_v0  ;;  %v5213_v3 = vpack.c.bf16 %v4869_v12, %v4859_v55 }
 0x6f1   :  { %v4875_v14 = vmax.f32 %v2130_v6, 1e-08  ;;  %v2131_v57 = vadd.f32 %v2123_v42, %v2115_v26 }
 0x6f2   :  { %v4877_v61 = vmax.f32 %v2128_v54, 1e-08  ;;  %v2129_v53 = vadd.f32 %v2121_v38, %v2113_v43  ;;  %v2145_v54 = vand.u32 2147483648, %v2132_v17 }
 0x6f3   :  { %3500 = vrsqrt.f32 %v4875_v14  ;;  %v4880_v20 = vmax.f32 %v2131_v57, 1e-08  ;;  %v2152_v57 = vand.u32 2147483648, %v2133_v51  ;;  %vm2184_vm3 = vcmp.eq.f32.partialorder %v4875_v14, inf }
 0x6f4   :  { %3502 = vrsqrt.f32 %v4877_v61  ;;  %v4883_v44 = vmax.f32 %v2129_v53, 1e-08  ;;  %vm2170_vm4 = vcmp.eq.f32.partialorder %v4877_v61, inf  ;;  %vm2172_vm7 = vcmp.eq.f32.partialorder %v4877_v61, 0.0 }
 0x6f5   :  { %v3493_v13 = vpop.eup %3492  ;;  %3504 = vrsqrt.f32 %v4880_v20  ;;  %vm2186_vm8 = vcmp.eq.f32.partialorder %v4875_v14, 0.0  ;;  %vm2191_vm9 = vcmp.eq.f32.partialorder %v4880_v20, inf }
 0x6f6   :  { %v3495_v46 = vpop.eup %3494  ;;  %v2155_v41 = vmul.f32 %v3493_v13, %v2134_v24  ;;  %3506 = vrsqrt.f32 %v4883_v44  ;;  %v1884_v13 = vld [vmem:[%s5175_s17 + $0x10] sm:$0xff] }
 0x6f7   :  { %v3497_v26 = vpop.eup %3496  ;;  %v2141_v63 = vmul.f32 %v3495_v46, %v2132_v17 }
 0x6f8   :  { %v3499_v43 = vpop.eup %3498  ;;  %v2162_v16 = vmul.f32 %v3497_v26, %v2135_v0  ;;  %v2157_v6 = vsel %vm2156_vm10, %v2134_v24, %v2155_v41  ;;  %v1885_v41 = vld [vmem:[%s5175_s17 + $0x18] sm:$0xff]  ;;  %v1886_v26 = vld [vmem:[%s5175_s17 + $0x20] sm:$0xff]  ;;  %v1887_v24 = vld [vmem:[%s5175_s17 + $0x28] sm:$0xff]  ;;  %vm2177_vm10 = vcmp.eq.f32.partialorder %v4883_v44, inf }
 0x6f9   :  { %v2143_v42 = vsel %vm2142_vm11, %v2132_v17, %v2141_v63  ;;  %v2148_v38 = vmul.f32 %v3499_v43, %v2133_v51  ;;  %v2160_v33 = vsel %vm2158_vm15, %v2159_v25, %v2157_v6  ;;  %v2202_v6 = vpack.c.bf16 %v1887_v24, %v1886_v26 }
 0x6fa   :  { %v2164_v53 = vsel %vm2163_vm13, %v2135_v0, %v2162_v16  ;;  %v2146_v0 = vsel %vm2144_vm12, %v2145_v54, %v2143_v42  ;;  %v2187_v42 = vand.u32 2147483648, %v4875_v14  ;;  %vm2193_vm11 = vcmp.eq.f32.partialorder %v4880_v20, 0.0 }
 0x6fb   :  { %v2150_v46 = vsel %vm2149_vm14, %v2133_v51, %v2148_v38  ;;  %v2167_v29 = vsel %vm2165_vm0, %v2166_v32, %v2164_v53  ;;  %v2201_v32 = vpack.c.bf16 %v1885_v41, %v1884_v13  ;;  %v2180_v41 = vand.u32 2147483648, %v4883_v44 }
 0x6fc   :  { %v2153_v63 = vsel %vm2151_vm2, %v2152_v57, %v2150_v46  ;;  %v2208_v43 = vpack.c.bf16 %v2167_v29, %v2160_v33  ;;  %v2173_v33 = vand.u32 2147483648, %v4877_v61  ;;  %v2194_v46 = vand.u32 2147483648, %v4880_v20 }
 0x6fd   :  { %v3501_v16 = vpop.eup %3500  ;;  %v2207_v51 = vpack.c.bf16 %v2153_v63, %v2146_v0  ;;  %vm2179_vm12 = vcmp.eq.f32.partialorder %v4883_v44, 0.0  ;;  %v1888_v0 = vld [vmem:[%s5175_s17 + $0x30] sm:$0xff]  ;;  %v1889_v63 = vld [vmem:[%s5175_s17 + $0x38] sm:$0xff] }
 0x6fe   :  { %v3503_v25 = vpop.eup %3502  ;;  %v2183_v38 = vmul.f32 %v3501_v16, %v4875_v14 }
 0x6ff   :  { %v3505_v53 = vpop.eup %3504  ;;  %3294 = vmatprep.mubr.msk.bf16.mxu1 %vm1076_vm1, %v2207_v51  ;;  %v2169_v45 = vmul.f32 %v3503_v25, %v4877_v61  ;;  %v1891_v25 = vld [vmem:[%s5175_s17 + $0x48] sm:$0xff] }
 0x700   :  { %v3507_v17 = vpop.eup %3506  ;;  %3295 = vmatmul.mubr.msk.bf16.vlgmr.msra.gmra.mrb[80].mxu1 %vm1076_vm1, %v2208_v43  ;;  %v2185_v29 = vsel %vm2184_vm3, %v4875_v14, %v2183_v38  ;;  %v2190_v54 = vmul.f32 %v3505_v53, %v4880_v20  ;;  %v1890_v14 = vld [vmem:[%s5175_s17 + $0x40] sm:$0xff]  ;;  %v1893_v38 = vld [vmem:[%s5175_s17 + $0x58] sm:$0xff] }
 0x701   :  { %3303 = vmatpush3.bf16.msra.mxu1 %v4716_v30  ;;  %v2171_v57 = vsel %vm2170_vm4, %v4877_v61, %v2169_v45  ;;  %v2176_v13 = vmul.f32 %v3507_v17, %v4883_v44  ;;  %v2188_v30 = vsel %vm2186_vm8, %v2187_v42, %v2185_v29  ;;  %v2204_v61 = vpack.c.bf16 %v1891_v25, %v1890_v14 }
 0x702   :  { %3304 = vmatprep.subr.bf16.mxu1 %v2201_v32  ;;  %v2192_v26 = vsel %vm2191_vm9, %v4880_v20, %v2190_v54  ;;  %v2174_v43 = vsel %vm2172_vm7, %v2173_v33, %v2171_v57  ;;  %v1912_v33 = vld [vmem:[%s5176_s21 + $0x60] sm:$0xf] }
 0x703   :  { %v2178_v24 = vsel %vm2177_vm10, %v4883_v44, %v2176_v13  ;;  %v2195_v45 = vsel %vm2193_vm11, %v2194_v46, %v2192_v26  ;;  %v2203_v44 = vpack.c.bf16 %v1889_v63, %v1888_v0  ;;  %v2393_v29 = vpack.c.bf16 %v1912_v33, %v1912_v33 }
 0x704   :  { %v2181_v20 = vsel %vm2179_vm12, %v2180_v41, %v2178_v24  ;;  %v2210_v16 = vpack.c.bf16 %v2195_v45, %v2188_v30 }
 0x705   :  { %3305 = vmatpush3.bf16.msra.mxu1 %v2201_v32  ;;  %v2209_v51 = vpack.c.bf16 %v2181_v20, %v2174_v43  ;;  %v1892_v32 = vld [vmem:[%s5175_s17 + $0x50] sm:$0xff]  ;;  %3394 = vmatprep.subr.msk.bf16.mxu0 %vm713_vm5, %v2393_v29  ;;  %v2413_v42 = vsel %vm713_vm5, %v2393_v29, 0 }
 0x706   :  { %3306 = vmatprep.subr.bf16.mxu1 %v2202_v6  ;;  %v2205_v53 = vpack.c.bf16 %v1893_v38, %v1892_v32  ;;  %3337 = vmatpush3.bf16.msra.mxu0 %v2413_v42 }
 0x707   :  { %3298 = vmatprep.mubr.msk.bf16.mxu1 %vm1076_vm1, %v2209_v51 }
 0x708   :  { %3299 = vmatmul.mubr.msk.bf16.gmra.mrb[84].mxu1 %vm1076_vm1, %v2210_v16 }
 0x709   :  { %3307 = vmatpush3.bf16.msra.mxu1 %v2202_v6  ;;  %3316 = vmatprep.mubr.msk.bf16.mxu1 %vm700_vm6, %v4601_v49  ;;  %v1894_v6 = vld [vmem:[%s5175_s17 + $0x60] sm:$0xf] }
 0x70a   :  { %3308 = vmatprep.subr.bf16.mxu1 %v2203_v44  ;;  %v2206_v49 = vpack.c.bf16 %v1894_v6, %v1894_v6 }
 0x70c   :  { %v2302_v17 = vsel %vm713_vm5, %v2206_v49, 0 }
 0x70d   :  { %3309 = vmatpush3.bf16.msra.mxu1 %v2203_v44 }
 0x70e   :  { %3310 = vmatprep.subr.bf16.mxu1 %v2204_v61 }
 0x711   :  { %3311 = vmatpush3.bf16.msra.mxu1 %v2204_v61 }
 0x712   :  { %3312 = vmatprep.subr.bf16.mxu1 %v2205_v53 }
 0x715   :  { %3313 = vmatpush3.bf16.msra.mxu1 %v2205_v53 }
 0x716   :  { %3393 = vmatprep.subr.msk.bf16.mxu1 %vm713_vm5, %v2206_v49 }
 0x719   :  { %3315 = vmatpush3.bf16.msra.mxu1 %v2302_v17 }
 0x71c   :  { %3317 = vmatmul.mubr.msk.bf16.vlgmr.msra.gmra.mrb[80].mxu1 %vm700_vm6, %v4599_v56  ;;  %v1898_v56 = vld [vmem:[%s5177_s20] sm:$0xff] }
 0x71d   :  { %3320 = vmatprep.mubr.msk.bf16.mxu1 %vm700_vm6, %v4607_v40  ;;  %v1899_v40 = vld [vmem:[%s5177_s20 + $0x8] sm:$0xff] }
 0x71e   :  { %v2532_v54 = vpack.c.bf16 %v1899_v40, %v1898_v56 }
 0x720   :  { %3346 = vmatprep.subr.bf16.mxu0 %v2532_v54 }
 0x724   :  { %3321 = vmatmul.mubr.msk.bf16.gmra.mrb[84].mxu1 %vm700_vm6, %v4605_v59  ;;  %v2876_v59 = vld [vmem:[%s5178_s19] ss:$0 sm:$0xff] }
 0x7ef   :  { %v3318_v57 = vpop.f32.mrb[80].mxu1 }
 0x7f0   :  { %v2377_v13 = vadd.f32 %v3318_v57, %v2876_v59  ;;  %v2338_v46 = vpop.f32.mrb[81].mxu1 }
 0x7f1   :  { %v2375_v41 = vadd.f32 %v2876_v59, %v2338_v46  ;;  %v3319_v26 = vpop.f32.mrb[82].mxu1 }
 0x7f2   :  { %2724 = vst.msk [vmem:[%s5179_s23 + $0x10] sm:$0xff] %vm700_vm6, %v2377_v13  ;;  %v2378_v24 = vadd.f32 %v3319_v26, %v2876_v59  ;;  %v2341_v30 = vpop.f32.mrb[83].mxu1 }
 0x7f3   :  { %2722 = vst.msk [vmem:[%s5179_s23] sm:$0xff] %vm700_vm6, %v2375_v41  ;;  %v2376_v45 = vadd.f32 %v2876_v59, %v2341_v30 }
 0x7f4   :  { %v2384_v0 = vpack.c.bf16 %v2378_v24, %v2377_v13  ;;  %2725 = vst.msk [vmem:[%s5179_s23 + $0x18] sm:$0xff] %vm700_vm6, %v2378_v24 }
 0x7f5   :  { %v2383_v63 = vpack.c.bf16 %v2376_v45, %v2375_v41  ;;  %2723 = vst.msk [vmem:[%s5179_s23 + $0x8] sm:$0xff] %vm700_vm6, %v2376_v45 }
 0x7f7   :  { %v3322_v43 = vpop.f32.mrb[84].mxu1  ;;  %3338 = vmatprep.mubr.msk.bf16.mxu0 %vm700_vm6, %v2383_v63 }
 0x7f8   :  { %v2381_v20 = vadd.f32 %v3322_v43, %v2876_v59  ;;  %v2354_v16 = vpop.f32.mrb[85].mxu1  ;;  %3339 = vmatmul.mubr.msk.bf16.vlgmr.msra.gmra.mrb[88].mxu0 %vm700_vm6, %v2384_v0 }
 0x7f9   :  { %v2379_v51 = vadd.f32 %v2876_v59, %v2354_v16  ;;  %3347 = vmatpush3.bf16.msra.mxu0 %v2532_v54  ;;  %v3323_v44 = vpop.f32.mrb[86].mxu1 }
 0x7fa   :  { %2728 = vst.msk [vmem:[%s5179_s23 + $0x30] sm:$0xff] %vm700_vm6, %v2381_v20  ;;  %v2382_v14 = vadd.f32 %v3323_v44, %v2876_v59  ;;  %v2357_v25 = vpop.f32.mrb[87].mxu1 }
 0x7fb   :  { %2726 = vst.msk [vmem:[%s5179_s23 + $0x20] sm:$0xff] %vm700_vm6, %v2379_v51  ;;  %v2380_v61 = vadd.f32 %v2876_v59, %v2357_v25 }
 0x7fc   :  { %v2386_v32 = vpack.c.bf16 %v2382_v14, %v2381_v20  ;;  %2729 = vst.msk [vmem:[%s5179_s23 + $0x38] sm:$0xff] %vm700_vm6, %v2382_v14 }
 0x7fd   :  { %v2385_v38 = vpack.c.bf16 %v2380_v61, %v2379_v51  ;;  %2727 = vst.msk [vmem:[%s5179_s23 + $0x28] sm:$0xff] %vm700_vm6, %v2380_v61 }
 0x7ff   :  { %3342 = vmatprep.mubr.msk.bf16.mxu0 %vm700_vm6, %v2385_v38 }
 0x800   :  { %3343 = vmatmul.mubr.msk.bf16.gmra.mrb[92].mxu0 %vm700_vm6, %v2386_v32 }
 0x801   :  { %3348 = vmatprep.mubr.msk.bf16.mxu0 %vm1076_vm1, %v2520_v7 }
 0x808   :  { %3349 = vmatmul.mubr.msk.bf16.vlgmr.msra.gmra.mrb[96].mxu0 %vm1076_vm1, %v2521_v18  ;;  %v2877_v18 = vld [vmem:[%s5180_s22] ss:$0 sm:$0xff] }
 0x809   :  { %3352 = vmatprep.mubr.msk.bf16.mxu0 %vm1076_vm1, %v2522_v37 }
 0x810   :  { %3353 = vmatmul.mubr.msk.bf16.gmra.mrb[100].mxu0 %vm1076_vm1, %v2523_v9 }
 0x811   :  { %3356 = vmatprep.mubr.msk.bf16.mxu0 %vm1076_vm1, %v2524_v62 }
 0x818   :  { %3357 = vmatmul.mubr.msk.bf16.gmra.mrb[104].mxu0 %vm1076_vm1, %v2525_v36 }
 0x819   :  { %3360 = vmatprep.mubr.msk.bf16.mxu0 %vm1076_vm1, %v2526_v15 }
 0x820   :  { %3361 = vmatmul.mubr.msk.bf16.gmra.mrb[108].mxu0 %vm1076_vm1, %v2527_v1 }
 0x821   :  { %3364 = vmatprep.mubr.msk.bf16.mxu0 %vm1076_vm1, %v2528_v31 }
 0x828   :  { %3365 = vmatmul.mubr.msk.bf16.gmra.mrb[112].mxu0 %vm1076_vm1, %v5212_v60 }
 0x829   :  { %3368 = vmatprep.mubr.msk.bf16.mxu0 %vm1076_vm1, %v5213_v3 }
 0x830   :  { %3369 = vmatmul.mubr.msk.bf16.gmra.mrb[116].mxu0 %vm1076_vm1, %v5214_v4 }
 0x8cb   :  { %v3340_v35 = vpop.f32.mrb[88].mxu0 }
 0x8cc   :  { %v2458_v7 = vadd.f32 %v3340_v35, %v2877_v18  ;;  %v2449_v23 = vpop.f32.mrb[89].mxu0 }
 0x8cd   :  { %v2450_v28 = vadd.f32 %v2877_v18, %v2449_v23  ;;  %v3341_v52 = vpop.f32.mrb[90].mxu0 }
 0x8ce   :  { %v2482_v9 = vsub.f32 0.0, %v2458_v7  ;;  %v2461_v8 = vadd.f32 %v3341_v52, %v2877_v18  ;;  %v2452_v37 = vpop.f32.mrb[91].mxu0 }
 0x8cf   :  { %v2480_v2 = vsub.f32 0.0, %v2450_v28  ;;  %v2453_v21 = vadd.f32 %v2877_v18, %v2452_v37 }
 0x8d0   :  { %v2492_v5 = vmul.f32 1.442695, %v2482_v9  ;;  %v2483_v36 = vsub.f32 0.0, %v2461_v8 }
 0x8d1   :  { %v2488_v48 = vmul.f32 1.442695, %v2480_v2  ;;  %v2481_v62 = vsub.f32 0.0, %v2453_v21 }
 0x8d2   :  { %3508 = vpow2.f32 %v2492_v5  ;;  %v2494_v34 = vmul.f32 1.442695, %v2483_v36 }
 0x8d3   :  { %3510 = vpow2.f32 %v2488_v48  ;;  %v2490_v11 = vmul.f32 1.442695, %v2481_v62  ;;  %v3344_v47 = vpop.f32.mrb[92].mxu0 }
 0x8d4   :  { %3512 = vpow2.f32 %v2494_v34  ;;  %v2474_v1 = vadd.f32 %v3344_v47, %v2877_v18  ;;  %v2465_v27 = vpop.f32.mrb[93].mxu0 }
 0x8d5   :  { %3514 = vpow2.f32 %v2490_v11  ;;  %v2466_v15 = vadd.f32 %v2877_v18, %v2465_v27  ;;  %v3345_v50 = vpop.f32.mrb[94].mxu0 }
 0x8d6   :  { %v2486_v58 = vsub.f32 0.0, %v2474_v1  ;;  %v2477_v22 = vadd.f32 %v3345_v50, %v2877_v18  ;;  %v2468_v19 = vpop.f32.mrb[95].mxu0 }
 0x8d7   :  { %v2484_v31 = vsub.f32 0.0, %v2466_v15  ;;  %v2469_v39 = vadd.f32 %v2877_v18, %v2468_v19 }
 0x8d8   :  { %v2500_v55 = vmul.f32 1.442695, %v2486_v58  ;;  %v2487_v10 = vsub.f32 0.0, %v2477_v22 }
 0x8d9   :  { %v2496_v12 = vmul.f32 1.442695, %v2484_v31  ;;  %v2485_v53 = vsub.f32 0.0, %v2469_v39 }
 0x8da   :  { %3516 = vpow2.f32 %v2500_v55  ;;  %v2502_v6 = vmul.f32 1.442695, %v2487_v10 }
 0x8db   :  { %3518 = vpow2.f32 %v2496_v12  ;;  %v2498_v49 = vmul.f32 1.442695, %v2485_v53  ;;  %v3350_v17 = vpop.f32.mrb[96].mxu0 }
 0x8dc   :  { %v3509_v33 = vpop.eup %3508  ;;  %3520 = vpow2.f32 %v2502_v6  ;;  %v2603_v29 = vpop.f32.mrb[97].mxu0 }
 0x8dd   :  { %v3511_v42 = vpop.eup %3510  ;;  %v2506_v56 = vadd.f32 1.0, %v3509_v33  ;;  %3522 = vpow2.f32 %v2498_v49  ;;  %v3351_v40 = vpop.f32.mrb[98].mxu0 }
 0x8de   :  { %v3513_v54 = vpop.eup %3512  ;;  %v2504_v59 = vadd.f32 1.0, %v3511_v42  ;;  %v2606_v57 = vpop.f32.mrb[99].mxu0 }
 0x8df   :  { %v3515_v13 = vpop.eup %3514  ;;  %3524 = vrcp.f32 %v2506_v56  ;;  %v2507_v46 = vadd.f32 1.0, %v3513_v54 }
 0x8e0   :  { %3526 = vrcp.f32 %v2504_v59  ;;  %v2505_v41 = vadd.f32 1.0, %v3515_v13 }
 0x8e1   :  { %3528 = vrcp.f32 %v2507_v46 }
 0x8e2   :  { %3530 = vrcp.f32 %v2505_v41 }
 0x8e3   :  { %v3354_v26 = vpop.f32.mrb[100].mxu0 }
 0x8e4   :  { %v3517_v24 = vpop.eup %3516  ;;  %v2619_v30 = vpop.f32.mrb[101].mxu0 }
 0x8e5   :  { %v3519_v45 = vpop.eup %3518  ;;  %v2510_v0 = vadd.f32 1.0, %v3517_v24  ;;  %v3355_v63 = vpop.f32.mrb[102].mxu0 }
 0x8e6   :  { %v3521_v43 = vpop.eup %3520  ;;  %v2508_v20 = vadd.f32 1.0, %v3519_v45  ;;  %v2622_v16 = vpop.f32.mrb[103].mxu0 }
 0x8e7   :  { %v3523_v51 = vpop.eup %3522  ;;  %3532 = vrcp.f32 %v2510_v0  ;;  %v2511_v44 = vadd.f32 1.0, %v3521_v43 }
 0x8e8   :  { %3534 = vrcp.f32 %v2508_v20  ;;  %v2509_v14 = vadd.f32 1.0, %v3523_v51 }
 0x8e9   :  { %v3525_v25 = vpop.eup %3524  ;;  %3536 = vrcp.f32 %v2511_v44 }
 0x8ea   :  { %v3527_v61 = vpop.eup %3526  ;;  %3538 = vrcp.f32 %v2509_v14  ;;  %v2700_v32 = vmul.f32 %v3525_v25, %v3350_v17 }
 0x8eb   :  { %v3529_v38 = vpop.eup %3528  ;;  %v2698_v60 = vmul.f32 %v3527_v61, %v2603_v29  ;;  %v3358_v3 = vpop.f32.mrb[104].mxu0 }
 0x8ec   :  { %v3531_v4 = vpop.eup %3530  ;;  %2732 = vst.msk [vmem:[%s5181_s24 + $0x10] sm:$0xff] %vm1076_vm1, %v2700_v32  ;;  %v2701_v18 = vmul.f32 %v3529_v38, %v3351_v40  ;;  %v2708_v35 = vmul.f32 %v3525_v25, %v3358_v3  ;;  %v2635_v7 = vpop.f32.mrb[105].mxu0 }
 0x8ed   :  { %2730 = vst.msk [vmem:[%s5181_s24] sm:$0xff] %vm1076_vm1, %v2698_v60  ;;  %v2699_v23 = vmul.f32 %v3531_v4, %v2606_v57  ;;  %v2706_v28 = vmul.f32 %v3527_v61, %v2635_v7  ;;  %v3359_v52 = vpop.f32.mrb[106].mxu0 }
 0x8ee   :  { %2733 = vst.msk [vmem:[%s5181_s24 + $0x18] sm:$0xff] %vm1076_vm1, %v2701_v18  ;;  %2896 = vst.msk [vmem:[%s5181_s24 + $0x50] sm:$0xff] %vm1076_vm1, %v2708_v35  ;;  %v2709_v9 = vmul.f32 %v3529_v38, %v3359_v52  ;;  %v2638_v8 = vpop.f32.mrb[107].mxu0 }
 0x8ef   :  { %2731 = vst.msk [vmem:[%s5181_s24 + $0x8] sm:$0xff] %vm1076_vm1, %v2699_v23  ;;  %2894 = vst.msk [vmem:[%s5181_s24 + $0x40] sm:$0xff] %vm1076_vm1, %v2706_v28  ;;  %v2707_v37 = vmul.f32 %v3531_v4, %v2638_v8 }
 0x8f0   :  { %2897 = vst.msk [vmem:[%s5181_s24 + $0x58] sm:$0xff] %vm1076_vm1, %v2709_v9 }
 0x8f1   :  { %v3533_v2 = vpop.eup %3532  ;;  %2895 = vst.msk [vmem:[%s5181_s24 + $0x48] sm:$0xff] %vm1076_vm1, %v2707_v37 }
 0x8f2   :  { %v3535_v21 = vpop.eup %3534  ;;  %v2704_v5 = vmul.f32 %v3533_v2, %v3354_v26 }
 0x8f3   :  { %v3537_v36 = vpop.eup %3536  ;;  %v2702_v48 = vmul.f32 %v3535_v21, %v2619_v30  ;;  %v3362_v62 = vpop.f32.mrb[108].mxu0 }
 0x8f4   :  { %v3539_v34 = vpop.eup %3538  ;;  %2736 = vst.msk [vmem:[%s5181_s24 + $0x30] sm:$0xff] %vm1076_vm1, %v2704_v5  ;;  %v2705_v11 = vmul.f32 %v3537_v36, %v3355_v63  ;;  %v2712_v47 = vmul.f32 %v3533_v2, %v3362_v62  ;;  %v2651_v1 = vpop.f32.mrb[109].mxu0 }
 0x8f5   :  { %2734 = vst.msk [vmem:[%s5181_s24 + $0x20] sm:$0xff] %vm1076_vm1, %v2702_v48  ;;  %v2703_v27 = vmul.f32 %v3539_v34, %v2622_v16  ;;  %v2710_v15 = vmul.f32 %v3535_v21, %v2651_v1  ;;  %v3363_v50 = vpop.f32.mrb[110].mxu0 }
 0x8f6   :  { %2737 = vst.msk [vmem:[%s5181_s24 + $0x38] sm:$0xff] %vm1076_vm1, %v2705_v11  ;;  %2900 = vst.msk [vmem:[%s5181_s24 + $0x70] sm:$0xff] %vm1076_vm1, %v2712_v47  ;;  %v2713_v58 = vmul.f32 %v3537_v36, %v3363_v50  ;;  %v2654_v22 = vpop.f32.mrb[111].mxu0 }
 0x8f7   :  { %2735 = vst.msk [vmem:[%s5181_s24 + $0x28] sm:$0xff] %vm1076_vm1, %v2703_v27  ;;  %2898 = vst.msk [vmem:[%s5181_s24 + $0x60] sm:$0xff] %vm1076_vm1, %v2710_v15  ;;  %v2711_v19 = vmul.f32 %v3539_v34, %v2654_v22 }
 0x8f8   :  { %2901 = vst.msk [vmem:[%s5181_s24 + $0x78] sm:$0xff] %vm1076_vm1, %v2713_v58 }
 0x8f9   :  { %2899 = vst.msk [vmem:[%s5181_s24 + $0x68] sm:$0xff] %vm1076_vm1, %v2711_v19 }
 0x8fb   :  { %v3366_v31 = vpop.f32.mrb[112].mxu0 }
 0x8fc   :  { %v2716_v39 = vmul.f32 %v3525_v25, %v3366_v31  ;;  %v2667_v55 = vpop.f32.mrb[113].mxu0 }
 0x8fd   :  { %v2714_v10 = vmul.f32 %v3527_v61, %v2667_v55  ;;  %v3367_v12 = vpop.f32.mrb[114].mxu0 }
 0x8fe   :  { %2904 = vst.msk [vmem:[%s5181_s24 + $0x90] sm:$0xff] %vm1076_vm1, %v2716_v39  ;;  %v2717_v53 = vmul.f32 %v3529_v38, %v3367_v12  ;;  %v2670_v6 = vpop.f32.mrb[115].mxu0 }
 0x8ff   :  { %2902 = vst.msk [vmem:[%s5181_s24 + $0x80] sm:$0xff] %vm1076_vm1, %v2714_v10  ;;  %v2715_v49 = vmul.f32 %v3531_v4, %v2670_v6 }
 0x900   :  { %2905 = vst.msk [vmem:[%s5181_s24 + $0x98] sm:$0xff] %vm1076_vm1, %v2717_v53 }
 0x901   :  { %2903 = vst.msk [vmem:[%s5181_s24 + $0x88] sm:$0xff] %vm1076_vm1, %v2715_v49 }
 0x903   :  { %v3370_v17 = vpop.f32.mrb[116].mxu0 }
 0x904   :  { %v2720_v33 = vmul.f32 %v3533_v2, %v3370_v17  ;;  %v2683_v29 = vpop.f32.mrb[117].mxu0 }
 0x905   :  { %v2718_v42 = vmul.f32 %v3535_v21, %v2683_v29  ;;  %v3371_v56 = vpop.f32.mrb[118].mxu0 }
 0x906   :  { %2908 = vst.msk [vmem:[%s5181_s24 + $0xb0] sm:$0xff] %vm1076_vm1, %v2720_v33  ;;  %v2721_v40 = vmul.f32 %v3537_v36, %v3371_v56  ;;  %v2686_v54 = vpop.f32.mrb[119].mxu0 }
 0x907   :  { %2906 = vst.msk [vmem:[%s5181_s24 + $0xa0] sm:$0xff] %vm1076_vm1, %v2718_v42  ;;  %v2719_v59 = vmul.f32 %v3539_v34, %v2686_v54 }
 0x908   :  { %2909 = vst.msk [vmem:[%s5181_s24 + $0xb8] sm:$0xff] %vm1076_vm1, %v2721_v40 }
 0x909   :  { %2907 = vst.msk [vmem:[%s5181_s24 + $0xa8] sm:$0xff] %vm1076_vm1, %v2719_v59 }

// kernel: lba_model_forward.16
= control target key start
LH: loop header
LB: loop body
LE: loop exit
PB: predicated region body
PF: predicated region fallthrough
CT: control target
= control target key end

     0   :  { %v2019_v0 = vmov 0.0   ;;  %vm2020_vm0 = vmmov 0   ;;  %vm92_vm1 = vcmask 523264   ;;  %vm318_vm2 = vcmask 818176   ;;  %s3227_s1 = inlined_call_operand.vmem [shape: f32[64,100], index: 1, kind: input, shape index: {}]   ;;  %s3228_s2 = inlined_call_operand.vmem [shape: f32[3,64,16], index: 2, kind: input, shape index: {}]   ;;  %s3229_s0 = inlined_call_operand.vmem [shape: f32[16,64], index: 0, kind: input, shape index: {}]   ;;  %s3230_s3 = inlined_call_operand.vmem [shape: f32[16,100], index: 3, kind: input, shape index: {}]   ;;  %s3231_s4 = inlined_call_operand.vmem [shape: f32[3,16,16], index: 4, kind: input, shape index: {}]   ;;  %s3232_s7 = inlined_call_operand.vmem [shape: f32[16,32], index: 7, kind: input, shape index: {}]   ;;  %s3233_s9 = inlined_call_operand.vmem [shape: f32[32,400], index: 9, kind: input, shape index: {}]   ;;  %s3234_s12 = inlined_call_operand.vmem [shape: f32[400,32], index: 12, kind: input, shape index: {}]   ;;  %s3235_s8 = inlined_call_operand.vmem [shape: f32[100,400], index: 8, kind: input, shape index: {}]   ;;  %s3236_s5 = inlined_call_operand.vmem [shape: f32[1,100], index: 5, kind: input, shape index: {}]   ;;  %s3237_s6 = inlined_call_operand.vmem [shape: f32[1,100], index: 6, kind: input, shape index: {}]   ;;  %s3238_s11 = inlined_call_operand.vmem [shape: f32[32,32], index: 11, kind: input, shape index: {}]   ;;  %s3239_s10 = inlined_call_operand.vmem [shape: f32[1,400], index: 10, kind: input, shape index: {}]   ;;  %s3240_s14 = inlined_call_operand.vmem [shape: f32[32,32], index: 14, kind: input, shape index: {}]   ;;  %s3241_s15 = inlined_call_operand.vmem [shape: f32[400,100], index: 15, kind: input, shape index: {}]   ;;  %s3242_s13 = inlined_call_operand.vmem [shape: f32[1,32], index: 13, kind: input, shape index: {}]   ;;  %s3243_s16 = inlined_call_operand.vmem [shape: f32[32,100], index: 16, kind: input, shape index: {}]   ;;  %s3244_s18 = inlined_call_operand.vmem [shape: f32[32,16], index: 18, kind: input, shape index: {}]   ;;  %s3245_s19 = inlined_call_operand.vmem [shape: f32[100,16], index: 19, kind: input, shape index: {}]   ;;  %s3246_s17 = inlined_call_operand.vmem [shape: f32[1,100], index: 17, kind: input, shape index: {}]   ;;  %s3247_s20 = inlined_call_operand.vmem [shape: f32[1,16], index: 20, kind: input, shape index: {}]   ;;  %s3248_s21 = inlined_call_operand.vmem [shape: f32[1,100], index: 21, kind: input, shape index: {}]   ;;  %s3249_s22 = inlined_call_operand.vmem [shape: f32[1,100], index: 22, kind: input, shape index: {}]   ;;  %s3250_s23 = inlined_call_operand.vmem [shape: f32[16,100], index: 23, kind: output, shape index: {0}]   ;;  %s3251_s24 = inlined_call_operand.vmem [shape: f32[3,16,16], index: 24, kind: output, shape index: {1}]  }
   0x1   :  { %3261 = sst [smem:[#allocation2_spill]] %s3227_s1  ;;  %1828 = vmatprep.subr.bf16.mxu0 %v2019_v0  ;;  %1840 = vmatprep.subr.bf16.mxu1 %v2019_v0  ;;  %vm374_vm3 = vcmask 130048   ;;  %vm652_vm8 = vcmask 261120   ;;  %vm745_vm9 = vcmask 1041408  }
   0x2   :  { %3262 = sst [smem:[#allocation3_spill]] %s3228_s2  ;;  %s3270_s27 = sld [smem:[#allocation2_spill]]  ;;  %1836 = vmatprep.mubr.msk.bf16.mxu0 %vm2020_vm0, %v2019_v0  ;;  %1848 = vmatprep.mubr.msk.bf16.mxu1 %vm2020_vm0, %v2019_v0 }
   0x3   :  { %3263 = sst [smem:[#allocation4_spill]] %s3229_s0  ;;  %s3271_s1 = sld [smem:[#allocation3_spill]] }
   0x4   :  { %3264 = sst [smem:[#allocation5_spill]] %s3230_s3  ;;  %s3272_s3 = sld [smem:[#allocation4_spill]] }
   0x5   :  { %3265 = sst [smem:[#allocation6_spill]] %s3231_s4  ;;  %s3273_s28 = sld [smem:[#allocation5_spill]] }
   0x6   :  { %3266 = sst [smem:[#allocation7_spill]] %s3232_s7  ;;  %s3274_s30 = sld [smem:[#allocation6_spill]] }
   0x7   :  { %3267 = sst [smem:[#allocation8_spill]] %s3233_s9  ;;  %s3275_s29 = sld [smem:[#allocation7_spill]] }
   0x8   :  { %3268 = sst [smem:[#allocation9_spill]] %s3234_s12  ;;  %v79_v1 = vld [vmem:[%s3270_s27] sm:$0xff]  ;;  %v80_v2 = vld [vmem:[%s3270_s27 + $0x8] sm:$0xff]  ;;  %v81_v6 = vld [vmem:[%s3270_s27 + $0x10] sm:$0xff] }
   0x9   :  { %3269 = sst [smem:[#allocation10_spill]] %s3235_s8  ;;  %v137_v3 = vld [vmem:[%s3271_s1] sm:$0xff]  ;;  %v88_v4 = vpack.c.bf16 %v80_v2, %v79_v1  ;;  %v138_v5 = vld [vmem:[%s3271_s1 + $0x8] sm:$0xff]  ;;  %v82_v7 = vld [vmem:[%s3270_s27 + $0x18] sm:$0xff]  ;;  %s3276_s8 = sld [smem:[#allocation8_spill]] }
   0xa   :  { %v145_v8 = vpack.c.bf16 %v138_v5, %v137_v3  ;;  %v139_v9 = vld [vmem:[%s3271_s1 + $0x10] sm:$0xff]  ;;  %v140_v10 = vld [vmem:[%s3271_s1 + $0x18] sm:$0xff]  ;;  %v89_v11 = vpack.c.bf16 %v82_v7, %v81_v6  ;;  %v83_v13 = vld [vmem:[%s3270_s27 + $0x20] sm:$0xff]  ;;  %s3278_s4 = sld [smem:[#allocation10_spill]] }
   0xb   :  { %1829 = vmatpush3.bf16.msra.mxu0 %v88_v4  ;;  %v146_v12 = vpack.c.bf16 %v140_v10, %v139_v9  ;;  %v84_v14 = vld [vmem:[%s3270_s27 + $0x28] sm:$0xff]  ;;  %v141_v15 = vld [vmem:[%s3271_s1 + $0x20] sm:$0xff]  ;;  %v85_v19 = vld [vmem:[%s3270_s27 + $0x30] sm:$0xff] }
   0xc   :  { %1841 = vmatpush3.bf16.msra.mxu1 %v145_v8  ;;  %1830 = vmatprep.subr.bf16.mxu0 %v2019_v0  ;;  %v142_v16 = vld [vmem:[%s3271_s1 + $0x28] sm:$0xff]  ;;  %v90_v17 = vpack.c.bf16 %v84_v14, %v83_v13  ;;  %v86_v20 = vld [vmem:[%s3270_s27 + $0x38] sm:$0xff]  ;;  %v143_v21 = vld [vmem:[%s3271_s1 + $0x30] sm:$0xff] }
   0xd   :  { %1842 = vmatprep.subr.bf16.mxu1 %v2019_v0  ;;  %v147_v18 = vpack.c.bf16 %v142_v16, %v141_v15  ;;  %v144_v22 = vld [vmem:[%s3271_s1 + $0x38] sm:$0xff]  ;;  %v91_v23 = vpack.c.bf16 %v86_v20, %v85_v19  ;;  %v77_v24 = vld [vmem:[%s3272_s3] sm:$0xff]  ;;  %v78_v25 = vld [vmem:[%s3272_s3 + $0x8] sm:$0xff] }
   0xe   :  { %v148_v26 = vpack.c.bf16 %v144_v22, %v143_v21  ;;  %v1679_v27 = vld [vmem:[%s3271_s1 + $0x40] sm:$0xff]  ;;  %v1680_v28 = vld [vmem:[%s3271_s1 + $0x48] sm:$0xff]  ;;  %v87_v31 = vpack.c.bf16 %v78_v25, %v77_v24  ;;  %v1681_v34 = vld [vmem:[%s3271_s1 + $0x50] sm:$0xff] }
   0xf   :  { %1831 = vmatpush3.bf16.msra.mxu0 %v89_v11  ;;  %v1688_v29 = vld [vmem:[%s3271_s1 + $0x80] sm:$0xff]  ;;  %v1689_v30 = vld [vmem:[%s3271_s1 + $0x88] sm:$0xff]  ;;  %v199_v32 = vpack.c.bf16 %v1680_v28, %v1679_v27  ;;  %v1682_v35 = vld [vmem:[%s3271_s1 + $0x58] sm:$0xff] }
  0x10   :  { %1843 = vmatpush3.bf16.msra.mxu1 %v146_v12  ;;  %1832 = vmatprep.subr.bf16.mxu0 %v2019_v0  ;;  %v253_v33 = vpack.c.bf16 %v1689_v30, %v1688_v29  ;;  %v1690_v36 = vld [vmem:[%s3271_s1 + $0x90] sm:$0xff]  ;;  %v1691_v37 = vld [vmem:[%s3271_s1 + $0x98] sm:$0xff]  ;;  %v200_v38 = vpack.c.bf16 %v1682_v35, %v1681_v34  ;;  %v1683_v40 = vld [vmem:[%s3271_s1 + $0x60] sm:$0xff] }
  0x11   :  { %1844 = vmatprep.subr.bf16.mxu1 %v2019_v0  ;;  %v254_v39 = vpack.c.bf16 %v1691_v37, %v1690_v36  ;;  %v1684_v41 = vld [vmem:[%s3271_s1 + $0x68] sm:$0xff]  ;;  %v1692_v42 = vld [vmem:[%s3271_s1 + $0xa0] sm:$0xff]  ;;  %v1685_v46 = vld [vmem:[%s3271_s1 + $0x70] sm:$0xff] }
  0x12   :  { %v1693_v43 = vld [vmem:[%s3271_s1 + $0xa8] sm:$0xff]  ;;  %v201_v44 = vpack.c.bf16 %v1684_v41, %v1683_v40  ;;  %v1686_v47 = vld [vmem:[%s3271_s1 + $0x78] sm:$0xff]  ;;  %v1694_v48 = vld [vmem:[%s3271_s1 + $0xb0] sm:$0xff] }
  0x13   :  { %1833 = vmatpush3.bf16.msra.mxu0 %v90_v17  ;;  %v255_v45 = vpack.c.bf16 %v1693_v43, %v1692_v42  ;;  %v1695_v49 = vld [vmem:[%s3271_s1 + $0xb8] sm:$0xff]  ;;  %v202_v50 = vpack.c.bf16 %v1686_v47, %v1685_v46  ;;  %v298_v52 = vld [vmem:[%s3273_s28] sm:$0xff]  ;;  %v299_v54 = vld [vmem:[%s3273_s28 + $0x8] sm:$0xff]  ;;  %s3277_s28 = sld [smem:[#allocation9_spill]] }
  0x14   :  { %1845 = vmatpush3.bf16.msra.mxu1 %v147_v18  ;;  %1834 = vmatprep.subr.bf16.mxu0 %v2019_v0  ;;  %v256_v51 = vpack.c.bf16 %v1695_v49, %v1694_v48  ;;  %v302_v3 = vld [vmem:[%s3274_s30] sm:$0xff]  ;;  %v303_v4 = vld [vmem:[%s3274_s30 + $0x8] sm:$0xff]  ;;  %v1697_v5 = vld [vmem:[%s3274_s30 + $0x10] sm:$0xff] }
  0x15   :  { %1846 = vmatprep.subr.bf16.mxu1 %v2019_v0  ;;  %v1699_v7 = vld [vmem:[%s3274_s30 + $0x20] sm:$0xff]  ;;  %v1698_v9 = vld [vmem:[%s3274_s30 + $0x18] sm:$0xff]  ;;  %v1700_v14 = vld [vmem:[%s3274_s30 + $0x28] sm:$0xff] }
  0x16   :  { %v392_v37 = vld [vmem:[%s3275_s29] sm:$0xff] }
  0x17   :  { %1835 = vmatpush3.bf16.msra.mxu0 %v91_v23 }
  0x18   :  { %1847 = vmatpush3.bf16.msra.mxu1 %v148_v26  ;;  %1852 = vmatprep.subr.bf16.mxu0 %v2019_v0 }
  0x19   :  { %1864 = vmatprep.subr.bf16.mxu1 %v2019_v0 }
  0x1a   :  { %1837 = vmatmul.mubr.msk.bf16.vlgmr.msra.gmra.mrb[0].mxu0 %vm92_vm1, %v87_v31 }
  0x1b   :  { %1849 = vmatmul.mubr.msk.bf16.vlgmr.msra.gmra.mrb[0].mxu1 %vm92_vm1, %v87_v31  ;;  %1853 = vmatpush3.bf16.msra.mxu0 %v199_v32 }
  0x1c   :  { %1865 = vmatpush3.bf16.msra.mxu1 %v253_v33  ;;  %1854 = vmatprep.subr.bf16.mxu0 %v2019_v0 }
  0x1d   :  { %1866 = vmatprep.subr.bf16.mxu1 %v2019_v0  ;;  %1860 = vmatprep.mubr.msk.bf16.mxu0 %vm2020_vm0, %v2019_v0 }
  0x1e   :  { %1872 = vmatprep.mubr.msk.bf16.mxu1 %vm2020_vm0, %v2019_v0 }
  0x1f   :  { %1855 = vmatpush3.bf16.msra.mxu0 %v200_v38  ;;  %v393_v38 = vld [vmem:[%s3275_s29 + $0x8] sm:$0xff] }
  0x20   :  { %1867 = vmatpush3.bf16.msra.mxu1 %v254_v39  ;;  %1856 = vmatprep.subr.bf16.mxu0 %v2019_v0  ;;  %v521_v39 = vpack.c.bf16 %v393_v38, %v392_v37  ;;  %v489_v37 = vld [vmem:[%s3277_s28 + $0xb0] sm:$0xff]  ;;  %v490_v38 = vld [vmem:[%s3277_s28 + $0xb8] sm:$0xff] }
  0x21   :  { %1868 = vmatprep.subr.bf16.mxu1 %v2019_v0 }
  0x23   :  { %1857 = vmatpush3.bf16.msra.mxu0 %v201_v44 }
  0x24   :  { %1869 = vmatpush3.bf16.msra.mxu1 %v255_v45  ;;  %1858 = vmatprep.subr.bf16.mxu0 %v2019_v0 }
  0x25   :  { %1870 = vmatprep.subr.bf16.mxu1 %v2019_v0 }
  0x27   :  { %1859 = vmatpush3.bf16.msra.mxu0 %v202_v50 }
  0x28   :  { %1871 = vmatpush3.bf16.msra.mxu1 %v256_v51  ;;  %1876 = vmatprep.subr.bf16.mxu0 %v2019_v0 }
  0x2a   :  { %1861 = vmatmul.mubr.msk.bf16.vlgmr.msra.gmra.mrb[4].mxu0 %vm92_vm1, %v87_v31 }
  0x2b   :  { %1873 = vmatmul.mubr.msk.bf16.vlgmr.msra.gmra.mrb[4].mxu1 %vm92_vm1, %v87_v31  ;;  %1878 = vmatprep.mubr.msk.bf16.mxu0 %vm2020_vm0, %v2019_v0 }
  0x2c   :  { %1877 = vmatpush3.bf16.msra.mxu0 %v521_v39 }
  0xed   :  { %v130_v53 = vpop.f32.mrb[0].mxu0 }
  0xee   :  { %v300_v55 = vadd.f32 %v298_v52, %v130_v53  ;;  %v183_v56 = vpop.f32.mrb[0].mxu1  ;;  %v1838_v57 = vpop.f32.mrb[1].mxu0 }
  0xef   :  { %v1850_v58 = vpop.f32.mrb[1].mxu1  ;;  %v133_v59 = vpop.f32.mrb[2].mxu0  ;;  %v310_v6 = vadd.f32 %v302_v3, %v183_v56  ;;  %v451_v3 = vld [vmem:[%s3276_s8 + $0x28] sm:$0xff] }
  0xf0   :  { %v301_v60 = vadd.f32 %v299_v54, %v133_v59  ;;  %v186_v61 = vpop.f32.mrb[2].mxu1  ;;  %v1839_v62 = vpop.f32.mrb[3].mxu0  ;;  %v319_v63 = vsel %vm318_vm2, %v300_v55, 0.0 }
  0xf1   :  { %v1851_v1 = vpop.f32.mrb[3].mxu1  ;;  %320 = vadd.xlane.f32.xlu1 %v319_v63  ;;  %v311_v10 = vadd.f32 %v303_v4, %v186_v61  ;;  %v362_v18 = vmul.f32 %v310_v6, %v310_v6  ;;  %v446_v4 = vld [vmem:[%s3276_s8] sm:$0xff] }
  0xf2   :  { %v322_v2 = vsel %vm318_vm2, %v301_v60, 0.0 }
  0xf3   :  { %v363_v26 = vmul.f32 %v311_v10, %v311_v10 }
  0xf5   :  { %323 = vadd.xlane.f32.xlu1 %v322_v2  ;;  %v447_v2 = vld [vmem:[%s3276_s8 + $0x8] sm:$0xff] }
  0xfd   :  { %v237_v8 = vpop.f32.mrb[4].mxu0 }
  0xfe   :  { %v312_v11 = vadd.f32 %v1697_v5, %v237_v8  ;;  %v291_v12 = vpop.f32.mrb[4].mxu1  ;;  %v1862_v13 = vpop.f32.mrb[5].mxu0  ;;  %v2021_v5 = vmov 0   ;;  %v455_v8 = vld [vmem:[%s3276_s8 + $0x48] sm:$0xff] }
  0xff   :  { %v314_v15 = vadd.f32 %v1699_v7, %v291_v12  ;;  %v1874_v16 = vpop.f32.mrb[5].mxu1  ;;  %v240_v17 = vpop.f32.mrb[6].mxu0  ;;  %688 = vmatprep.mubr.bf16.mxu1 %v2021_v5  ;;  %v450_v7 = vld [vmem:[%s3276_s8 + $0x20] sm:$0xff] }
 0x100   :  { %v364_v19 = vmul.f32 %v312_v11, %v312_v11  ;;  %v313_v20 = vadd.f32 %v1698_v9, %v240_v17  ;;  %v294_v21 = vpop.f32.mrb[6].mxu1  ;;  %v1863_v22 = vpop.f32.mrb[7].mxu0  ;;  %v459_v9 = vld [vmem:[%s3276_s8 + $0x68] sm:$0xff]  ;;  %v454_v12 = vld [vmem:[%s3276_s8 + $0x40] sm:$0xff] }
 0x101   :  { %v368_v23 = vmul.f32 %v314_v15, %v314_v15  ;;  %v315_v24 = vadd.f32 %v1700_v14, %v294_v21  ;;  %v1875_v25 = vpop.f32.mrb[7].mxu1  ;;  %v458_v13 = vld [vmem:[%s3276_s8 + $0x60] sm:$0xff]  ;;  %v449_v14 = vld [vmem:[%s3276_s8 + $0x18] sm:$0xff]  ;;  %v468_v22 = vld [vmem:[%s3277_s28 + $0x8] sm:$0xff] }
 0x102   :  { %v365_v27 = vmul.f32 %v313_v20, %v313_v20  ;;  %v366_v28 = vadd.f32 %v364_v19, %v362_v18  ;;  %v648_v16 = vpack.c.bf16 %v458_v13, %v454_v12  ;;  %v483_v18 = vld [vmem:[%s3277_s28 + $0x80] sm:$0xff]  ;;  %v484_v19 = vld [vmem:[%s3277_s28 + $0x88] sm:$0xff]  ;;  %v477_v12 = vld [vmem:[%s3277_s28 + $0x50] sm:$0xff] }
 0x103   :  { %v369_v30 = vmul.f32 %v315_v24, %v315_v24  ;;  %v893_v21 = vpack.c.bf16 %v484_v19, %v483_v18  ;;  %v478_v13 = vld [vmem:[%s3277_s28 + $0x58] sm:$0xff] }
 0x104   :  { %v367_v29 = vadd.f32 %v365_v27, %v363_v26  ;;  %v370_v31 = vadd.f32 %v368_v23, %v366_v28  ;;  %v485_v23 = vld [vmem:[%s3277_s28 + $0x90] sm:$0xff]  ;;  %v470_v28 = vld [vmem:[%s3277_s28 + $0x18] sm:$0xff] }
 0x105   :  { %v469_v27 = vld [vmem:[%s3277_s28 + $0x10] sm:$0xff]  ;;  %1758 = vmatprep.subr.bf16.mxu0 %v893_v21 }
 0x106   :  { %v372_v32 = vmax.f32 %v370_v31, 1e-08  ;;  %v371_v33 = vadd.f32 %v369_v30, %v367_v29  ;;  %v487_v29 = vld [vmem:[%s3277_s28 + $0xa0] sm:$0xff]  ;;  %v488_v30 = vld [vmem:[%s3277_s28 + $0xa8] sm:$0xff]  ;;  %v886_v31 = vpack.c.bf16 %v470_v28, %v469_v27 }
 0x108   :  { %v375_v34 = vsel %vm374_vm3, %v372_v32, 0.0  ;;  %v373_v35 = vmax.f32 %v371_v33, 1e-08  ;;  %v895_v33 = vpack.c.bf16 %v488_v30, %v487_v29 }
 0x109   :  { %376 = vadd.xlane.f32.xlu0 %v375_v34  ;;  %v471_v34 = vld [vmem:[%s3277_s28 + $0x20] sm:$0xff] }
 0x10a   :  { %v378_v36 = vsel %vm374_vm3, %v373_v35, 0.0  ;;  %v472_v35 = vld [vmem:[%s3277_s28 + $0x28] sm:$0xff] }
 0x10d   :  { %379 = vadd.xlane.f32.xlu0 %v378_v36 }
 0x17e   :  { %v321_v40 = vpop.xlane.xlu1 %320 }
 0x17f   :  { %v326_v41 = vmul.f32 0.01, %v321_v40 }
 0x181   :  { %v2314_v42 = vsub.f32 %v300_v55, %v326_v41 }
 0x182   :  { %v324_v43 = vpop.xlane.xlu1 %323 }
 0x183   :  { %v327_v44 = vmul.f32 0.01, %v324_v43  ;;  %v330_v45 = vmul.f32 %v2314_v42, %v2314_v42  ;;  %v887_v43 = vpack.c.bf16 %v472_v35, %v471_v34  ;;  %v452_v34 = vld [vmem:[%s3276_s8 + $0x30] sm:$0xff] }
 0x185   :  { %v2318_v46 = vsub.f32 %v301_v60, %v327_v44  ;;  %v332_v47 = vsel %vm318_vm2, %v330_v45, 0.0  ;;  %v896_v44 = vpack.c.bf16 %v490_v38, %v489_v37  ;;  %v473_v45 = vld [vmem:[%s3277_s28 + $0x30] sm:$0xff]  ;;  %v457_v37 = vld [vmem:[%s3276_s8 + $0x58] sm:$0xff] }
 0x186   :  { %333 = vadd.xlane.f32.xlu0 %v332_v47  ;;  %v474_v47 = vld [vmem:[%s3277_s28 + $0x38] sm:$0xff] }
 0x187   :  { %v331_v48 = vmul.f32 %v2318_v46, %v2318_v46  ;;  %v461_v38 = vld [vmem:[%s3276_s8 + $0x78] sm:$0xff] }
 0x189   :  { %v335_v49 = vsel %vm318_vm2, %v331_v48, 0.0  ;;  %v491_v48 = vld [vmem:[%s3277_s28 + $0xc0] sm:$0xff] }
 0x18a   :  { %336 = vadd.xlane.f32.xlu1 %v335_v49  ;;  %v492_v49 = vld [vmem:[%s3277_s28 + $0xc8] sm:$0xff] }
 0x196   :  { %v377_v50 = vpop.xlane.xlu0 %376 }
 0x197   :  { %v382_v51 = vmul.f32 0.0625, %v377_v50  ;;  %v888_v50 = vpack.c.bf16 %v474_v47, %v473_v45 }
 0x199   :  { %1979 = vrsqrt.f32 %v382_v51  ;;  %v475_v51 = vld [vmem:[%s3277_s28 + $0x40] sm:$0xff] }
 0x19a   :  { %v380_v52 = vpop.xlane.xlu0 %379 }
 0x19b   :  { %v383_v53 = vmul.f32 0.0625, %v380_v52  ;;  %v476_v52 = vld [vmem:[%s3277_s28 + $0x48] sm:$0xff] }
 0x19d   :  { %1981 = vrsqrt.f32 %v383_v53 }
 0x1a3   :  { %v1980_v54 = vpop.eup %1979 }
 0x1a4   :  { %v2324_v56 = vmul.f32 %v1980_v54, %v310_v6  ;;  %v2335_v60 = vmul.f32 %v1980_v54, %v312_v11  ;;  %v2344_v63 = vmul.f32 %v1980_v54, %v314_v15  ;;  %v645_v6 = vpack.c.bf16 %v451_v3, %v447_v2  ;;  %v453_v15 = vld [vmem:[%s3276_s8 + $0x38] sm:$0xff] }
 0x1a5   :  { %v649_v11 = vpack.c.bf16 %v459_v9, %v455_v8  ;;  %v647_v17 = vpack.c.bf16 %v453_v15, %v449_v14  ;;  %v897_v54 = vpack.c.bf16 %v492_v49, %v491_v48  ;;  %v494_v2 = vld [vmem:[%s3277_s28 + $0xd8] sm:$0xff]  ;;  %v890_v15 = vpack.c.bf16 %v478_v13, %v477_v12  ;;  %v402_v13 = vld [vmem:[%s3278_s4 + $0x40] sm:$0xff] }
 0x1a6   :  { %656 = vmatprep.subr.bf16.mxu1 %v645_v6  ;;  %v651_v49 = vpack.c.bf16 %v461_v38, %v457_v37  ;;  %v430_v37 = vld [vmem:[%s3278_s4 + $0x120] sm:$0xff] }
 0x1a7   :  { %v1982_v55 = vpop.eup %1981 }
 0x1a8   :  { %v2326_v57 = vmul.f32 %v1982_v55, %v311_v10  ;;  %v2333_v59 = vmul.f32 %v1982_v55, %v313_v20  ;;  %v2342_v62 = vmul.f32 %v1982_v55, %v315_v24  ;;  %v644_v10 = vpack.c.bf16 %v450_v7, %v446_v4  ;;  %v467_v20 = vld [vmem:[%s3277_s28] sm:$0xff]  ;;  %v486_v24 = vld [vmem:[%s3277_s28 + $0x98] sm:$0xff] }
 0x1a9   :  { %v885_v25 = vpack.c.bf16 %v468_v22, %v467_v20  ;;  %v894_v26 = vpack.c.bf16 %v486_v24, %v485_v23  ;;  %v889_v4 = vpack.c.bf16 %v476_v52, %v475_v51  ;;  %v460_v51 = vld [vmem:[%s3276_s8 + $0x70] sm:$0xff]  ;;  %v395_v52 = vld [vmem:[%s3278_s4 + $0x8] sm:$0xff] }
 0x1aa   :  { %v518_v58 = vpack.c.bf16 %v2326_v57, %v2324_v56  ;;  %v519_v61 = vpack.c.bf16 %v2333_v59, %v2335_v60  ;;  %v520_v1 = vpack.c.bf16 %v2342_v62, %v2344_v63  ;;  %657 = vmatpush1.bf16.msra.mxu1 %v644_v10 }
 0x1ab   :  { %658 = vmatprep.subr.bf16.mxu1 %v649_v11 }
 0x1ac   :  { %1879 = vmatmul.mubr.msk.bf16.vlgmr.msra.gmra.mrb[8].mxu0 %vm374_vm3, %v518_v58 }
 0x1ad   :  { %1882 = vmatprep.mubr.msk.bf16.mxu0 %vm2020_vm0, %v2019_v0  ;;  %1759 = vmatpush3.bf16.msra.mxu0 %v885_v25 }
 0x1ae   :  { %659 = vmatpush1.bf16.msra.mxu1 %v648_v16  ;;  %1760 = vmatprep.subr.bf16.mxu0 %v894_v26 }
 0x1af   :  { %699 = vmatprep.subr.bf16.mxu1 %v647_v17 }
 0x1b1   :  { %1761 = vmatpush3.bf16.msra.mxu0 %v886_v31 }
 0x1b2   :  { %1762 = vmatprep.subr.bf16.mxu0 %v895_v33  ;;  %v448_v33 = vld [vmem:[%s3276_s8 + $0x10] sm:$0xff] }
 0x1b3   :  { %v646_v45 = vpack.c.bf16 %v452_v34, %v448_v33  ;;  %v431_v33 = vld [vmem:[%s3278_s4 + $0x128] sm:$0xff] }
 0x1b4   :  { %1883 = vmatmul.mubr.msk.bf16.gmra.mrb[12].mxu0 %vm374_vm3, %v519_v61 }
 0x1b5   :  { %1886 = vmatprep.mubr.msk.bf16.mxu0 %vm2020_vm0, %v2019_v0  ;;  %1763 = vmatpush3.bf16.msra.mxu0 %v887_v43 }
 0x1b6   :  { %1764 = vmatprep.subr.bf16.mxu0 %v896_v44 }
 0x1b9   :  { %1765 = vmatpush3.bf16.msra.mxu0 %v888_v50  ;;  %v456_v50 = vld [vmem:[%s3276_s8 + $0x50] sm:$0xff] }
 0x1ba   :  { %1766 = vmatprep.subr.bf16.mxu0 %v897_v54  ;;  %v399_v54 = vld [vmem:[%s3278_s4 + $0x28] sm:$0xff] }
 0x1bc   :  { %1887 = vmatmul.mubr.msk.bf16.gmra.mrb[16].mxu0 %vm374_vm3, %v520_v1  ;;  %v493_v1 = vld [vmem:[%s3277_s28 + $0xd0] sm:$0xff] }
 0x1bd   :  { %v898_v11 = vpack.c.bf16 %v494_v2, %v493_v1  ;;  %1767 = vmatpush3.bf16.msra.mxu0 %v889_v4  ;;  %v616_v1 = vpack.c.bf16 %v399_v54, %v395_v52  ;;  %v394_v2 = vld [vmem:[%s3278_s4] sm:$0xff] }
 0x1be   :  { %v398_v4 = vld [vmem:[%s3278_s4 + $0x20] sm:$0xff] }
 0x1bf   :  { %1768 = vmatprep.subr.bf16.mxu0 %v898_v11  ;;  %v615_v11 = vpack.c.bf16 %v398_v4, %v394_v2  ;;  %v442_v52 = vld [vmem:[%s3278_s4 + $0x180] sm:$0xf]  ;;  %v397_v2 = vld [vmem:[%s3278_s4 + $0x18] sm:$0xff] }
 0x1c0   :  { %v1701_v54 = vld [vmem:[%s3236_s5] ss:$0 sm:$0xff]  ;;  %v401_v4 = vld [vmem:[%s3278_s4 + $0x38] sm:$0xff] }
 0x1c1   :  { %1769 = vmatpush3.bf16.msra.mxu0 %v890_v15 }
 0x217   :  { %v337_v47 = vpop.xlane.xlu1 %336 }
 0x27f   :  { %v2410_v32 = vpop.f32.mrb[8].mxu0 }
 0x280   :  { %v1880_v36 = vpop.f32.mrb[9].mxu0  ;;  %v588_v55 = vmul.f32 %v2410_v32, %v2410_v32 }
 0x281   :  { %v2424_v39 = vpop.f32.mrb[10].mxu0 }
 0x282   :  { %v1011_v40 = vpack.c.bf16 %v2424_v39, %v2410_v32  ;;  %v1881_v41 = vpop.f32.mrb[11].mxu0  ;;  %v589_v6 = vmul.f32 %v2424_v39, %v2424_v39  ;;  %v1090_v32 = vld [vmem:[%s3240_s14 + $0x10] sm:$0xff]  ;;  %v1091_v39 = vld [vmem:[%s3240_s14 + $0x18] sm:$0xff] }
 0x287   :  { %v2446_v53 = vpop.f32.mrb[12].mxu0 }
 0x288   :  { %v590_v58 = vmul.f32 %v2446_v53, %v2446_v53  ;;  %v1884_v61 = vpop.f32.mrb[13].mxu0 }
 0x289   :  { %v2458_v3 = vpop.f32.mrb[14].mxu0  ;;  %v650_v61 = vpack.c.bf16 %v460_v51, %v456_v50  ;;  %v438_v50 = vld [vmem:[%s3278_s4 + $0x160] sm:$0xff]  ;;  %v443_v51 = vld [vmem:[%s3278_s4 + $0x188] sm:$0xf] }
 0x28a   :  { %v592_v7 = vadd.f32 %v590_v58, %v588_v55  ;;  %v591_v8 = vmul.f32 %v2458_v3, %v2458_v3  ;;  %v1012_v9 = vpack.c.bf16 %v2458_v3, %v2446_v53  ;;  %v1885_v10 = vpop.f32.mrb[15].mxu0  ;;  %v334_v55 = vpop.xlane.xlu0 %333  ;;  %v339_v58 = vmul.f32 0.01, %v337_v47  ;;  %v496_v53 = vld [vmem:[%s3277_s28 + $0xe8] sm:$0xff] }
 0x28c   :  { %v593_v14 = vadd.f32 %v591_v8, %v589_v6  ;;  %v338_v6 = vmul.f32 0.01, %v334_v55  ;;  %v407_v8 = vld [vmem:[%s3278_s4 + $0x68] sm:$0xff]  ;;  %v341_v10 = vadd.f32 1e-05, %v339_v58 }
 0x28e   :  { %v340_v15 = vadd.f32 1e-05, %v338_v6  ;;  %v1702_v6 = vld [vmem:[%s3237_s6] ss:$0 sm:$0xff] }
 0x28f   :  { %v2472_v16 = vpop.f32.mrb[16].mxu0 }
 0x290   :  { %v594_v17 = vmul.f32 %v2472_v16, %v2472_v16  ;;  %v1888_v18 = vpop.f32.mrb[17].mxu0 }
 0x291   :  { %v2476_v19 = vpop.f32.mrb[18].mxu0  ;;  %v415_v18 = vld [vmem:[%s3278_s4 + $0xa8] sm:$0xff] }
 0x292   :  { %v596_v20 = vadd.f32 %v594_v17, %v592_v7  ;;  %v595_v21 = vmul.f32 %v2476_v19, %v2476_v19  ;;  %v1013_v22 = vpack.c.bf16 %v2476_v19, %v2472_v16  ;;  %v1889_v23 = vpop.f32.mrb[19].mxu0  ;;  %v403_v7 = vld [vmem:[%s3278_s4 + $0x48] sm:$0xff] }
 0x293   :  { %v620_v12 = vpack.c.bf16 %v407_v8, %v403_v7  ;;  %v411_v17 = vld [vmem:[%s3278_s4 + $0x88] sm:$0xff]  ;;  %v410_v23 = vld [vmem:[%s3278_s4 + $0x80] sm:$0xff] }
 0x294   :  { %v598_v24 = vmax.f32 %v596_v20, 1e-08  ;;  %v597_v25 = vadd.f32 %v595_v21, %v593_v14  ;;  %v406_v14 = vld [vmem:[%s3278_s4 + $0x60] sm:$0xff]  ;;  %v624_v21 = vpack.c.bf16 %v415_v18, %v411_v17  ;;  %v480_v16 = vld [vmem:[%s3277_s28 + $0x68] sm:$0xff] }
 0x295   :  { %v619_v20 = vpack.c.bf16 %v406_v14, %v402_v13  ;;  %v405_v13 = vld [vmem:[%s3278_s4 + $0x58] sm:$0xff] }
 0x296   :  { %1983 = vrsqrt.f32 %v598_v24  ;;  %v599_v26 = vmax.f32 %v597_v25, 1e-08  ;;  %vm602_vm4 = vcmp.eq.f32.partialorder %v598_v24, inf  ;;  %v605_v35 = vand.u32 2147483648, %v598_v24  ;;  %v419_v25 = vld [vmem:[%s3278_s4 + $0xc8] sm:$0xff]  ;;  %v409_v14 = vld [vmem:[%s3278_s4 + $0x78] sm:$0xff] }
 0x297   :  { %vm604_vm6 = vcmp.eq.f32.partialorder %v598_v24, 0.0 }
 0x298   :  { %1985 = vrsqrt.f32 %v599_v26  ;;  %vm609_vm5 = vcmp.eq.f32.partialorder %v599_v26, inf  ;;  %v612_v36 = vand.u32 2147483648, %v599_v26  ;;  %vm611_vm7 = vcmp.eq.f32.partialorder %v599_v26, 0.0 }
 0x299   :  { %1987 = vrsqrt.f32 %v341_v10  ;;  %v618_v10 = vpack.c.bf16 %v401_v4, %v397_v2  ;;  %v463_v2 = vld [vmem:[%s3238_s11] sm:$0xff]  ;;  %v464_v4 = vld [vmem:[%s3238_s11 + $0x8] sm:$0xff] }
 0x29a   :  { %1989 = vrsqrt.f32 %v340_v15 }
 0x2a0   :  { %v1984_v27 = vpop.eup %1983 }
 0x2a1   :  { %v601_v28 = vmul.f32 %v1984_v27, %v598_v24 }
 0x2a2   :  { %v1986_v29 = vpop.eup %1985 }
 0x2a3   :  { %v603_v30 = vsel %vm602_vm4, %v598_v24, %v601_v28  ;;  %v608_v31 = vmul.f32 %v1986_v29, %v599_v26  ;;  %v414_v24 = vld [vmem:[%s3278_s4 + $0xa0] sm:$0xff]  ;;  %v1988_v38 = vpop.eup %1987 }
 0x2a4   :  { %v606_v43 = vsel %vm604_vm6, %v605_v35, %v603_v30  ;;  %v623_v27 = vpack.c.bf16 %v414_v24, %v410_v23  ;;  %v418_v29 = vld [vmem:[%s3278_s4 + $0xc0] sm:$0xff]  ;;  %v345_v47 = vmul.f32 %v1988_v38, %v2318_v46  ;;  %v408_v23 = vld [vmem:[%s3278_s4 + $0x70] sm:$0xff]  ;;  %v413_v24 = vld [vmem:[%s3278_s4 + $0x98] sm:$0xff] }
 0x2a5   :  { %v610_v41 = vsel %vm609_vm5, %v599_v26, %v608_v31  ;;  %v423_v26 = vld [vmem:[%s3278_s4 + $0xe8] sm:$0xff]  ;;  %v422_v30 = vld [vmem:[%s3278_s4 + $0xe0] sm:$0xff]  ;;  %v433_v38 = vld [vmem:[%s3278_s4 + $0x138] sm:$0xff] }
 0x2a6   :  { %v613_v44 = vsel %vm611_vm7, %v612_v36, %v610_v41  ;;  %v628_v28 = vpack.c.bf16 %v423_v26, %v419_v25  ;;  %v427_v31 = vld [vmem:[%s3278_s4 + $0x108] sm:$0xff]  ;;  %v627_v34 = vpack.c.bf16 %v422_v30, %v418_v29  ;;  %v426_v36 = vld [vmem:[%s3278_s4 + $0x100] sm:$0xff]  ;;  %v353_v58 = vmul.f32 %v1701_v54, %v345_v47  ;;  %v417_v25 = vld [vmem:[%s3278_s4 + $0xb8] sm:$0xff] }
 0x2a7   :  { %v643_v48 = vpack.c.bf16 %v613_v44, %v606_v43  ;;  %v632_v35 = vpack.c.bf16 %v431_v33, %v427_v31  ;;  %v435_v41 = vld [vmem:[%s3278_s4 + $0x148] sm:$0xff]  ;;  %v1990_v44 = vpop.eup %1989  ;;  %v416_v29 = vld [vmem:[%s3278_s4 + $0xb0] sm:$0xff]  ;;  %v421_v30 = vld [vmem:[%s3278_s4 + $0xd8] sm:$0xff] }
 0x2a8   :  { %v439_v43 = vld [vmem:[%s3278_s4 + $0x168] sm:$0xff]  ;;  %v344_v46 = vmul.f32 %v1990_v44, %v2314_v42  ;;  %v2598_v8 = vadd.f32 %v1702_v6, %v353_v58  ;;  %v425_v31 = vld [vmem:[%s3278_s4 + $0xf8] sm:$0xff]  ;;  %v428_v44 = vld [vmem:[%s3278_s4 + $0x110] sm:$0xff] }
 0x2a9   :  { %1706 = vmatmul.mubr.msk.bf16.vlgmr.msra.gmra.mrb[8].mxu1 %vm652_vm8, %v643_v48  ;;  %v437_v47 = vld [vmem:[%s3278_s4 + $0x158] sm:$0xff] }
 0x2aa   :  { %700 = vmatpush1.bf16.msra.mxu1 %v646_v45  ;;  %731 = vmatprep.mubr.bf16.mxu1 %v2021_v5  ;;  %v631_v45 = vpack.c.bf16 %v430_v37, %v426_v36  ;;  %v352_v42 = vmul.f32 %v1701_v54, %v344_v46  ;;  %v424_v36 = vld [vmem:[%s3278_s4 + $0xf0] sm:$0xff]  ;;  %v429_v37 = vld [vmem:[%s3278_s4 + $0x118] sm:$0xff] }
 0x2ab   :  { %701 = vmatprep.subr.bf16.mxu1 %v651_v49  ;;  %v434_v49 = vld [vmem:[%s3278_s4 + $0x140] sm:$0xff]  ;;  %v445_v46 = vld [vmem:[%s3278_s4 + $0x198] sm:$0xf]  ;;  %v444_v54 = vld [vmem:[%s3278_s4 + $0x190] sm:$0xf] }
 0x2ac   :  { %v635_v55 = vpack.c.bf16 %v438_v50, %v434_v49  ;;  %v2612_v15 = vadd.f32 %v1702_v6, %v352_v42  ;;  %v642_v58 = vpack.c.bf16 %v445_v46, %v445_v46  ;;  %v2686_v42 = vpack.c.bf16 %v464_v4, %v463_v2  ;;  %v465_v6 = vld [vmem:[%s3238_s11 + $0x10] sm:$0xff]  ;;  %v506_v2 = vld [vmem:[%s3277_s28 + $0x138] sm:$0xff] }
 0x2ae   :  { %702 = vmatpush1.bf16.msra.mxu1 %v650_v61  ;;  %v640_v61 = vpack.c.bf16 %v443_v51, %v443_v51  ;;  %v614_v18 = vpack.c.bf16 %v2598_v8, %v2612_v15  ;;  %v436_v51 = vld [vmem:[%s3278_s4 + $0x150] sm:$0xff] }
 0x2af   :  { %758 = vmatprep.subr.bf16.mxu1 %v616_v1  ;;  %v639_v1 = vpack.c.bf16 %v442_v52, %v442_v52  ;;  %v440_v52 = vld [vmem:[%s3278_s4 + $0x170] sm:$0xff] }
 0x2b1   :  { %1707 = vmatmul.mubr.msk.bf16.vlgmr.msra.gmra.mrb[12].mxu1 %vm652_vm8, %v643_v48  ;;  %v636_v48 = vpack.c.bf16 %v439_v43, %v435_v41  ;;  %v747_v7 = vsel %vm745_vm9, %v639_v1, 0  ;;  %v634_v43 = vpack.c.bf16 %v433_v38, %v429_v37  ;;  %v500_v37 = vld [vmem:[%s3277_s28 + $0x108] sm:$0xff] }
 0x2b2   :  { %759 = vmatpush1.bf16.msra.mxu1 %v615_v11  ;;  %790 = vmatprep.mubr.bf16.mxu1 %v2021_v5  ;;  %v396_v11 = vld [vmem:[%s3278_s4 + $0x10] sm:$0xff] }
 0x2b3   :  { %760 = vmatprep.subr.bf16.mxu1 %v620_v12  ;;  %v400_v12 = vld [vmem:[%s3278_s4 + $0x30] sm:$0xff] }
 0x2b4   :  { %v617_v17 = vpack.c.bf16 %v400_v12, %v396_v11  ;;  %v495_v11 = vld [vmem:[%s3277_s28 + $0xe0] sm:$0xff]  ;;  %v498_v12 = vld [vmem:[%s3277_s28 + $0xf8] sm:$0xff] }
 0x2b5   :  { %v899_v3 = vpack.c.bf16 %v496_v53, %v495_v11 }
 0x2b6   :  { %761 = vmatpush1.bf16.msra.mxu1 %v619_v20  ;;  %v622_v20 = vpack.c.bf16 %v409_v14, %v405_v13  ;;  %v481_v14 = vld [vmem:[%s3277_s28 + $0x70] sm:$0xff] }
 0x2b7   :  { %762 = vmatprep.subr.bf16.mxu1 %v624_v21  ;;  %v404_v21 = vld [vmem:[%s3278_s4 + $0x50] sm:$0xff]  ;;  %1770 = vmatprep.subr.bf16.mxu0 %v899_v3 }
 0x2b8   :  { %v621_v26 = vpack.c.bf16 %v408_v23, %v404_v21 }
 0x2ba   :  { %763 = vmatpush1.bf16.msra.mxu1 %v623_v27  ;;  %v626_v27 = vpack.c.bf16 %v417_v25, %v413_v24  ;;  %v462_v24 = vld [vmem:[%s3239_s10] sm:$0xf] }
 0x2bb   :  { %764 = vmatprep.subr.bf16.mxu1 %v628_v28  ;;  %v412_v28 = vld [vmem:[%s3278_s4 + $0x90] sm:$0xff] }
 0x2bc   :  { %v625_v33 = vpack.c.bf16 %v416_v29, %v412_v28 }
 0x2be   :  { %765 = vmatpush1.bf16.msra.mxu1 %v627_v34  ;;  %v630_v34 = vpack.c.bf16 %v425_v31, %v421_v30 }
 0x2bf   :  { %766 = vmatprep.subr.bf16.mxu1 %v632_v35  ;;  %v420_v35 = vld [vmem:[%s3278_s4 + $0xd0] sm:$0xff] }
 0x2c0   :  { %v629_v41 = vpack.c.bf16 %v424_v36, %v420_v35  ;;  %v499_v36 = vld [vmem:[%s3277_s28 + $0x100] sm:$0xff] }
 0x2c2   :  { %767 = vmatpush1.bf16.msra.mxu1 %v631_v45  ;;  %v432_v45 = vld [vmem:[%s3278_s4 + $0x130] sm:$0xff] }
 0x2c3   :  { %768 = vmatprep.subr.bf16.mxu1 %v636_v48  ;;  %v441_v48 = vld [vmem:[%s3278_s4 + $0x178] sm:$0xff]  ;;  %v633_v49 = vpack.c.bf16 %v432_v45, %v428_v44 }
 0x2c4   :  { %v638_v50 = vpack.c.bf16 %v441_v48, %v437_v47 }
 0x2c6   :  { %769 = vmatpush1.bf16.msra.mxu1 %v635_v55  ;;  %v637_v55 = vpack.c.bf16 %v440_v52, %v436_v51  ;;  %v501_v51 = vld [vmem:[%s3277_s28 + $0x110] sm:$0xff]  ;;  %v502_v52 = vld [vmem:[%s3277_s28 + $0x118] sm:$0xff] }
 0x2c7   :  { %1708 = vmatprep.subr.msk.bf16.mxu1 %vm745_vm9, %v640_v61  ;;  %v641_v61 = vpack.c.bf16 %v444_v54, %v444_v54  ;;  %v902_v54 = vpack.c.bf16 %v502_v52, %v501_v51 }
 0x2c9   :  { %v753_v1 = vsel %vm745_vm9, %v641_v61, 0 }
 0x2ca   :  { %771 = vmatpush1.bf16.msra.mxu1 %v747_v7  ;;  %v466_v7 = vld [vmem:[%s3238_s11 + $0x18] sm:$0xff] }
 0x2cb   :  { %801 = vmatprep.subr.bf16.mxu1 %v618_v10  ;;  %v2697_v10 = vpack.c.bf16 %v466_v7, %v465_v6  ;;  %v507_v6 = vld [vmem:[%s3277_s28 + $0x140] sm:$0xff]  ;;  %v508_v7 = vld [vmem:[%s3277_s28 + $0x148] sm:$0xff] }
 0x2cc   :  { %v905_v53 = vpack.c.bf16 %v508_v7, %v507_v6 }
 0x2cd   :  { %1709 = vmatmul.mubr.msk.bf16.vlgmr.msra.gmra.mrb[8].mxu1 %vm318_vm2, %v614_v18 }
 0x2ce   :  { %802 = vmatpush1.bf16.msra.mxu1 %v617_v17  ;;  %833 = vmatprep.mubr.bf16.mxu1 %v2021_v5  ;;  %v482_v17 = vld [vmem:[%s3277_s28 + $0x78] sm:$0xff] }
 0x2cf   :  { %803 = vmatprep.subr.bf16.mxu1 %v622_v20  ;;  %v845_v20 = vlaneseq }
 0x2d1   :  { %v846_v21 = vshrl.u32 %v845_v20, 7 }
 0x2d2   :  { %804 = vmatpush1.bf16.msra.mxu1 %v621_v26 }
 0x2d3   :  { %805 = vmatprep.subr.bf16.mxu1 %v626_v27  ;;  %v847_v23 = vsub.s32 0, %v846_v21  ;;  %v851_v25 = vsub.s32 1, %v846_v21  ;;  %v855_v11 = vsub.s32 2, %v846_v21  ;;  %v859_v3 = vsub.s32 3, %v846_v21 }
 0x2d5   :  { %v848_v26 = vrot.slane %v462_v24, %v847_v23  ;;  %v852_v27 = vrot.slane %v462_v24, %v851_v25 }
 0x2d6   :  { %806 = vmatpush1.bf16.msra.mxu1 %v625_v33 }
 0x2d7   :  { %807 = vmatprep.subr.bf16.mxu1 %v630_v34 }
 0x2da   :  { %808 = vmatpush1.bf16.msra.mxu1 %v629_v41 }
 0x2db   :  { %809 = vmatprep.subr.bf16.mxu1 %v634_v43 }
 0x2de   :  { %810 = vmatpush1.bf16.msra.mxu1 %v633_v49  ;;  %v901_v49 = vpack.c.bf16 %v500_v37, %v499_v36 }
 0x2df   :  { %811 = vmatprep.subr.bf16.mxu1 %v638_v50 }
 0x2e2   :  { %812 = vmatpush1.bf16.msra.mxu1 %v637_v55  ;;  %v503_v55 = vld [vmem:[%s3277_s28 + $0x120] sm:$0xff] }
 0x2e3   :  { %1710 = vmatprep.subr.msk.bf16.mxu1 %vm745_vm9, %v642_v58  ;;  %v504_v58 = vld [vmem:[%s3277_s28 + $0x128] sm:$0xff] }
 0x2e4   :  { %v903_v61 = vpack.c.bf16 %v504_v58, %v503_v55 }
 0x2e6   :  { %814 = vmatpush1.bf16.msra.mxu1 %v753_v1  ;;  %v505_v1 = vld [vmem:[%s3277_s28 + $0x130] sm:$0xff] }
 0x2e7   :  { %1964 = vmatprep.subr.bf16.mxu1 %v2019_v0  ;;  %v904_v4 = vpack.c.bf16 %v506_v2, %v505_v1  ;;  %v1109_v2 = vld [vmem:[%s3241_s15 + $0x88] sm:$0xff] }
 0x2e9   :  { %1711 = vmatmul.mubr.msk.bf16.vlgmr.msra.gmra.mrb[12].mxu1 %vm318_vm2, %v614_v18  ;;  %v892_v18 = vpack.c.bf16 %v482_v17, %v481_v14  ;;  %v512_v14 = vld [vmem:[%s3277_s28 + $0x168] sm:$0xff] }
 0x2ea   :  { %1966 = vmatpush3.bf16.msra.mxu1 %v2686_v42  ;;  %1898 = vmatprep.mubr.msk.bf16.mxu1 %vm2020_vm0, %v2019_v0 }
 0x2eb   :  { %1965 = vmatprep.subr.bf16.mxu1 %v2019_v0 }
 0x2ee   :  { %1967 = vmatpush3.bf16.msra.mxu1 %v2697_v10 }
 0x2ef   :  { %1922 = vmatprep.subr.bf16.mxu1 %v2019_v0 }
 0x2f1   :  { %1899 = vmatmul.mubr.msk.bf16.vlgmr.msra.gmra.mrb[16].mxu1 %vm652_vm8, %v1012_v9  ;;  %v479_v9 = vld [vmem:[%s3277_s28 + $0x60] sm:$0xff] }
 0x2f2   :  { %1902 = vmatprep.mubr.msk.bf16.mxu1 %vm2020_vm0, %v2019_v0  ;;  %v891_v19 = vpack.c.bf16 %v480_v16, %v479_v9  ;;  %v509_v9 = vld [vmem:[%s3277_s28 + $0x150] sm:$0xff]  ;;  %v510_v16 = vld [vmem:[%s3277_s28 + $0x158] sm:$0xff] }
 0x2f4   :  { %1771 = vmatpush3.bf16.msra.mxu0 %v891_v19  ;;  %v856_v19 = vrot.slane %v462_v24, %v855_v11 }
 0x2f9   :  { %1903 = vmatmul.mubr.msk.bf16.gmra.mrb[20].mxu1 %vm652_vm8, %v1013_v22  ;;  %v497_v22 = vld [vmem:[%s3277_s28 + $0xf0] sm:$0xff] }
 0x2fa   :  { %1926 = vmatprep.mubr.msk.bf16.mxu1 %vm2020_vm0, %v2019_v0  ;;  %v900_v13 = vpack.c.bf16 %v498_v12, %v497_v22  ;;  %v860_v22 = vrot.slane %v462_v24, %v859_v3  ;;  %v906_v12 = vpack.c.bf16 %v510_v16, %v509_v9  ;;  %v1712_v16 = vld [vmem:[%s3242_s13] ss:$0 sm:$0xff] }
 0x2fc   :  { %1772 = vmatprep.subr.bf16.mxu0 %v900_v13  ;;  %v511_v13 = vld [vmem:[%s3277_s28 + $0x160] sm:$0xff] }
 0x2fd   :  { %1773 = vmatpush3.bf16.msra.mxu0 %v892_v18  ;;  %v907_v25 = vpack.c.bf16 %v512_v14, %v511_v13 }
 0x2fe   :  { %960 = vmatprep.subr.bf16.mxu0 %v2021_v5 }
 0x3a0   :  { %v792_v28 = vpop.f32.mrb[8].mxu1 }
 0x3a1   :  { %v865_v29 = vadd.f32 %v848_v26, %v792_v28  ;;  %v794_v30 = vpop.f32.mrb[9].mxu1  ;;  %v514_v28 = vld [vmem:[%s3277_s28 + $0x178] sm:$0xff] }
 0x3a2   :  { %v866_v31 = vadd.f32 %v852_v27, %v794_v30  ;;  %v796_v33 = vpop.f32.mrb[10].mxu1 }
 0x3a3   :  { %v869_v34 = vadd.f32 %v848_v26, %v796_v33  ;;  %v798_v35 = vpop.f32.mrb[11].mxu1  ;;  %v873_v41 = vmax.f32 %v865_v29, 0.0 }
 0x3a4   :  { %v870_v38 = vadd.f32 %v852_v27, %v798_v35  ;;  %v874_v45 = vmax.f32 %v866_v31, 0.0  ;;  %v513_v27 = vld [vmem:[%s3277_s28 + $0x170] sm:$0xff] }
 0x3a5   :  { %v877_v43 = vmax.f32 %v869_v34, 0.0  ;;  %v881_v44 = vpack.c.bf16 %v869_v34, %v865_v29  ;;  %v908_v37 = vpack.c.bf16 %v514_v28, %v513_v27 }
 0x3a6   :  { %v878_v47 = vmax.f32 %v870_v38, 0.0  ;;  %v882_v48 = vpack.c.bf16 %v870_v38, %v866_v31 }
 0x3a7   :  { %v2750_v50 = vpack.c.bf16 %v877_v43, %v873_v41  ;;  %v515_v41 = vld [vmem:[%s3277_s28 + $0x180] sm:$0xff]  ;;  %v516_v43 = vld [vmem:[%s3277_s28 + $0x188] sm:$0xff] }
 0x3a8   :  { %951 = vmatprep.mubr.bf16.mxu0 %v882_v48  ;;  %v2758_v46 = vpack.c.bf16 %v878_v47, %v874_v45 }
 0x3a9   :  { %952 = vmatmul.mubr.bf16.vlgmr.msra.gmra.mrb[20].mxu0 %v881_v44 }
 0x3aa   :  { %961 = vmatpush1.bf16.msra.mxu0 %v901_v49  ;;  %v909_v49 = vpack.c.bf16 %v516_v43, %v515_v41  ;;  %v1093_v41 = vld [vmem:[%s3241_s15 + $0x8] sm:$0xff] }
 0x3ab   :  { %962 = vmatprep.subr.bf16.mxu0 %v2021_v5 }
 0x3ae   :  { %963 = vmatpush1.bf16.msra.mxu0 %v902_v54 }
 0x3af   :  { %964 = vmatprep.subr.bf16.mxu0 %v2021_v5 }
 0x3b2   :  { %965 = vmatpush1.bf16.msra.mxu0 %v903_v61  ;;  %v1089_v61 = vld [vmem:[%s3240_s14 + $0x8] sm:$0xff] }
 0x3b3   :  { %966 = vmatprep.subr.bf16.mxu0 %v2021_v5 }
 0x3b6   :  { %967 = vmatpush1.bf16.msra.mxu0 %v904_v4 }
 0x3b7   :  { %968 = vmatprep.subr.bf16.mxu0 %v2021_v5 }
 0x3ba   :  { %969 = vmatpush1.bf16.msra.mxu0 %v905_v53 }
 0x3bb   :  { %970 = vmatprep.subr.bf16.mxu0 %v2021_v5 }
 0x3bc   :  { %v835_v17 = vpop.f32.mrb[12].mxu1 }
 0x3bd   :  { %v867_v18 = vadd.f32 %v856_v19, %v835_v17  ;;  %v837_v20 = vpop.f32.mrb[13].mxu1 }
 0x3be   :  { %v868_v21 = vadd.f32 %v860_v22, %v837_v20  ;;  %971 = vmatpush1.bf16.msra.mxu0 %v906_v12  ;;  %v839_v23 = vpop.f32.mrb[14].mxu1 }
 0x3bf   :  { %v871_v26 = vadd.f32 %v856_v19, %v839_v23  ;;  %v841_v24 = vpop.f32.mrb[15].mxu1  ;;  %972 = vmatprep.subr.bf16.mxu0 %v2021_v5  ;;  %v875_v30 = vmax.f32 %v867_v18, 0.0 }
 0x3c0   :  { %v872_v29 = vadd.f32 %v860_v22, %v841_v24  ;;  %v876_v34 = vmax.f32 %v868_v21, 0.0 }
 0x3c1   :  { %v879_v31 = vmax.f32 %v871_v26, 0.0  ;;  %v883_v33 = vpack.c.bf16 %v871_v26, %v867_v18 }
 0x3c2   :  { %v880_v35 = vmax.f32 %v872_v29, 0.0  ;;  %v884_v36 = vpack.c.bf16 %v872_v29, %v868_v21  ;;  %973 = vmatpush1.bf16.msra.mxu0 %v907_v25 }
 0x3c3   :  { %v2802_v38 = vpack.c.bf16 %v879_v31, %v875_v30  ;;  %974 = vmatprep.subr.bf16.mxu0 %v2021_v5 }
 0x3c4   :  { %v2811_v44 = vpack.c.bf16 %v880_v35, %v876_v34  ;;  %1713 = vmatprep.mubr.msk.bf16.mxu0 %vm374_vm3, %v884_v36  ;;  %v2814_v45 = vpop.f32.mrb[16].mxu1 }
 0x3c5   :  { %v1900_v47 = vpop.f32.mrb[17].mxu1 }
 0x3c6   :  { %975 = vmatpush1.bf16.msra.mxu0 %v908_v37  ;;  %v2816_v48 = vpop.f32.mrb[18].mxu1  ;;  %v1092_v37 = vld [vmem:[%s3241_s15] sm:$0xff] }
 0x3c7   :  { %v1901_v51 = vpop.f32.mrb[19].mxu1  ;;  %976 = vmatprep.subr.bf16.mxu0 %v2021_v5 }
 0x3c8   :  { %v1110_v51 = vld [vmem:[%s3241_s15 + $0x90] sm:$0xff] }
 0x3ca   :  { %977 = vmatpush1.bf16.msra.mxu0 %v909_v49 }
 0x3cb   :  { %1890 = vmatprep.subr.bf16.mxu0 %v2019_v0 }
 0x3cc   :  { %v2820_v52 = vpop.f32.mrb[20].mxu1 }
 0x3cd   :  { %993 = vmatmul.mubr.bf16.vlgmr.msra.gmra.mrb[24].mxu0 %v883_v33  ;;  %v1904_v54 = vpop.f32.mrb[21].mxu1 }
 0x3ce   :  { %1891 = vmatpush3.bf16.msra.mxu0 %v2686_v42  ;;  %v2823_v55 = vpop.f32.mrb[22].mxu1  ;;  %1894 = vmatprep.mubr.msk.bf16.mxu0 %vm2020_vm0, %v2019_v0  ;;  %v1088_v42 = vld [vmem:[%s3240_s14] sm:$0xff]  ;;  %v1111_v54 = vld [vmem:[%s3241_s15 + $0x98] sm:$0xff] }
 0x3cf   :  { %v1905_v58 = vpop.f32.mrb[23].mxu1  ;;  %1892 = vmatprep.subr.bf16.mxu0 %v2019_v0  ;;  %v1168_v1 = vpack.c.bf16 %v1089_v61, %v1088_v42 }
 0x3d2   :  { %1893 = vmatpush3.bf16.msra.mxu0 %v2697_v10  ;;  %v1108_v10 = vld [vmem:[%s3241_s15 + $0x80] sm:$0xff] }
 0x3d3   :  { %1906 = vmatprep.subr.bf16.mxu0 %v2019_v0  ;;  %v1274_v4 = vpack.c.bf16 %v1109_v2, %v1108_v10  ;;  %v1112_v2 = vld [vmem:[%s3241_s15 + $0xa0] sm:$0xff] }
 0x3d5   :  { %1895 = vmatmul.mubr.msk.bf16.vlgmr.msra.gmra.mrb[28].mxu0 %vm652_vm8, %v1011_v40  ;;  %v1169_v40 = vpack.c.bf16 %v1091_v39, %v1090_v32  ;;  %v1275_v39 = vpack.c.bf16 %v1111_v54, %v1110_v51  ;;  %v1144_v54 = vld [vmem:[%s3243_s16 + $0x10] sm:$0xff] }
 0x3d6   :  { %1910 = vmatprep.mubr.msk.bf16.mxu0 %vm2020_vm0, %v2019_v0  ;;  %1907 = vmatpush3.bf16.msra.mxu0 %v1168_v1  ;;  %v1266_v1 = vpack.c.bf16 %v1093_v41, %v1092_v37  ;;  %v1106_v37 = vld [vmem:[%s3241_s15 + $0x70] sm:$0xff]  ;;  %v1107_v41 = vld [vmem:[%s3241_s15 + $0x78] sm:$0xff] }
 0x3d7   :  { %1908 = vmatprep.subr.bf16.mxu0 %v2019_v0 }
 0x3da   :  { %1909 = vmatpush3.bf16.msra.mxu0 %v1169_v40 }
 0x3db   :  { %1793 = vmatprep.subr.bf16.mxu0 %v1274_v4 }
 0x47c   :  { %v1774_v6 = vpop.f32.mrb[20].mxu0 }
 0x47d   :  { %v1775_v7 = vpop.f32.mrb[21].mxu0 }
 0x47e   :  { %v1776_v11 = vadd.f32 %v1775_v7, %v1774_v6  ;;  %v1777_v53 = vpop.f32.mrb[22].mxu0  ;;  %v1096_v6 = vld [vmem:[%s3241_s15 + $0x20] sm:$0xff]  ;;  %v1097_v7 = vld [vmem:[%s3241_s15 + $0x28] sm:$0xff] }
 0x47f   :  { %v1778_v3 = vpop.f32.mrb[23].mxu0 }
 0x480   :  { %v1779_v9 = vadd.f32 %v1778_v3, %v1777_v53  ;;  %v954_v19 = vadd.f32 %v1776_v11, %v1712_v16  ;;  %v1114_v11 = vld [vmem:[%s3241_s15 + $0xb0] sm:$0xff]  ;;  %v1115_v53 = vld [vmem:[%s3241_s15 + $0xb8] sm:$0xff]  ;;  %v1268_v3 = vpack.c.bf16 %v1097_v7, %v1096_v6 }
 0x482   :  { %v957_v14 = vadd.f32 %v1779_v9, %v1712_v16  ;;  %v1277_v9 = vpack.c.bf16 %v1115_v53, %v1114_v11  ;;  %v1098_v16 = vld [vmem:[%s3241_s15 + $0x30] sm:$0xff] }
 0x4a0   :  { %v994_v22 = vpop.f32.mrb[24].mxu0 }
 0x4a1   :  { %v995_v12 = vadd.f32 %v994_v22, %v954_v19  ;;  %v996_v13 = vpop.f32.mrb[25].mxu0  ;;  %v1099_v19 = vld [vmem:[%s3241_s15 + $0x38] sm:$0xff]  ;;  %v1116_v22 = vld [vmem:[%s3241_s15 + $0xc0] sm:$0xff] }
 0x4a2   :  { %v997_v17 = vpop.f32.mrb[26].mxu0  ;;  %v1269_v13 = vpack.c.bf16 %v1099_v19, %v1098_v16 }
 0x4a3   :  { %v1001_v18 = vsub.f32 0.0, %v995_v12  ;;  %v998_v20 = vadd.f32 %v997_v17, %v957_v14  ;;  %v999_v21 = vpop.f32.mrb[27].mxu0  ;;  %v1117_v12 = vld [vmem:[%s3241_s15 + $0xc8] sm:$0xff]  ;;  %v1100_v17 = vld [vmem:[%s3241_s15 + $0x40] sm:$0xff] }
 0x4a4   :  { %v1278_v14 = vpack.c.bf16 %v1117_v12, %v1116_v22  ;;  %v1119_v21 = vld [vmem:[%s3241_s15 + $0xd8] sm:$0xff] }
 0x4a5   :  { %v1003_v23 = vmul.f32 1.442695, %v1001_v18  ;;  %v1002_v25 = vsub.f32 0.0, %v998_v20  ;;  %v1101_v18 = vld [vmem:[%s3241_s15 + $0x48] sm:$0xff]  ;;  %v1118_v20 = vld [vmem:[%s3241_s15 + $0xd0] sm:$0xff] }
 0x4a7   :  { %1991 = vpow2.f32 %v1003_v23  ;;  %v1005_v26 = vmul.f32 1.442695, %v1002_v25  ;;  %v1270_v23 = vpack.c.bf16 %v1101_v18, %v1100_v17  ;;  %v1279_v25 = vpack.c.bf16 %v1119_v21, %v1118_v20 }
 0x4a8   :  { %v1059_v24 = vpop.f32.mrb[28].mxu0 }
 0x4a9   :  { %1993 = vpow2.f32 %v1005_v26  ;;  %v1896_v27 = vpop.f32.mrb[29].mxu0  ;;  %v1102_v26 = vld [vmem:[%s3241_s15 + $0x50] sm:$0xff] }
 0x4aa   :  { %v1062_v28 = vpop.f32.mrb[30].mxu0  ;;  %v1120_v27 = vld [vmem:[%s3241_s15 + $0xe0] sm:$0xff] }
 0x4ab   :  { %v1897_v29 = vpop.f32.mrb[31].mxu0 }
 0x4b1   :  { %v1992_v30 = vpop.eup %1991 }
 0x4b2   :  { %v1007_v31 = vadd.f32 1.0, %v1992_v30 }
 0x4b3   :  { %v1994_v33 = vpop.eup %1993 }
 0x4b4   :  { %1995 = vrcp.f32 %v1007_v31  ;;  %v1008_v34 = vadd.f32 1.0, %v1994_v33  ;;  %v1104_v31 = vld [vmem:[%s3241_s15 + $0x60] sm:$0xff]  ;;  %v1105_v33 = vld [vmem:[%s3241_s15 + $0x68] sm:$0xff] }
 0x4b6   :  { %1997 = vrcp.f32 %v1008_v34  ;;  %v1122_v34 = vld [vmem:[%s3241_s15 + $0xf0] sm:$0xff] }
 0x4be   :  { %v1996_v35 = vpop.eup %1995 }
 0x4bf   :  { %v1082_v36 = vmul.f32 %v1996_v35, %v1059_v24  ;;  %v1084_v43 = vmul.f32 %v1996_v35, %v2814_v45  ;;  %v1086_v47 = vmul.f32 %v1996_v35, %v2820_v52  ;;  %v1094_v45 = vld [vmem:[%s3241_s15 + $0x10] sm:$0xff]  ;;  %v1095_v52 = vld [vmem:[%s3241_s15 + $0x18] sm:$0xff] }
 0x4c0   :  { %v1998_v49 = vpop.eup %1997  ;;  %v1103_v24 = vld [vmem:[%s3241_s15 + $0x58] sm:$0xff] }
 0x4c1   :  { %v1083_v58 = vmul.f32 %v1998_v49, %v1062_v28  ;;  %v1085_v42 = vmul.f32 %v1998_v49, %v2816_v48  ;;  %v1087_v61 = vmul.f32 %v1998_v49, %v2823_v55  ;;  %v1113_v48 = vld [vmem:[%s3241_s15 + $0xa8] sm:$0xff]  ;;  %v1267_v55 = vpack.c.bf16 %v1095_v52, %v1094_v45  ;;  %v1123_v35 = vld [vmem:[%s3241_s15 + $0xf8] sm:$0xff] }
 0x4c2   :  { %v1276_v4 = vpack.c.bf16 %v1113_v48, %v1112_v2  ;;  %v1121_v28 = vld [vmem:[%s3241_s15 + $0xe8] sm:$0xff]  ;;  %v1271_v29 = vpack.c.bf16 %v1103_v24, %v1102_v26 }
 0x4c3   :  { %v1165_v32 = vpack.c.bf16 %v1083_v58, %v1082_v36  ;;  %v1166_v40 = vpack.c.bf16 %v1085_v42, %v1084_v43  ;;  %v1167_v10 = vpack.c.bf16 %v1087_v61, %v1086_v47  ;;  %v1280_v30 = vpack.c.bf16 %v1121_v28, %v1120_v27  ;;  %v1142_v47 = vld [vmem:[%s3243_s16] sm:$0xff]  ;;  %v1143_v49 = vld [vmem:[%s3243_s16 + $0x8] sm:$0xff] }
 0x4c4   :  { %v1281_v36 = vpack.c.bf16 %v1123_v35, %v1122_v34  ;;  %v1273_v43 = vpack.c.bf16 %v1107_v41, %v1106_v37  ;;  %v1292_v51 = vpack.c.bf16 %v1143_v49, %v1142_v47  ;;  %v1125_v34 = vld [vmem:[%s3241_s15 + $0x108] sm:$0xff]  ;;  %v1126_v49 = vld [vmem:[%s3241_s15 + $0x110] sm:$0xff] }
 0x4c5   :  { %1911 = vmatmul.mubr.msk.bf16.vlgmr.msra.gmra.mrb[32].mxu0 %vm652_vm8, %v1165_v32 }
 0x4c6   :  { %1794 = vmatpush3.bf16.msra.mxu0 %v1266_v1  ;;  %1914 = vmatprep.mubr.msk.bf16.mxu0 %vm2020_vm0, %v2019_v0 }
 0x4c7   :  { %1795 = vmatprep.subr.bf16.mxu0 %v1275_v39  ;;  %1923 = vmatpush3.bf16.msra.mxu1 %v1292_v51  ;;  %v1127_v51 = vld [vmem:[%s3241_s15 + $0x118] sm:$0xff] }
 0x4c8   :  { %1924 = vmatprep.subr.bf16.mxu1 %v2019_v0 }
 0x4ca   :  { %1796 = vmatpush3.bf16.msra.mxu0 %v1267_v55 }
 0x4cb   :  { %1797 = vmatprep.subr.bf16.mxu0 %v1276_v4 }
 0x4cd   :  { %1915 = vmatmul.mubr.msk.bf16.gmra.mrb[36].mxu0 %vm652_vm8, %v1166_v40 }
 0x4ce   :  { %1798 = vmatpush3.bf16.msra.mxu0 %v1268_v3  ;;  %1918 = vmatprep.mubr.msk.bf16.mxu0 %vm2020_vm0, %v2019_v0 }
 0x4cf   :  { %1799 = vmatprep.subr.bf16.mxu0 %v1277_v9 }
 0x4d2   :  { %1800 = vmatpush3.bf16.msra.mxu0 %v1269_v13 }
 0x4d3   :  { %1801 = vmatprep.subr.bf16.mxu0 %v1278_v14 }
 0x4d5   :  { %1919 = vmatmul.mubr.msk.bf16.gmra.mrb[40].mxu0 %vm652_vm8, %v1167_v10 }
 0x4d6   :  { %1802 = vmatpush3.bf16.msra.mxu0 %v1270_v23  ;;  %1373 = vmatprep.mubr.bf16.mxu0 %v2758_v46  ;;  %v1272_v46 = vpack.c.bf16 %v1105_v33, %v1104_v31  ;;  %v1124_v33 = vld [vmem:[%s3241_s15 + $0x100] sm:$0xff] }
 0x4d7   :  { %1803 = vmatprep.subr.bf16.mxu0 %v1279_v25 }
 0x4da   :  { %1804 = vmatpush3.bf16.msra.mxu0 %v1271_v29 }
 0x4db   :  { %1805 = vmatprep.subr.bf16.mxu0 %v1280_v30 }
 0x4de   :  { %1806 = vmatpush3.bf16.msra.mxu0 %v1272_v46 }
 0x4df   :  { %1807 = vmatprep.subr.bf16.mxu0 %v1281_v36 }
 0x4e2   :  { %1808 = vmatpush3.bf16.msra.mxu0 %v1273_v43  ;;  %v1282_v43 = vpack.c.bf16 %v1125_v34, %v1124_v33  ;;  %v1161_v34 = vld [vmem:[%s3245_s19 + $0x50] sm:$0xff] }
 0x4e3   :  { %1930 = vmatprep.subr.bf16.mxu0 %v2019_v0 }
 0x4e5   :  { %1374 = vmatmul.mubr.bf16.vlgmr.msra.gmra.mrb[44].mxu0 %v2750_v50  ;;  %v1145_v50 = vld [vmem:[%s3243_s16 + $0x18] sm:$0xff] }
 0x4e6   :  { %1944 = vmatprep.mubr.msk.bf16.mxu0 %vm2020_vm0, %v2019_v0  ;;  %v1293_v58 = vpack.c.bf16 %v1145_v50, %v1144_v54  ;;  %v1283_v54 = vpack.c.bf16 %v1127_v51, %v1126_v49  ;;  %v1128_v50 = vld [vmem:[%s3241_s15 + $0x120] sm:$0xff] }
 0x4e8   :  { %1925 = vmatpush3.bf16.msra.mxu1 %v1293_v58  ;;  %v1129_v58 = vld [vmem:[%s3241_s15 + $0x128] sm:$0xff] }
 0x4e9   :  { %1382 = vmatprep.subr.bf16.mxu1 %v2021_v5 }
 0x598   :  { %v2978_v42 = vpop.f32.mrb[32].mxu0 }
 0x599   :  { %v1912_v61 = vpop.f32.mrb[33].mxu0  ;;  %v1236_v52 = vmul.f32 %v2978_v42, %v2978_v42 }
 0x59a   :  { %v2980_v1 = vpop.f32.mrb[34].mxu0  ;;  %v1284_v61 = vpack.c.bf16 %v1129_v58, %v1128_v50  ;;  %v1722_v58 = vld [vmem:[%s3246_s17] ss:$0 sm:$0xff] }
 0x59b   :  { %v1502_v32 = vpack.c.bf16 %v2980_v1, %v2978_v42  ;;  %v1913_v39 = vpop.f32.mrb[35].mxu0  ;;  %v1237_v48 = vmul.f32 %v2980_v1, %v2980_v1  ;;  %v1152_v42 = vld [vmem:[%s3245_s19 + $0x8] sm:$0xff]  ;;  %v1153_v1 = vld [vmem:[%s3245_s19 + $0x10] sm:$0xff] }
 0x59c   :  { %v1130_v39 = vld [vmem:[%s3241_s15 + $0x130] sm:$0xff] }
 0x5a0   :  { %v2984_v45 = vpop.f32.mrb[36].mxu0 }
 0x5a1   :  { %v1238_v40 = vmul.f32 %v2984_v45, %v2984_v45  ;;  %v1916_v10 = vpop.f32.mrb[37].mxu0 }
 0x5a2   :  { %v2990_v2 = vpop.f32.mrb[38].mxu0  ;;  %v1133_v10 = vld [vmem:[%s3241_s15 + $0x148] sm:$0xff] }
 0x5a3   :  { %v1240_v55 = vadd.f32 %v1238_v40, %v1236_v52  ;;  %v1239_v4 = vmul.f32 %v2990_v2, %v2990_v2  ;;  %v1503_v6 = vpack.c.bf16 %v2990_v2, %v2984_v45  ;;  %v1917_v7 = vpop.f32.mrb[39].mxu0  ;;  %v1132_v40 = vld [vmem:[%s3241_s15 + $0x140] sm:$0xff]  ;;  %v1154_v45 = vld [vmem:[%s3245_s19 + $0x18] sm:$0xff] }
 0x5a4   :  { %v1433_v2 = vpack.c.bf16 %v1154_v45, %v1153_v1 }
 0x5a5   :  { %v1241_v11 = vadd.f32 %v1239_v4, %v1237_v48  ;;  %v1286_v48 = vpack.c.bf16 %v1133_v10, %v1132_v40  ;;  %v1135_v4 = vld [vmem:[%s3241_s15 + $0x158] sm:$0xff] }
 0x5a8   :  { %v2998_v53 = vpop.f32.mrb[40].mxu0 }
 0x5a9   :  { %v1242_v3 = vmul.f32 %v2998_v53, %v2998_v53  ;;  %v1920_v9 = vpop.f32.mrb[41].mxu0 }
 0x5aa   :  { %v3002_v16 = vpop.f32.mrb[42].mxu0 }
 0x5ab   :  { %v1244_v19 = vadd.f32 %v1242_v3, %v1240_v55  ;;  %v1243_v22 = vmul.f32 %v3002_v16, %v3002_v16  ;;  %v1504_v12 = vpack.c.bf16 %v3002_v16, %v2998_v53  ;;  %v1921_v13 = vpop.f32.mrb[43].mxu0  ;;  %v1134_v55 = vld [vmem:[%s3241_s15 + $0x150] sm:$0xff]  ;;  %v1137_v3 = vld [vmem:[%s3241_s15 + $0x168] sm:$0xff] }
 0x5ac   :  { %v1287_v7 = vpack.c.bf16 %v1135_v4, %v1134_v55  ;;  %v1156_v53 = vld [vmem:[%s3245_s19 + $0x28] sm:$0xff] }
 0x5ad   :  { %v1246_v14 = vmax.f32 %v1244_v19, 1e-08  ;;  %v1245_v17 = vadd.f32 %v1243_v22, %v1241_v11  ;;  %v1136_v11 = vld [vmem:[%s3241_s15 + $0x160] sm:$0xff]  ;;  %v1138_v19 = vld [vmem:[%s3241_s15 + $0x170] sm:$0xff]  ;;  %v1139_v22 = vld [vmem:[%s3241_s15 + $0x178] sm:$0xff] }
 0x5ae   :  { %v1288_v9 = vpack.c.bf16 %v1137_v3, %v1136_v11  ;;  %v1289_v13 = vpack.c.bf16 %v1139_v22, %v1138_v19 }
 0x5af   :  { %1999 = vrsqrt.f32 %v1246_v14  ;;  %v1247_v18 = vmax.f32 %v1245_v17, 1e-08  ;;  %vm1250_vm10 = vcmp.eq.f32.partialorder %v1246_v14, inf  ;;  %v1253_v35 = vand.u32 2147483648, %v1246_v14  ;;  %v1141_v17 = vld [vmem:[%s3241_s15 + $0x188] sm:$0xff] }
 0x5b0   :  { %vm1252_vm12 = vcmp.eq.f32.partialorder %v1246_v14, 0.0 }
 0x5b1   :  { %2001 = vrsqrt.f32 %v1247_v18  ;;  %vm1257_vm11 = vcmp.eq.f32.partialorder %v1247_v18, inf  ;;  %v1260_v46 = vand.u32 2147483648, %v1247_v18  ;;  %vm1259_vm13 = vcmp.eq.f32.partialorder %v1247_v18, 0.0 }
 0x5b8   :  { %v1809_v20 = vpop.f32.mrb[44].mxu0 }
 0x5b9   :  { %v2000_v21 = vpop.eup %1999  ;;  %v1810_v23 = vpop.f32.mrb[45].mxu0 }
 0x5ba   :  { %v1249_v25 = vmul.f32 %v2000_v21, %v1246_v14  ;;  %v3008_v26 = vadd.f32 %v1810_v23, %v1809_v20  ;;  %v1812_v24 = vpop.f32.mrb[46].mxu0  ;;  %v1147_v20 = vld [vmem:[%s3244_s18] sm:$0xff]  ;;  %v1148_v21 = vld [vmem:[%s3244_s18 + $0x8] sm:$0xff] }
 0x5bb   :  { %v2002_v27 = vpop.eup %2001  ;;  %v1813_v28 = vpop.f32.mrb[47].mxu0  ;;  %v1505_v23 = vpack.c.bf16 %v1148_v21, %v1147_v20 }
 0x5bc   :  { %v1256_v29 = vmul.f32 %v2002_v27, %v1247_v18  ;;  %v3010_v30 = vadd.f32 %v1813_v28, %v1812_v24  ;;  %v1251_v31 = vsel %vm1250_vm10, %v1246_v14, %v1249_v25  ;;  %v1140_v14 = vld [vmem:[%s3241_s15 + $0x180] sm:$0xff]  ;;  %v1149_v25 = vld [vmem:[%s3244_s18 + $0x10] sm:$0xff]  ;;  %v1158_v27 = vld [vmem:[%s3245_s19 + $0x38] sm:$0xff] }
 0x5bd   :  { %v1254_v37 = vsel %vm1252_vm12, %v1253_v35, %v1251_v31  ;;  %v1160_v31 = vld [vmem:[%s3245_s19 + $0x48] sm:$0xff]  ;;  %v1162_v35 = vld [vmem:[%s3245_s19 + $0x58] sm:$0xff] }
 0x5be   :  { %v1258_v36 = vsel %vm1257_vm11, %v1247_v18, %v1256_v29  ;;  %v1290_v18 = vpack.c.bf16 %v1141_v17, %v1140_v14  ;;  %v1159_v29 = vld [vmem:[%s3245_s19 + $0x40] sm:$0xff] }
 0x5bf   :  { %v1261_v41 = vsel %vm1259_vm13, %v1260_v46, %v1258_v36  ;;  %v1436_v33 = vpack.c.bf16 %v1160_v31, %v1159_v29  ;;  %v1437_v46 = vpack.c.bf16 %v1162_v35, %v1161_v34  ;;  %v1163_v36 = vld [vmem:[%s3245_s19 + $0x60] sm:$0xf] }
 0x5c0   :  { %v1291_v47 = vpack.c.bf16 %v1261_v41, %v1254_v37  ;;  %v1438_v37 = vpack.c.bf16 %v1163_v36, %v1163_v36 }
 0x5c2   :  { %1927 = vmatmul.mubr.msk.bf16.vlgmr.msra.gmra.mrb[24].mxu1 %vm652_vm8, %v1291_v47  ;;  %v1449_v41 = vsel %vm745_vm9, %v1438_v37, 0 }
 0x5c3   :  { %1383 = vmatpush1.bf16.msra.mxu1 %v1282_v43  ;;  %1721 = vmatprep.mubr.msk.bf16.mxu1 %vm374_vm3, %v2811_v44  ;;  %v1131_v44 = vld [vmem:[%s3241_s15 + $0x138] sm:$0xff] }
 0x5c4   :  { %1384 = vmatprep.subr.bf16.mxu1 %v2021_v5  ;;  %v1285_v52 = vpack.c.bf16 %v1131_v44, %v1130_v39 }
 0x5c7   :  { %1385 = vmatpush1.bf16.msra.mxu1 %v1283_v54 }
 0x5c8   :  { %1386 = vmatprep.subr.bf16.mxu1 %v2021_v5 }
 0x5cb   :  { %1387 = vmatpush1.bf16.msra.mxu1 %v1284_v61 }
 0x5cc   :  { %1388 = vmatprep.subr.bf16.mxu1 %v2021_v5 }
 0x5cf   :  { %1389 = vmatpush1.bf16.msra.mxu1 %v1285_v52 }
 0x5d0   :  { %1390 = vmatprep.subr.bf16.mxu1 %v2021_v5 }
 0x5d3   :  { %1391 = vmatpush1.bf16.msra.mxu1 %v1286_v48 }
 0x5d4   :  { %1392 = vmatprep.subr.bf16.mxu1 %v2021_v5 }
 0x5d7   :  { %1393 = vmatpush1.bf16.msra.mxu1 %v1287_v7 }
 0x5d8   :  { %1394 = vmatprep.subr.bf16.mxu1 %v2021_v5 }
 0x5db   :  { %1395 = vmatpush1.bf16.msra.mxu1 %v1288_v9 }
 0x5dc   :  { %1396 = vmatprep.subr.bf16.mxu1 %v2021_v5 }
 0x5df   :  { %1397 = vmatpush1.bf16.msra.mxu1 %v1289_v13 }
 0x5e0   :  { %1398 = vmatprep.subr.bf16.mxu1 %v2021_v5  ;;  %v1150_v5 = vld [vmem:[%s3244_s18 + $0x18] sm:$0xff] }
 0x5e1   :  { %v1506_v24 = vpack.c.bf16 %v1150_v5, %v1149_v25 }
 0x5e3   :  { %1399 = vmatpush1.bf16.msra.mxu1 %v1290_v18 }
 0x5e4   :  { %1948 = vmatprep.subr.bf16.mxu1 %v2019_v0 }
 0x5e6   :  { %1415 = vmatmul.mubr.bf16.vlgmr.msra.gmra.mrb[28].mxu1 %v2802_v38  ;;  %v1151_v38 = vld [vmem:[%s3245_s19] sm:$0xff] }
 0x5e7   :  { %1949 = vmatpush3.bf16.msra.mxu1 %v1505_v23  ;;  %1952 = vmatprep.mubr.msk.bf16.mxu1 %vm2020_vm0, %v2019_v0 }
 0x5e8   :  { %1950 = vmatprep.subr.bf16.mxu1 %v2019_v0 }
 0x5eb   :  { %1951 = vmatpush3.bf16.msra.mxu1 %v1506_v24 }
 0x5ee   :  { %1953 = vmatmul.mubr.msk.bf16.vlgmr.msra.gmra.mrb[32].mxu1 %vm652_vm8, %v1502_v32  ;;  %v1432_v32 = vpack.c.bf16 %v1152_v42, %v1151_v38 }
 0x5ef   :  { %1956 = vmatprep.mubr.msk.bf16.mxu1 %vm2020_vm0, %v2019_v0 }
 0x5f0   :  { %1931 = vmatpush3.bf16.msra.mxu0 %v1432_v32 }
 0x5f1   :  { %1932 = vmatprep.subr.bf16.mxu0 %v2019_v0 }
 0x5f4   :  { %1933 = vmatpush3.bf16.msra.mxu0 %v1433_v2  ;;  %v1723_v2 = vld [vmem:[%s3247_s20] ss:$0 sm:$0xff] }
 0x5f5   :  { %1934 = vmatprep.subr.bf16.mxu0 %v2019_v0 }
 0x5f6   :  { %1957 = vmatmul.mubr.msk.bf16.gmra.mrb[36].mxu1 %vm652_vm8, %v1503_v6  ;;  %v1155_v6 = vld [vmem:[%s3245_s19 + $0x20] sm:$0xff] }
 0x5f7   :  { %1960 = vmatprep.mubr.msk.bf16.mxu1 %vm2020_vm0, %v2019_v0  ;;  %v1434_v16 = vpack.c.bf16 %v1156_v53, %v1155_v6 }
 0x5f9   :  { %1935 = vmatpush3.bf16.msra.mxu0 %v1434_v16 }
 0x5fa   :  { %1936 = vmatprep.subr.bf16.mxu0 %v2019_v0 }
 0x5fe   :  { %1961 = vmatmul.mubr.msk.bf16.gmra.mrb[40].mxu1 %vm652_vm8, %v1504_v12  ;;  %v1157_v12 = vld [vmem:[%s3245_s19 + $0x30] sm:$0xff] }
 0x5ff   :  { %v1435_v28 = vpack.c.bf16 %v1158_v27, %v1157_v12 }
 0x601   :  { %1937 = vmatpush3.bf16.msra.mxu0 %v1435_v28 }
 0x602   :  { %1938 = vmatprep.subr.bf16.mxu0 %v2019_v0 }
 0x605   :  { %1939 = vmatpush3.bf16.msra.mxu0 %v1436_v33 }
 0x606   :  { %1940 = vmatprep.subr.bf16.mxu0 %v2019_v0 }
 0x609   :  { %1941 = vmatpush3.bf16.msra.mxu0 %v1437_v46 }
 0x60a   :  { %1942 = vmatprep.subr.bf16.mxu0 %v2019_v0 }
 0x60d   :  { %1943 = vmatpush3.bf16.msra.mxu0 %v1449_v41 }
 0x695   :  { %v1331_v43 = vpop.f32.mrb[24].mxu1 }
 0x696   :  { %v1376_v47 = vadd.f32 %v3008_v26, %v1331_v43  ;;  %v1928_v49 = vpop.f32.mrb[25].mxu1 }
 0x697   :  { %v1334_v51 = vpop.f32.mrb[26].mxu1 }
 0x698   :  { %v1379_v54 = vadd.f32 %v3010_v30, %v1334_v51  ;;  %v1929_v50 = vpop.f32.mrb[27].mxu1 }
 0x6b9   :  { %v1416_v61 = vpop.f32.mrb[28].mxu1 }
 0x6ba   :  { %v1417_v39 = vadd.f32 %v1416_v61, %v1376_v47  ;;  %v1418_v44 = vpop.f32.mrb[29].mxu1 }
 0x6bb   :  { %v1419_v0 = vpop.f32.mrb[30].mxu1 }
 0x6bc   :  { %v1429_v52 = vadd.f32 %v1722_v58, %v1417_v39  ;;  %v1420_v40 = vadd.f32 %v1419_v0, %v1379_v54  ;;  %v1421_v10 = vpop.f32.mrb[31].mxu1 }
 0x6be   :  { %v1430_v48 = vadd.f32 %v1722_v58, %v1420_v40  ;;  %v1579_v55 = vadd.f32 %v1429_v52, %v2612_v15 }
 0x6c0   :  { %v1431_v26 = vpack.c.bf16 %v1430_v48, %v1429_v52  ;;  %v1589_v4 = vsel %vm318_vm2, %v1579_v55, 0.0  ;;  %v1580_v30 = vadd.f32 %v1430_v48, %v2598_v8 }
 0x6c1   :  { %v1550_v7 = vpop.f32.mrb[32].mxu1  ;;  %1590 = vadd.xlane.f32.xlu0 %v1589_v4 }
 0x6c2   :  { %1945 = vmatmul.mubr.msk.bf16.vlgmr.msra.gmra.mrb[48].mxu0 %vm318_vm2, %v1431_v26  ;;  %v1954_v11 = vpop.f32.mrb[33].mxu1  ;;  %v1592_v3 = vsel %vm318_vm2, %v1580_v30, 0.0 }
 0x6c3   :  { %v1553_v9 = vpop.f32.mrb[34].mxu1  ;;  %1593 = vadd.xlane.f32.xlu1 %v1592_v3 }
 0x6c4   :  { %v1955_v19 = vpop.f32.mrb[35].mxu1 }
 0x6c9   :  { %v1558_v22 = vpop.f32.mrb[36].mxu1 }
 0x6ca   :  { %v1958_v13 = vpop.f32.mrb[37].mxu1 }
 0x6cb   :  { %v1561_v14 = vpop.f32.mrb[38].mxu1 }
 0x6cc   :  { %v1959_v17 = vpop.f32.mrb[39].mxu1 }
 0x6d1   :  { %v1566_v15 = vpop.f32.mrb[40].mxu1 }
 0x6d2   :  { %v1962_v18 = vpop.f32.mrb[41].mxu1 }
 0x6d3   :  { %v1569_v20 = vpop.f32.mrb[42].mxu1 }
 0x6d4   :  { %v1963_v21 = vpop.f32.mrb[43].mxu1 }
 0x6d5   :  { %v1729_v21 = vld [vmem:[%s3249_s22] ss:$0 sm:$0xff] }
 0x74e   :  { %v1591_v23 = vpop.xlane.xlu0 %1590 }
 0x74f   :  { %v1595_v8 = vmul.f32 0.01, %v1591_v23 }
 0x750   :  { %v1594_v25 = vpop.xlane.xlu1 %1593 }
 0x751   :  { %v3166_v5 = vsub.f32 %v1579_v55, %v1595_v8  ;;  %v1596_v24 = vmul.f32 0.01, %v1594_v25 }
 0x753   :  { %v3168_v38 = vsub.f32 %v1580_v30, %v1596_v24  ;;  %v1599_v42 = vmul.f32 %v3166_v5, %v3166_v5 }
 0x755   :  { %v1601_v1 = vsel %vm318_vm2, %v1599_v42, 0.0  ;;  %v1600_v32 = vmul.f32 %v3168_v38, %v3168_v38 }
 0x756   :  { %1602 = vadd.xlane.f32.xlu0 %v1601_v1 }
 0x757   :  { %v1604_v45 = vsel %vm318_vm2, %v1600_v32, 0.0 }
 0x758   :  { %1605 = vadd.xlane.f32.xlu1 %v1604_v45 }
 0x795   :  { %v1485_v6 = vpop.f32.mrb[48].mxu0 }
 0x796   :  { %v1486_v53 = vadd.f32 %v1723_v2, %v1485_v6  ;;  %v1946_v16 = vpop.f32.mrb[49].mxu0 }
 0x797   :  { %v1488_v12 = vpop.f32.mrb[50].mxu0 }
 0x798   :  { %v1492_v27 = vsub.f32 0.0, %v1486_v53  ;;  %v1489_v28 = vadd.f32 %v1723_v2, %v1488_v12  ;;  %v1947_v29 = vpop.f32.mrb[51].mxu0 }
 0x79a   :  { %v1494_v31 = vmul.f32 1.442695, %v1492_v27  ;;  %v1493_v33 = vsub.f32 0.0, %v1489_v28 }
 0x79c   :  { %2003 = vpow2.f32 %v1494_v31  ;;  %v1496_v34 = vmul.f32 1.442695, %v1493_v33 }
 0x79e   :  { %2005 = vpow2.f32 %v1496_v34 }
 0x7a6   :  { %v2004_v35 = vpop.eup %2003 }
 0x7a7   :  { %v1498_v46 = vadd.f32 1.0, %v2004_v35 }
 0x7a8   :  { %v2006_v36 = vpop.eup %2005 }
 0x7a9   :  { %2007 = vrcp.f32 %v1498_v46  ;;  %v1499_v37 = vadd.f32 1.0, %v2006_v36 }
 0x7ab   :  { %2009 = vrcp.f32 %v1499_v37 }
 0x7b3   :  { %v2008_v41 = vpop.eup %2007 }
 0x7b4   :  { %v1573_v43 = vmul.f32 %v2008_v41, %v1550_v7  ;;  %v1575_v47 = vmul.f32 %v2008_v41, %v1558_v22  ;;  %v1577_v49 = vmul.f32 %v2008_v41, %v1566_v15  ;;  %v1728_v15 = vld [vmem:[%s3248_s21] ss:$0 sm:$0xff] }
 0x7b5   :  { %v2010_v51 = vpop.eup %2009 }
 0x7b6   :  { %v1581_v54 = vadd.f32 %v1573_v43, %v2324_v56  ;;  %v1583_v50 = vadd.f32 %v1575_v47, %v2335_v60  ;;  %v1585_v58 = vadd.f32 %v1577_v49, %v2344_v63  ;;  %v1574_v61 = vmul.f32 %v2010_v51, %v1553_v9 }
 0x7b7   :  { %v1576_v39 = vmul.f32 %v2010_v51, %v1561_v14  ;;  %v1578_v44 = vmul.f32 %v2010_v51, %v1569_v20 }
 0x7b8   :  { %v1631_v0 = vmul.f32 %v1581_v54, %v1581_v54  ;;  %v1633_v52 = vmul.f32 %v1583_v50, %v1583_v50  ;;  %v1582_v40 = vadd.f32 %v1574_v61, %v2326_v57  ;;  %v1637_v26 = vmul.f32 %v1585_v58, %v1585_v58 }
 0x7b9   :  { %v1584_v10 = vadd.f32 %v1576_v39, %v2333_v59  ;;  %v1586_v48 = vadd.f32 %v1578_v44, %v2342_v62 }
 0x7ba   :  { %v1635_v55 = vadd.f32 %v1633_v52, %v1631_v0  ;;  %v1632_v4 = vmul.f32 %v1582_v40, %v1582_v40 }
 0x7bb   :  { %v1634_v30 = vmul.f32 %v1584_v10, %v1584_v10  ;;  %v1638_v60 = vmul.f32 %v1586_v48, %v1586_v48 }
 0x7bc   :  { %v1639_v56 = vadd.f32 %v1637_v26, %v1635_v55 }
 0x7bd   :  { %v1636_v7 = vadd.f32 %v1634_v30, %v1632_v4 }
 0x7be   :  { %v1641_v11 = vmax.f32 %v1639_v56, 1e-08 }
 0x7bf   :  { %v1640_v63 = vadd.f32 %v1638_v60, %v1636_v7 }
 0x7c0   :  { %v1643_v3 = vsel %vm374_vm3, %v1641_v11, 0.0 }
 0x7c1   :  { %1644 = vadd.xlane.f32.xlu0 %v1643_v3  ;;  %v1642_v9 = vmax.f32 %v1640_v63, 1e-08 }
 0x7c3   :  { %v1646_v19 = vsel %vm374_vm3, %v1642_v9, 0.0 }
 0x7c4   :  { %1647 = vadd.xlane.f32.xlu1 %v1646_v19 }
 0x7e3   :  { %v1603_v57 = vpop.xlane.xlu0 %1602 }
 0x7e4   :  { %v1607_v59 = vmul.f32 0.01, %v1603_v57 }
 0x7e5   :  { %v1606_v22 = vpop.xlane.xlu1 %1605 }
 0x7e6   :  { %v1609_v62 = vadd.f32 1e-05, %v1607_v59  ;;  %v1608_v13 = vmul.f32 0.01, %v1606_v22 }
 0x7e8   :  { %2011 = vrsqrt.f32 %v1609_v62  ;;  %v1610_v14 = vadd.f32 1e-05, %v1608_v13 }
 0x7ea   :  { %2013 = vrsqrt.f32 %v1610_v14 }
 0x7f2   :  { %v2012_v17 = vpop.eup %2011 }
 0x7f3   :  { %v1613_v18 = vmul.f32 %v2012_v17, %v3166_v5 }
 0x7f4   :  { %v2014_v20 = vpop.eup %2013 }
 0x7f5   :  { %v1621_v23 = vmul.f32 %v1728_v15, %v1613_v18  ;;  %v1614_v8 = vmul.f32 %v2014_v20, %v3168_v38 }
 0x7f7   :  { %v1629_v25 = vadd.f32 %v1729_v21, %v1621_v23  ;;  %v1622_v24 = vmul.f32 %v1728_v15, %v1614_v8 }
 0x7f9   :  { %1659 = vst.msk [vmem:[%s3250_s23] sm:$0xff] %vm318_vm2, %v1629_v25  ;;  %v1630_v42 = vadd.f32 %v1729_v21, %v1622_v24 }
 0x7fb   :  { %1660 = vst.msk [vmem:[%s3250_s23 + $0x8] sm:$0xff] %vm318_vm2, %v1630_v42 }
 0x84e   :  { %v1645_v5 = vpop.xlane.xlu0 %1644 }
 0x84f   :  { %v1649_v1 = vmul.f32 0.0625, %v1645_v5 }
 0x851   :  { %2015 = vrsqrt.f32 %v1649_v1  ;;  %v1648_v32 = vpop.xlane.xlu1 %1647 }
 0x852   :  { %v1650_v45 = vmul.f32 0.0625, %v1648_v32 }
 0x854   :  { %2017 = vrsqrt.f32 %v1650_v45 }
 0x85b   :  { %v2016_v38 = vpop.eup %2015 }
 0x85c   :  { %v1653_v2 = vmul.f32 %v2016_v38, %v1581_v54  ;;  %v1655_v6 = vmul.f32 %v2016_v38, %v1583_v50  ;;  %v1657_v53 = vmul.f32 %v2016_v38, %v1585_v58 }
 0x85e   :  { %v2018_v16 = vpop.eup %2017  ;;  %1661 = vst.msk [vmem:[%s3251_s24] sm:$0xff] %vm374_vm3, %v1653_v2  ;;  %1730 = vst.msk [vmem:[%s3251_s24 + $0x10] sm:$0xff] %vm374_vm3, %v1655_v6 }
 0x85f   :  { %1732 = vst.msk [vmem:[%s3251_s24 + $0x20] sm:$0xff] %vm374_vm3, %v1657_v53  ;;  %v1654_v12 = vmul.f32 %v2018_v16, %v1582_v40  ;;  %v1656_v27 = vmul.f32 %v2018_v16, %v1584_v10  ;;  %v1658_v28 = vmul.f32 %v2018_v16, %v1586_v48 }
 0x861   :  { %1662 = vst.msk [vmem:[%s3251_s24 + $0x8] sm:$0xff] %vm374_vm3, %v1654_v12  ;;  %1731 = vst.msk [vmem:[%s3251_s24 + $0x18] sm:$0xff] %vm374_vm3, %v1656_v27 }
 0x862   :  { %1733 = vst.msk [vmem:[%s3251_s24 + $0x28] sm:$0xff] %vm374_vm3, %v1658_v28 }

</bundles_post_ra>
